<compile_context>
chip_gen: v5e
topology: v5e:2x2
jax: 0.10.0
libtpu: 0.0.40
codegen_flags: <defaults>
</compile_context>

<pallas_src>
import functools

import jax
import jax.numpy as jnp
from jax.experimental import pallas as pl
from jax.experimental.pallas import tpu as pltpu

DTYPE = jnp.float32


def _dcsnn_kernel(x_ref, *refs, n_blocks, eye_blocks):
    """refs = per-block [Wa, ba, Wb, bb, (eye if block in eye_blocks)], then Wout, bout, out_ref.

    All tensors are in transposed orientation: weights are (out, in), biases
    (out, 1), activations (features, batch_tile).
    """
    out_ref = refs[-1]
    params = refs[:-1]

    x = x_ref[...]                                   # (d_feat, batch_tile)
    idx = 0
    for i in range(n_blocks):
        Wa = params[idx][...]
        ba = params[idx + 1][...]
        Wb = params[idx + 2][...]
        bb = params[idx + 3][...]
        idx += 4

        h = jnp.sin(jnp.dot(Wa, x, preferred_element_type=jnp.float32) + ba)
        h = jnp.sin(jnp.dot(Wb, h, preferred_element_type=jnp.float32) + bb)

        d_in, d_out = x.shape[0], h.shape[0]
        if i in eye_blocks:
            # Rare growing-width mid-network case: keep the eye residual on MXU.
            eye = params[idx][...]
            idx += 1
            x = h + jnp.dot(eye, x, preferred_element_type=jnp.float32)
        elif d_out == d_in:
            x = h + x                                # eye(d,d) residual == add
        else:
            x = h + x[:d_out, :]                     # eye truncates columns

    Wout = params[idx][...]
    bout = params[idx + 1][...]
    out_ref[...] = (jnp.dot(Wout, x, preferred_element_type=jnp.float32)
                    + bout).astype(out_ref.dtype)


def init_params(key, layers, dtype=DTYPE):
    """Deterministic init mimicking torch.nn.Linear default: U(-1/sqrt(fan_in), +)."""
    layers_hid_num = len(layers) - 2
    dims = []
    for i in range(layers_hid_num):
        dims.append((layers[i], layers[i + 1]))
        dims.append((layers[i + 1], layers[i + 1]))
    dims.append((layers[-2], layers[-1]))

    params = []
    for fan_in, fan_out in dims:
        key, kw, kb = jax.random.split(key, 3)
        bound = 1.0 / (fan_in ** 0.5)
        W = jax.random.uniform(kw, (fan_in, fan_out), dtype, -bound, bound)  # (in, out)
        b = jax.random.uniform(kb, (1, fan_out), dtype, -bound, bound)
        params.append((W, b))
    return params


def dcsnn_forward(x, params, layers, *, batch_tile=256):
    N, d0 = x.shape
    assert d0 == layers[0]
    nhid = len(layers) - 2
    out_dim = layers[-1]
    dtype = x.dtype

    # ---- transposed, lane-dense orientation: (features, batch) ----
    x_t = x.T                                         # (d0, N)

    # cdiv grid with zero-padded ragged last tile (padded rows sliced off at the end).
    n_tiles = pl.cdiv(N, batch_tile)
    n_pad = n_tiles * batch_tile
    if n_pad != N:
        x_t = jnp.pad(x_t, ((0, 0), (0, n_pad - N)))

    # Fold block 0's eye(d0, d1) zero-pad residual into the wrapper: zero-pad the
    # input features to layers[1] rows and the first weight with zero columns.
    Wa0_t = params[0][0].T                            # (d1, d0)
    d_feat = d0
    if layers[1] > d0:
        d_feat = layers[1]
        x_t = jnp.pad(x_t, ((0, d_feat - d0), (0, 0)))
        Wa0_t = jnp.pad(Wa0_t, ((0, 0), (0, d_feat - d0)))

    # Flatten kernel inputs: per block (Wa, ba, Wb, bb[, eye]), then (Wout, bout).
    flat_inputs = []
    eye_blocks = []
    cur = d_feat                                      # feature rows entering block i
    for i in range(nhid):
        if i == 0:
            Wa_t, ba = Wa0_t, params[0][1]
        else:
            Wa, ba = params[2 * i]
            Wa_t = Wa.T
        Wb, bb = params[2 * i + 1]
        flat_inputs += [Wa_t, ba.reshape(-1, 1), Wb.T, bb.reshape(-1, 1)]
        d_out = layers[i + 1]
        if d_out > cur:
            eye_blocks.append(i)
            flat_inputs.append(jnp.eye(d_out, cur, dtype=dtype))
        cur = d_out
    Wout, bout = params[-1]
    flat_inputs += [Wout.T, bout.reshape(-1, 1)]

    grid = (n_tiles,)
    in_specs = [pl.BlockSpec((d_feat, batch_tile), lambda i: (0, i))]
    in_specs += [pl.BlockSpec(p.shape, lambda i: (0, 0)) for p in flat_inputs]
    out_specs = pl.BlockSpec((out_dim, batch_tile), lambda i: (0, i))

    kernel = functools.partial(_dcsnn_kernel, n_blocks=nhid,
                               eye_blocks=tuple(eye_blocks))

    out_t = pl.pallas_call(
        kernel,
        out_shape=jax.ShapeDtypeStruct((out_dim, n_pad), dtype),
        grid=grid,
        in_specs=in_specs,
        out_specs=out_specs,
        compiler_params=pltpu.CompilerParams(dimension_semantics=("parallel",)),
    )(x_t, *flat_inputs)

    return out_t[:, :N].T                             # back to (N, out_dim)


def dcsnn_reference(x, params, layers):
    """Pure-JAX reference matching the PyTorch forward."""
    layers_hid_num = len(layers) - 2
    for i in range(layers_hid_num):
        Wa, ba = params[2 * i]
        Wb, bb = params[2 * i + 1]
        h = jnp.sin(x @ Wa + ba)
        h = jnp.sin(h @ Wb + bb)
        temp = jnp.eye(x.shape[-1], layers[i + 1], dtype=x.dtype)
        x = h + x @ temp
    Wout, bout = params[-1]
    return x @ Wout + bout


if __name__ == "__main__":
    # Typical DCSNN layer spec: small input dim, two hidden layers, scalar output.
    layers = [3, 32, 32, 1]

    key = jax.random.PRNGKey(0)
    key, kx1, kx2 = jax.random.split(key, 3)
    params = init_params(key, layers, dtype=DTYPE)

    # Case 1: N a multiple of the batch tile -> grid of 2 steps (feeds 2 TCs on v7x).
    N1 = 512
    x1 = jax.random.normal(kx1, (N1, layers[0]), dtype=DTYPE)
    out1 = jax.block_until_ready(dcsnn_forward(x1, params, layers, batch_tile=256))
    ref1 = dcsnn_reference(x1, params, layers)
    assert out1.shape == (N1, layers[-1])
    assert jnp.allclose(out1, ref1, atol=1e-5, rtol=1e-5), "mismatch vs JAX reference (N=512)"

    # Case 2: ragged N -> padded last tile, padding sliced off.
    N2 = 200
    x2 = jax.random.normal(kx2, (N2, layers[0]), dtype=DTYPE)
    out2 = jax.block_until_ready(dcsnn_forward(x2, params, layers, batch_tile=256))
    ref2 = dcsnn_reference(x2, params, layers)
    assert out2.shape == (N2, layers[-1])
    assert jnp.allclose(out2, ref2, atol=1e-5, rtol=1e-5), "mismatch vs JAX reference (N=200)"

    print("KERNEL_OK")
</pallas_src>

<mosaic_0001>
module attributes {stable_mosaic.version = 11 : i64} {
  func.func @_dcsnn_kernel(%arg0: i32, %arg1: memref<32x256xf32, #tpu.memory_space<vmem>>, %arg2: memref<32x32xf32, #tpu.memory_space<vmem>>, %arg3: memref<32x1xf32, #tpu.memory_space<vmem>>, %arg4: memref<32x32xf32, #tpu.memory_space<vmem>>, %arg5: memref<32x1xf32, #tpu.memory_space<vmem>>, %arg6: memref<32x32xf32, #tpu.memory_space<vmem>>, %arg7: memref<32x1xf32, #tpu.memory_space<vmem>>, %arg8: memref<32x32xf32, #tpu.memory_space<vmem>>, %arg9: memref<32x1xf32, #tpu.memory_space<vmem>>, %arg10: memref<1x32xf32, #tpu.memory_space<vmem>>, %arg11: memref<1x1xf32, #tpu.memory_space<vmem>>, %arg12: memref<1x256xf32, #tpu.memory_space<vmem>>) attributes {dimension_semantics = [#tpu.dimension_semantics<parallel>], iteration_bounds = array<i64: 2>, scalar_prefetch = 0 : i64, scratch_operands = 0 : i64, tpu.core_type = #tpu.core_type<tc>, window_params = [{transform_indices = @transform_0, window_bounds = array<i64: 32, 256>}, {pipeline_mode = #tpu.pipeline_mode<synchronous>, transform_indices = @transform_1, window_bounds = array<i64: 32, 32>}, {pipeline_mode = #tpu.pipeline_mode<synchronous>, transform_indices = @transform_2, window_bounds = array<i64: 32, 1>}, {pipeline_mode = #tpu.pipeline_mode<synchronous>, transform_indices = @transform_3, window_bounds = array<i64: 32, 32>}, {pipeline_mode = #tpu.pipeline_mode<synchronous>, transform_indices = @transform_4, window_bounds = array<i64: 32, 1>}, {pipeline_mode = #tpu.pipeline_mode<synchronous>, transform_indices = @transform_5, window_bounds = array<i64: 32, 32>}, {pipeline_mode = #tpu.pipeline_mode<synchronous>, transform_indices = @transform_6, window_bounds = array<i64: 32, 1>}, {pipeline_mode = #tpu.pipeline_mode<synchronous>, transform_indices = @transform_7, window_bounds = array<i64: 32, 32>}, {pipeline_mode = #tpu.pipeline_mode<synchronous>, transform_indices = @transform_8, window_bounds = array<i64: 32, 1>}, {pipeline_mode = #tpu.pipeline_mode<synchronous>, transform_indices = @transform_9, window_bounds = array<i64: 1, 32>}, {pipeline_mode = #tpu.pipeline_mode<synchronous>, transform_indices = @transform_10, window_bounds = array<i64: 1, 1>}, {transform_indices = @transform_11, window_bounds = array<i64: 1, 256>}]} {
    %c0 = arith.constant 0 : index
    %c0_0 = arith.constant 0 : index
    %0 = vector.load %arg1[%c0, %c0_0] : memref<32x256xf32, #tpu.memory_space<vmem>>, vector<32x256xf32>
    %c0_1 = arith.constant 0 : index
    %c0_2 = arith.constant 0 : index
    %1 = vector.load %arg2[%c0_1, %c0_2] : memref<32x32xf32, #tpu.memory_space<vmem>>, vector<32x32xf32>
    %c0_3 = arith.constant 0 : index
    %c0_4 = arith.constant 0 : index
    %2 = vector.load %arg3[%c0_3, %c0_4] : memref<32x1xf32, #tpu.memory_space<vmem>>, vector<32x1xf32>
    %c0_5 = arith.constant 0 : index
    %c0_6 = arith.constant 0 : index
    %3 = vector.load %arg4[%c0_5, %c0_6] : memref<32x32xf32, #tpu.memory_space<vmem>>, vector<32x32xf32>
    %c0_7 = arith.constant 0 : index
    %c0_8 = arith.constant 0 : index
    %4 = vector.load %arg5[%c0_7, %c0_8] : memref<32x1xf32, #tpu.memory_space<vmem>>, vector<32x1xf32>
    %cst = arith.constant dense<0.000000e+00> : vector<32x256xf32>
    %5 = tpu.matmul %1, %0, %cst {dimension_numbers = #tpu.dot_dimension_numbers<[1], [0], [0], [1], [0, 0, 1, 1], [], []>} : vector<32x32xf32>, vector<32x256xf32>, vector<32x256xf32> -> vector<32x256xf32>
    %6 = vector.broadcast %2 : vector<32x1xf32> to vector<32x256xf32>
    %7 = arith.addf %5, %6 : vector<32x256xf32>
    %8 = math.sin %7 : vector<32x256xf32>
    %cst_9 = arith.constant dense<0.000000e+00> : vector<32x256xf32>
    %9 = tpu.matmul %3, %8, %cst_9 {dimension_numbers = #tpu.dot_dimension_numbers<[1], [0], [0], [1], [0, 0, 1, 1], [], []>} : vector<32x32xf32>, vector<32x256xf32>, vector<32x256xf32> -> vector<32x256xf32>
    %10 = vector.broadcast %4 : vector<32x1xf32> to vector<32x256xf32>
    %11 = arith.addf %9, %10 : vector<32x256xf32>
    %12 = math.sin %11 : vector<32x256xf32>
    %13 = arith.addf %12, %0 : vector<32x256xf32>
    %c0_10 = arith.constant 0 : index
    %c0_11 = arith.constant 0 : index
    %14 = vector.load %arg6[%c0_10, %c0_11] : memref<32x32xf32, #tpu.memory_space<vmem>>, vector<32x32xf32>
    %c0_12 = arith.constant 0 : index
    %c0_13 = arith.constant 0 : index
    %15 = vector.load %arg7[%c0_12, %c0_13] : memref<32x1xf32, #tpu.memory_space<vmem>>, vector<32x1xf32>
    %c0_14 = arith.constant 0 : index
    %c0_15 = arith.constant 0 : index
    %16 = vector.load %arg8[%c0_14, %c0_15] : memref<32x32xf32, #tpu.memory_space<vmem>>, vector<32x32xf32>
    %c0_16 = arith.constant 0 : index
    %c0_17 = arith.constant 0 : index
    %17 = vector.load %arg9[%c0_16, %c0_17] : memref<32x1xf32, #tpu.memory_space<vmem>>, vector<32x1xf32>
    %cst_18 = arith.constant dense<0.000000e+00> : vector<32x256xf32>
    %18 = tpu.matmul %14, %13, %cst_18 {dimension_numbers = #tpu.dot_dimension_numbers<[1], [0], [0], [1], [0, 0, 1, 1], [], []>} : vector<32x32xf32>, vector<32x256xf32>, vector<32x256xf32> -> vector<32x256xf32>
    %19 = vector.broadcast %15 : vector<32x1xf32> to vector<32x256xf32>
    %20 = arith.addf %18, %19 : vector<32x256xf32>
    %21 = math.sin %20 : vector<32x256xf32>
    %cst_19 = arith.constant dense<0.000000e+00> : vector<32x256xf32>
    %22 = tpu.matmul %16, %21, %cst_19 {dimension_numbers = #tpu.dot_dimension_numbers<[1], [0], [0], [1], [0, 0, 1, 1], [], []>} : vector<32x32xf32>, vector<32x256xf32>, vector<32x256xf32> -> vector<32x256xf32>
    %23 = vector.broadcast %17 : vector<32x1xf32> to vector<32x256xf32>
    %24 = arith.addf %22, %23 : vector<32x256xf32>
    %25 = math.sin %24 : vector<32x256xf32>
    %26 = arith.addf %25, %13 : vector<32x256xf32>
    %c0_20 = arith.constant 0 : index
    %c0_21 = arith.constant 0 : index
    %27 = vector.load %arg10[%c0_20, %c0_21] : memref<1x32xf32, #tpu.memory_space<vmem>>, vector<1x32xf32>
    %c0_22 = arith.constant 0 : index
    %c0_23 = arith.constant 0 : index
    %28 = vector.load %arg11[%c0_22, %c0_23] : memref<1x1xf32, #tpu.memory_space<vmem>>, vector<1x1xf32>
    %cst_24 = arith.constant dense<0.000000e+00> : vector<1x256xf32>
    %29 = tpu.matmul %27, %26, %cst_24 {dimension_numbers = #tpu.dot_dimension_numbers<[1], [0], [0], [1], [0, 0, 1, 1], [], []>} : vector<1x32xf32>, vector<32x256xf32>, vector<1x256xf32> -> vector<1x256xf32>
    %30 = vector.broadcast %28 : vector<1x1xf32> to vector<1x256xf32>
    %31 = arith.addf %29, %30 : vector<1x256xf32>
    %c0_25 = arith.constant 0 : index
    %c0_26 = arith.constant 0 : index
    %32 = vector.load %arg12[%c0_25, %c0_26] : memref<1x256xf32, #tpu.memory_space<vmem>>, vector<1x256xf32>
    tpu.vector_store %arg12[%c0_25, %c0_26], %31 {strides = array<i32>} : memref<1x256xf32, #tpu.memory_space<vmem>>, vector<1x256xf32>,
    return
  }
  func.func @transform_0(%arg0: i32) -> (i32, i32) {
    %c0_i32 = arith.constant 0 : i32
    %c0_i32_0 = arith.constant 0 : i32
    return %c0_i32, %arg0 : i32, i32
  }
  func.func @transform_1(%arg0: i32) -> (i32, i32) {
    %c0_i32 = arith.constant 0 : i32
    %c0_i32_0 = arith.constant 0 : i32
    %c0_i32_1 = arith.constant 0 : i32
    return %c0_i32, %c0_i32_0 : i32, i32
  }
  func.func @transform_2(%arg0: i32) -> (i32, i32) {
    %c0_i32 = arith.constant 0 : i32
    %c0_i32_0 = arith.constant 0 : i32
    %c0_i32_1 = arith.constant 0 : i32
    return %c0_i32, %c0_i32_0 : i32, i32
  }
  func.func @transform_3(%arg0: i32) -> (i32, i32) {
    %c0_i32 = arith.constant 0 : i32
    %c0_i32_0 = arith.constant 0 : i32
    %c0_i32_1 = arith.constant 0 : i32
    return %c0_i32, %c0_i32_0 : i32, i32
  }
  func.func @transform_4(%arg0: i32) -> (i32, i32) {
    %c0_i32 = arith.constant 0 : i32
    %c0_i32_0 = arith.constant 0 : i32
    %c0_i32_1 = arith.constant 0 : i32
    return %c0_i32, %c0_i32_0 : i32, i32
  }
  func.func @transform_5(%arg0: i32) -> (i32, i32) {
    %c0_i32 = arith.constant 0 : i32
    %c0_i32_0 = arith.constant 0 : i32
    %c0_i32_1 = arith.constant 0 : i32
    return %c0_i32, %c0_i32_0 : i32, i32
  }
  func.func @transform_6(%arg0: i32) -> (i32, i32) {
    %c0_i32 = arith.constant 0 : i32
    %c0_i32_0 = arith.constant 0 : i32
    %c0_i32_1 = arith.constant 0 : i32
    return %c0_i32, %c0_i32_0 : i32, i32
  }
  func.func @transform_7(%arg0: i32) -> (i32, i32) {
    %c0_i32 = arith.constant 0 : i32
    %c0_i32_0 = arith.constant 0 : i32
    %c0_i32_1 = arith.constant 0 : i32
    return %c0_i32, %c0_i32_0 : i32, i32
  }
  func.func @transform_8(%arg0: i32) -> (i32, i32) {
    %c0_i32 = arith.constant 0 : i32
    %c0_i32_0 = arith.constant 0 : i32
    %c0_i32_1 = arith.constant 0 : i32
    return %c0_i32, %c0_i32_0 : i32, i32
  }
  func.func @transform_9(%arg0: i32) -> (i32, i32) {
    %c0_i32 = arith.constant 0 : i32
    %c0_i32_0 = arith.constant 0 : i32
    %c0_i32_1 = arith.constant 0 : i32
    return %c0_i32, %c0_i32_0 : i32, i32
  }
  func.func @transform_10(%arg0: i32) -> (i32, i32) {
    %c0_i32 = arith.constant 0 : i32
    %c0_i32_0 = arith.constant 0 : i32
    %c0_i32_1 = arith.constant 0 : i32
    return %c0_i32, %c0_i32_0 : i32, i32
  }
  func.func @transform_11(%arg0: i32) -> (i32, i32) {
    %c0_i32 = arith.constant 0 : i32
    %c0_i32_0 = arith.constant 0 : i32
    return %c0_i32, %arg0 : i32, i32
  }
}

</mosaic_0001>

<bundles_post_ra>
// kernel: tpu_custom_call.1
= control target key start
LH: loop header
LB: loop body
LE: loop exit
PB: predicated region body
PF: predicated region fallthrough
CT: control target
= control target key end

     0   :  { %s11095_s0 = inlined_call_operand.hbm [shape: f32[32,512], index: 0, kind: input, shape index: {}]   ;;  %s11096_s1 = inlined_call_operand.vmem [shape: f32[32,32], index: 1, kind: input, shape index: {}]   ;;  %s11097_s2 = inlined_call_operand.vmem [shape: f32[32,1], index: 2, kind: input, shape index: {}]   ;;  %s11098_s3 = inlined_call_operand.vmem [shape: f32[32,32], index: 3, kind: input, shape index: {}]   ;;  %s11099_s4 = inlined_call_operand.vmem [shape: f32[32,1], index: 4, kind: input, shape index: {}]   ;;  %s11100_s5 = inlined_call_operand.vmem [shape: f32[32,32], index: 5, kind: input, shape index: {}]   ;;  %s11101_s6 = inlined_call_operand.vmem [shape: f32[32,1], index: 6, kind: input, shape index: {}]   ;;  %s11102_s7 = inlined_call_operand.vmem [shape: f32[32,32], index: 7, kind: input, shape index: {}]   ;;  %s11103_s8 = inlined_call_operand.vmem [shape: f32[32,1], index: 8, kind: input, shape index: {}]   ;;  %s11104_s9 = inlined_call_operand.vmem [shape: f32[1,32], index: 9, kind: input, shape index: {}]   ;;  %s11105_s10 = inlined_call_operand.<no memory space> [shape: f32[1,1], index: 10, kind: input, shape index: {}]   ;;  %s11106_s11 = inlined_call_operand.hbm [shape: f32[1,512], index: 11, kind: output, shape index: {}]  }
   0x1   :  { %v16_v0 = vstv %s11105_s10 }
   0x2   :  { %17 = vst [vmem:[#allocation2] sm:$0x1] %v16_v0 }
   0x3   :  { %18 = vsyncpa [#allocation4], 0 }
   0x4   :  { %20 = vsyncpa [#allocation4 + $0x1], 0 }
   0x5   :  { %21 = vsyncpa [#allocation5], 0 }
   0x6   :  { %23 = vsyncpa [#allocation5 + $0x1], 0  ;;  %s6318_s19 = smov 0   ;;  %s6320_s20 = smov 0  }
   0x7   :  { %s6322_s21 = smov 0   ;;  %s6324_s22 = smov 0  }
   0x8 LB: > { %11283 = sst [smem:[#allocation9_spill]] %s6239_s21  ;;  %s6339_s10 = sadd.s32 4294967295, %s6243_s22   ;;  %s6243_s22 = sphi %s6324_s22, %s11667_s22   ;;  %s6239_s21 = sphi %s6322_s21, %s11669_s21   ;;  %s6235_s20 = sphi %s6320_s20, %s11671_s20   ;;  %s6231_s19 = sphi %s6318_s19, %s11670_s19  }
   0x9   : > { %s5936_s23 = sadd.s32 4294967294, %s6243_s22   ;;  %s6343_s24 = sadd.s32 1, %s6243_s22  }
   0xa   : > { %11284 = sst [smem:[#allocation10_spill]] %s6343_s24  ;;  %s36_s25 = sadd.s32 1, %s6239_s21 }
   0xb   : > { %s33_s26 = ssub.s32 %s6243_s22, %s6343_s24  ;;  %p43_p0 = scmp.ne.s32.totalorder %s6239_s21, %s6235_s20 }
   0xc   : > { %p34_p1 = scmp.eq.s32.totalorder %s33_s26, 0  ;;  %p44_p2 = scmp.eq.s32.totalorder %s6243_s22, 0 }
   0xd   : > { %p49_p3 = scmp.ne.s32.totalorder %s6235_s20, %s6231_s19  ;;  %p50_p4 = scmp.eq.s32.totalorder %s6339_s10, 0 }
   0xe   : > { %s6355_s27 = scalar_select %p34_p1, %s6239_s21, %s36_s25  }
   0xf   : > { %p6357_p5 = por %p44_p2, %p43_p0  ;;  %p6361_p6 = por %p50_p4, %p49_p3 }
  0x10   : > { %11285 = sst [smem:[#allocation11_spill]] %s6355_s27  ;;  %p283_p7 = scmp.eq.s32.totalorder %s6339_s10, 1 }
  0x11   : > { %p289_p8 = scmp.eq.s32.totalorder %s5936_s23, 1  ;;  %p5938_p9 = scmp.ge.s32.totalorder %s6243_s22, 2 }
  0x12   : > { %p6092_p10 = scmp.lt.s32.totalorder %s6243_s22, 2  ;;  %p6368_p11 = por %p283_p7, %p43_p0 }
  0x13   : > { %p6372_p12 = por %p289_p8, %p49_p3  ;;  %s339_s13 = sand.u32 1, %s6239_s21  }
  0x14   : > { %s6079_s14 = sshll.u32 %s6243_s22, 4  ;;  %s5939_s15 = sshll.u32 %s339_s13, 6 }
  0x15   : > { %s11289_s12 = scalar_select %p6372_p12, 1, 0 }
  0x16   : > { %s348_s18 = scalar_lea.hbm %s11095_s0, %s6079_s14  ;;  %s343_s26 = scalar_lea.vmem [#allocation3], %s5939_s15 }
  0x17   : > { %11290 = sst [smem:[#allocation12_spill]] %s11289_s12  ;;  %s349_s25 = sshll.u32 %s348_s18, 4  ;;  %s350_s25 = int_to_ptr.hbm [resolvable:$true] %s349_s25 }
  0x18   : > { %s351_s23 = sshll.u32 %s343_s26, 4  ;;  %p6383_p13 = pnand %p6092_p10, %p6357_p5  ;;  %s352_s23 = int_to_ptr.vmem [resolvable:$true] %s351_s23 }
  0x19   : > { %p5942_p0 = scmp.ge.s32.totalorder %s6243_s22, 1  ;;  %s340_s24 = scalar_lea.sflag [#allocation4], %s339_s13 }
  0x1a   : > { %s6147_s21 = sshra.s32 %s350_s25, 4  ;;  %p6151_p2 = pneg %p6383_p13  ;;  %s6148_s21 = int_to_ptr.hbm [resolvable:$true] %s6147_s21 }
  0x1b   : > { %s6149_s12 = scalar_lea.hbm %s6148_s21, 64  ;;  %s6154_s16 = scalar_lea.hbm %s11095_s0, 128 }
  0x1c   : > { %p6150_p1 = scmp.ne.s32.totalorder %s6148_s21, %s6149_s12  ;;  %p6155_p5 = scmp.lt.s32.totalorder %s6148_s21, %s11095_s0 }
  0x1d   : > { %p6156_p7 = scmp.lt.s32.totalorder %s6154_s16, %s6149_s12 }
  0x1e   : > { %p6152_p3 = pnand %p6151_p2, %p6150_p1 }
  0x1f   : > { %p6157_p8 = por %p6156_p7, %p6155_p5 }
  0x20   : > { %p6153_p4 = pneg %p6152_p3 }
  0x22   : > { %p6158_p10 = pnand %p6157_p8, %p6153_p4 }
  0x24   : > { %6161 = shalt.err (!%p6158_p10)
}
  0x25   : > { %s6245_s13 = smov 512   ;;  %s6246_s18 = smov 256  }
  0x26   : > { %s6247_s26 = smov 16   ;;  %p359_p1 = scmp.lt.s32.totalorder %s6243_s22, 3 }
  0x27   : > { %6087 = dma.hbm_to_vmem [thread:$0]  (!%p6383_p13), %s350_s25, 1024, %s352_s23, %s340_s24, %s6245_s13, %s6246_s18, %s6247_s26  }
  0x28   : > { %p360_p2 = pnand %p5942_p0, %p359_p1 }
  0x2a   : > { %363 = sbr.rel (%p360_p2) target bundleno = 2021 (0x7e5), region = 64 }
  0x2f   : > { %s6402_s14 = sand.u32 1, %s6235_s20  }
  0x30   : > { %s5943_s21 = sshll.u32 %s6402_s14, 6  ;;  %s366_s12 = scalar_lea.sflag [#allocation4], %s6402_s14 }
  0x31   : > { %s6406_s15 = scalar_lea.vmem [#allocation3], %s5943_s21 }
  0x32   : > { %6222 = dma.done.wait (%p6361_p6), %s366_s12, 1024  }
  0x33   : > { %6224 = vsyncadd (%p6361_p6), %s366_s12, 4294966272  ;;  %v11112_v1 = vmov 0   ;;  %v426_v2 = vld [vmem:[%s11097_s2 + $0x18] sm:$0xff]  ;;  %v424_v3 = vld [vmem:[%s11097_s2 + $0x8] sm:$0xff]  ;;  %vm11281_vm0 = vcmask 261120   ;;  %s5944_s24 = sshll.u32 %s6402_s14, 1 }
  0x34   : > { %6137 = vset.pattern.permute.xlu1 %v11112_v1  ;;  %6136 = vset.pattern.permute.xlu0 %v11112_v1  ;;  %v417_v4 = vld [vmem:[%s6406_s15 + $0x30] sm:$0xff]  ;;  %v418_v5 = vld [vmem:[%s6406_s15 + $0x38] sm:$0xff]  ;;  %v415_v6 = vld [vmem:[%s6406_s15 + $0x20] sm:$0xff]  ;;  %s6076_s27 = sshll.u32 %s6339_s10, 1  ;;  %s408_s23 = scalar_lea.vmem [#allocation6], %s5944_s24 }
  0x35   : > { %6138 = vset.pattern.permute.xlu2 %v11112_v1  ;;  %452 = vperm.xlu0 %6136, %v426_v2   ;;  %v416_v7 = vld [vmem:[%s6406_s15 + $0x28] sm:$0xff]  ;;  %v413_v8 = vld [vmem:[%s6406_s15 + $0x10] sm:$0xff]  ;;  %v414_v9 = vld [vmem:[%s6406_s15 + $0x18] sm:$0xff]  ;;  %s5863_s16 = sshll.u32 %s408_s23, 4  ;;  %s5851_s10 = scalar_lea.sflag [#allocation5], %s6402_s14  ;;  %s5864_s16 = int_to_ptr.vmem [resolvable:$true] %s5863_s16 }
  0x36   : > { %442 = vperm.xlu1 %6137, %v424_v3   ;;  %480 = vmatpush.msra.mxu0 %v417_v4  ;;  %v411_v10 = vld [vmem:[%s6406_s15] sm:$0xff]  ;;  %v412_v11 = vld [vmem:[%s6406_s15 + $0x8] sm:$0xff]  ;;  %v422_v21 = vld [vmem:[%s11096_s1 + $0x18] sm:$0xff]  ;;  %s6197_s21 = scalar_lea.hbm %s11106_s11, 4 }
  0x37   : > { %509 = vmatpush.msra.mxu1 %v418_v5  ;;  %v419_v12 = vld [vmem:[%s11096_s1] sm:$0xff]  ;;  %v425_v13 = vld [vmem:[%s11097_s2 + $0x10] sm:$0xff]  ;;  %v420_v15 = vld [vmem:[%s11096_s1 + $0x8] sm:$0xff] }
  0x38   : > { %481 = vmatpush.msra.mxu0 %v415_v6  ;;  %v423_v14 = vld [vmem:[%s11097_s2] sm:$0xff]  ;;  %v432_v16 = vld [vmem:[%s11099_s4 + $0x8] sm:$0xff]  ;;  %v421_v18 = vld [vmem:[%s11096_s1 + $0x10] sm:$0xff] }
  0x39   : > { %510 = vmatpush.msra.mxu1 %v416_v7  ;;  %v431_v17 = vld [vmem:[%s11099_s4] sm:$0xff]  ;;  %v3110_v19 = vld [vmem:[%s11101_s6 + $0x10] sm:$0xff]  ;;  %v3109_v20 = vld [vmem:[%s11101_s6 + $0x8] sm:$0xff] }
  0x3a   : > { %482 = vmatpush.msra.mxu0 %v413_v8  ;;  %v3119_v22 = vld [vmem:[%s11103_s8 + $0x18] sm:$0xff]  ;;  %v3118_v23 = vld [vmem:[%s11103_s8 + $0x10] sm:$0xff]  ;;  %v3116_v24 = vld [vmem:[%s11103_s8] sm:$0xff] }
  0x3b   : > { %511 = vmatpush.msra.mxu1 %v414_v9  ;;  %v5789_v25 = vld [vmem:[#allocation2] sm:$0x1] }
  0x3c   : > { %483 = vmatpush.msra.mxu0 %v411_v10 }
  0x3d   : > { %512 = vmatpush.msra.mxu1 %v412_v11  ;;  %5945 = vmatmul.msk.f32.vlgmr.msra.gmra.mxu0 %vm11281_vm0, %v419_v12 }
  0x3e   : > { %5949 = vmatmul.msk.f32.vlgmr.msra.gmra.mxu1 %vm11281_vm0, %v419_v12  ;;  %447 = vperm.xlu0 %6136, %v425_v13  }
  0x3f   : > { %437 = vperm.xlu1 %6137, %v423_v14  }
  0x45   : > { %5946 = vmatmul.msk.f32.gmra.mxu0 %vm11281_vm0, %v420_v15 }
  0x46   : > { %5950 = vmatmul.msk.f32.gmra.mxu1 %vm11281_vm0, %v420_v15  ;;  %1773 = vperm.xlu0 %6136, %v432_v16  }
  0x47   : > { %1768 = vperm.xlu1 %6137, %v431_v17  }
  0x4d   : > { %5947 = vmatmul.msk.f32.gmra.mxu0 %vm11281_vm0, %v421_v18 }
  0x4e   : > { %5951 = vmatmul.msk.f32.gmra.mxu1 %vm11281_vm0, %v421_v18  ;;  %3132 = vperm.xlu0 %6136, %v3110_v19  }
  0x4f   : > { %3127 = vperm.xlu1 %6137, %v3109_v20  }
  0x55   : > { %5948 = vmatmul.msk.f32.gmra.mxu0 %vm11281_vm0, %v422_v21 }
  0x56   : > { %5952 = vmatmul.msk.f32.gmra.mxu1 %vm11281_vm0, %v422_v21  ;;  %4467 = vperm.xlu0 %6136, %v3119_v22   ;;  %v11120_v21 = vmov 2102212464  }
  0x57   : > { %4462 = vperm.xlu1 %6137, %v3118_v23   ;;  %v11136_v23 = vmov 920167782  }
  0x5e   : > { %4452 = vperm.xlu0 %6136, %v3116_v24  }
  0x5f   : > { %5792 = vperm.xlu1 %6137, %v5789_v25  }
  0xa7   : > { %v453_v34 = vpop.permute.xlu0 %452 }
  0xa8   : > { %v443_v26 = vpop.permute.xlu1 %442 }
  0xb0   : > { %v448_v49 = vpop.permute.xlu0 %447 }
  0xb1   : > { %v438_v27 = vpop.permute.xlu1 %437 }
  0xba   : > { %v485_v28 = vpop.f32.mrf.mxu0 }
  0xbb   : > { %v514_v29 = vpop.f32.mrf.mxu1  ;;  %v6476_v30 = vadd.f32 %v485_v28, %v438_v27 }
  0xbc   : > { %v6478_v31 = vadd.f32 %v514_v29, %v438_v27 }
  0xbd   : > { %11292 = vst [vmem:[#allocation13_spill] sm:$0xff] %v6476_v30  ;;  %v529_v32 = vand.u32 2139095040, %v6476_v30 }
  0xbe   : > { %11293 = vst [vmem:[#allocation14_spill] sm:$0xff] %v6478_v31  ;;  %v684_v33 = vand.u32 2139095040, %v6478_v31 }
  0xbf   : > { %v530_v37 = vshrl.u32 %v529_v32, 23 }
  0xc0   : > { %v685_v40 = vshrl.u32 %v684_v33, 23  ;;  %v11126_v33 = vmov 1326507024  }
  0xc1   : > { %v5953_v43 = vadd.s32 4294967169, %v530_v37 }
  0xc2   : > { %v488_v35 = vpop.f32.mrf.mxu0  ;;  %v5956_v44 = vadd.s32 4294967169, %v685_v40 }
  0xc3   : > { %v517_v36 = vpop.f32.mrf.mxu1  ;;  %v6482_v38 = vadd.f32 %v488_v35, %v443_v26  ;;  %v536_v50 = vadd.s32 1, %v5953_v43 }
  0xc4   : > { %v6484_v39 = vadd.f32 %v517_v36, %v443_v26  ;;  %v691_v52 = vadd.s32 1, %v5956_v44 }
  0xc5   : > { %v839_v41 = vand.u32 2139095040, %v6482_v38  ;;  %vm537_vm1 = vcmp.gt.s32.totalorder %v536_v50, 0 }
  0xc6   : > { %11294 = vst [vmem:[#allocation15_spill] sm:$0xff] %v6484_v39  ;;  %v994_v42 = vand.u32 2139095040, %v6484_v39  ;;  %vm692_vm2 = vcmp.gt.s32.totalorder %v691_v52, 0  ;;  %v538_v60 = vsel %vm537_vm1, %v536_v50, 0 }
  0xc7   : > { %v840_v45 = vshrl.u32 %v839_v41, 23  ;;  %v693_v63 = vsel %vm692_vm2, %v691_v52, 0  ;;  %v6494_v4 = vand.u32 31, %v538_v60  ;;  %v6509_v17 = vshrl.u32 %v538_v60, 5 }
  0xc8   : > { %v995_v46 = vshrl.u32 %v994_v42, 23  ;;  %v6496_v7 = vand.u32 31, %v693_v63  ;;  %v6511_v18 = vshrl.u32 %v693_v63, 5 }
  0xc9   : > { %v5959_v51 = vadd.s32 4294967169, %v840_v45  ;;  %11295 = vst [vmem:[#allocation16_spill] sm:$0xff] %v6494_v4  ;;  %v6507_v15 = vsub.s32 32, %v6494_v4  ;;  %v6520_v22 = vshll.u32 %v11120_v21, %v6494_v4  ;;  %v6524_v24 = vshll.u32 %v11136_v23, %v6494_v4 }
  0xca   : > { %v491_v47 = vpop.f32.mrf.mxu0  ;;  %v5962_v53 = vadd.s32 4294967169, %v995_v46  ;;  %11296 = vst [vmem:[#allocation17_spill] sm:$0xff] %v6496_v7  ;;  %v6514_v19 = vsub.s32 32, %v6496_v7  ;;  %v6528_v25 = vshll.u32 %v11120_v21, %v6496_v7  ;;  %v6544_v35 = vshll.u32 %v11136_v23, %v6496_v7 }
  0xcb   : > { %v520_v48 = vpop.f32.mrf.mxu1  ;;  %v6488_v54 = vadd.f32 %v491_v47, %v448_v49  ;;  %v846_v56 = vadd.s32 1, %v5959_v51  ;;  %11297 = vst [vmem:[#allocation18_spill] sm:$0xff] %v6507_v15  ;;  %v6536_v32 = vshrl.u32 %v11136_v23, %v6507_v15 }
  0xcc   : > { %v6490_v55 = vadd.f32 %v520_v48, %v448_v49  ;;  %v1001_v59 = vadd.s32 1, %v5962_v53  ;;  %11298 = vst [vmem:[#allocation19_spill] sm:$0xff] %v6509_v17  ;;  %v6548_v36 = vshrl.u32 %v11136_v23, %v6514_v19 }
  0xcd   : > { %v1149_v57 = vand.u32 2139095040, %v6488_v54  ;;  %vm847_vm3 = vcmp.gt.s32.totalorder %v846_v56, 0  ;;  %11299 = vst [vmem:[#allocation20_spill] sm:$0xff] %v6511_v18  ;;  %v11134_v18 = vmov 2131351028  }
  0xce   : > { %v1304_v58 = vand.u32 2139095040, %v6490_v55  ;;  %v848_v3 = vsel %vm847_vm3, %v846_v56, 0  ;;  %vm1002_vm4 = vcmp.gt.s32.totalorder %v1001_v59, 0  ;;  %11300 = vst [vmem:[#allocation21_spill] sm:$0xff] %v6514_v19 }
  0xcf   : > { %v1150_v61 = vshrl.u32 %v1149_v57, 23  ;;  %v6502_v10 = vand.u32 31, %v848_v3  ;;  %v1003_v11 = vsel %vm1002_vm4, %v1001_v59, 0  ;;  %11302 = vst [vmem:[#allocation23_spill] sm:$0xff] %v6520_v22  ;;  %v6550_v37 = vshrl.u32 %v848_v3, 5 }
  0xd0   : > { %v1305_v62 = vshrl.u32 %v1304_v58, 23  ;;  %v6516_v20 = vand.u32 31, %v1003_v11  ;;  %11303 = vst [vmem:[#allocation24_spill] sm:$0xff] %v6524_v24  ;;  %v6569_v50 = vshrl.u32 %v1003_v11, 5 }
  0xd1   : > { %v5965_v5 = vadd.s32 4294967169, %v1150_v61  ;;  %11304 = vst [vmem:[#allocation25_spill] sm:$0xff] %v6528_v25  ;;  %v6531_v26 = vsub.s32 32, %v6502_v10  ;;  %v862_v40 = vshll.u32 %v11120_v21, %v6502_v10  ;;  %v6559_v42 = vshll.u32 %v11136_v23, %v6502_v10 }
  0xd2   : > { %v494_v0 = vpop.f32.mrf.mxu0  ;;  %v5968_v6 = vadd.s32 4294967169, %v1305_v62  ;;  %11301 = vst [vmem:[#allocation22_spill] sm:$0xff] %v6516_v20  ;;  %v6555_v41 = vsub.s32 32, %v6516_v20  ;;  %v6573_v51 = vshll.u32 %v11120_v21, %v6516_v20  ;;  %v6581_v57 = vshll.u32 %v11136_v23, %v6516_v20 }
  0xd3   : > { %v523_v2 = vpop.f32.mrf.mxu1  ;;  %v6498_v8 = vadd.f32 %v494_v0, %v453_v34  ;;  %v1156_v12 = vadd.s32 1, %v5965_v5  ;;  %11305 = vst [vmem:[#allocation26_spill] sm:$0xff] %v6536_v32  ;;  %v863_v46 = vshrl.u32 %v11136_v23, %v6531_v26  ;;  %v6565_v47 = vshrl.u32 %v11126_v33, %v6531_v26 }
  0xd4   : > { %v6500_v9 = vadd.f32 %v523_v2, %v453_v34  ;;  %v1311_v16 = vadd.s32 1, %v5968_v6  ;;  %v6540_v34 = vshrl.u32 %v11126_v33, %v6507_v15  ;;  %11307 = vst [vmem:[#allocation28_spill] sm:$0xff] %v6544_v35  ;;  %v6577_v56 = vshrl.u32 %v11136_v23, %v6555_v41 }
  0xd5   : > { %v1459_v13 = vand.u32 2139095040, %v6498_v8  ;;  %vm1157_vm5 = vcmp.gt.s32.totalorder %v1156_v12, 0  ;;  %v11111_v29 = vand.u32 2147483647, %v6498_v8  ;;  %11308 = vst [vmem:[#allocation29_spill] sm:$0xff] %v6548_v36  ;;  %v6585_v58 = vshrl.u32 %v11126_v33, %v6555_v41 }
  0xd6   : > { %v1614_v14 = vand.u32 2139095040, %v6500_v9  ;;  %11306 = vst [vmem:[#allocation27_spill] sm:$0xff] %v6540_v34  ;;  %vm1312_vm6 = vcmp.gt.s32.totalorder %v1311_v16, 0  ;;  %v1158_v43 = vsel %vm1157_vm5, %v1156_v12, 0  ;;  %v6591_v62 = vor.u32 %v863_v46, %v862_v40 }
  0xd7   : > { %v1460_v27 = vshrl.u32 %v1459_v13, 23  ;;  %11309 = vst [vmem:[#allocation30_spill] sm:$0xff] %v6555_v41  ;;  %v1313_v48 = vsel %vm1312_vm6, %v1311_v16, 0  ;;  %v1463_v49 = vand.u32 8388607, %v11111_v29  ;;  %v6587_v59 = vand.u32 31, %v1158_v43 }
  0xd8   : > { %v1615_v28 = vshrl.u32 %v1614_v14, 23  ;;  %11310 = vst [vmem:[#allocation31_spill] sm:$0xff] %v6569_v50  ;;  %v6589_v60 = vand.u32 31, %v1313_v48  ;;  %v6595_v3 = vshrl.u32 %v1158_v43, 5  ;;  %v6612_v16 = vshrl.u32 %v1313_v48, 5 }
  0xd9   : > { %v5971_v44 = vadd.s32 4294967169, %v1460_v27  ;;  %11311 = vst [vmem:[#allocation32_spill] sm:$0xff] %v6581_v57  ;;  %v1464_v61 = vor.u32 8388608, %v1463_v49  ;;  %v6602_v12 = vsub.s32 32, %v6587_v59  ;;  %v6606_v13 = vshll.u32 %v11120_v21, %v6587_v59 }
  0xda   : > { %v5974_v45 = vadd.s32 4294967169, %v1615_v28  ;;  %11312 = vst [vmem:[#allocation33_spill] sm:$0xff] %v6585_v58  ;;  %v6610_v14 = vshll.u32 %v11136_v23, %v6587_v59  ;;  %v6615_v27 = vsub.s32 32, %v6589_v60  ;;  %v11132_v29 = vmov 2475754826  }
  0xdb   : > { %v1466_v52 = vadd.s32 1, %v5971_v44  ;;  %v6619_v43 = vshll.u32 %v1464_v61, 8 }
  0xdc   : > { %v1621_v53 = vadd.s32 1, %v5974_v45 }
  0xdd   : > { %vm1467_vm7 = vcmp.gt.s32.totalorder %v1466_v52, 0 }
  0xde   : > { %vm1622_vm8 = vcmp.gt.s32.totalorder %v1621_v53, 0  ;;  %v1468_v0 = vsel %vm1467_vm7, %v1466_v52, 0 }
  0xdf   : > { %v1623_v2 = vsel %vm1622_vm8, %v1621_v53, 0  ;;  %v6597_v5 = vshrl.u32 %v1468_v0, 5  ;;  %v1470_v6 = vand.u32 31, %v1468_v0  ;;  %vm1181_vm8 = vcmp.lt.s32.totalorder %v6595_v3, 4 }
  0xe0   : > { %v6599_v11 = vand.u32 31, %v1623_v2  ;;  %v6617_v40 = vshrl.u32 %v1623_v2, 5  ;;  %v11130_v2 = vmov 683565275  }
  0xe1   : > { %v1471_v28 = vsub.s32 32, %v1470_v6  ;;  %v1482_v44 = vshll.u32 %v11120_v21, %v1470_v6  ;;  %v1485_v45 = vshll.u32 %v11136_v23, %v1470_v6  ;;  %vm1491_vm9 = vcmp.lt.s32.totalorder %v6597_v5, 4 }
  0xe2   : > { %v6624_v46 = vsub.s32 32, %v6599_v11  ;;  %v1637_v53 = vshll.u32 %v11120_v21, %v6599_v11  ;;  %v1473_v63 = vshll.u32 %v11130_v2, %v1470_v6  ;;  %v1476_v31 = vshll.u32 %v11132_v29, %v1470_v6 }
  0xe3   : > { %v1483_v48 = vshrl.u32 %v11136_v23, %v1471_v28  ;;  %v1486_v52 = vshrl.u32 %v11126_v33, %v1471_v28  ;;  %v1474_v1 = vshrl.u32 %v11132_v29, %v1471_v28  ;;  %v1477_v35 = vshrl.u32 %v11134_v18, %v1471_v28 }
  0xe4   : > { %v1638_v61 = vshrl.u32 %v11136_v23, %v6624_v46  ;;  %v1641_v0 = vshrl.u32 %v11126_v33, %v6624_v46  ;;  %v1640_v21 = vshll.u32 %v11136_v23, %v6599_v11  ;;  %v1479_v4 = vshll.u32 %v11134_v18, %v1470_v6 }
  0xe5   : > { %v1484_v49 = vor.u32 %v1483_v48, %v1482_v44  ;;  %v1487_v7 = vor.u32 %v1486_v52, %v1485_v45  ;;  %v1475_v15 = vor.u32 %v1474_v1, %v1473_v63  ;;  %v11313_v33 = vmov 2102212464  }
  0xe6   : > { %v1480_v30 = vshrl.u32 %v11313_v33, %v1471_v28  ;;  %v11314_v45 = vmov 683565275   ;;  %v1478_v52 = vor.u32 %v1477_v35, %v1476_v31  ;;  %v6649_v29 = vor.u32 %v1638_v61, %v1637_v53 }
  0xe7   : > { %v1497_v2 = vsel %vm1491_vm9, %v1484_v49, 920167782  ;;  %v1501_v44 = vsel %vm1491_vm9, %v1487_v7, 1326507024  ;;  %v1472_v48 = vshrl.u32 %v11314_v45, %v1471_v28  ;;  %v1642_v36 = vor.u32 %v1641_v0, %v1640_v21 }
  0xe8   : > { %v1481_v25 = vor.u32 %v1480_v30, %v1479_v4  ;;  %vm1488_vm10 = vcmp.lt.s32.totalorder %v6597_v5, 1  ;;  %vm1489_vm11 = vcmp.lt.s32.totalorder %v6597_v5, 2  ;;  %vm1490_vm12 = vcmp.lt.s32.totalorder %v6597_v5, 3 }
  0xe9   : > { %v1492_v1 = vsel %vm1488_vm10, %v1472_v48, %v1475_v15  ;;  %v1496_v63 = vsel %vm1488_vm10, %v1475_v15, %v1478_v52  ;;  %v1502_v23 = vsel %vm1490_vm12, %v1484_v49, %v1501_v44  ;;  %v1505_v4 = vand.u32 65535, %v6619_v43 }
  0xea   : > { %v1493_v6 = vsel %vm1491_vm9, %v1481_v25, 2102212464  ;;  %v1498_v18 = vsel %vm1490_vm12, %v1481_v25, %v1497_v2  ;;  %v1500_v7 = vsel %vm1488_vm10, %v1478_v52, %v1481_v25  ;;  %v1506_v21 = vshrl.u32 %v6619_v43, 16 }
  0xeb   : > { %v1494_v28 = vsel %vm1490_vm12, %v1478_v52, %v1493_v6  ;;  %v1499_v31 = vsel %vm1489_vm11, %v1496_v63, %v1498_v18  ;;  %v1503_v30 = vsel %vm1489_vm11, %v1500_v7, %v1502_v23  ;;  %v6664_v61 = vshll.u32 %v11313_v33, %v6589_v60 }
  0xec   : > { %v1507_v35 = vand.u32 65535, %v1503_v30  ;;  %v1508_v53 = vshrl.u32 %v1503_v30, 16  ;;  %v1529_v15 = vand.u32 65535, %v1499_v31  ;;  %v11315_v25 = vmov 920167782  }
  0xed   : > { %v6668_v49 = vshll.u32 %v11315_v25, %v6589_v60  ;;  %vm1646_vm13 = vcmp.lt.s32.totalorder %v6617_v40, 4  ;;  %v1530_v18 = vshrl.u32 %v1499_v31, 16  ;;  %v6678_v48 = vsel %vm1489_vm11, %v1492_v1, %v1494_v28 }
  0xee   : > { %v1652_v23 = vsel %vm1646_vm13, %v6649_v29, 920167782  ;;  %v1656_v0 = vsel %vm1646_vm13, %v1642_v36, 1326507024  ;;  %v1510_v2 = vmul.u32 %v1508_v53, %v1505_v4  ;;  %v1511_v44 = vmul.u32 %v1507_v35, %v1506_v21 }
  0xef   : > { %v1532_v52 = vmul.u32 %v1530_v18, %v1505_v4  ;;  %v1533_v63 = vmul.u32 %v1529_v15, %v1506_v21  ;;  %v11316_v6 = vand.u32 2147483647, %v6500_v9  ;;  %v1509_v30 = vmul.u32 %v1507_v35, %v1505_v4 }
  0xf0   : > { %v1512_v31 = vmul.u32 %v1508_v53, %v1506_v21  ;;  %v1513_v34 = vshll.u32 %v1510_v2, 16  ;;  %v1531_v24 = vmul.u32 %v1529_v15, %v1505_v4  ;;  %v1514_v17 = vshrl.u32 %v1510_v2, 16 }
  0xf1   : > { %v1618_v7 = vand.u32 8388607, %v11316_v6  ;;  %v1515_v32 = vshll.u32 %v1511_v44, 16  ;;  %v1534_v22 = vmul.u32 %v1530_v18, %v1506_v21  ;;  %v1535_v41 = vshll.u32 %v1532_v52, 16 }
  0xf2   : > { %vm1517_vm14 = vc.u32 %v1509_v30, %v1513_v34  ;;  %v1519_v36 = vadd.s32 %v1513_v34, %v1509_v30  ;;  %v1536_v20 = vshrl.u32 %v1532_v52, 16  ;;  %v1537_v39 = vshll.u32 %v1533_v63, 16 }
  0xf3   : > { %v11317_v5 = vmov 0   ;;  %vm1539_vm15 = vc.u32 %v1531_v24, %v1535_v41  ;;  %v1541_v28 = vadd.s32 %v1535_v41, %v1531_v24  ;;  %v1628_v50 = vshll.u32 %v11314_v45, %v6599_v11 }
  0xf4   : > { %v1518_v1 = vsel %vm1517_vm14, 1, %v11317_v5  ;;  %vm1521_vm1 = vc.u32 %v1519_v36, %v1515_v32  ;;  %v1540_v35 = vsel %vm1539_vm15, 1, %v11317_v5  ;;  %v11318_v4 = vmov 2475754826  }
  0xf5   : > { %v1520_v6 = vadd.s32 %v1518_v1, %v1512_v31  ;;  %v1629_v53 = vshrl.u32 %v11318_v4, %v6624_v46  ;;  %v1522_v21 = vsel %vm1521_vm1, 1, %v11317_v5  ;;  %v1542_v15 = vadd.s32 %v1540_v35, %v1534_v22 }
  0xf6   : > { %vm1543_vm2 = vc.u32 %v1541_v28, %v1537_v39  ;;  %v1619_v34 = vor.u32 8388608, %v1618_v7  ;;  %v1631_v24 = vshll.u32 %v11318_v4, %v6599_v11  ;;  %v11319_v32 = vmov 2131351028  }
  0xf7   : > { %v1524_v18 = vadd.s32 %v1522_v21, %v1520_v6  ;;  %v1544_v2 = vsel %vm1543_vm2, 1, %v11317_v5  ;;  %v6690_v52 = vor.u32 %v1629_v53, %v1628_v50  ;;  %v1632_v30 = vshrl.u32 %v11319_v32, %v6624_v46 }
  0xf8   : > { %v1546_v41 = vadd.s32 %v1544_v2, %v1542_v15  ;;  %v1634_v31 = vshll.u32 %v11319_v32, %v6599_v11  ;;  %v1635_v22 = vshrl.u32 %v11313_v33, %v6624_v46  ;;  %v1516_v36 = vshrl.u32 %v1511_v44, 16 }
  0xf9   : > { %v1525_v7 = vadd.s32 %v1524_v18, %v1514_v17  ;;  %v1538_v1 = vshrl.u32 %v1533_v63, 16  ;;  %v6700_v6 = vadd.s32 %v1541_v28, %v1537_v39  ;;  %v1633_v35 = vor.u32 %v1632_v30, %v1631_v24 }
  0xfa   : > { %v1547_v50 = vadd.s32 %v1546_v41, %v1536_v20  ;;  %v1636_v53 = vor.u32 %v1635_v22, %v1634_v31  ;;  %vm1643_vm3 = vcmp.lt.s32.totalorder %v6617_v40, 1  ;;  %vm1644_vm4 = vcmp.lt.s32.totalorder %v6617_v40, 2 }
  0xfb   : > { %v6703_v21 = vadd.s32 %v1525_v7, %v1516_v36  ;;  %vm1645_vm5 = vcmp.lt.s32.totalorder %v6617_v40, 3  ;;  %v6707_v11 = vshll.u32 %v1619_v34, 8  ;;  %v1651_v17 = vsel %vm1643_vm3, %v6690_v52, %v1633_v35 }
  0xfc   : > { %v1548_v15 = vadd.s32 %v1547_v50, %v1538_v1  ;;  %v1653_v39 = vsel %vm1645_vm5, %v1636_v53, %v1652_v23  ;;  %v1657_v20 = vsel %vm1645_vm5, %v6649_v29, %v1656_v0  ;;  %v1173_v44 = vshrl.u32 %v11315_v25, %v6602_v12 }
  0xfd   : > { %v11320_v63 = vmov 1326507024   ;;  %vm1551_vm6 = vc.u32 %v6703_v21, %v6700_v6  ;;  %v1654_v34 = vsel %vm1644_vm4, %v1651_v17, %v1653_v39  ;;  %v1549_v23 = vmul.u32 %v6619_v43, %v6678_v48 }
  0xfe   : > { %v6721_v28 = vshrl.u32 %v11320_v63, %v6602_v12  ;;  %v1552_v18 = vadd.s32 1, %v1548_v15  ;;  %v1655_v29 = vsel %vm1643_vm3, %v1633_v35, %v1636_v53  ;;  %v1660_v0 = vand.u32 65535, %v6707_v11 }
  0xff   : > { %v1658_v2 = vsel %vm1644_vm4, %v1655_v29, %v1657_v20  ;;  %v1661_v24 = vshrl.u32 %v6707_v11, 16  ;;  %v1684_v41 = vand.u32 65535, %v1654_v34  ;;  %v1685_v30 = vshrl.u32 %v1654_v34, 16 }
 0x100   : > { %v6737_v31 = vshrl.u32 %v11315_v25, %v6615_v27  ;;  %v1553_v22 = vsel %vm1551_vm6, %v1552_v18, %v1548_v15  ;;  %v1662_v36 = vand.u32 65535, %v1658_v2  ;;  %v1663_v43 = vshrl.u32 %v1658_v2, 16 }
 0x101   : > { %v6741_v48 = vshrl.u32 %v11320_v63, %v6615_v27  ;;  %v1554_v7 = vadd.s32 %v1553_v22, %v1549_v23  ;;  %v1687_v1 = vmul.u32 %v1685_v30, %v1660_v0  ;;  %v1688_v50 = vmul.u32 %v1684_v41, %v1661_v24 }
 0x102   : > { %v6744_v17 = vor.u32 %v1173_v44, %v6606_v13  ;;  %v1627_v39 = vshrl.u32 %v11314_v45, %v6624_v46  ;;  %v1665_v20 = vmul.u32 %v1663_v43, %v1660_v0  ;;  %v1666_v34 = vmul.u32 %v1662_v36, %v1661_v24 }
 0x103   : > { %v1555_v29 = vadd.s32 536870912, %v1554_v7  ;;  %v1648_v15 = vsel %vm1646_vm13, %v1636_v53, 2102212464  ;;  %v1686_v18 = vmul.u32 %v1684_v41, %v1660_v0  ;;  %v1690_v2 = vshll.u32 %v1687_v1, 16 }
 0x104   : > { %v1664_v25 = vmul.u32 %v1662_v36, %v1660_v0  ;;  %v1667_v63 = vmul.u32 %v1663_v43, %v1661_v24  ;;  %v1668_v19 = vshll.u32 %v1665_v20, 16  ;;  %v1689_v23 = vmul.u32 %v1685_v30, %v1661_v24 }
 0x105   : > { %v6750_v22 = vshrl.u32 %v1555_v29, 30  ;;  %v1670_v58 = vshll.u32 %v1666_v34, 16  ;;  %v1692_v13 = vshll.u32 %v1688_v50, 16  ;;  %vm1694_vm7 = vc.u32 %v1686_v18, %v1690_v2 }
 0x106   : > { %vm1672_vm9 = vc.u32 %v1664_v25, %v1668_v19  ;;  %v1674_v46 = vadd.s32 %v1668_v19, %v1664_v25  ;;  %v1695_v44 = vsel %vm1694_vm7, 1, %v11317_v5  ;;  %v1696_v57 = vadd.s32 %v1690_v2, %v1686_v18 }
 0x107   : > { %v1557_v53 = vshll.u32 %v6750_v22, 30  ;;  %v1647_v0 = vsel %vm1643_vm3, %v1627_v39, %v6690_v52  ;;  %v1673_v24 = vsel %vm1672_vm9, 1, %v11317_v5  ;;  %v1697_v41 = vadd.s32 %v1695_v44, %v1689_v23 }
 0x108   : > { %v1649_v30 = vsel %vm1645_vm5, %v1633_v35, %v1648_v15  ;;  %v1675_v36 = vadd.s32 %v1673_v24, %v1667_v63  ;;  %vm1676_vm10 = vc.u32 %v1674_v46, %v1670_v58  ;;  %vm1698_vm11 = vc.u32 %v1696_v57, %v1692_v13 }
 0x109   : > { %v1177_v19 = vor.u32 %v6721_v28, %v6610_v14  ;;  %v1558_v25 = vsub.s32 %v1554_v7, %v1557_v53  ;;  %v1677_v43 = vsel %vm1676_vm10, 1, %v11317_v5  ;;  %v1699_v29 = vsel %vm1698_vm11, 1, %v11317_v5 }
 0x10a   : > { %v1669_v18 = vshrl.u32 %v1665_v20, 16  ;;  %v1679_v2 = vadd.s32 %v1677_v43, %v1675_v36  ;;  %v1691_v52 = vshrl.u32 %v1687_v1, 16  ;;  %v1701_v39 = vadd.s32 %v1699_v29, %v1697_v41 }
 0x10b   : > { %vm1458_vm12 = vcmp.lt.s32.totalorder %v6498_v8, 0  ;;  %vm1559_vm13 = vcmp.lt.s32.totalorder %v1558_v25, 0  ;;  %v1560_v23 = vsub.s32 0, %v1558_v25  ;;  %v1650_v58 = vsel %vm1644_vm4, %v1647_v0, %v1649_v30 }
 0x10c   : > { %v1146_v35 = vand.u32 2147483647, %v6488_v54  ;;  %v1671_v63 = vshrl.u32 %v1666_v34, 16  ;;  %v1680_v14 = vadd.s32 %v1679_v2, %v1669_v18  ;;  %v1693_v28 = vshrl.u32 %v1688_v50, 16 }
 0x10d   : > { %v1702_v7 = vadd.s32 %v1701_v39, %v1691_v52  ;;  %v1332_v15 = vor.u32 %v6741_v48, %v6668_v49  ;;  %v1561_v20 = vsel %vm1559_vm13, %v1560_v23, %v1558_v25  ;;  %v6771_v46 = vadd.s32 %v1696_v57, %v1692_v13 }
 0x10e   : > { %v1163_v1 = vshll.u32 %v11314_v45, %v6587_v59  ;;  %v11321_v44 = vand.u32 2147483647, %v6498_v8  ;;  %v1562_v53 = vclz %v1561_v20  ;;  %v6781_v34 = vadd.s32 %v1680_v14, %v1671_v63 }
 0x10f   : > { %v1703_v50 = vadd.s32 %v1702_v7, %v1693_v28  ;;  %v1164_v0 = vshrl.u32 %v11318_v4, %v6602_v12  ;;  %v1187_v57 = vsel %vm1181_vm8, %v6744_v17, 920167782  ;;  %v1191_v49 = vsel %vm1181_vm8, %v1177_v19, 1326507024 }
 0x110   : > { %vm6777_vm14 = vcmp.le.f32.partialorder %v11321_v44, 0.7853982  ;;  %v1580_v48 = vsub.s32 4, %v6750_v22  ;;  %v1704_v13 = vmul.u32 %v6707_v11, %v1650_v58  ;;  %v5972_v24 = vadd.s32 4294967294, %v1562_v53 }
 0x111   : > { %vm1706_vm15 = vc.u32 %v6781_v34, %v6771_v46  ;;  %v1707_v41 = vadd.s32 1, %v1703_v50  ;;  %v1153_v30 = vand.u32 8388607, %v1146_v35  ;;  %v1166_v36 = vshll.u32 %v11318_v4, %v6587_v59 }
 0x112   : > { %v1167_v43 = vshrl.u32 %v11319_v32, %v6602_v12  ;;  %v1169_v19 = vshll.u32 %v11319_v32, %v6587_v59  ;;  %v1170_v11 = vshrl.u32 %v11313_v33, %v6602_v12  ;;  %v1550_v29 = vadd.s32 %v6700_v6, %v6703_v21 }
 0x113   : > { %vm5973_vm1 = vcmp.lt.s32.totalorder %v5972_v24, 0  ;;  %v1708_v18 = vsel %vm1706_vm15, %v1707_v41, %v1703_v50  ;;  %v1165_v2 = vor.u32 %v1164_v0, %v1163_v1  ;;  %v1581_v28 = vsel %vm1458_vm12, %v1580_v48, %v6750_v22 }
 0x114   : > { %v1565_v52 = vsel %vm5973_vm1, 0, %v5972_v24  ;;  %v1709_v39 = vadd.s32 %v1708_v18, %v1704_v13  ;;  %v1168_v23 = vor.u32 %v1167_v43, %v1166_v36  ;;  %v1171_v58 = vor.u32 %v1170_v11, %v1169_v19 }
 0x115   : > { %v1566_v63 = vsub.s32 32, %v1565_v52  ;;  %v1570_v14 = vsub.s32 4294967266, %v1565_v52  ;;  %v1154_v59 = vor.u32 8388608, %v1153_v30  ;;  %v1567_v7 = vshll.u32 %v1558_v25, %v1565_v52 }
 0x116   : > { %v1710_v20 = vadd.s32 536870912, %v1709_v39  ;;  %vm1178_vm2 = vcmp.lt.s32.totalorder %v6595_v3, 1  ;;  %vm1180_vm3 = vcmp.lt.s32.totalorder %v6595_v3, 3  ;;  %v1583_v53 = vsel %vm6777_vm14, 0, %v1581_v28 }
 0x117   : > { %v1568_v6 = vshrl.u32 %v1550_v29, %v1566_v63  ;;  %v1571_v21 = vadd.s32 127, %v1570_v14  ;;  %v1186_v1 = vsel %vm1178_vm2, %v1165_v2, %v1168_v23  ;;  %v1188_v44 = vsel %vm1180_vm3, %v1171_v58, %v1187_v57 }
 0x118   : > { %v6817_v50 = vshrl.u32 %v1710_v20, 30  ;;  %vm1179_vm4 = vcmp.lt.s32.totalorder %v6595_v3, 2  ;;  %v1190_v22 = vsel %vm1178_vm2, %v1168_v23, %v1171_v58  ;;  %v1192_v48 = vsel %vm1180_vm3, %v6744_v17, %v1191_v49 }
 0x119   : > { %v1569_v25 = vor.u32 %v1568_v6, %v1567_v7  ;;  %v1572_v0 = vshll.u32 %v1571_v21, 23  ;;  %v6825_v13 = vshll.u32 %v1154_v59, 8  ;;  %vm1336_vm5 = vcmp.lt.s32.totalorder %v6612_v16, 4 }
 0x11a   : > { %v1712_v57 = vshll.u32 %v6817_v50, 30  ;;  %v1189_v24 = vsel %vm1179_vm4, %v1186_v1, %v1188_v44  ;;  %v1193_v41 = vsel %vm1179_vm4, %v1190_v22, %v1192_v48  ;;  %v6835_v30 = vor.u32 %v6737_v31, %v6664_v61 }
 0x11b   : > { %v6839_v36 = vsel %vm1336_vm5, %v1332_v15, 1326507024  ;;  %v1573_v17 = vor.u32 4788187, %v1572_v0  ;;  %v1600_v49 = vadd.s32 3, %v1583_v53  ;;  %v1162_v19 = vshrl.u32 %v11314_v45, %v6602_v12 }
 0x11c   : > { %v6841_v43 = vsub.s32 %v1709_v39, %v1712_v57  ;;  %v1197_v11 = vand.u32 65535, %v1193_v41  ;;  %v1198_v29 = vshrl.u32 %v1193_v41, 16  ;;  %v1576_v52 = vcvt.s32.f32 %v1569_v25 }
 0x11d   : > { %v1574_v18 = vand.u32 2147483647, %v1573_v17  ;;  %v1195_v63 = vand.u32 65535, %v6825_v13  ;;  %v1220_v14 = vshrl.u32 %v1189_v24, 16  ;;  %v1196_v31 = vshrl.u32 %v6825_v13, 16 }
 0x11e   : > { %vm1714_vm6 = vcmp.lt.s32.totalorder %v6841_v43, 0  ;;  %v1715_v61 = vsub.s32 0, %v6841_v43  ;;  %v1219_v15 = vand.u32 65535, %v1189_v24  ;;  %v6849_v39 = vand.u32 3, %v1600_v49 }
 0x11f   : > { %v1577_v28 = vmul.f32 %v1576_v52, %v1574_v18  ;;  %v1183_v12 = vsel %vm1181_vm8, %v1171_v58, 2102212464  ;;  %v1200_v59 = vmul.u32 %v1198_v29, %v1195_v63  ;;  %v1705_v7 = vadd.s32 %v6771_v46, %v6781_v34 }
 0x120   : > { %v1716_v20 = vsel %vm1714_vm6, %v1715_v61, %v6841_v43  ;;  %v1199_v6 = vmul.u32 %v1197_v11, %v1195_v63  ;;  %v6856_v21 = vmul.u32 %v1197_v11, %v1196_v31  ;;  %v6858_v22 = vmul.u32 %v1220_v14, %v1195_v63 }
 0x121   : > { %v1578_v1 = vxor.u32 2147483648, %v1577_v28  ;;  %v1717_v44 = vclz %v1716_v20  ;;  %v1203_v53 = vshll.u32 %v1200_v59, 16  ;;  %vm1613_vm7 = vcmp.lt.s32.totalorder %v6500_v9, 0 }
 0x122   : > { %v1735_v25 = vsub.s32 4, %v6817_v50  ;;  %v1182_v58 = vsel %vm1178_vm2, %v1162_v19, %v1165_v2  ;;  %v1184_v46 = vsel %vm1180_vm3, %v1168_v23, %v1183_v12  ;;  %v1221_v34 = vmul.u32 %v1219_v15, %v1195_v63 }
 0x123   : > { %v1579_v0 = vsel %vm1458_vm12, %v1578_v1, %v1577_v28  ;;  %v5975_v48 = vadd.s32 4294967294, %v1717_v44  ;;  %v1202_v57 = vmul.u32 %v1198_v29, %v1196_v31  ;;  %vm1207_vm8 = vc.u32 %v1199_v6, %v1203_v53 }
 0x124   : > { %v6871_v24 = vsel %vm6777_vm14, %v6498_v8, %v1579_v0  ;;  %v1205_v41 = vshll.u32 %v6856_v21, 16  ;;  %v1208_v17 = vsel %vm1207_vm8, 1, %v11317_v5  ;;  %v1209_v2 = vadd.s32 %v1203_v53, %v1199_v6 }
 0x125   : > { %v1584_v23 = vmul.f32 %v6871_v24, %v6871_v24  ;;  %vm5976_vm9 = vcmp.lt.s32.totalorder %v5975_v48, 0  ;;  %v1210_v49 = vadd.s32 %v1208_v17, %v1202_v57  ;;  %v1225_v19 = vshll.u32 %v6858_v22, 16 }
 0x126   : > { %v1720_v11 = vsel %vm5976_vm9, 0, %v5975_v48  ;;  %v1204_v29 = vshrl.u32 %v1200_v59, 16  ;;  %vm1211_vm10 = vc.u32 %v1209_v2, %v1205_v41  ;;  %v1223_v18 = vmul.u32 %v1219_v15, %v1196_v31 }
 0x127   : > { %v1585_v52 = vmul.f32 -0.001358992, %v1584_v23  ;;  %v1592_v40 = vmul.f32 -0.00019511016, %v1584_v23  ;;  %v1721_v63 = vsub.s32 32, %v1720_v11  ;;  %v1224_v61 = vmul.u32 %v1220_v14, %v1196_v31 }
 0x128   : > { %v1722_v28 = vshll.u32 %v6841_v43, %v1720_v11  ;;  %v1725_v12 = vsub.s32 4294967266, %v1720_v11  ;;  %v1212_v20 = vsel %vm1211_vm10, 1, %v11317_v5  ;;  %vm1229_vm11 = vc.u32 %v1221_v34, %v1225_v19 }
 0x129   : > { %v1586_v6 = vadd.f32 0.041655596, %v1585_v52  ;;  %v1593_v1 = vadd.f32 0.008332121, %v1592_v40  ;;  %v1723_v44 = vshrl.u32 %v1705_v7, %v1721_v63  ;;  %v1214_v53 = vadd.s32 %v1212_v20, %v1210_v49 }
 0x12a   : > { %v1726_v0 = vadd.s32 127, %v1725_v12  ;;  %v1227_v57 = vshll.u32 %v1223_v18, 16  ;;  %v1230_v59 = vsel %vm1229_vm11, 1, %v11317_v5  ;;  %v1231_v48 = vadd.s32 %v1225_v19, %v1221_v34 }
 0x12b   : > { %v1587_v15 = vmul.f32 %v1586_v6, %v1584_v23  ;;  %v1594_v41 = vmul.f32 %v1593_v1, %v1584_v23  ;;  %v1724_v17 = vor.u32 %v1723_v44, %v1722_v28  ;;  %v1736_v43 = vsel %vm1613_vm7, %v1735_v25, %v6817_v50 }
 0x12c   : > { %v1727_v14 = vshll.u32 %v1726_v0, 23  ;;  %v1215_v31 = vadd.s32 %v1214_v53, %v1204_v29  ;;  %v1232_v2 = vadd.s32 %v1230_v59, %v1224_v61  ;;  %vm1233_vm12 = vc.u32 %v1231_v48, %v1227_v57 }
 0x12d   : > { %v1588_v11 = vadd.f32 -0.4999988, %v1587_v15  ;;  %v1595_v52 = vadd.f32 -0.16666654, %v1594_v41  ;;  %v11324_v7 = vand.u32 2147483647, %v6500_v9  ;;  %v1185_v34 = vsel %vm1179_vm4, %v1182_v58, %v1184_v46 }
 0x12e   : > { %v1728_v19 = vor.u32 4788187, %v1727_v14  ;;  %v1206_v50 = vshrl.u32 %v6856_v21, 16  ;;  %v1234_v25 = vsel %vm1233_vm12, 1, %v11317_v5  ;;  %vm1602_vm14 = vcmp.lt.s32.totalorder %v6849_v39, 2 }
 0x12f   : > { %vm6886_vm13 = vcmp.le.f32.partialorder %v11324_v7, 0.7853982  ;;  %v1589_v29 = vmul.f32 %v1588_v11, %v1584_v23  ;;  %v1596_v63 = vmul.f32 %v1595_v52, %v1584_v23  ;;  %v1226_v61 = vshrl.u32 %v6858_v22, 16 }
 0x130   : > { %v1738_v40 = vsel %vm6886_vm13, 0, %v1736_v43  ;;  %v1236_v28 = vadd.s32 %v1234_v25, %v1232_v2  ;;  %vm1599_vm15 = vweird.f32 %v6498_v8  ;;  %v1729_v12 = vand.u32 2147483647, %v1728_v19 }
 0x131   : > { %v1731_v3 = vcvt.s32.f32 %v1724_v17  ;;  %v6899_v58 = vadd.s32 %v1215_v31, %v1206_v50  ;;  %v1228_v46 = vshrl.u32 %v1223_v18, 16  ;;  %v1590_v20 = vadd.f32 1.0, %v1589_v29 }
 0x132   : > { %v1597_v6 = vadd.f32 1.0, %v1596_v63  ;;  %v1237_v1 = vadd.s32 %v1236_v28, %v1226_v61  ;;  %v1301_v21 = vand.u32 2147483647, %v6490_v55  ;;  %vm871_vm1 = vcmp.lt.s32.totalorder %v6550_v37, 4 }
 0x133   : > { %vm1603_vm2 = vcmp.eq.s32.totalorder %v6849_v39, 0  ;;  %vm1606_vm3 = vcmp.eq.s32.totalorder %v6849_v39, 2  ;;  %v1732_v22 = vmul.f32 %v1731_v3, %v1729_v12  ;;  %v6905_v23 = vadd.s32 %v1231_v48, %v1227_v57 }
 0x134   : > { %v1598_v44 = vmul.f32 %v1597_v6, %v6871_v24  ;;  %v1607_v53 = vxor.u32 2147483648, %v1590_v20  ;;  %v1755_v0 = vadd.s32 3, %v1738_v40  ;;  %v1238_v59 = vadd.s32 %v1237_v1, %v1228_v46 }
 0x135   : > { %v1733_v18 = vxor.u32 2147483648, %v1732_v22  ;;  %v1239_v15 = vmul.u32 %v6825_v13, %v1185_v34  ;;  %vm1241_vm4 = vc.u32 %v6899_v58, %v6905_v23  ;;  %v1322_v41 = vshrl.u32 %v11319_v32, %v6615_v27 }
 0x136   : > { %v1604_v17 = vxor.u32 2147483648, %v1598_v44  ;;  %v1242_v43 = vadd.s32 1, %v1238_v59  ;;  %v1308_v57 = vand.u32 8388607, %v1301_v21  ;;  %v1321_v24 = vshll.u32 %v11318_v4, %v6589_v60 }
 0x137   : > { %v1608_v48 = vsel %vm1606_vm3, %v1607_v53, %v1598_v44  ;;  %v1734_v14 = vsel %vm1613_vm7, %v1733_v18, %v1732_v22  ;;  %v1324_v13 = vshll.u32 %v11319_v32, %v6589_v60  ;;  %v1325_v31 = vshrl.u32 %v11313_v33, %v6615_v27 }
 0x138   : > { %v1605_v2 = vsel %vm1603_vm2, %v1590_v20, %v1604_v17  ;;  %v6928_v11 = vsel %vm6886_vm13, %v6500_v9, %v1734_v14  ;;  %v1243_v52 = vsel %vm1241_vm4, %v1242_v43, %v1238_v59  ;;  %v6930_v7 = vor.u32 %v1322_v41, %v1321_v24 }
 0x139   : > { %v1609_v34 = vsel %vm1602_vm14, %v1605_v2, %v1608_v48  ;;  %v1739_v19 = vmul.f32 %v6928_v11, %v6928_v11  ;;  %v1244_v40 = vadd.s32 %v1243_v52, %v1239_v15  ;;  %v1326_v50 = vor.u32 %v1325_v31, %v1324_v13 }
 0x13a   : > { %v1610_v25 = vsel %vm1599_vm15, nan, %v1609_v34  ;;  %v1309_v29 = vor.u32 8388608, %v1308_v57  ;;  %v1319_v49 = vshrl.u32 %v11318_v4, %v6615_v27  ;;  %vm1333_vm6 = vcmp.lt.s32.totalorder %v6612_v16, 1 }
 0x13b   : > { %1810 = vmatpush.msra.mxu2 %v1610_v25  ;;  %v1740_v63 = vmul.f32 -0.001358992, %v1739_v19  ;;  %v1747_v61 = vmul.f32 -0.00019511016, %v1739_v19  ;;  %v1245_v28 = vadd.s32 536870912, %v1244_v40  ;;  %vm1335_vm7 = vcmp.lt.s32.totalorder %v6612_v16, 3 }
 0x13c   : > { %v6945_v39 = vsel %vm871_vm1, %v6591_v62, 920167782  ;;  %v1318_v8 = vshll.u32 %v11314_v45, %v6589_v60  ;;  %v1345_v12 = vsel %vm1333_vm6, %v6930_v7, %v1326_v50  ;;  %v1347_v3 = vsel %vm1335_vm7, %v6835_v30, %v6839_v36 }
 0x13d   : > { %v1741_v46 = vadd.f32 0.041655596, %v1740_v63  ;;  %v1748_v20 = vadd.f32 0.008332121, %v1747_v61  ;;  %v6956_v6 = vshrl.u32 %v1245_v28, 30  ;;  %vm1334_vm8 = vcmp.lt.s32.totalorder %v6612_v16, 2 }
 0x13e   : > { %v1756_v1 = vand.u32 3, %v1755_v0  ;;  %v1320_v22 = vor.u32 %v1319_v49, %v1318_v8  ;;  %v1348_v60 = vsel %vm1334_vm8, %v1345_v12, %v1347_v3  ;;  %v6961_v44 = vshll.u32 %v1309_v29, 8 }
 0x13f   : > { %v1342_v53 = vsel %vm1336_vm5, %v6835_v30, 920167782  ;;  %v1742_v59 = vmul.f32 %v1741_v46, %v1739_v19  ;;  %v1749_v18 = vmul.f32 %v1748_v20, %v1739_v19  ;;  %v1247_v36 = vshll.u32 %v6956_v6, 30 }
 0x140   : > { %v6968_v15 = vand.u32 65535, %v6961_v44  ;;  %v6971_v41 = vshrl.u32 %v6961_v44, 16  ;;  %v1352_v0 = vand.u32 65535, %v1348_v60  ;;  %v1353_v17 = vshrl.u32 %v1348_v60, 16 }
 0x141   : > { %v11327_v43 = vor.u32 %v6565_v47, %v6559_v42  ;;  %v1743_v30 = vadd.f32 -0.4999988, %v1742_v59  ;;  %v1750_v24 = vadd.f32 -0.16666654, %v1749_v18  ;;  %v6980_v48 = vsub.s32 %v1244_v40, %v1247_v36  ;;  %v11330_v18 = vld [vmem:[#allocation32_spill] sm:$0xff] }
 0x142   : > { %vm1758_vm9 = vcmp.eq.s32.totalorder %v1756_v1, 0  ;;  %v1341_v14 = vsel %vm1333_vm6, %v1320_v22, %v6930_v7  ;;  %v1343_v13 = vsel %vm1335_vm7, %v1326_v50, %v1342_v53  ;;  %v1355_v31 = vmul.u32 %v1353_v17, %v6968_v15 }
 0x143   : > { %v6978_v57 = vsel %vm871_vm1, %v11327_v43, 1326507024  ;;  %v6989_v42 = vmul.u32 %v1352_v0, %v6971_v41  ;;  %v1744_v47 = vmul.f32 %v1743_v30, %v1739_v19  ;;  %v1751_v2 = vmul.f32 %v1750_v24, %v1739_v19 }
 0x144   : > { %vm1757_vm10 = vcmp.lt.s32.totalorder %v1756_v1, 2  ;;  %vm1249_vm11 = vcmp.lt.s32.totalorder %v6980_v48, 0  ;;  %v1250_v52 = vsub.s32 0, %v6980_v48  ;;  %vm1754_vm12 = vweird.f32 %v6500_v9 }
 0x145   : > { %v1317_v34 = vshrl.u32 %v11314_v45, %v6615_v27  ;;  %v1338_v40 = vsel %vm1336_vm5, %v1326_v50, 2102212464  ;;  %v1354_v25 = vmul.u32 %v1352_v0, %v6968_v15  ;;  %v1358_v29 = vshll.u32 %v1355_v31, 16 }
 0x146   : > { %v1745_v49 = vadd.f32 1.0, %v1744_v47  ;;  %v1752_v63 = vadd.f32 1.0, %v1751_v2  ;;  %v1251_v19 = vsel %vm1249_vm11, %v1250_v52, %v6980_v48  ;;  %v1344_v61 = vsel %vm1334_vm8, %v1341_v14, %v1343_v13 }
 0x147   : > { %v1252_v28 = vclz %v1251_v19  ;;  %v1357_v8 = vmul.u32 %v1353_v17, %v6971_v41  ;;  %v1360_v12 = vshll.u32 %v6989_v42, 16  ;;  %vm1362_vm13 = vc.u32 %v1354_v25, %v1358_v29 }
 0x148   : > { %v1753_v27 = vmul.f32 %v1752_v63, %v6928_v11  ;;  %v1762_v3 = vxor.u32 2147483648, %v1745_v49  ;;  %v1363_v50 = vsel %vm1362_vm13, 1, %v11317_v5  ;;  %v1364_v46 = vadd.s32 %v1358_v29, %v1354_v25 }
 0x149   : > { %vm1761_vm5 = vcmp.eq.s32.totalorder %v1756_v1, 2  ;;  %v1240_v20 = vadd.s32 %v6905_v23, %v6899_v58  ;;  %v5966_v60 = vadd.s32 4294967294, %v1252_v28  ;;  %v1337_v53 = vsel %vm1333_vm6, %v1317_v34, %v1320_v22 }
 0x14a   : > { %v1759_v59 = vxor.u32 2147483648, %v1753_v27  ;;  %vm7012_vm14 = vcmp.le.f32.partialorder %v1146_v35, 0.7853982  ;;  %v1365_v11 = vadd.s32 %v1363_v50, %v1357_v8  ;;  %vm1366_vm15 = vc.u32 %v1364_v46, %v1360_v12 }
 0x14b   : > { %v1374_v36 = vand.u32 65535, %v1344_v61  ;;  %vm5967_vm2 = vcmp.lt.s32.totalorder %v5966_v60, 0  ;;  %v1339_v0 = vsel %vm1335_vm7, %v6930_v7, %v1338_v40  ;;  %v1367_v58 = vsel %vm1366_vm15, 1, %v11317_v5 }
 0x14c   : > { %v1375_v23 = vshrl.u32 %v1344_v61, 16  ;;  %v1760_v22 = vsel %vm1758_vm9, %v1745_v49, %v1759_v59  ;;  %v1763_v17 = vsel %vm1761_vm5, %v1762_v3, %v1753_v27  ;;  %v1255_v43 = vsel %vm5967_vm2, 0, %v5966_v60 }
 0x14d   : > { %v1270_v35 = vsub.s32 4, %v6956_v6  ;;  %v1764_v30 = vsel %vm1757_vm10, %v1760_v22, %v1763_v17  ;;  %v1256_v24 = vsub.s32 32, %v1255_v43  ;;  %v1260_v14 = vsub.s32 4294967266, %v1255_v43 }
 0x14e   : > { %v1369_v13 = vadd.s32 %v1367_v58, %v1365_v11  ;;  %v1765_v47 = vsel %vm1754_vm12, nan, %v1764_v30  ;;  %vm1148_vm3 = vcmp.lt.s32.totalorder %v6488_v54, 0  ;;  %v1377_v7 = vmul.u32 %v1375_v23, %v6968_v15 }
 0x14f   : > { %v1378_v2 = vmul.u32 %v1374_v36, %v6971_v41  ;;  %1839 = vmatpush.msra.mxu3 %v1765_v47  ;;  %v1257_v52 = vshll.u32 %v6980_v48, %v1255_v43  ;;  %v1258_v34 = vshrl.u32 %v1240_v20, %v1256_v24  ;;  %v1261_v40 = vadd.s32 127, %v1260_v14 }
 0x150   : > { %v1359_v25 = vshrl.u32 %v1355_v31, 16  ;;  %v1271_v1 = vsel %vm1148_vm3, %v1270_v35, %v6956_v6  ;;  %v1340_v9 = vsel %vm1334_vm8, %v1337_v53, %v1339_v0  ;;  %v1376_v29 = vmul.u32 %v1374_v36, %v6968_v15 }
 0x151   : > { %v1380_v49 = vshll.u32 %v1377_v7, 16  ;;  %v1259_v63 = vor.u32 %v1258_v34, %v1257_v52  ;;  %v1262_v19 = vshll.u32 %v1261_v40, 23  ;;  %v836_v28 = vand.u32 2147483647, %v6482_v38 }
 0x152   : > { %v1370_v61 = vadd.s32 %v1369_v13, %v1359_v25  ;;  %v1379_v48 = vmul.u32 %v1375_v23, %v6971_v41  ;;  %v1382_v8 = vshll.u32 %v1378_v2, 16  ;;  %v1273_v6 = vsel %vm7012_vm14, 0, %v1271_v1 }
 0x153   : > { %vm1384_vm4 = vc.u32 %v1376_v29, %v1380_v49  ;;  %v1386_v31 = vadd.s32 %v1380_v49, %v1376_v29  ;;  %v1263_v12 = vor.u32 4788187, %v1262_v19  ;;  %v1361_v16 = vshrl.u32 %v6989_v42, 16 }
 0x154   : > { %v1385_v27 = vsel %vm1384_vm4, 1, %v11317_v5  ;;  %v1266_v15 = vcvt.s32.f32 %v1259_v63  ;;  %v843_v50 = vand.u32 8388607, %v836_v28  ;;  %v853_v20 = vshll.u32 %v11314_v45, %v6502_v10  ;;  %v11331_v63 = vld [vmem:[#allocation33_spill] sm:$0xff] }
 0x155   : > { %v1387_v3 = vadd.s32 %v1385_v27, %v1379_v48  ;;  %vm1388_vm6 = vc.u32 %v1386_v31, %v1382_v8  ;;  %v1264_v46 = vand.u32 2147483647, %v1263_v12  ;;  %v854_v60 = vshrl.u32 %v11318_v4, %v6531_v26 }
 0x156   : > { %v1389_v41 = vsel %vm1388_vm6, 1, %v11317_v5  ;;  %v7048_v53 = vadd.s32 %v1370_v61, %v1361_v16  ;;  %v1381_v42 = vshrl.u32 %v1377_v7, 16  ;;  %v1383_v59 = vshrl.u32 %v1378_v2, 16 }
 0x157   : > { %v1391_v11 = vadd.s32 %v1389_v41, %v1387_v3  ;;  %v1267_v36 = vmul.f32 %v1266_v15, %v1264_v46  ;;  %v7050_v0 = vor.u32 %v854_v60, %v853_v20  ;;  %v856_v58 = vshll.u32 %v11318_v4, %v6502_v10  ;;  %v11332_v3 = vld [vmem:[#allocation21_spill] sm:$0xff] }
 0x158   : > { %v857_v23 = vshrl.u32 %v11319_v32, %v6531_v26  ;;  %v844_v17 = vor.u32 8388608, %v843_v50  ;;  %v859_v43 = vshll.u32 %v11319_v32, %v6502_v10  ;;  %v860_v35 = vshrl.u32 %v11313_v33, %v6531_v26 }
 0x159   : > { %v1392_v22 = vadd.s32 %v1391_v11, %v1381_v42  ;;  %v1268_v30 = vxor.u32 2147483648, %v1267_v36  ;;  %v1290_v24 = vadd.s32 3, %v1273_v6  ;;  %v7060_v14 = vadd.s32 %v1386_v31, %v1382_v8  ;;  %v11334_v42 = vld [vmem:[#allocation31_spill] sm:$0xff] }
 0x15a   : > { %v7062_v13 = vor.u32 %v857_v23, %v856_v58  ;;  %v861_v7 = vor.u32 %v860_v35, %v859_v43  ;;  %vm868_vm7 = vcmp.lt.s32.totalorder %v6550_v37, 1  ;;  %vm870_vm8 = vcmp.lt.s32.totalorder %v6550_v37, 3 }
 0x15b   : > { %v1393_v47 = vadd.s32 %v1392_v22, %v1383_v59  ;;  %v1269_v2 = vsel %vm1148_vm3, %v1268_v30, %v1267_v36  ;;  %vm1396_vm9 = vc.u32 %v7048_v53, %v7060_v14  ;;  %v882_v52 = vsel %vm870_vm8, %v6591_v62, %v6978_v57 }
 0x15c   : > { %v876_v10 = vsel %vm868_vm7, %v7050_v0, %v7062_v13  ;;  %v7081_v34 = vsel %vm7012_vm14, %v6488_v54, %v1269_v2  ;;  %v878_v25 = vsel %vm870_vm8, %v861_v7, %v6945_v39  ;;  %v7086_v1 = vshll.u32 %v844_v17, 8 }
 0x15d   : > { %v1397_v40 = vadd.s32 1, %v1393_v47  ;;  %v1274_v29 = vmul.f32 %v7081_v34, %v7081_v34  ;;  %v1394_v49 = vmul.u32 %v6961_v44, %v1340_v9  ;;  %vm869_vm10 = vcmp.lt.s32.totalorder %v6550_v37, 2 }
 0x15e   : > { %v880_v62 = vsel %vm868_vm7, %v7062_v13, %v861_v7  ;;  %v7097_v57 = vor.u32 %v6577_v56, %v6573_v51  ;;  %v1022_v39 = vor.u32 %v11331_v63, %v11330_v18  ;;  %v7105_v9 = vsel %vm869_vm10, %v876_v10, %v878_v25 }
 0x15f   : > { %v1398_v19 = vsel %vm1396_vm9, %v1397_v40, %v1393_v47  ;;  %v883_v61 = vsel %vm869_vm10, %v880_v62, %v882_v52  ;;  %v1275_v48 = vmul.f32 -0.001358992, %v1274_v29  ;;  %v1282_v8 = vmul.f32 -0.00019511016, %v1274_v29 }
 0x160   : > { %v1399_v44 = vadd.s32 %v1398_v19, %v1394_v49  ;;  %v885_v31 = vand.u32 65535, %v7086_v1  ;;  %v886_v12 = vshrl.u32 %v7086_v1, 16  ;;  %v887_v51 = vand.u32 65535, %v883_v61 }
 0x161   : > { %v888_v56 = vshrl.u32 %v883_v61, 16  ;;  %v1276_v6 = vadd.f32 0.041655596, %v1275_v48  ;;  %v1283_v16 = vadd.f32 0.008332121, %v1282_v8  ;;  %v7109_v27 = vand.u32 3, %v1290_v24 }
 0x162   : > { %v1400_v15 = vadd.s32 536870912, %v1399_v44  ;;  %v11333_v50 = vmov 1326507024   ;;  %v7115_v20 = vmul.u32 %v887_v51, %v886_v12  ;;  %v910_v60 = vshrl.u32 %v7105_v9, 16 }
 0x163   : > { %v7113_v46 = vshrl.u32 %v11333_v50, %v11332_v3  ;;  %v890_v41 = vmul.u32 %v888_v56, %v885_v31  ;;  %vm1026_vm11 = vcmp.lt.s32.totalorder %v11334_v42, 4  ;;  %v1277_v59 = vmul.f32 %v1276_v6, %v1274_v29 }
 0x164   : > { %v1284_v11 = vmul.f32 %v1283_v16, %v1274_v29  ;;  %v7119_v36 = vshrl.u32 %v1400_v15, 30  ;;  %v7124_v58 = vsel %vm1026_vm11, %v7097_v57, 920167782  ;;  %v7128_v23 = vsel %vm1026_vm11, %v1022_v39, 1326507024 }
 0x165   : > { %v889_v22 = vmul.u32 %v887_v51, %v885_v31  ;;  %v893_v17 = vshll.u32 %v890_v41, 16  ;;  %v1278_v43 = vadd.f32 -0.4999988, %v1277_v59  ;;  %vm1296_vm12 = vcmp.eq.s32.totalorder %v7109_v27, 2 }
 0x166   : > { %v1285_v35 = vadd.f32 -0.16666654, %v1284_v11  ;;  %v1402_v30 = vshll.u32 %v7119_v36, 30  ;;  %v909_v24 = vand.u32 65535, %v7105_v9  ;;  %vm1293_vm13 = vcmp.eq.s32.totalorder %v7109_v27, 0 }
 0x167   : > { %v895_v47 = vshll.u32 %v7115_v20, 16  ;;  %vm897_vm5 = vc.u32 %v889_v22, %v893_v17  ;;  %v899_v2 = vadd.s32 %v893_v17, %v889_v22  ;;  %v7135_v10 = vmul.u32 %v910_v60, %v885_v31 }
 0x168   : > { %v1279_v52 = vmul.f32 %v1278_v43, %v1274_v29  ;;  %v1286_v40 = vmul.f32 %v1285_v35, %v1274_v29  ;;  %vm1292_vm14 = vcmp.lt.s32.totalorder %v7109_v27, 2  ;;  %v7138_v25 = vsub.s32 %v1399_v44, %v1402_v30 }
 0x169   : > { %v852_v49 = vshrl.u32 %v11314_v45, %v6531_v26  ;;  %vm1289_vm15 = vweird.f32 %v6488_v54  ;;  %v873_v62 = vsel %vm871_vm1, %v861_v7, 2102212464  ;;  %v892_v18 = vmul.u32 %v888_v56, %v886_v12 }
 0x16a   : > { %v898_v63 = vsel %vm897_vm5, 1, %v11317_v5  ;;  %vm901_vm2 = vc.u32 %v899_v2, %v895_v47  ;;  %v1280_v39 = vadd.f32 1.0, %v1279_v52  ;;  %v1287_v19 = vadd.f32 1.0, %v1286_v40 }
 0x16b   : > { %vm1404_vm3 = vcmp.lt.s32.totalorder %v7138_v25, 0  ;;  %v1405_v29 = vsub.s32 0, %v7138_v25  ;;  %v900_v61 = vadd.s32 %v898_v63, %v892_v18  ;;  %v902_v48 = vsel %vm901_vm2, 1, %v11317_v5 }
 0x16c   : > { %v913_v8 = vmul.u32 %v909_v24, %v886_v12  ;;  %v915_v26 = vshll.u32 %v7135_v10, 16  ;;  %v1288_v44 = vmul.f32 %v1287_v19, %v7081_v34  ;;  %v1297_v9 = vxor.u32 2147483648, %v1280_v39 }
 0x16d   : > { %v1406_v7 = vsel %vm1404_vm3, %v1405_v29, %v7138_v25  ;;  %v911_v51 = vmul.u32 %v909_v24, %v885_v31  ;;  %vm1303_vm1 = vcmp.lt.s32.totalorder %v6490_v55, 0  ;;  %v872_v6 = vsel %vm868_vm7, %v852_v49, %v7050_v0 }
 0x16e   : > { %v1407_v56 = vclz %v1406_v7  ;;  %v874_v16 = vsel %vm870_vm8, %v7062_v13, %v873_v62  ;;  %v904_v15 = vadd.s32 %v902_v48, %v900_v61  ;;  %v1294_v59 = vxor.u32 2147483648, %v1288_v44  ;;  %v11339_v7 = vld [vmem:[#allocation30_spill] sm:$0xff] }
 0x16f   : > { %v894_v11 = vshrl.u32 %v890_v41, 16  ;;  %v896_v34 = vshrl.u32 %v7115_v20, 16  ;;  %vm919_vm4 = vc.u32 %v911_v51, %v915_v26  ;;  %v1298_v31 = vsel %vm1296_vm12, %v1297_v9, %v1288_v44  ;;  %v11335_v20 = vld [vmem:[#allocation15_spill] sm:$0xff]  ;;  %v11338_v9 = vld [vmem:[#allocation22_spill] sm:$0xff] }
 0x170   : > { %v5969_v22 = vadd.s32 4294967294, %v1407_v56  ;;  %v914_v17 = vmul.u32 %v910_v60, %v886_v12  ;;  %v917_v43 = vshll.u32 %v913_v8, 16  ;;  %v1295_v35 = vsel %vm1293_vm13, %v1280_v39, %v1294_v59 }
 0x171   : > { %v905_v0 = vadd.s32 %v904_v15, %v894_v11  ;;  %v920_v30 = vsel %vm919_vm4, 1, %v11317_v5  ;;  %v921_v24 = vadd.s32 %v915_v26, %v911_v51  ;;  %v1299_v13 = vsel %vm1292_vm14, %v1295_v35, %v1298_v31 }
 0x172   : > { %vm5970_vm6 = vcmp.lt.s32.totalorder %v5969_v22, 0  ;;  %v922_v41 = vadd.s32 %v920_v30, %v914_v17  ;;  %v991_v47 = vand.u32 2147483647, %v11335_v20  ;;  %v1300_v2 = vsel %vm1289_vm15, nan, %v1299_v13  ;;  %v11341_v13 = vld [vmem:[#allocation26_spill] sm:$0xff] }
 0x173   : > { %v1410_v52 = vsel %vm5970_vm6, 0, %v5969_v22  ;;  %v1425_v12 = vsub.s32 4, %v7119_v36  ;;  %vm923_vm7 = vc.u32 %v921_v24, %v917_v43  ;;  %1811 = vmatpush.msra.mxu2 %v1300_v2  ;;  %vm7173_vm8 = vcmp.le.f32.partialorder %v1301_v21, 0.7853982 }
 0x174   : > { %v1395_v27 = vadd.s32 %v7060_v14, %v7048_v53  ;;  %v1411_v40 = vsub.s32 32, %v1410_v52  ;;  %v1415_v49 = vsub.s32 4294967266, %v1410_v52  ;;  %v924_v62 = vsel %vm923_vm7, 1, %v11317_v5 }
 0x175   : > { %v875_v54 = vsel %vm869_vm10, %v872_v6, %v874_v16  ;;  %v7182_v18 = vadd.s32 %v905_v0, %v896_v34  ;;  %v916_v63 = vshrl.u32 %v7135_v10, 16  ;;  %v926_v39 = vadd.s32 %v924_v62, %v922_v41 }
 0x176   : > { %v1412_v21 = vshll.u32 %v7138_v25, %v1410_v52  ;;  %v1413_v19 = vshrl.u32 %v1395_v27, %v1411_v40  ;;  %v1416_v29 = vadd.s32 127, %v1415_v49  ;;  %v998_v61 = vand.u32 8388607, %v991_v47 }
 0x177   : > { %v1426_v53 = vsel %vm1303_vm1, %v1425_v12, %v7119_v36  ;;  %v918_v14 = vshrl.u32 %v913_v8, 16  ;;  %v7191_v48 = vadd.s32 %v921_v24, %v917_v43  ;;  %v927_v37 = vadd.s32 %v926_v39, %v916_v63 }
 0x178   : > { %v1414_v26 = vor.u32 %v1413_v19, %v1412_v21  ;;  %v1417_v44 = vshll.u32 %v1416_v29, 23  ;;  %v1008_v10 = vshll.u32 %v11314_v45, %v11338_v9  ;;  %v1009_v25 = vshrl.u32 %v11318_v4, %v11339_v7  ;;  %v11342_v19 = vld [vmem:[#allocation19_spill] sm:$0xff] }
 0x179   : > { %v928_v51 = vadd.s32 %v927_v37, %v918_v14  ;;  %v999_v56 = vor.u32 8388608, %v998_v61  ;;  %v1011_v6 = vshll.u32 %v11318_v4, %v11338_v9  ;;  %v1012_v36 = vshrl.u32 %v11319_v32, %v11339_v7 }
 0x17a   : > { %v1418_v8 = vor.u32 4788187, %v1417_v44  ;;  %vm931_vm9 = vc.u32 %v7182_v18, %v7191_v48  ;;  %v1014_v16 = vshll.u32 %v11319_v32, %v11338_v9  ;;  %v1015_v15 = vshrl.u32 %v11313_v33, %v11339_v7  ;;  %v11343_v9 = vld [vmem:[#allocation24_spill] sm:$0xff] }
 0x17b   : > { %v929_v59 = vmul.u32 %v7086_v1, %v875_v54  ;;  %v932_v11 = vadd.s32 1, %v928_v51  ;;  %v1010_v34 = vor.u32 %v1009_v25, %v1008_v10  ;;  %v1013_v31 = vor.u32 %v1012_v36, %v1011_v6  ;;  %v11340_v1 = vld [vmem:[#allocation23_spill] sm:$0xff] }
 0x17c   : > { %v1419_v22 = vand.u32 2147483647, %v1418_v8  ;;  %v1421_v17 = vcvt.s32.f32 %v1414_v26  ;;  %v1016_v43 = vor.u32 %v1015_v15, %v1014_v16  ;;  %vm1025_vm10 = vcmp.lt.s32.totalorder %v11334_v42, 3  ;;  %v11344_v10 = vld [vmem:[#allocation27_spill] sm:$0xff] }
 0x17d   : > { %v1428_v35 = vsel %vm7173_vm8, 0, %v1426_v53  ;;  %v933_v0 = vsel %vm931_vm9, %v932_v11, %v928_v51  ;;  %v1037_v30 = vsel %vm1025_vm10, %v7097_v57, %v7128_v23  ;;  %v7215_v24 = vshll.u32 %v999_v56, 8 }
 0x17e   : > { %v7219_v41 = vor.u32 %v11341_v13, %v11340_v1  ;;  %v1422_v2 = vmul.f32 %v1421_v17, %v1419_v22  ;;  %v934_v52 = vadd.s32 %v933_v0, %v929_v59  ;;  %vm1023_vm12 = vcmp.lt.s32.totalorder %v11334_v42, 1 }
 0x17f   : > { %vm1024_vm13 = vcmp.lt.s32.totalorder %v11334_v42, 2  ;;  %v1031_v12 = vsel %vm1023_vm12, %v1010_v34, %v1013_v31  ;;  %v1033_v27 = vsel %vm1025_vm10, %v1016_v43, %v7124_v58  ;;  %v1035_v57 = vsel %vm1023_vm12, %v1013_v31, %v1016_v43 }
 0x180   : > { %v1423_v23 = vxor.u32 2147483648, %v1422_v2  ;;  %v1445_v40 = vadd.s32 3, %v1428_v35  ;;  %v935_v49 = vadd.s32 536870912, %v934_v52  ;;  %v1038_v62 = vsel %vm1024_vm13, %v1035_v57, %v1037_v30  ;;  %v11345_v57 = vld [vmem:[#allocation25_spill] sm:$0xff] }
 0x181   : > { %v7233_v54 = vand.u32 65535, %v7215_v24  ;;  %v7236_v63 = vshrl.u32 %v7215_v24, 16  ;;  %v1042_v39 = vand.u32 65535, %v1038_v62  ;;  %v1043_v21 = vshrl.u32 %v1038_v62, 16 }
 0x182   : > { %vm561_vm5 = vcmp.lt.s32.totalorder %v11342_v19, 4  ;;  %v1424_v58 = vsel %vm1303_vm1, %v1423_v23, %v1422_v2  ;;  %v7241_v29 = vshrl.u32 %v935_v49, 30  ;;  %v1007_v61 = vshrl.u32 %v11314_v45, %v11339_v7  ;;  %v11346_v23 = vld [vmem:[#allocation29_spill] sm:$0xff] }
 0x183   : > { %v1034_v53 = vsel %vm1024_vm13, %v1031_v12, %v1033_v27  ;;  %v7250_v14 = vsel %vm7173_vm8, %v6490_v55, %v1424_v58  ;;  %v1028_v37 = vsel %vm1026_vm11, %v1016_v43, 2102212464  ;;  %v1045_v26 = vmul.u32 %v1043_v21, %v7233_v54 }
 0x184   : > { %v7256_v44 = vmul.u32 %v1042_v39, %v7236_v63  ;;  %v557_v25 = vor.u32 %v11344_v10, %v11343_v9  ;;  %v1429_v7 = vmul.f32 %v7250_v14, %v7250_v14  ;;  %v7262_v51 = vand.u32 3, %v1445_v40 }
 0x185   : > { %v937_v60 = vshll.u32 %v7241_v29, 30  ;;  %v1027_v56 = vsel %vm1023_vm12, %v1007_v61, %v1010_v34  ;;  %v1044_v6 = vmul.u32 %v1042_v39, %v7233_v54  ;;  %v1048_v36 = vshll.u32 %v1045_v26, 16 }
 0x186   : > { %v1065_v8 = vshrl.u32 %v1034_v53, 16  ;;  %v1430_v16 = vmul.f32 -0.001358992, %v1429_v7  ;;  %v1437_v15 = vmul.f32 -0.00019511016, %v1429_v7  ;;  %v1029_v11 = vsel %vm1025_vm10, %v1013_v31, %v1028_v37 }
 0x187   : > { %v7268_v59 = vsub.s32 %v934_v52, %v937_v60  ;;  %v1047_v22 = vmul.u32 %v1043_v21, %v7236_v63  ;;  %v1050_v17 = vshll.u32 %v7256_v44, 16  ;;  %vm1052_vm11 = vc.u32 %v1044_v6, %v1048_v36 }
 0x188   : > { %v1054_v43 = vadd.s32 %v1048_v36, %v1044_v6  ;;  %v1431_v35 = vadd.f32 0.041655596, %v1430_v16  ;;  %v1438_v0 = vadd.f32 0.008332121, %v1437_v15  ;;  %v1053_v30 = vsel %vm1052_vm11, 1, %v11317_v5 }
 0x189   : > { %vm939_vm14 = vcmp.lt.s32.totalorder %v7268_v59, 0  ;;  %v940_v34 = vsub.s32 0, %v7268_v59  ;;  %v1064_v1 = vand.u32 65535, %v1034_v53  ;;  %v7278_v13 = vmul.u32 %v1065_v8, %v7233_v54 }
 0x18a   : > { %vm1056_vm15 = vc.u32 %v1054_v43, %v1050_v17  ;;  %v1432_v31 = vmul.f32 %v1431_v35, %v1429_v7  ;;  %v1439_v2 = vmul.f32 %v1438_v0, %v1429_v7  ;;  %v1055_v12 = vadd.s32 %v1053_v30, %v1047_v22 }
 0x18b   : > { %v941_v52 = vsel %vm939_vm14, %v940_v34, %v7268_v59  ;;  %v7283_v27 = vsel %vm561_vm5, %v557_v25, 1326507024  ;;  %v7287_v40 = vor.u32 %v11346_v23, %v11345_v57  ;;  %v1057_v62 = vsel %vm1056_vm15, 1, %v11317_v5 }
 0x18c   : > { %v942_v49 = vclz %v941_v52  ;;  %v1433_v39 = vadd.f32 -0.4999988, %v1432_v31  ;;  %v1440_v21 = vadd.f32 -0.16666654, %v1439_v2  ;;  %vm838_vm2 = vcmp.lt.s32.totalorder %v6482_v38, 0  ;;  %v11349_v52 = vld [vmem:[#allocation13_spill] sm:$0xff] }
 0x18d   : > { %v1059_v58 = vadd.s32 %v1057_v62, %v1055_v12  ;;  %vm1448_vm3 = vcmp.eq.s32.totalorder %v7262_v51, 0  ;;  %vm1451_vm1 = vcmp.eq.s32.totalorder %v7262_v51, 2  ;;  %v930_v61 = vadd.s32 %v7191_v48, %v7182_v18 }
 0x18e   : > { %v5960_v53 = vadd.s32 4294967294, %v942_v49  ;;  %v7297_v37 = vsel %vm1024_vm13, %v1027_v56, %v1029_v11  ;;  %v1068_v9 = vmul.u32 %v1064_v1, %v7236_v63  ;;  %v1434_v10 = vmul.f32 %v1433_v39, %v1429_v7 }
 0x18f   : > { %v1441_v25 = vmul.f32 %v1440_v21, %v1429_v7  ;;  %vm1447_vm4 = vcmp.lt.s32.totalorder %v7262_v51, 2  ;;  %v1049_v60 = vshrl.u32 %v1045_v26, 16  ;;  %v1070_v6 = vshll.u32 %v7278_v13, 16 }
 0x190   : > { %vm1444_vm6 = vweird.f32 %v6490_v55  ;;  %vm5961_vm7 = vcmp.lt.s32.totalorder %v5960_v53, 0  ;;  %v960_v36 = vsub.s32 4, %v7241_v29  ;;  %v1066_v18 = vmul.u32 %v1064_v1, %v7233_v54 }
 0x191   : > { %v1069_v42 = vmul.u32 %v1065_v8, %v7236_v63  ;;  %v1435_v48 = vadd.f32 1.0, %v1434_v10  ;;  %v1442_v56 = vadd.f32 1.0, %v1441_v25  ;;  %v945_v16 = vsel %vm5961_vm7, 0, %v5960_v53  ;;  %v11350_v25 = vld [vmem:[#allocation16_spill] sm:$0xff] }
 0x192   : > { %v1060_v15 = vadd.s32 %v1059_v58, %v1049_v60  ;;  %v946_v11 = vsub.s32 32, %v945_v16  ;;  %v950_v7 = vsub.s32 4294967266, %v945_v16  ;;  %v1072_v22 = vshll.u32 %v1068_v9, 16  ;;  %v11351_v60 = vld [vmem:[#allocation18_spill] sm:$0xff] }
 0x193   : > { %vm1074_vm8 = vc.u32 %v1066_v18, %v1070_v6  ;;  %v1443_v26 = vmul.f32 %v1442_v56, %v7250_v14  ;;  %v1452_v17 = vxor.u32 2147483648, %v1435_v48  ;;  %v1076_v35 = vadd.s32 %v1070_v6, %v1066_v18 }
 0x194   : > { %v1075_v43 = vsel %vm1074_vm8, 1, %v11317_v5  ;;  %vm7310_vm9 = vcmp.le.f32.partialorder %v836_v28, 0.7853982  ;;  %v947_v63 = vshll.u32 %v7268_v59, %v945_v16  ;;  %v948_v8 = vshrl.u32 %v930_v61, %v946_v11 }
 0x195   : > { %v951_v0 = vadd.s32 127, %v950_v7  ;;  %v1077_v34 = vadd.s32 %v1075_v43, %v1069_v42  ;;  %v1449_v30 = vxor.u32 2147483648, %v1443_v26  ;;  %v961_v14 = vsel %vm838_vm2, %v960_v36, %v7241_v29 }
 0x196   : > { %v1051_v1 = vshrl.u32 %v7256_v44, 16  ;;  %vm1078_vm10 = vc.u32 %v1076_v35, %v1072_v22  ;;  %v949_v31 = vor.u32 %v948_v8, %v947_v63  ;;  %v526_v12 = vand.u32 2147483647, %v11349_v52 }
 0x197   : > { %v952_v2 = vshll.u32 %v951_v0, 23  ;;  %v1079_v28 = vsel %vm1078_vm10, 1, %v11317_v5  ;;  %v1450_v59 = vsel %vm1448_vm3, %v1435_v48, %v1449_v30  ;;  %v1453_v57 = vsel %vm1451_vm1, %v1452_v17, %v1443_v26 }
 0x198   : > { %v1071_v23 = vshrl.u32 %v7278_v13, 16  ;;  %v1081_v49 = vadd.s32 %v1079_v28, %v1077_v34  ;;  %v1454_v29 = vsel %vm1447_vm4, %v1450_v59, %v1453_v57  ;;  %v7328_v62 = vadd.s32 %v1060_v15, %v1051_v1 }
 0x199   : > { %v953_v44 = vor.u32 4788187, %v952_v2  ;;  %v1073_v39 = vshrl.u32 %v1068_v9, 16  ;;  %v1455_v21 = vsel %vm1444_vm6, nan, %v1454_v29  ;;  %v7332_v58 = vadd.s32 %v1076_v35, %v1072_v22  ;;  %v11352_v29 = vld [vmem:[#allocation28_spill] sm:$0xff] }
 0x19a   : > { %v1082_v61 = vadd.s32 %v1081_v49, %v1071_v23  ;;  %v533_v53 = vand.u32 8388607, %v526_v12  ;;  %1840 = vmatpush.msra.mxu3 %v1455_v21  ;;  %v956_v13 = vcvt.s32.f32 %v949_v31  ;;  %v543_v51 = vshll.u32 %v11314_v45, %v11350_v25 }
 0x19b   : > { %v954_v10 = vand.u32 2147483647, %v953_v44  ;;  %v544_v6 = vshrl.u32 %v11318_v4, %v11351_v60  ;;  %v546_v55 = vshll.u32 %v11318_v4, %v11350_v25  ;;  %v547_v18 = vshrl.u32 %v11319_v32, %v11351_v60 }
 0x19c   : > { %v1083_v36 = vadd.s32 %v1082_v61, %v1073_v39  ;;  %v534_v9 = vor.u32 8388608, %v533_v53  ;;  %vm1086_vm12 = vc.u32 %v7328_v62, %v7332_v58  ;;  %v549_v48 = vshll.u32 %v11319_v32, %v11350_v25  ;;  %v11353_v39 = vld [vmem:[#allocation20_spill] sm:$0xff] }
 0x19d   : > { %v957_v42 = vmul.f32 %v956_v13, %v954_v10  ;;  %v550_v56 = vshrl.u32 %v11313_v33, %v11351_v60  ;;  %v963_v16 = vsel %vm7310_vm9, 0, %v961_v14  ;;  %v7352_v11 = vor.u32 %v544_v6, %v543_v51 }
 0x19e   : > { %v1087_v15 = vadd.s32 1, %v1083_v36  ;;  %v7354_v7 = vor.u32 %v547_v18, %v546_v55  ;;  %v1084_v26 = vmul.u32 %v7215_v24, %v7297_v37  ;;  %vm560_vm13 = vcmp.lt.s32.totalorder %v11342_v19, 3 }
 0x19f   : > { %v958_v22 = vxor.u32 2147483648, %v957_v42  ;;  %v7358_v17 = vor.u32 %v550_v56, %v549_v48  ;;  %v567_v43 = vsel %vm561_vm5, %v7219_v41, 920167782  ;;  %v572_v63 = vsel %vm560_vm13, %v7219_v41, %v7283_v27 }
 0x1a0   : > { %v1088_v35 = vsel %vm1086_vm12, %v1087_v15, %v1083_v36  ;;  %v7368_v8 = vshll.u32 %v534_v9, 8  ;;  %v980_v24 = vadd.s32 3, %v963_v16  ;;  %vm558_vm11 = vcmp.lt.s32.totalorder %v11342_v19, 1 }
 0x1a1   : > { %v959_v0 = vsel %vm838_vm2, %v958_v22, %v957_v42  ;;  %v1089_v37 = vadd.s32 %v1088_v35, %v1084_v26  ;;  %vm559_vm14 = vcmp.lt.s32.totalorder %v11342_v19, 2  ;;  %v566_v41 = vsel %vm558_vm11, %v7352_v11, %v7354_v7 }
 0x1a2   : > { %v962_v34 = vsel %vm7310_vm9, %v6482_v38, %v959_v0  ;;  %v570_v27 = vsel %vm558_vm11, %v7354_v7, %v7358_v17  ;;  %v568_v1 = vsel %vm560_vm13, %v7358_v17, %v567_v43  ;;  %v575_v31 = vand.u32 65535, %v7368_v8 }
 0x1a3   : > { %v964_v30 = vmul.f32 %v962_v34, %v962_v34  ;;  %v1090_v14 = vadd.s32 536870912, %v1089_v37  ;;  %v573_v54 = vsel %vm559_vm14, %v570_v27, %v572_v63  ;;  %v7392_v2 = vshrl.u32 %v7368_v8, 16 }
 0x1a4   : > { %v577_v28 = vand.u32 65535, %v573_v54  ;;  %v578_v59 = vshrl.u32 %v573_v54, 16  ;;  %v712_v44 = vor.u32 %v7113_v46, %v11352_v29  ;;  %vm716_vm15 = vcmp.lt.s32.totalorder %v11353_v39, 4 }
 0x1a5   : > { %v965_v57 = vmul.f32 -0.001358992, %v964_v30  ;;  %v972_v23 = vmul.f32 -0.00019511016, %v964_v30  ;;  %v7394_v49 = vshrl.u32 %v1090_v14, 30  ;;  %v569_v25 = vsel %vm559_vm14, %v566_v41, %v568_v1 }
 0x1a6   : > { %v580_v21 = vmul.u32 %v578_v59, %v575_v31  ;;  %v7400_v61 = vmul.u32 %v577_v28, %v7392_v2  ;;  %v7408_v51 = vsel %vm716_vm15, %v7287_v40, 920167782  ;;  %v981_v6 = vand.u32 3, %v980_v24 }
 0x1a7   : > { %v966_v53 = vadd.f32 0.041655596, %v965_v57  ;;  %v973_v10 = vadd.f32 0.008332121, %v972_v23  ;;  %v1092_v13 = vshll.u32 %v7394_v49, 30  ;;  %v579_v36 = vmul.u32 %v577_v28, %v575_v31 }
 0x1a8   : > { %v583_v9 = vshll.u32 %v580_v21, 16  ;;  %v582_v48 = vmul.u32 %v578_v59, %v7392_v2  ;;  %v585_v56 = vshll.u32 %v7400_v61, 16  ;;  %v600_v15 = vshrl.u32 %v569_v25, 16 }
 0x1a9   : > { %v967_v55 = vmul.f32 %v966_v53, %v964_v30  ;;  %v974_v18 = vmul.f32 %v973_v10, %v964_v30  ;;  %v7410_v42 = vsub.s32 %v1089_v37, %v1092_v13  ;;  %v542_v35 = vshrl.u32 %v11314_v45, %v11351_v60 }
 0x1aa   : > { %vm587_vm2 = vc.u32 %v579_v36, %v583_v9  ;;  %v589_v16 = vadd.s32 %v583_v9, %v579_v36  ;;  %v599_v0 = vand.u32 65535, %v569_v25  ;;  %vm982_vm4 = vcmp.lt.s32.totalorder %v981_v6, 2 }
 0x1ab   : > { %v968_v22 = vadd.f32 -0.4999988, %v967_v55  ;;  %v975_v26 = vadd.f32 -0.16666654, %v974_v18  ;;  %vm1094_vm3 = vcmp.lt.s32.totalorder %v7410_v42, 0  ;;  %v1095_v43 = vsub.s32 0, %v7410_v42 }
 0x1ac   : > { %v588_v63 = vsel %vm587_vm2, 1, %v11317_v5  ;;  %vm591_vm1 = vc.u32 %v589_v16, %v585_v56  ;;  %vm979_vm6 = vweird.f32 %v6482_v38  ;;  %vm983_vm7 = vcmp.eq.s32.totalorder %v981_v6, 0 }
 0x1ad   : > { %v969_v24 = vmul.f32 %v968_v22, %v964_v30  ;;  %v976_v37 = vmul.f32 %v975_v26, %v964_v30  ;;  %v1096_v41 = vsel %vm1094_vm3, %v1095_v43, %v7410_v42  ;;  %v590_v27 = vadd.s32 %v588_v63, %v582_v48 }
 0x1ae   : > { %v1097_v14 = vclz %v1096_v41  ;;  %v592_v1 = vsel %vm591_vm1, 1, %v11317_v5  ;;  %v602_v54 = vmul.u32 %v600_v15, %v575_v31  ;;  %v563_v60 = vsel %vm561_vm5, %v7358_v17, 2102212464 }
 0x1af   : > { %v970_v28 = vadd.f32 1.0, %v969_v24  ;;  %v977_v59 = vadd.f32 1.0, %v976_v37  ;;  %v594_v57 = vadd.s32 %v592_v1, %v590_v27  ;;  %vm986_vm8 = vcmp.eq.s32.totalorder %v981_v6, 2 }
 0x1b0   : > { %v1085_v30 = vadd.s32 %v7332_v58, %v7328_v62  ;;  %v5963_v23 = vadd.s32 4294967294, %v1097_v14  ;;  %v603_v53 = vmul.u32 %v599_v0, %v7392_v2  ;;  %v562_v25 = vsel %vm558_vm11, %v542_v35, %v7352_v11 }
 0x1b1   : > { %v978_v10 = vmul.f32 %v977_v59, %v962_v34  ;;  %v987_v13 = vxor.u32 2147483648, %v970_v28  ;;  %v584_v36 = vshrl.u32 %v580_v21, 16  ;;  %v564_v17 = vsel %vm560_vm13, %v7354_v7, %v563_v60  ;;  %v11355_v60 = vld [vmem:[#allocation17_spill] sm:$0xff] }
 0x1b2   : > { %vm5964_vm9 = vcmp.lt.s32.totalorder %v5963_v23, 0  ;;  %v601_v9 = vmul.u32 %v599_v0, %v575_v31  ;;  %v605_v55 = vshll.u32 %v602_v54, 16  ;;  %v604_v58 = vmul.u32 %v600_v15, %v7392_v2 }
 0x1b3   : > { %v984_v18 = vxor.u32 2147483648, %v978_v10  ;;  %v1100_v48 = vsel %vm5964_vm9, 0, %v5963_v23  ;;  %v595_v62 = vadd.s32 %v594_v57, %v584_v36  ;;  %v988_v34 = vsel %vm986_vm8, %v987_v13, %v978_v10 }
 0x1b4   : > { %v1101_v56 = vsub.s32 32, %v1100_v48  ;;  %v1105_v16 = vsub.s32 4294967266, %v1100_v48  ;;  %v607_v22 = vshll.u32 %v603_v53, 16  ;;  %v1102_v21 = vshll.u32 %v7410_v42, %v1100_v48 }
 0x1b5   : > { %v985_v11 = vsel %vm983_vm7, %v970_v28, %v984_v18  ;;  %vm609_vm5 = vc.u32 %v601_v9, %v605_v55  ;;  %v611_v26 = vadd.s32 %v605_v55, %v601_v9  ;;  %v726_v2 = vsel %vm716_vm15, %v712_v44, 1326507024  ;;  %v11354_v44 = vld [vmem:[#allocation14_spill] sm:$0xff] }
 0x1b6   : > { %v989_v7 = vsel %vm982_vm4, %v985_v11, %v988_v34  ;;  %v1103_v31 = vshrl.u32 %v1085_v30, %v1101_v56  ;;  %v1106_v43 = vadd.s32 127, %v1105_v16  ;;  %v610_v35 = vsel %vm609_vm5, 1, %v11317_v5 }
 0x1b7   : > { %v990_v15 = vsel %vm979_vm6, nan, %v989_v7  ;;  %v612_v63 = vadd.s32 %v610_v35, %v604_v58  ;;  %vm613_vm10 = vc.u32 %v611_v26, %v607_v22  ;;  %vm993_vm12 = vcmp.lt.s32.totalorder %v11335_v20, 0 }
 0x1b8   : > { %1812 = vmatpush.msra.mxu2 %v990_v15  ;;  %v1104_v6 = vor.u32 %v1103_v31, %v1102_v21  ;;  %v1107_v42 = vshll.u32 %v1106_v43, 23  ;;  %v586_v0 = vshrl.u32 %v7400_v61, 16  ;;  %v614_v24 = vsel %vm613_vm10, 1, %v11317_v5 }
 0x1b9   : > { %v565_v46 = vsel %vm559_vm14, %v562_v25, %v564_v17  ;;  %v606_v29 = vshrl.u32 %v602_v54, 16  ;;  %v616_v37 = vadd.s32 %v614_v24, %v612_v63  ;;  %v681_v41 = vand.u32 2147483647, %v11354_v44 }
 0x1ba   : > { %v1108_v38 = vor.u32 4788187, %v1107_v42  ;;  %v7453_v27 = vadd.s32 %v595_v62, %v586_v0  ;;  %v608_v14 = vshrl.u32 %v603_v53, 16  ;;  %v7455_v1 = vadd.s32 %v611_v26, %v607_v22 }
 0x1bb   : > { %v1111_v28 = vcvt.s32.f32 %v1104_v6  ;;  %v617_v59 = vadd.s32 %v616_v37, %v606_v29  ;;  %v688_v61 = vand.u32 8388607, %v681_v41  ;;  %v698_v57 = vshll.u32 %v11314_v45, %v11355_v60 }
 0x1bc   : > { %v1109_v19 = vand.u32 2147483647, %v1108_v38  ;;  %v699_v54 = vshrl.u32 %v11318_v4, %v11332_v3  ;;  %v701_v30 = vshll.u32 %v11318_v4, %v11355_v60  ;;  %v702_v23 = vshrl.u32 %v11319_v32, %v11332_v3 }
 0x1bd   : > { %v1115_v53 = vsub.s32 4, %v7394_v49  ;;  %v618_v10 = vadd.s32 %v617_v59, %v608_v14  ;;  %v704_v13 = vshll.u32 %v11319_v32, %v11355_v60  ;;  %v705_v25 = vshrl.u32 %v11313_v33, %v11332_v3 }
 0x1be   : > { %v1112_v36 = vmul.f32 %v1111_v28, %v1109_v19  ;;  %vm621_vm13 = vc.u32 %v7453_v27, %v7455_v1  ;;  %v7474_v17 = vor.u32 %v699_v54, %v698_v57  ;;  %v7476_v9 = vor.u32 %v702_v23, %v701_v30 }
 0x1bf   : > { %v622_v55 = vadd.s32 1, %v618_v10  ;;  %v689_v18 = vor.u32 8388608, %v688_v61  ;;  %v7478_v48 = vor.u32 %v705_v25, %v704_v13  ;;  %vm715_vm11 = vcmp.lt.s32.totalorder %v11353_v39, 3 }
 0x1c0   : > { %v1113_v62 = vxor.u32 2147483648, %v1112_v36  ;;  %v619_v58 = vmul.u32 %v7368_v8, %v565_v46  ;;  %vm713_vm14 = vcmp.lt.s32.totalorder %v11353_v39, 1  ;;  %v727_v34 = vsel %vm715_vm11, %v7287_v40, %v726_v2 }
 0x1c1   : > { %vm7488_vm2 = vcmp.le.f32.partialorder %v991_v47, 0.7853982  ;;  %v1116_v16 = vsel %vm993_vm12, %v1115_v53, %v7394_v49  ;;  %v623_v22 = vsel %vm621_vm13, %v622_v55, %v618_v10  ;;  %v725_v8 = vsel %vm713_vm14, %v7476_v9, %v7478_v48 }
 0x1c2   : > { %v1114_v11 = vsel %vm993_vm12, %v1113_v62, %v1112_v36  ;;  %v624_v40 = vadd.s32 %v623_v22, %v619_v58  ;;  %vm714_vm3 = vcmp.lt.s32.totalorder %v11353_v39, 2  ;;  %v721_v47 = vsel %vm713_vm14, %v7474_v17, %v7476_v9 }
 0x1c3   : > { %v1117_v49 = vsel %vm7488_vm2, %v11335_v20, %v1114_v11  ;;  %v723_v21 = vsel %vm715_vm11, %v7478_v48, %v7408_v51  ;;  %v728_v26 = vsel %vm714_vm3, %v725_v8, %v727_v34  ;;  %v7515_v7 = vshll.u32 %v689_v18, 8 }
 0x1c4   : > { %v1119_v31 = vmul.f32 %v1117_v49, %v1117_v49  ;;  %v625_v43 = vadd.s32 536870912, %v624_v40  ;;  %v732_v35 = vand.u32 65535, %v728_v26  ;;  %v733_v2 = vshrl.u32 %v728_v26, 16 }
 0x1c5   : > { %v1118_v15 = vsel %vm7488_vm2, 0, %v1116_v16  ;;  %v730_v63 = vand.u32 65535, %v7515_v7  ;;  %v731_v6 = vshrl.u32 %v7515_v7, 16  ;;  %v724_v51 = vsel %vm714_vm3, %v721_v47, %v723_v21 }
 0x1c6   : > { %v1120_v42 = vmul.f32 -0.001358992, %v1119_v31  ;;  %v1127_v0 = vmul.f32 -0.00019511016, %v1119_v31  ;;  %v7521_v24 = vshrl.u32 %v625_v43, 30  ;;  %v1135_v28 = vadd.s32 3, %v1118_v15 }
 0x1c7   : > { %v735_v46 = vmul.u32 %v733_v2, %v730_v63  ;;  %v7525_v29 = vmul.u32 %v732_v35, %v731_v6  ;;  %v734_v59 = vmul.u32 %v732_v35, %v730_v63  ;;  %v755_v60 = vshrl.u32 %v724_v51, 16 }
 0x1c8   : > { %v1121_v37 = vadd.f32 0.041655596, %v1120_v42  ;;  %v1128_v38 = vadd.f32 0.008332121, %v1127_v0  ;;  %v627_v14 = vshll.u32 %v7521_v24, 30  ;;  %v754_v30 = vand.u32 65535, %v724_v51 }
 0x1c9   : > { %v738_v61 = vshll.u32 %v735_v46, 16  ;;  %v737_v23 = vmul.u32 %v733_v2, %v731_v6  ;;  %v740_v53 = vshll.u32 %v7525_v29, 16  ;;  %v1136_v55 = vand.u32 3, %v1135_v28 }
 0x1ca   : > { %v1122_v57 = vmul.f32 %v1121_v37, %v1119_v31  ;;  %v1129_v19 = vmul.f32 %v1128_v38, %v1119_v31  ;;  %v628_v54 = vsub.s32 %v624_v40, %v627_v14  ;;  %v757_v62 = vmul.u32 %v755_v60, %v730_v63 }
 0x1cb   : > { %vm742_vm1 = vc.u32 %v734_v59, %v738_v61  ;;  %v744_v10 = vadd.s32 %v738_v61, %v734_v59  ;;  %vm1134_vm7 = vweird.f32 %v11335_v20  ;;  %v758_v21 = vmul.u32 %v754_v30, %v731_v6 }
 0x1cc   : > { %v1123_v13 = vadd.f32 -0.4999988, %v1122_v57  ;;  %v1130_v25 = vadd.f32 -0.16666654, %v1129_v19  ;;  %vm629_vm4 = vcmp.lt.s32.totalorder %v628_v54, 0  ;;  %v630_v36 = vsub.s32 0, %v628_v54 }
 0x1cd   : > { %v743_v18 = vsel %vm742_vm1, 1, %v11317_v5  ;;  %vm746_vm6 = vc.u32 %v744_v10, %v740_v53  ;;  %vm1137_vm8 = vcmp.lt.s32.totalorder %v1136_v55, 2  ;;  %vm1138_vm9 = vcmp.eq.s32.totalorder %v1136_v55, 0 }
 0x1ce   : > { %v1124_v58 = vmul.f32 %v1123_v13, %v1119_v31  ;;  %v1131_v34 = vmul.f32 %v1130_v25, %v1119_v31  ;;  %v631_v56 = vsel %vm629_vm4, %v630_v36, %v628_v54  ;;  %v745_v16 = vadd.s32 %v743_v18, %v737_v23 }
 0x1cf   : > { %v632_v22 = vclz %v631_v56  ;;  %v747_v8 = vsel %vm746_vm6, 1, %v11317_v5  ;;  %vm1141_vm5 = vcmp.eq.s32.totalorder %v1136_v55, 2  ;;  %v739_v2 = vshrl.u32 %v735_v46, 16 }
 0x1d0   : > { %v1125_v11 = vadd.f32 1.0, %v1124_v58  ;;  %v1132_v40 = vadd.f32 1.0, %v1131_v34  ;;  %v749_v47 = vadd.s32 %v747_v8, %v745_v16  ;;  %v760_v15 = vshll.u32 %v757_v62, 16 }
 0x1d1   : > { %v5954_v26 = vadd.s32 4294967294, %v632_v22  ;;  %v620_v31 = vadd.s32 %v7455_v1, %v7453_v27  ;;  %v756_v42 = vmul.u32 %v754_v30, %v730_v63  ;;  %v759_v0 = vmul.u32 %v755_v60, %v731_v6 }
 0x1d2   : > { %v1133_v43 = vmul.f32 %v1132_v40, %v1117_v49  ;;  %v1142_v35 = vxor.u32 2147483648, %v1125_v11  ;;  %v750_v38 = vadd.s32 %v749_v47, %v739_v2  ;;  %v762_v14 = vshll.u32 %v758_v21, 16 }
 0x1d3   : > { %vm5955_vm10 = vcmp.lt.s32.totalorder %v5954_v26, 0  ;;  %vm764_vm12 = vc.u32 %v756_v42, %v760_v15  ;;  %v766_v19 = vadd.s32 %v760_v15, %v756_v42  ;;  %v697_v60 = vshrl.u32 %v11314_v45, %v11332_v3 }
 0x1d4   : > { %v1139_v51 = vxor.u32 2147483648, %v1133_v43  ;;  %v635_v37 = vsel %vm5955_vm10, 0, %v5954_v26  ;;  %v1143_v28 = vsel %vm1141_vm5, %v1142_v35, %v1133_v43  ;;  %v765_v46 = vsel %vm764_vm12, 1, %v11317_v5 }
 0x1d5   : > { %v636_v59 = vsub.s32 32, %v635_v37  ;;  %v640_v61 = vsub.s32 4294967266, %v635_v37  ;;  %v637_v49 = vshll.u32 %v628_v54, %v635_v37  ;;  %v767_v63 = vadd.s32 %v765_v46, %v759_v0 }
 0x1d6   : > { %v1140_v57 = vsel %vm1138_vm9, %v1125_v11, %v1139_v51  ;;  %v718_v30 = vsel %vm716_vm15, %v7478_v48, 2102212464  ;;  %vm768_vm13 = vc.u32 %v766_v19, %v762_v14  ;;  %v741_v10 = vshrl.u32 %v7525_v29, 16 }
 0x1d7   : > { %v1144_v23 = vsel %vm1137_vm8, %v1140_v57, %v1143_v28  ;;  %v638_v27 = vshrl.u32 %v620_v31, %v636_v59  ;;  %v641_v1 = vadd.s32 127, %v640_v61  ;;  %v769_v13 = vsel %vm768_vm13, 1, %v11317_v5 }
 0x1d8   : > { %v1145_v6 = vsel %vm1134_vm7, nan, %v1144_v23  ;;  %v761_v25 = vshrl.u32 %v757_v62, 16  ;;  %v771_v36 = vadd.s32 %v769_v13, %v767_v63  ;;  %v717_v20 = vsel %vm713_vm14, %v697_v60, %v7474_v17 }
 0x1d9   : > { %1841 = vmatpush.msra.mxu3 %v1145_v6  ;;  %v639_v54 = vor.u32 %v638_v27, %v637_v49  ;;  %v642_v53 = vshll.u32 %v641_v1, 23  ;;  %v719_v3 = vsel %vm715_vm11, %v7476_v9, %v718_v30  ;;  %v751_v48 = vadd.s32 %v750_v38, %v741_v10 }
 0x1da   : > { %v763_v18 = vshrl.u32 %v758_v21, 16  ;;  %v772_v58 = vadd.s32 %v771_v36, %v761_v25  ;;  %v770_v16 = vadd.s32 %v766_v19, %v762_v14  ;;  %v720_v29 = vsel %vm714_vm3, %v717_v20, %v719_v3 }
 0x1db   : > { %v643_v55 = vor.u32 4788187, %v642_v53  ;;  %v646_v56 = vcvt.s32.f32 %v639_v54  ;;  %v774_v17 = vmul.u32 %v7515_v7, %v720_v29  ;;  %vm528_vm14 = vcmp.lt.s32.totalorder %v11349_v52, 0  ;;  %v427_v29 = vld [vmem:[%s11098_s3] sm:$0xff] }
 0x1dc   : > { %v773_v62 = vadd.s32 %v772_v58, %v763_v18  ;;  %vm776_vm15 = vc.u32 %v751_v48, %v770_v16  ;;  %v650_v9 = vsub.s32 4, %v7521_v24  ;;  %vm7559_vm11 = vcmp.le.f32.partialorder %v526_v12, 0.7853982 }
 0x1dd   : > { %v644_v34 = vand.u32 2147483647, %v643_v55  ;;  %v775_v53 = vadd.s32 %v770_v16, %v751_v48  ;;  %vm669_vm6 = vweird.f32 %v11349_v52  ;;  %vm683_vm8 = vcmp.lt.s32.totalorder %v11354_v44, 0 }
 0x1de   : > { %v777_v8 = vadd.s32 1, %v773_v62  ;;  %v651_v7 = vsel %vm528_vm14, %v650_v9, %v7521_v24  ;;  %vm7580_vm9 = vcmp.le.f32.partialorder %v681_v41, 0.7853982  ;;  %vm824_vm13 = vweird.f32 %v11354_v44 }
 0x1df   : > { %v647_v22 = vmul.f32 %v646_v56, %v644_v34  ;;  %v653_v42 = vsel %vm7559_vm11, 0, %v651_v7 }
 0x1e0   : > { %v778_v40 = vsel %vm776_vm15, %v777_v8, %v773_v62  ;;  %v670_v28 = vadd.s32 3, %v653_v42 }
 0x1e1   : > { %v648_v11 = vxor.u32 2147483648, %v647_v22  ;;  %v779_v21 = vadd.s32 %v778_v40, %v774_v17 }
 0x1e2   : > { %v671_v1 = vand.u32 3, %v670_v28 }
 0x1e3   : > { %v649_v39 = vsel %vm528_vm14, %v648_v11, %v647_v22  ;;  %v780_v35 = vadd.s32 536870912, %v779_v21  ;;  %v428_v22 = vld [vmem:[%s11098_s3 + $0x8] sm:$0xff] }
 0x1e4   : > { %v652_v26 = vsel %vm7559_vm11, %v11349_v52, %v649_v39  ;;  %vm673_vm1 = vcmp.eq.s32.totalorder %v671_v1, 0  ;;  %vm676_vm4 = vcmp.eq.s32.totalorder %v671_v1, 2  ;;  %vm672_vm7 = vcmp.lt.s32.totalorder %v671_v1, 2  ;;  %v3111_v1 = vld [vmem:[%s11101_s6 + $0x18] sm:$0xff] }
 0x1e5   : > { %v654_v43 = vmul.f32 %v652_v26, %v652_v26  ;;  %v781_v31 = vshrl.u32 %v780_v35, 30 }
 0x1e7   : > { %v655_v2 = vmul.f32 -0.001358992, %v654_v43  ;;  %v662_v15 = vmul.f32 -0.00019511016, %v654_v43  ;;  %v782_v51 = vshll.u32 %v781_v31, 30  ;;  %v805_v9 = vsub.s32 4, %v781_v31 }
 0x1e9   : > { %v656_v12 = vadd.f32 0.041655596, %v655_v2  ;;  %v663_v0 = vadd.f32 0.008332121, %v662_v15  ;;  %v783_v14 = vsub.s32 %v779_v21, %v782_v51 }
 0x1eb   : > { %v657_v37 = vmul.f32 %v656_v12, %v654_v43  ;;  %v664_v38 = vmul.f32 %v663_v0, %v654_v43  ;;  %vm784_vm2 = vcmp.lt.s32.totalorder %v783_v14, 0  ;;  %v785_v57 = vsub.s32 0, %v783_v14 }
 0x1ed   : > { %v658_v59 = vadd.f32 -0.4999988, %v657_v37  ;;  %v665_v61 = vadd.f32 -0.16666654, %v664_v38  ;;  %v786_v24 = vsel %vm784_vm2, %v785_v57, %v783_v14  ;;  %v434_v57 = vld [vmem:[%s11099_s4 + $0x18] sm:$0xff] }
 0x1ee   : > { %v787_v19 = vclz %v786_v24  ;;  %1783 = vperm.xlu2 %6138, %v434_v57  }
 0x1ef   : > { %v659_v49 = vmul.f32 %v658_v59, %v654_v43  ;;  %v666_v46 = vmul.f32 %v665_v61, %v654_v43  ;;  %v429_v43 = vld [vmem:[%s11098_s3 + $0x10] sm:$0xff] }
 0x1f0   : > { %v5957_v63 = vadd.s32 4294967294, %v787_v19 }
 0x1f1   : > { %v660_v23 = vadd.f32 1.0, %v659_v49  ;;  %v667_v27 = vadd.f32 1.0, %v666_v46 }
 0x1f2   : > { %vm5958_vm3 = vcmp.lt.s32.totalorder %v5957_v63, 0 }
 0x1f3   : > { %v668_v6 = vmul.f32 %v667_v27, %v652_v26  ;;  %v677_v60 = vxor.u32 2147483648, %v660_v23  ;;  %v790_v54 = vsel %vm5958_vm3, 0, %v5957_v63  ;;  %v806_v26 = vsel %vm683_vm8, %v805_v9, %v781_v31  ;;  %v430_v31 = vld [vmem:[%s11098_s3 + $0x18] sm:$0xff]  ;;  %v433_v27 = vld [vmem:[%s11099_s4 + $0x10] sm:$0xff]  ;;  %v3117_v63 = vld [vmem:[%s11103_s8 + $0x8] sm:$0xff] }
 0x1f4   : > { %v791_v10 = vsub.s32 32, %v790_v54  ;;  %v795_v13 = vsub.s32 4294967266, %v790_v54  ;;  %v792_v20 = vshll.u32 %v783_v14, %v790_v54  ;;  %v808_v7 = vsel %vm7580_vm9, 0, %v806_v26 }
 0x1f5   : > { %v674_v30 = vxor.u32 2147483648, %v668_v6  ;;  %v678_v36 = vsel %vm676_vm4, %v677_v60, %v668_v6  ;;  %v825_v0 = vadd.s32 3, %v808_v7  ;;  %v1769_v6 = vpop.permute.xlu1 %1768 }
 0x1f6   : > { %v793_v3 = vshrl.u32 %v775_v53, %v791_v10  ;;  %v796_v18 = vadd.s32 127, %v795_v13  ;;  %1778 = vperm.xlu2 %6138, %v433_v27  }
 0x1f7   : > { %v675_v25 = vsel %vm673_vm1, %v660_v23, %v674_v30  ;;  %v826_v28 = vand.u32 3, %v825_v0 }
 0x1f8   : > { %v679_v55 = vsel %vm672_vm7, %v675_v25, %v678_v36  ;;  %v794_v34 = vor.u32 %v793_v3, %v792_v20  ;;  %v797_v56 = vshll.u32 %v796_v18, 23  ;;  %v7622_v3 = vpop.permute.xlu0 %1773 }
 0x1f9   : > { %v680_v58 = vsel %vm669_vm6, nan, %v679_v55  ;;  %vm828_vm5 = vcmp.eq.s32.totalorder %v826_v28, 0  ;;  %vm831_vm10 = vcmp.eq.s32.totalorder %v826_v28, 2  ;;  %vm827_vm12 = vcmp.lt.s32.totalorder %v826_v28, 2 }
 0x1fa   : > { %1813 = vmatpush.msra.mxu2 %v680_v58  ;;  %v798_v48 = vor.u32 4788187, %v797_v56  ;;  %v801_v52 = vcvt.s32.f32 %v794_v34  ;;  %v11363_v56 = vmov 920167782  }
 0x1fb   : > { %5977 = vmatmul.msk.f32.vlgmr.msra.gmra.mxu2 %vm11281_vm0, %v427_v29 }
 0x1fc   : > { %v799_v16 = vand.u32 2147483647, %v798_v48 }
 0x1fe   : > { %v802_v62 = vmul.f32 %v801_v52, %v799_v16  ;;  %3137 = vperm.xlu2 %6138, %v3111_v1  }
 0x200   : > { %v803_v8 = vxor.u32 2147483648, %v802_v62 }
 0x202   : > { %v804_v17 = vsel %vm683_vm8, %v803_v8, %v802_v62 }
 0x203   : > { %5978 = vmatmul.msk.f32.gmra.mxu2 %vm11281_vm0, %v428_v22  ;;  %v807_v40 = vsel %vm7580_vm9, %v11354_v44, %v804_v17  ;;  %v3108_v44 = vld [vmem:[%s11101_s6] sm:$0xff] }
 0x204   : > { %v809_v47 = vmul.f32 %v807_v40, %v807_v40 }
 0x206   : > { %v810_v39 = vmul.f32 -0.001358992, %v809_v47  ;;  %v817_v21 = vmul.f32 -0.00019511016, %v809_v47  ;;  %3122 = vperm.xlu2 %6138, %v3108_v44  }
 0x208   : > { %v811_v41 = vadd.f32 0.041655596, %v810_v39  ;;  %v818_v35 = vadd.f32 0.008332121, %v817_v21 }
 0x20a   : > { %v812_v2 = vmul.f32 %v811_v41, %v809_v47  ;;  %v819_v15 = vmul.f32 %v818_v35, %v809_v47 }
 0x20b   : > { %5979 = vmatmul.msk.f32.gmra.mxu2 %vm11281_vm0, %v429_v43 }
 0x20c   : > { %v813_v42 = vadd.f32 -0.4999988, %v812_v2  ;;  %v820_v12 = vadd.f32 -0.16666654, %v819_v15 }
 0x20e   : > { %v814_v51 = vmul.f32 %v813_v42, %v809_v47  ;;  %v821_v37 = vmul.f32 %v820_v12, %v809_v47  ;;  %4457 = vperm.xlu2 %6138, %v3117_v63  }
 0x210   : > { %v815_v38 = vadd.f32 1.0, %v814_v51  ;;  %v822_v14 = vadd.f32 1.0, %v821_v37 }
 0x212   : > { %v823_v59 = vmul.f32 %v822_v14, %v807_v40  ;;  %v832_v61 = vxor.u32 2147483648, %v815_v38 }
 0x213   : > { %5980 = vmatmul.msk.f32.gmra.mxu2 %vm11281_vm0, %v430_v31 }
 0x214   : > { %v829_v49 = vxor.u32 2147483648, %v823_v59  ;;  %v833_v24 = vsel %vm831_vm10, %v832_v61, %v823_v59 }
 0x216   : > { %v830_v46 = vsel %vm828_vm5, %v815_v38, %v829_v49 }
 0x217   : > { %v834_v19 = vsel %vm827_vm12, %v830_v46, %v833_v24 }
 0x218   : > { %v835_v23 = vsel %vm824_vm13, nan, %v834_v19 }
 0x219   : > { %1842 = vmatpush.msra.mxu3 %v835_v23 }
 0x21a   : > { %5981 = vmatmul.msk.f32.vlgmr.msra.gmra.mxu3 %vm11281_vm0, %v427_v29 }
 0x222   : > { %5982 = vmatmul.msk.f32.gmra.mxu3 %vm11281_vm0, %v428_v22 }
 0x22a   : > { %5983 = vmatmul.msk.f32.gmra.mxu3 %vm11281_vm0, %v429_v43 }
 0x232   : > { %5984 = vmatmul.msk.f32.gmra.mxu3 %vm11281_vm0, %v430_v31 }
 0x27e   : > { %v1815_v60 = vpop.f32.mrf.mxu2 }
 0x27f   : > { %v7618_v30 = vadd.f32 %v1815_v60, %v1769_v6 }
 0x281   : > { %11362 = vst [vmem:[#allocation32_spill] sm:$0xff] %v7618_v30  ;;  %v1859_v54 = vand.u32 2139095040, %v7618_v30  ;;  %v11151_v58 = vand.u32 2147483647, %v7618_v30 }
 0x283   : > { %v1860_v53 = vshrl.u32 %v1859_v54, 23  ;;  %v1863_v21 = vand.u32 8388607, %v11151_v58 }
 0x285   : > { %v5985_v10 = vadd.s32 4294967169, %v1860_v53  ;;  %v1864_v51 = vor.u32 8388608, %v1863_v21 }
 0x286   : > { %v1818_v18 = vpop.f32.mrf.mxu2 }
 0x287   : > { %v1866_v13 = vadd.s32 1, %v5985_v10  ;;  %v7627_v16 = vadd.f32 %v1818_v18, %v7622_v3  ;;  %v7654_v19 = vshll.u32 %v1864_v51, 8 }
 0x289   : > { %vm1867_vm15 = vcmp.gt.s32.totalorder %v1866_v13, 0  ;;  %11364 = vst [vmem:[#allocation33_spill] sm:$0xff] %v7627_v16  ;;  %v2169_v17 = vand.u32 2139095040, %v7627_v16  ;;  %v11154_v57 = vand.u32 2147483647, %v7627_v16  ;;  %v7667_v53 = vand.u32 65535, %v7654_v19 }
 0x28a   : > { %v1868_v25 = vsel %vm1867_vm15, %v1866_v13, 0  ;;  %11367 = vst [vmem:[#allocation15_spill] sm:$0xff] %v7654_v19 }
 0x28b   : > { %v1870_v36 = vand.u32 31, %v1868_v25  ;;  %v1869_v34 = vshrl.u32 %v1868_v25, 5  ;;  %v2170_v43 = vshrl.u32 %v2169_v17, 23  ;;  %v2173_v54 = vand.u32 8388607, %v11154_v57  ;;  %11369 = vst [vmem:[#allocation30_spill] sm:$0xff] %v7667_v53 }
 0x28d   : > { %v1871_v55 = vsub.s32 32, %v1870_v36  ;;  %v1885_v29 = vshll.u32 %v11363_v56, %v1870_v36  ;;  %v1876_v9 = vshll.u32 %v11318_v4, %v1870_v36  ;;  %v1879_v40 = vshll.u32 %v11319_v32, %v1870_v36 }
 0x28e   : > { %v1882_v47 = vshll.u32 %v11313_v33, %v1870_v36  ;;  %vm1891_vm14 = vcmp.lt.s32.totalorder %v1869_v34, 4  ;;  %v5991_v42 = vadd.s32 4294967169, %v2170_v43  ;;  %v1873_v12 = vshll.u32 %v11314_v45, %v1870_v36 }
 0x28f   : > { %v1886_v20 = vshrl.u32 %v11333_v50, %v1871_v55  ;;  %v1877_v52 = vshrl.u32 %v11319_v32, %v1871_v55  ;;  %v1880_v62 = vshrl.u32 %v11313_v33, %v1871_v55  ;;  %v1883_v22 = vshrl.u32 %v11363_v56, %v1871_v55 }
 0x290   : > { %v1874_v26 = vshrl.u32 %v11318_v4, %v1871_v55  ;;  %vm1888_vm11 = vcmp.lt.s32.totalorder %v1869_v34, 1  ;;  %vm1890_vm2 = vcmp.lt.s32.totalorder %v1869_v34, 3  ;;  %v2176_v59 = vadd.s32 1, %v5991_v42 }
 0x291   : > { %v1887_v11 = vor.u32 %v1886_v20, %v1885_v29  ;;  %v1878_v41 = vor.u32 %v1877_v52, %v1876_v9  ;;  %v1881_v35 = vor.u32 %v1880_v62, %v1879_v40  ;;  %v1884_v7 = vor.u32 %v1883_v22, %v1882_v47 }
 0x292   : > { %v1875_v37 = vor.u32 %v1874_v26, %v1873_v12  ;;  %vm1889_vm3 = vcmp.lt.s32.totalorder %v1869_v34, 2  ;;  %v1872_v23 = vshrl.u32 %v11314_v45, %v1871_v55  ;;  %vm2177_vm4 = vcmp.gt.s32.totalorder %v2176_v59, 0  ;;  %v7706_v26 = vpop.permute.xlu2 %1783 }
 0x293   : > { %v1901_v15 = vsel %vm1891_vm14, %v1887_v11, 1326507024  ;;  %v1900_v31 = vsel %vm1888_vm11, %v1878_v41, %v1881_v35  ;;  %v1897_v28 = vsel %vm1891_vm14, %v1884_v7, 920167782  ;;  %v1893_v49 = vsel %vm1891_vm14, %v1881_v35, 2102212464 }
 0x294   : > { %v1902_v38 = vsel %vm1890_vm2, %v1884_v7, %v1901_v15  ;;  %v1896_v46 = vsel %vm1888_vm11, %v1875_v37, %v1878_v41  ;;  %v1898_v24 = vsel %vm1890_vm2, %v1881_v35, %v1897_v28  ;;  %v1892_v63 = vsel %vm1888_vm11, %v1872_v23, %v1875_v37 }
 0x295   : > { %v7648_v61 = vsel %vm1889_vm3, %v1900_v31, %v1902_v38  ;;  %v7662_v60 = vsel %vm1889_vm3, %v1896_v46, %v1898_v24  ;;  %v2178_v13 = vsel %vm2177_vm4, %v2176_v59, 0  ;;  %v2174_v52 = vor.u32 8388608, %v2173_v54 }
 0x296   : > { %11366 = vst [vmem:[#allocation31_spill] sm:$0xff] %v7648_v61  ;;  %v1908_v1 = vshrl.u32 %v7648_v61, 16  ;;  %v11155_v36 = vand.u32 65535, %v7648_v61  ;;  %v1930_v18 = vshrl.u32 %v7662_v60, 16  ;;  %v2180_v62 = vand.u32 31, %v2178_v13 }
 0x297   : > { %11368 = vst [vmem:[#allocation22_spill] sm:$0xff] %v7662_v60  ;;  %v7708_v43 = vshrl.u32 %v2178_v13, 5  ;;  %v7710_v35 = vshll.u32 %v2174_v52, 8 }
 0x298   : > { %v7674_v20 = vmul.u32 %v1908_v1, %v7667_v53  ;;  %v7690_v11 = vmul.u32 %v11155_v36, %v7667_v53  ;;  %v2183_v37 = vshll.u32 %v11314_v45, %v2180_v62  ;;  %v2186_v31 = vshll.u32 %v11318_v4, %v2180_v62 }
 0x299   : > { %11378 = vst [vmem:[#allocation16_spill] sm:$0xff] %v7710_v35  ;;  %v2189_v59 = vshll.u32 %v11319_v32, %v2180_v62  ;;  %v2192_v52 = vshll.u32 %v11313_v33, %v2180_v62  ;;  %vm2201_vm5 = vcmp.lt.s32.totalorder %v7708_v43, 4  ;;  %vm2198_vm10 = vcmp.lt.s32.totalorder %v7708_v43, 1 }
 0x29a   : > { %11371 = vst [vmem:[#allocation26_spill] sm:$0xff] %v7674_v20  ;;  %v11157_v47 = vshll.u32 %v7674_v20, 16  ;;  %vm2200_vm12 = vcmp.lt.s32.totalorder %v7708_v43, 3  ;;  %vm2199_vm15 = vcmp.lt.s32.totalorder %v7708_v43, 2 }
 0x29b   : > { %11374 = vst [vmem:[#allocation27_spill] sm:$0xff] %v7690_v11 }
 0x29d   : > { %v1844_v48 = vpop.f32.mrf.mxu3 }
 0x29e   : > { %v7632_v8 = vadd.f32 %v1844_v48, %v1769_v6  ;;  %v1894_v6 = vsel %vm1890_vm2, %v1878_v41, %v1893_v49  ;;  %v7682_v48 = vshrl.u32 %v7654_v19, 16  ;;  %v2181_v41 = vsub.s32 32, %v2180_v62 }
 0x29f   : > { %v7671_v55 = vsel %vm1889_vm3, %v1892_v63, %v1894_v6 }
 0x2a0   : > { %11365 = vst [vmem:[#allocation21_spill] sm:$0xff] %v7632_v8  ;;  %v2014_v39 = vand.u32 2139095040, %v7632_v8  ;;  %v11150_v44 = vand.u32 2147483647, %v7632_v8  ;;  %v7693_v17 = vmul.u32 %v1908_v1, %v7682_v48  ;;  %v2196_v23 = vshrl.u32 %v11333_v50, %v2181_v41 }
 0x2a1   : > { %11370 = vst [vmem:[#allocation23_spill] sm:$0xff] %v7671_v55  ;;  %v2193_v63 = vshrl.u32 %v11363_v56, %v2181_v41  ;;  %v2187_v13 = vshrl.u32 %v11319_v32, %v2181_v41 }
 0x2a2   : > { %v2015_v2 = vshrl.u32 %v2014_v39, 23  ;;  %v7679_v29 = vand.u32 8388607, %v11150_v44  ;;  %11372 = vst [vmem:[#allocation19_spill] sm:$0xff] %v7682_v48  ;;  %v7700_v39 = vmul.u32 %v1930_v18, %v7667_v53 }
 0x2a3   : > { %11375 = vst [vmem:[#allocation25_spill] sm:$0xff] %v7693_v17 }
 0x2a4   : > { %v5988_v0 = vadd.s32 4294967169, %v2015_v2  ;;  %11376 = vst [vmem:[#allocation29_spill] sm:$0xff] %v7700_v39  ;;  %v2019_v21 = vor.u32 8388608, %v7679_v29 }
 0x2a5   : > { %v1847_v25 = vpop.f32.mrf.mxu3 }
 0x2a6   : > { %v2021_v14 = vadd.s32 1, %v5988_v0  ;;  %v7685_v22 = vadd.f32 %v1847_v25, %v7622_v3  ;;  %v7703_v3 = vmul.u32 %v1930_v18, %v7682_v48  ;;  %v2195_v25 = vshll.u32 %v11363_v56, %v2180_v62 }
 0x2a8   : > { %vm2022_vm1 = vcmp.gt.s32.totalorder %v2021_v14, 0  ;;  %11373 = vst [vmem:[#allocation24_spill] sm:$0xff] %v7685_v22  ;;  %v11152_v7 = vand.u32 2147483647, %v7685_v22  ;;  %v2324_v12 = vand.u32 2139095040, %v7685_v22 }
 0x2a9   : > { %v2023_v27 = vsel %vm2022_vm1, %v2021_v14, 0  ;;  %11377 = vst [vmem:[#allocation13_spill] sm:$0xff] %v7703_v3 }
 0x2aa   : > { %v2025_v10 = vand.u32 31, %v2023_v27  ;;  %v7713_v2 = vshrl.u32 %v2023_v27, 5 }
 0x2ac   : > { %v2026_v34 = vsub.s32 32, %v2025_v10  ;;  %v2028_v38 = vshll.u32 %v11314_v45, %v2025_v10  ;;  %v2031_v14 = vshll.u32 %v11318_v4, %v2025_v10  ;;  %v2034_v28 = vshll.u32 %v11319_v32, %v2025_v10 }
 0x2ad   : > { %v2037_v46 = vshll.u32 %v11313_v33, %v2025_v10  ;;  %v2040_v24 = vshll.u32 %v11363_v56, %v2025_v10  ;;  %vm2043_vm6 = vcmp.lt.s32.totalorder %v7713_v2, 1  ;;  %vm2045_vm7 = vcmp.lt.s32.totalorder %v7713_v2, 3 }
 0x2ae   : > { %v2029_v15 = vshrl.u32 %v11318_v4, %v2026_v34  ;;  %v2035_v42 = vshrl.u32 %v11313_v33, %v2026_v34  ;;  %v2038_v0 = vshrl.u32 %v11363_v56, %v2026_v34  ;;  %v2041_v51 = vshrl.u32 %v11333_v50, %v2026_v34 }
 0x2af   : > { %v2032_v49 = vshrl.u32 %v11319_v32, %v2026_v34  ;;  %v2027_v18 = vshrl.u32 %v11314_v45, %v2026_v34  ;;  %v2190_v10 = vshrl.u32 %v11313_v33, %v2181_v41  ;;  %vm2044_vm8 = vcmp.lt.s32.totalorder %v7713_v2, 2 }
 0x2b0   : > { %v2030_v27 = vor.u32 %v2029_v15, %v2028_v38  ;;  %v2036_v1 = vor.u32 %v2035_v42, %v2034_v28  ;;  %v2039_v6 = vor.u32 %v2038_v0, %v2037_v46  ;;  %v2042_v54 = vor.u32 %v2041_v51, %v2040_v24  ;;  %v1821_v51 = vpop.f32.mrf.mxu2  ;;  %v7744_v24 = vpop.permute.xlu2 %1778 }
 0x2b1   : > { %v2033_v15 = vor.u32 %v2032_v49, %v2031_v14  ;;  %vm2046_vm9 = vcmp.lt.s32.totalorder %v7713_v2, 4  ;;  %v2184_v42 = vshrl.u32 %v11318_v4, %v2181_v41  ;;  %v2197_v0 = vor.u32 %v2196_v23, %v2195_v25 }
 0x2b2   : > { %v2047_v38 = vsel %vm2043_vm6, %v2027_v18, %v2030_v27  ;;  %v2182_v34 = vshrl.u32 %v11314_v45, %v2181_v41  ;;  %v2194_v28 = vor.u32 %v2193_v63, %v2192_v52  ;;  %v2325_v46 = vshrl.u32 %v2324_v12, 23 }
 0x2b3   : > { %v2048_v44 = vsel %vm2046_vm9, %v2036_v1, 2102212464  ;;  %v2052_v62 = vsel %vm2046_vm9, %v2039_v6, 920167782  ;;  %v2056_v14 = vsel %vm2046_vm9, %v2042_v54, 1326507024  ;;  %v2188_v49 = vor.u32 %v2187_v13, %v2186_v31 }
 0x2b4   : > { %v2191_v58 = vor.u32 %v2190_v10, %v2189_v59  ;;  %v5994_v40 = vadd.s32 4294967169, %v2325_v46  ;;  %v7748_v23 = vadd.f32 %v1821_v51, %v7744_v24  ;;  %v2051_v25 = vsel %vm2043_vm6, %v2030_v27, %v2033_v15 }
 0x2b5   : > { %v2055_v41 = vsel %vm2043_vm6, %v2033_v15, %v2036_v1  ;;  %v2185_v12 = vor.u32 %v2184_v42, %v2183_v37  ;;  %v2211_v63 = vsel %vm2201_vm5, %v2197_v0, 1326507024  ;;  %v2049_v18 = vsel %vm2045_vm7, %v2033_v15, %v2048_v44 }
 0x2b6   : > { %v2053_v31 = vsel %vm2045_vm7, %v2036_v1, %v2052_v62  ;;  %v2207_v59 = vsel %vm2201_vm5, %v2194_v28, 920167782  ;;  %v2331_v54 = vadd.s32 1, %v5994_v40  ;;  %v2057_v13 = vsel %vm2045_vm7, %v2039_v6, %v2056_v14 }
 0x2b7   : > { %v2479_v27 = vand.u32 2139095040, %v7748_v23  ;;  %v2203_v10 = vsel %vm2201_vm5, %v2191_v58, 2102212464  ;;  %v2210_v37 = vsel %vm2198_vm10, %v2188_v49, %v2191_v58  ;;  %v2212_v44 = vsel %vm2200_vm12, %v2194_v28, %v2211_v63 }
 0x2b8   : > { %vm2332_vm13 = vcmp.gt.s32.totalorder %v2331_v54, 0  ;;  %v2206_v40 = vsel %vm2198_vm10, %v2185_v12, %v2188_v49  ;;  %v2208_v1 = vsel %vm2200_vm12, %v2191_v58, %v2207_v59  ;;  %v7773_v15 = vsel %vm2044_vm8, %v2055_v41, %v2057_v13 }
 0x2b9   : > { %v2333_v6 = vsel %vm2332_vm13, %v2331_v54, 0  ;;  %v2480_v52 = vshrl.u32 %v2479_v27, 23  ;;  %11379 = vst [vmem:[#allocation18_spill] sm:$0xff] %v7773_v15  ;;  %v2328_v42 = vand.u32 8388607, %v11152_v7  ;;  %v7781_v51 = vadd.s32 %v11157_v47, %v7690_v11 }
 0x2ba   : > { %v2335_v0 = vand.u32 31, %v2333_v6  ;;  %v7785_v58 = vsel %vm2044_vm8, %v2047_v38, %v2049_v18  ;;  %v7789_v28 = vshll.u32 %v2019_v21, 8  ;;  %v7793_v46 = vsel %vm2199_vm15, %v2210_v37, %v2212_v44 }
 0x2bb   : > { %11380 = vst [vmem:[#allocation28_spill] sm:$0xff] %v7781_v51  ;;  %v7797_v62 = vsel %vm2044_vm8, %v2051_v25, %v2053_v31  ;;  %v2202_v14 = vsel %vm2198_vm10, %v2182_v34, %v2185_v12  ;;  %v2204_v41 = vsel %vm2200_vm12, %v2188_v49, %v2203_v10  ;;  %v7805_v38 = vsel %vm2199_vm15, %v2206_v40, %v2208_v1 }
 0x2bc   : > { %11381 = vst [vmem:[#allocation20_spill] sm:$0xff] %v7785_v58  ;;  %v11153_v29 = vand.u32 65535, %v7773_v15  ;;  %v11156_v21 = vshrl.u32 %v7773_v15, 16  ;;  %v7809_v63 = vsub.s32 32, %v2335_v0  ;;  %v5997_v18 = vadd.s32 4294967169, %v2480_v52 }
 0x2bd   : > { %11382 = vst [vmem:[#allocation14_spill] sm:$0xff] %v7789_v28  ;;  %v7812_v2 = vand.u32 65535, %v7710_v35  ;;  %v7815_v25 = vshrl.u32 %v7710_v35, 16  ;;  %v2218_v34 = vshrl.u32 %v7793_v46, 16  ;;  %v2329_v49 = vor.u32 8388608, %v2328_v42 }
 0x2be   : > { %11383 = vst [vmem:[#allocation17_spill] sm:$0xff] %v7793_v46  ;;  %v7819_v12 = vand.u32 65535, %v7789_v28  ;;  %v7822_v31 = vshrl.u32 %v7789_v28, 16  ;;  %v7826_v59 = vsel %vm2199_vm15, %v2202_v14, %v2204_v41  ;;  %v2240_v54 = vshrl.u32 %v7805_v38, 16 }
 0x2bf   : > { %11384 = vst [vmem:[#allocation34_spill] sm:$0xff] %v7797_v62  ;;  %v11158_v37 = vand.u32 65535, %v7793_v46  ;;  %v2351_v40 = vshrl.u32 %v11333_v50, %v7809_v63  ;;  %v2486_v1 = vadd.s32 1, %v5997_v18  ;;  %v7847_v52 = vmul.u32 %v2218_v34, %v7812_v2 }
 0x2c0   : > { %11385 = vst [vmem:[#allocation35_spill] sm:$0xff] %v7805_v38  ;;  %v7837_v44 = vmul.u32 %v11153_v29, %v7819_v12  ;;  %v7842_v43 = vmul.u32 %v11156_v21, %v7819_v12  ;;  %v7852_v41 = vshll.u32 %v2329_v49, 8  ;;  %v7855_v10 = vmul.u32 %v2240_v54, %v7812_v2 }
 0x2c1   : > { %11386 = vst [vmem:[#allocation36_spill] sm:$0xff] %v7812_v2  ;;  %v7858_v7 = vmul.u32 %v2240_v54, %v7815_v25  ;;  %v2350_v13 = vshll.u32 %v11363_v56, %v2335_v0  ;;  %vm2487_vm14 = vcmp.gt.s32.totalorder %v2486_v1, 0  ;;  %v7864_v18 = vmul.u32 %v11158_v37, %v7812_v2 }
 0x2c2   : > { %11387 = vst [vmem:[#allocation37_spill] sm:$0xff] %v7815_v25  ;;  %v7866_v29 = vshrl.u32 %v2333_v6, 5  ;;  %v2348_v49 = vshrl.u32 %v11363_v56, %v7809_v63  ;;  %v2488_v57 = vsel %vm2487_vm14, %v2486_v1, 0  ;;  %v7871_v27 = vmul.u32 %v2218_v34, %v7815_v25 }
 0x2c3   : > { %11388 = vst [vmem:[#allocation38_spill] sm:$0xff] %v7819_v12  ;;  %v2342_v54 = vshrl.u32 %v11319_v32, %v7809_v63  ;;  %v2345_v9 = vshrl.u32 %v11313_v33, %v7809_v63  ;;  %v2352_v36 = vor.u32 %v2351_v40, %v2350_v13  ;;  %v2347_v47 = vshll.u32 %v11313_v33, %v2335_v0 }
 0x2c4   : > { %11389 = vst [vmem:[#allocation39_spill] sm:$0xff] %v7822_v31  ;;  %v7880_v6 = vand.u32 65535, %v7852_v41  ;;  %v2339_v34 = vshrl.u32 %v11318_v4, %v7809_v63  ;;  %v2341_v1 = vshll.u32 %v11318_v4, %v2335_v0  ;;  %v2344_v42 = vshll.u32 %v11319_v32, %v2335_v0 }
 0x2c5   : > { %11390 = vst [vmem:[#allocation40_spill] sm:$0xff] %v7826_v59  ;;  %v2490_v37 = vand.u32 31, %v2488_v57  ;;  %v2338_v8 = vshll.u32 %v11314_v45, %v2335_v0  ;;  %v2349_v13 = vor.u32 %v2348_v49, %v2347_v47  ;;  %vm2353_vm11 = vcmp.lt.s32.totalorder %v7866_v29, 1  ;;  %v1850_v47 = vpop.f32.mrf.mxu3 }
 0x2c6   : > { %11391 = vst [vmem:[#allocation41_spill] sm:$0xff] %v7837_v44  ;;  %vm2356_vm2 = vcmp.lt.s32.totalorder %v7866_v29, 4  ;;  %v7890_v40 = vor.u32 %v2342_v54, %v2341_v1  ;;  %v2346_v21 = vor.u32 %v2345_v9, %v2344_v42  ;;  %v7900_v19 = vshrl.u32 %v2488_v57, 5 }
 0x2c7   : > { %11392 = vst [vmem:[#allocation42_spill] sm:$0xff] %v7842_v43  ;;  %v2366_v14 = vsel %vm2356_vm2, %v2352_v36, 1326507024  ;;  %v2491_v30 = vsub.s32 32, %v2490_v37  ;;  %v2496_v58 = vshll.u32 %v11318_v4, %v2490_v37  ;;  %v2499_v28 = vshll.u32 %v11319_v32, %v2490_v37 }
 0x2c8   : > { %11393 = vst [vmem:[#allocation43_spill] sm:$0xff] %v7847_v52  ;;  %v2502_v55 = vshll.u32 %v11313_v33, %v2490_v37  ;;  %v2505_v0 = vshll.u32 %v11363_v56, %v2490_v37  ;;  %v7898_v49 = vor.u32 %v2339_v34, %v2338_v8  ;;  %vm2355_vm3 = vcmp.lt.s32.totalorder %v7866_v29, 3 }
 0x2c9   : > { %11394 = vst [vmem:[#allocation44_spill] sm:$0xff] %v7852_v41  ;;  %v2497_v54 = vshrl.u32 %v11319_v32, %v2491_v30  ;;  %v2500_v9 = vshrl.u32 %v11313_v33, %v2491_v30  ;;  %v2362_v36 = vsel %vm2356_vm2, %v2349_v13, 920167782  ;;  %v2503_v42 = vshrl.u32 %v11363_v56, %v2491_v30 }
 0x2ca   : > { %11395 = vst [vmem:[#allocation45_spill] sm:$0xff] %v7855_v10  ;;  %v2506_v1 = vshrl.u32 %v11333_v50, %v2491_v30  ;;  %v2365_v8 = vsel %vm2353_vm11, %v7890_v40, %v2346_v21  ;;  %v2367_v57 = vsel %vm2355_vm3, %v2349_v13, %v2366_v14  ;;  %v11403_v34 = vand.u32 2147483647, %v7748_v23 }
 0x2cb   : > { %11396 = vst [vmem:[#allocation46_spill] sm:$0xff] %v7858_v7  ;;  %v7917_v62 = vadd.f32 %v1850_v47, %v7744_v24  ;;  %v2498_v12 = vor.u32 %v2497_v54, %v2496_v58  ;;  %v2501_v44 = vor.u32 %v2500_v9, %v2499_v28  ;;  %v2504_v3 = vor.u32 %v2503_v42, %v2502_v55  ;;  %v1824_v54 = vpop.f32.mrf.mxu2 }
 0x2cc   : > { %11397 = vst [vmem:[#allocation47_spill] sm:$0xff] %v7864_v18  ;;  %v2483_v22 = vand.u32 8388607, %v11403_v34  ;;  %v2507_v16 = vor.u32 %v2506_v1, %v2505_v0  ;;  %vm2354_vm1 = vcmp.lt.s32.totalorder %v7866_v29, 2  ;;  %v2361_v60 = vsel %vm2353_vm11, %v7898_v49, %v7890_v40 }
 0x2cd   : > { %11398 = vst [vmem:[#allocation48_spill] sm:$0xff] %v7866_v29  ;;  %v2363_v14 = vsel %vm2355_vm3, %v2346_v21, %v2362_v36  ;;  %vm2511_vm4 = vcmp.lt.s32.totalorder %v7900_v19, 4  ;;  %v7929_v24 = vsel %vm2354_vm1, %v2365_v8, %v2367_v57  ;;  %v2493_v58 = vshll.u32 %v11314_v45, %v2490_v37 }
 0x2ce   : > { %11399 = vst [vmem:[#allocation49_spill] sm:$0xff] %v7871_v27  ;;  %v2494_v55 = vshrl.u32 %v11318_v4, %v2491_v30  ;;  %v2521_v28 = vsel %vm2511_vm4, %v2507_v16, 1326507024  ;;  %v11406_v13 = vshll.u32 %v7847_v52, 16  ;;  %v7941_v47 = vshrl.u32 %v7852_v41, 16 }
 0x2cf   : > { %11400 = vst [vmem:[#allocation50_spill] sm:$0xff] %v7880_v6  ;;  %vm2508_vm6 = vcmp.lt.s32.totalorder %v7900_v19, 1  ;;  %vm2510_vm7 = vcmp.lt.s32.totalorder %v7900_v19, 3  ;;  %v2484_v9 = vor.u32 8388608, %v2483_v22  ;;  %v2634_v36 = vand.u32 2139095040, %v7917_v62 }
 0x2d0   : > { %11401 = vst [vmem:[#allocation51_spill] sm:$0xff] %v7890_v40  ;;  %v7938_v0 = vadd.s32 %v11406_v13, %v7864_v18  ;;  %v2520_v37 = vsel %vm2508_vm6, %v2498_v12, %v2501_v44  ;;  %v2522_v16 = vsel %vm2510_vm7, %v2504_v3, %v2521_v28  ;;  %v7952_v42 = vshrl.u32 %v11314_v45, %v7809_v63 }
 0x2d1   : > { %11402 = vst [vmem:[#allocation52_spill] sm:$0xff] %v7898_v49  ;;  %v7956_v1 = vsel %vm2354_vm1, %v2361_v60, %v2363_v14  ;;  %v2373_v8 = vshrl.u32 %v7929_v24, 16  ;;  %v2495_v57 = vor.u32 %v2494_v55, %v2493_v58  ;;  %vm2509_vm8 = vcmp.lt.s32.totalorder %v7900_v19, 2 }
 0x2d2   : > { %11404 = vst [vmem:[#allocation53_spill] sm:$0xff] %v7917_v62  ;;  %v2635_v34 = vshrl.u32 %v2634_v36, 23  ;;  %v7962_v28 = vadd.f32 %v1824_v54, %v7706_v26  ;;  %v7966_v13 = vsel %vm2356_vm2, %v2346_v21, 2102212464  ;;  %v2517_v60 = vsel %vm2511_vm4, %v2504_v3, 920167782 }
 0x2d3   : > { %11405 = vst [vmem:[#allocation54_spill] sm:$0xff] %v7929_v24  ;;  %v7973_v14 = vsel %vm2509_vm8, %v2520_v37, %v2522_v16  ;;  %v2492_v55 = vshrl.u32 %v11314_v45, %v2491_v30  ;;  %v7977_v36 = vshll.u32 %v2484_v9, 8  ;;  %v7980_v22 = vmul.u32 %v2373_v8, %v7880_v6 }
 0x2d4   : > { %11407 = vst [vmem:[#allocation55_spill] sm:$0xff] %v7938_v0  ;;  %v6000_v54 = vadd.s32 4294967169, %v2635_v34  ;;  %v2395_v21 = vshrl.u32 %v7956_v1, 16  ;;  %v2513_v63 = vsel %vm2511_vm4, %v2501_v44, 2102212464  ;;  %v2789_v3 = vand.u32 2139095040, %v7962_v28  ;;  %v1853_v34 = vpop.f32.mrf.mxu3 }
 0x2d5   : > { %11408 = vst [vmem:[#allocation56_spill] sm:$0xff] %v7941_v47  ;;  %v2516_v37 = vsel %vm2508_vm6, %v2495_v57, %v2498_v12  ;;  %v2518_v16 = vsel %vm2510_vm7, %v2501_v44, %v2517_v60  ;;  %v2528_v30 = vshrl.u32 %v7973_v14, 16  ;;  %v11413_v58 = vand.u32 65535, %v7929_v24 }
 0x2d6   : > { %11409 = vst [vmem:[#allocation57_spill] sm:$0xff] %v7952_v42  ;;  %v2641_v9 = vadd.s32 1, %v6000_v54  ;;  %v11415_v39 = vand.u32 2147483647, %v7917_v62  ;;  %v11183_v51 = vand.u32 2147483647, %v7962_v28  ;;  %v2512_v43 = vsel %vm2508_vm6, %v2492_v55, %v2495_v57 }
 0x2d7   : > { %11410 = vst [vmem:[#allocation58_spill] sm:$0xff] %v7956_v1  ;;  %v7994_v53 = vmul.u32 %v11413_v58, %v7880_v6  ;;  %v2790_v41 = vshrl.u32 %v2789_v3, 23  ;;  %v2514_v44 = vsel %vm2510_vm7, %v2498_v12, %v2513_v63  ;;  %v8004_v60 = vand.u32 65535, %v7977_v36 }
 0x2d8   : > { %11411 = vst [vmem:[#allocation59_spill] sm:$0xff] %v7966_v13  ;;  %v2638_v17 = vand.u32 8388607, %v11415_v39  ;;  %vm2642_vm9 = vcmp.gt.s32.totalorder %v2641_v9, 0  ;;  %v8008_v58 = vsel %vm2509_vm8, %v2516_v37, %v2518_v16  ;;  %v8011_v39 = vadd.f32 %v1853_v34, %v7706_v26 }
 0x2d9   : > { %11412 = vst [vmem:[#allocation60_spill] sm:$0xff] %v7980_v22  ;;  %v2643_v54 = vsel %vm2642_vm9, %v2641_v9, 0  ;;  %v6003_v61 = vadd.s32 4294967169, %v2790_v41  ;;  %v8014_v3 = vmul.u32 %v2373_v8, %v7941_v47  ;;  %v8018_v12 = vmul.u32 %v2528_v30, %v8004_v60 }
 0x2da   : > { %11414 = vst [vmem:[#allocation61_spill] sm:$0xff] %v7994_v53  ;;  %v2645_v63 = vand.u32 31, %v2643_v54  ;;  %v8022_v55 = vsel %vm2509_vm8, %v2512_v43, %v2514_v44  ;;  %v2639_v16 = vor.u32 8388608, %v2638_v17  ;;  %v2793_v26 = vand.u32 8388607, %v11183_v51 }
 0x2db   : > { %11416 = vst [vmem:[#allocation62_spill] sm:$0xff] %v8014_v3  ;;  %v8028_v41 = vmul.u32 %v2395_v21, %v7880_v6  ;;  %v2550_v8 = vshrl.u32 %v8008_v58, 16  ;;  %v2796_v34 = vadd.s32 1, %v6003_v61  ;;  %v8032_v57 = vmul.u32 %v2395_v21, %v7941_v47 }
 0x2dc   : > { %v2646_v9 = vsub.s32 32, %v2645_v63  ;;  %v8035_v19 = vshrl.u32 %v7977_v36, 16  ;;  %v2944_v17 = vand.u32 2139095040, %v8011_v39  ;;  %v11419_v44 = vshll.u32 %v7980_v22, 16 }
 0x2dd   : > { %11417 = vst [vmem:[#allocation63_spill] sm:$0xff] %v8028_v41  ;;  %v11421_v21 = vand.u32 65535, %v7973_v14  ;;  %v8056_v31 = vshll.u32 %v2639_v16, 8  ;;  %v2794_v40 = vor.u32 8388608, %v2793_v26  ;;  %vm2797_vm5 = vcmp.gt.s32.totalorder %v2796_v34, 0 }
 0x2de   : > { %11418 = vst [vmem:[#allocation64_spill] sm:$0xff] %v8032_v57  ;;  %v8042_v51 = vadd.s32 %v11419_v44, %v7994_v53  ;;  %v8054_v43 = vmul.u32 %v2528_v30, %v8035_v19  ;;  %v8059_v44 = vmul.u32 %v2550_v8, %v8004_v60  ;;  %v2655_v37 = vshrl.u32 %v11313_v33, %v2646_v9 }
 0x2df   : > { %v8051_v15 = vmul.u32 %v11421_v21, %v8004_v60  ;;  %v2661_v48 = vshrl.u32 %v11333_v50, %v2646_v9  ;;  %v8064_v61 = vmul.u32 %v2550_v8, %v8035_v19  ;;  %v2798_v13 = vsel %vm2797_vm5, %v2796_v34, 0 }
 0x2e0   : > { %11420 = vst [vmem:[#allocation65_spill] sm:$0xff] %v8042_v51  ;;  %v2945_v21 = vshrl.u32 %v2944_v17, 23  ;;  %v11422_v57 = vand.u32 2147483647, %v8011_v39  ;;  %v11423_v16 = vshll.u32 %v8018_v12, 16  ;;  %v8075_v29 = vshrl.u32 %v2643_v54, 5 }
 0x2e1   : > { %v2654_v42 = vshll.u32 %v11319_v32, %v2645_v63  ;;  %v2660_v49 = vshll.u32 %v11363_v56, %v2645_v63  ;;  %v2649_v8 = vshrl.u32 %v11318_v4, %v2646_v9  ;;  %v2652_v34 = vshrl.u32 %v11319_v32, %v2646_v9 }
 0x2e2   : > { %v8068_v30 = vand.u32 8388607, %v11422_v57  ;;  %v8073_v26 = vadd.s32 %v11423_v16, %v8051_v15  ;;  %v8082_v17 = vand.u32 65535, %v8056_v31  ;;  %v8084_v57 = vshll.u32 %v2794_v40, 8 }
 0x2e3   : > { %v8086_v11 = vor.u32 %v2655_v37, %v2654_v42  ;;  %v2658_v16 = vshrl.u32 %v11363_v56, %v2646_v9  ;;  %v2662_v20 = vor.u32 %v2661_v48, %v2660_v49  ;;  %v2800_v54 = vand.u32 31, %v2798_v13 }
 0x2e4   : > { %v2648_v59 = vshll.u32 %v11314_v45, %v2645_v63  ;;  %v2651_v35 = vshll.u32 %v11318_v4, %v2645_v63  ;;  %v6006_v6 = vadd.s32 4294967169, %v2945_v21  ;;  %v2647_v41 = vshrl.u32 %v11314_v45, %v2646_v9 }
 0x2e5   : > { %v2657_v1 = vshll.u32 %v11313_v33, %v2645_v63  ;;  %vm2663_vm10 = vcmp.lt.s32.totalorder %v8075_v29, 1  ;;  %vm2665_vm12 = vcmp.lt.s32.totalorder %v8075_v29, 3  ;;  %vm2666_vm13 = vcmp.lt.s32.totalorder %v8075_v29, 4 }
 0x2e6   : > { %v2650_v40 = vor.u32 %v2649_v8, %v2648_v59  ;;  %v2653_v42 = vor.u32 %v2652_v34, %v2651_v35  ;;  %v2801_v48 = vsub.s32 32, %v2800_v54  ;;  %v2668_v37 = vsel %vm2666_vm13, %v8086_v11, 2102212464 }
 0x2e7   : > { %v2659_v49 = vor.u32 %v2658_v16, %v2657_v1  ;;  %v2676_v21 = vsel %vm2666_vm13, %v2662_v20, 1326507024  ;;  %v2799_v9 = vshrl.u32 %v2798_v13, 5  ;;  %v2803_v63 = vshll.u32 %v11314_v45, %v2800_v54 }
 0x2e8   : > { %v2804_v51 = vshrl.u32 %v11318_v4, %v2801_v48  ;;  %v2806_v3 = vshll.u32 %v11318_v4, %v2800_v54  ;;  %v2807_v35 = vshrl.u32 %v11319_v32, %v2801_v48  ;;  %vm2664_vm15 = vcmp.lt.s32.totalorder %v8075_v29, 2 }
 0x2e9   : > { %v2809_v59 = vshll.u32 %v11319_v32, %v2800_v54  ;;  %v2810_v1 = vshrl.u32 %v11313_v33, %v2801_v48  ;;  %v2812_v8 = vshll.u32 %v11313_v33, %v2800_v54  ;;  %v2813_v34 = vshrl.u32 %v11363_v56, %v2801_v48 }
 0x2ea   : > { %v2805_v20 = vor.u32 %v2804_v51, %v2803_v63  ;;  %v2808_v13 = vor.u32 %v2807_v35, %v2806_v3  ;;  %v2815_v16 = vshll.u32 %v11363_v56, %v2800_v54  ;;  %v2816_v24 = vshrl.u32 %v11333_v50, %v2801_v48 }
 0x2eb   : > { %v2675_v47 = vsel %vm2663_vm10, %v2653_v42, %v8086_v11  ;;  %v2677_v7 = vsel %vm2665_vm12, %v2659_v49, %v2676_v21  ;;  %v2811_v62 = vor.u32 %v2810_v1, %v2809_v59  ;;  %v2814_v10 = vor.u32 %v2813_v34, %v2812_v8 }
 0x2ec   : > { %v2802_v53 = vshrl.u32 %v11314_v45, %v2801_v48  ;;  %v2817_v22 = vor.u32 %v2816_v24, %v2815_v16  ;;  %vm2818_vm14 = vcmp.lt.s32.totalorder %v2799_v9, 1  ;;  %vm2821_vm2 = vcmp.lt.s32.totalorder %v2799_v9, 4 }
 0x2ed   : > { %vm2820_vm4 = vcmp.lt.s32.totalorder %v2799_v9, 3  ;;  %v2823_v51 = vsel %vm2821_vm2, %v2811_v62, 2102212464  ;;  %v2826_v3 = vsel %vm2818_vm14, %v2805_v20, %v2808_v13  ;;  %v2827_v54 = vsel %vm2821_vm2, %v2814_v10, 920167782 }
 0x2ee   : > { %vm2819_vm6 = vcmp.lt.s32.totalorder %v2799_v9, 2  ;;  %v2828_v63 = vsel %vm2820_vm4, %v2811_v62, %v2827_v54  ;;  %v2830_v35 = vsel %vm2818_vm14, %v2808_v13, %v2811_v62  ;;  %v2831_v2 = vsel %vm2821_vm2, %v2817_v22, 1326507024 }
 0x2ef   : > { %v2822_v38 = vsel %vm2818_vm14, %v2802_v53, %v2805_v20  ;;  %v2824_v27 = vsel %vm2820_vm4, %v2808_v13, %v2823_v51  ;;  %v8120_v0 = vsel %vm2819_vm6, %v2826_v3, %v2828_v63  ;;  %v2832_v21 = vsel %vm2820_vm4, %v2814_v10, %v2831_v2 }
 0x2f0   : > { %v2667_v48 = vsel %vm2663_vm10, %v2647_v41, %v2650_v40  ;;  %v2669_v24 = vsel %vm2665_vm12, %v2653_v42, %v2668_v37  ;;  %v2833_v59 = vsel %vm2819_vm6, %v2830_v35, %v2832_v21  ;;  %v2835_v1 = vand.u32 65535, %v8084_v57 }
 0x2f1   : > { %v2672_v62 = vsel %vm2666_vm13, %v2659_v49, 920167782  ;;  %v2837_v22 = vand.u32 65535, %v2833_v59  ;;  %v2838_v53 = vshrl.u32 %v2833_v59, 16  ;;  %v2951_v8 = vadd.s32 1, %v6006_v6 }
 0x2f2   : > { %v8132_v34 = vsel %vm2664_vm15, %v2675_v47, %v2677_v7  ;;  %v8135_v2 = vsel %vm2819_vm6, %v2822_v38, %v2824_v27  ;;  %v2836_v10 = vshrl.u32 %v8084_v57, 16  ;;  %v2860_v41 = vshrl.u32 %v8120_v0, 16 }
 0x2f3   : > { %v8141_v37 = vsel %vm2663_vm10, %v2650_v40, %v2653_v42  ;;  %v8143_v20 = vmul.u32 %v2838_v53, %v2835_v1  ;;  %v2859_v49 = vand.u32 65535, %v8120_v0  ;;  %vm2952_vm7 = vcmp.gt.s32.totalorder %v2951_v8, 0 }
 0x2f4   : > { %v8148_v7 = vsel %vm2664_vm15, %v2667_v48, %v2669_v24  ;;  %v8153_v38 = vsel %vm2665_vm12, %v8086_v11, %v2672_v62  ;;  %v2953_v27 = vsel %vm2952_vm7, %v2951_v8, 0  ;;  %v8155_v6 = vmul.u32 %v2837_v22, %v2836_v10 }
 0x2f5   : > { %v2843_v40 = vshll.u32 %v8143_v20, 16  ;;  %v2955_v42 = vand.u32 31, %v2953_v27  ;;  %v2839_v9 = vmul.u32 %v2837_v22, %v2835_v1  ;;  %v8161_v13 = vmul.u32 %v2860_v41, %v2835_v1 }
 0x2f6   : > { %v2864_v16 = vmul.u32 %v2860_v41, %v2836_v10  ;;  %v11424_v51 = vor.u32 8388608, %v8068_v30  ;;  %v2842_v11 = vmul.u32 %v2838_v53, %v2836_v10  ;;  %v8167_v54 = vshrl.u32 %v2953_v27, 5 }
 0x2f7   : > { %v2956_v63 = vsub.s32 32, %v2955_v42  ;;  %v2861_v35 = vmul.u32 %v2859_v49, %v2835_v1  ;;  %vm8169_vm8 = vc.u32 %v2839_v9, %v2843_v40  ;;  %v2958_v48 = vshll.u32 %v11314_v45, %v2955_v42 }
 0x2f8   : > { %v8165_v3 = vshll.u32 %v11424_v51, 8  ;;  %v2961_v24 = vshll.u32 %v11318_v4, %v2955_v42  ;;  %v2845_v59 = vshll.u32 %v8155_v6, 16  ;;  %v2964_v22 = vshll.u32 %v11319_v32, %v2955_v42 }
 0x2f9   : > { %v2959_v62 = vshrl.u32 %v11318_v4, %v2956_v63  ;;  %v2962_v30 = vshrl.u32 %v11319_v32, %v2956_v63  ;;  %v2965_v53 = vshrl.u32 %v11313_v33, %v2956_v63  ;;  %v2967_v1 = vshll.u32 %v11313_v33, %v2955_v42 }
 0x2fa   : > { %v2968_v8 = vshrl.u32 %v11363_v56, %v2956_v63  ;;  %v2970_v41 = vshll.u32 %v11363_v56, %v2955_v42  ;;  %v2971_v27 = vshrl.u32 %v11333_v50, %v2956_v63  ;;  %v2849_v51 = vadd.s32 %v2843_v40, %v2839_v9 }
 0x2fb   : > { %v8184_v47 = vor.u32 %v2959_v62, %v2958_v48  ;;  %v8186_v0 = vor.u32 %v2962_v30, %v2961_v24  ;;  %v2966_v4 = vor.u32 %v2965_v53, %v2964_v22  ;;  %vm2973_vm9 = vcmp.lt.s32.totalorder %v8167_v54, 1 }
 0x2fc   : > { %v2969_v46 = vor.u32 %v2968_v8, %v2967_v1  ;;  %v2972_v25 = vor.u32 %v2971_v27, %v2970_v41  ;;  %v2848_v32 = vsel %vm8169_vm8, 1, %v11317_v5  ;;  %vm2976_vm5 = vcmp.lt.s32.totalorder %v8167_v54, 4 }
 0x2fd   : > { %v2981_v40 = vsel %vm2973_vm9, %v8184_v47, %v8186_v0  ;;  %v2985_v42 = vsel %vm2973_vm9, %v8186_v0, %v2966_v4  ;;  %v2865_v9 = vshll.u32 %v8161_v13, 16  ;;  %vm2975_vm10 = vcmp.lt.s32.totalorder %v8167_v54, 3 }
 0x2fe   : > { %v2982_v48 = vsel %vm2976_vm5, %v2969_v46, 920167782  ;;  %v2986_v21 = vsel %vm2976_vm5, %v2972_v25, 1326507024  ;;  %v2850_v24 = vadd.s32 %v2848_v32, %v2842_v11  ;;  %vm2974_vm12 = vcmp.lt.s32.totalorder %v8167_v54, 2 }
 0x2ff   : > { %v2983_v62 = vsel %vm2975_vm10, %v2966_v4, %v2982_v48  ;;  %v2987_v30 = vsel %vm2975_vm10, %v2969_v46, %v2986_v21  ;;  %vm2851_vm13 = vc.u32 %v2849_v51, %v2845_v59  ;;  %v2863_v8 = vmul.u32 %v2859_v49, %v2836_v10 }
 0x300   : > { %v2984_v22 = vsel %vm2974_vm12, %v2981_v40, %v2983_v62  ;;  %v2988_v53 = vsel %vm2974_vm12, %v2985_v42, %v2987_v30  ;;  %v2852_v1 = vsel %vm2851_vm13, 1, %v11317_v5  ;;  %v2990_v32 = vand.u32 65535, %v8165_v3 }
 0x301   : > { %v2991_v25 = vshrl.u32 %v8165_v3, 16  ;;  %v2992_v11 = vand.u32 65535, %v2988_v53  ;;  %v2993_v41 = vshrl.u32 %v2988_v53, 16  ;;  %v3015_v27 = vshrl.u32 %v2984_v22, 16 }
 0x302   : > { %v2844_v48 = vshrl.u32 %v8143_v20, 16  ;;  %v2854_v46 = vadd.s32 %v2852_v1, %v2850_v24  ;;  %vm2869_vm14 = vc.u32 %v2861_v35, %v2865_v9  ;;  %v3014_v51 = vand.u32 65535, %v2984_v22 }
 0x303   : > { %v2995_v59 = vmul.u32 %v2993_v41, %v2990_v32  ;;  %v2846_v40 = vshrl.u32 %v8155_v6, 16  ;;  %v2866_v42 = vshrl.u32 %v8161_v13, 16  ;;  %v2867_v62 = vshll.u32 %v2863_v8, 16 }
 0x304   : > { %v2855_v21 = vadd.s32 %v2854_v46, %v2844_v48  ;;  %v2870_v10 = vsel %vm2869_vm14, 1, %v11317_v5  ;;  %v2871_v49 = vadd.s32 %v2865_v9, %v2861_v35  ;;  %v11427_v30 = vshll.u32 %v8018_v12, 16 }
 0x305   : > { %v2994_v20 = vmul.u32 %v2992_v11, %v2990_v32  ;;  %v2998_v24 = vshll.u32 %v2995_v59, 16  ;;  %v2872_v1 = vadd.s32 %v2870_v10, %v2864_v16  ;;  %v2996_v22 = vmul.u32 %v2992_v11, %v2991_v25 }
 0x306   : > { %vm8225_vm2 = vc.u32 %v8051_v15, %v11427_v30  ;;  %v2957_v6 = vshrl.u32 %v11314_v45, %v2956_v63  ;;  %v2978_v13 = vsel %vm2976_vm5, %v2966_v4, 2102212464  ;;  %v3017_v48 = vmul.u32 %v3015_v27, %v2990_v32 }
 0x307   : > { %vm2873_vm4 = vc.u32 %v2871_v49, %v2867_v62  ;;  %vm3002_vm6 = vc.u32 %v2994_v20, %v2998_v24  ;;  %v3004_v35 = vadd.s32 %v2998_v24, %v2994_v20  ;;  %v3000_v46 = vshll.u32 %v2996_v22, 16 }
 0x308   : > { %v2874_v9 = vsel %vm2873_vm4, 1, %v11317_v5  ;;  %v2997_v15 = vmul.u32 %v2993_v41, %v2991_v25  ;;  %v8233_v30 = vadd.s32 %v2855_v21, %v2846_v40  ;;  %v2868_v50 = vshrl.u32 %v2863_v8, 16 }
 0x309   : > { %v2876_v33 = vadd.s32 %v2874_v9, %v2872_v1  ;;  %v3003_v16 = vsel %vm3002_vm6, 1, %v11317_v5  ;;  %vm3006_vm7 = vc.u32 %v3004_v35, %v3000_v46  ;;  %v3016_v11 = vmul.u32 %v3014_v51, %v2990_v32 }
 0x30a   : > { %v3018_v63 = vmul.u32 %v3014_v51, %v2991_v25  ;;  %v3005_v45 = vadd.s32 %v3003_v16, %v2997_v15  ;;  %v3007_v4 = vsel %vm3006_vm7, 1, %v11317_v5  ;;  %v3020_v56 = vshll.u32 %v3017_v48, 16 }
 0x30b   : > { %v2877_v10 = vadd.s32 %v2876_v33, %v2866_v42  ;;  %v3019_v18 = vmul.u32 %v3015_v27, %v2991_v25  ;;  %v8237_v20 = vadd.s32 %v2871_v49, %v2867_v62  ;;  %v2999_v24 = vshrl.u32 %v2995_v59, 16 }
 0x30c   : > { %v3022_v52 = vshll.u32 %v3018_v63, 16  ;;  %v3009_v40 = vadd.s32 %v3007_v4, %v3005_v45  ;;  %vm3024_vm8 = vc.u32 %v3016_v11, %v3020_v56  ;;  %v3026_v8 = vadd.s32 %v3020_v56, %v3016_v11 }
 0x30d   : > { %v2878_v41 = vadd.s32 %v2877_v10, %v2868_v50  ;;  %v2977_v21 = vsel %vm2973_vm9, %v2957_v6, %v8184_v47  ;;  %vm2881_vm5 = vc.u32 %v8233_v30, %v8237_v20  ;;  %v3025_v33 = vsel %vm3024_vm8, 1, %v11317_v5 }
 0x30e   : > { %v11430_v32 = vand.u32 65535, %v7973_v14  ;;  %v3010_v59 = vadd.s32 %v3009_v40, %v2999_v24  ;;  %v3027_v51 = vadd.s32 %v3025_v33, %v3019_v18  ;;  %vm3028_vm13 = vc.u32 %v3026_v8, %v3022_v52 }
 0x30f   : > { %v2882_v27 = vadd.s32 1, %v2878_v41  ;;  %v2979_v45 = vsel %vm2975_vm10, %v8186_v0, %v2978_v13  ;;  %v3001_v50 = vshrl.u32 %v2996_v22, 16  ;;  %v3029_v56 = vsel %vm3028_vm13, 1, %v11317_v5 }
 0x310   : > { %v2531_v25 = vmul.u32 %v11430_v32, %v8035_v19  ;;  %v3021_v62 = vshrl.u32 %v3017_v48, 16  ;;  %v3031_v49 = vadd.s32 %v3029_v56, %v3027_v51  ;;  %v2538_v14 = vsel %vm8225_vm2, 1, %v11317_v5 }
 0x311   : > { %v2883_v42 = vsel %vm2881_vm5, %v2882_v27, %v2878_v41  ;;  %v11431_v1 = vmul.u32 %v8084_v57, %v8135_v2  ;;  %v8258_v6 = vadd.s32 %v3010_v59, %v3001_v50  ;;  %v2540_v35 = vadd.s32 %v2538_v14, %v8054_v43 }
 0x312   : > { %v2535_v47 = vshll.u32 %v2531_v25, 16  ;;  %v3023_v0 = vshrl.u32 %v3018_v63, 16  ;;  %v8262_v22 = vadd.s32 %v3026_v8, %v3022_v52  ;;  %v3032_v13 = vadd.s32 %v3031_v49, %v3021_v62 }
 0x313   : > { %v2884_v18 = vadd.s32 %v2883_v42, %v11431_v1  ;;  %v11432_v53 = vand.u32 65535, %v8008_v58  ;;  %v2555_v57 = vshll.u32 %v8059_v44, 16  ;;  %v8273_v43 = vsel %vm2664_vm15, %v8141_v37, %v8153_v38 }
 0x314   : > { %vm2541_vm9 = vc.u32 %v8073_v26, %v2535_v47  ;;  %v2980_v52 = vsel %vm2974_vm12, %v2977_v21, %v2979_v45  ;;  %v3033_v26 = vadd.s32 %v3032_v13, %v3023_v0  ;;  %v11434_v11 = vshrl.u32 %v8132_v34, 16 }
 0x315   : > { %v2542_v48 = vsel %vm2541_vm9, 1, %v11317_v5  ;;  %v2885_v9 = vadd.s32 536870912, %v2884_v18  ;;  %v2553_v15 = vmul.u32 %v11432_v53, %v8035_v19  ;;  %v11433_v2 = vmov %v11432_v53 }
 0x316   : > { %v2544_v46 = vadd.s32 %v2542_v48, %v2540_v35  ;;  %v2551_v16 = vmul.u32 %v11433_v2, %v8004_v60  ;;  %v8283_v19 = vmul.u32 %v11434_v11, %v8082_v17  ;;  %vm3036_vm10 = vc.u32 %v8258_v6, %v8262_v22 }
 0x317   : > { %v8285_v63 = vshrl.u32 %v2885_v9, 30  ;;  %v2534_v29 = vshrl.u32 %v8018_v12, 16  ;;  %v3037_v37 = vadd.s32 1, %v3033_v26  ;;  %v2557_v38 = vshll.u32 %v2553_v15, 16 }
 0x318   : > { %vm2559_vm15 = vc.u32 %v2551_v16, %v2555_v57  ;;  %v2561_v54 = vadd.s32 %v2555_v57, %v2551_v16  ;;  %v3034_v10 = vmul.u32 %v8165_v3, %v2980_v52  ;;  %v2682_v24 = vand.u32 65535, %v8132_v34 }
 0x319   : > { %v2887_v60 = vshll.u32 %v8285_v63, 30  ;;  %v2545_v58 = vadd.s32 %v2544_v46, %v2534_v29  ;;  %v2560_v4 = vsel %vm2559_vm15, 1, %v11317_v5  ;;  %v3038_v41 = vsel %vm3036_vm10, %v3037_v37, %v3033_v26 }
 0x31a   : > { %v2562_v40 = vadd.s32 %v2560_v4, %v8064_v61  ;;  %vm2563_vm12 = vc.u32 %v2561_v54, %v2557_v38  ;;  %v3039_v12 = vadd.s32 %v3038_v41, %v3034_v10  ;;  %v2536_v21 = vshrl.u32 %v2531_v25, 16 }
 0x31b   : > { %v8295_v8 = vsub.s32 %v2884_v18, %v2887_v60  ;;  %v2564_v33 = vsel %vm2563_vm12, 1, %v11317_v5  ;;  %v2681_v32 = vshrl.u32 %v8056_v31, 16  ;;  %v2688_v3 = vshll.u32 %v8283_v19, 16 }
 0x31c   : > { %v2556_v27 = vshrl.u32 %v8059_v44, 16  ;;  %v2566_v59 = vadd.s32 %v2564_v33, %v2562_v40  ;;  %vm2788_vm14 = vcmp.lt.s32.totalorder %v7962_v28, 0  ;;  %v3040_v51 = vadd.s32 536870912, %v3039_v12 }
 0x31d   : > { %vm2889_vm2 = vcmp.lt.s32.totalorder %v8295_v8, 0  ;;  %v2890_v61 = vsub.s32 0, %v8295_v8  ;;  %v2546_v45 = vadd.s32 %v2545_v58, %v2536_v21  ;;  %v2705_v50 = vshrl.u32 %v8273_v43, 16 }
 0x31e   : > { %v2724_v25 = vmul.u32 %v8056_v31, %v8148_v7  ;;  %v2558_v56 = vshrl.u32 %v2553_v15, 16  ;;  %v2567_v47 = vadd.s32 %v2566_v59, %v2556_v27  ;;  %v2684_v42 = vmul.u32 %v2682_v24, %v8082_v17 }
 0x31f   : > { %v2891_v44 = vsel %vm2889_vm2, %v2890_v61, %v8295_v8  ;;  %v8309_v62 = vshrl.u32 %v3040_v51, 30  ;;  %v2565_v49 = vadd.s32 %v2561_v54, %v2557_v38  ;;  %v2704_v14 = vand.u32 65535, %v8273_v43 }
 0x320   : > { %v2892_v1 = vclz %v2891_v44  ;;  %v2568_v18 = vadd.s32 %v2567_v47, %v2558_v56  ;;  %v8312_v35 = vmul.u32 %v2682_v24, %v2681_v32  ;;  %v11435_v0 = vmov %v11434_v11 }
 0x321   : > { %v2687_v13 = vmul.u32 %v11435_v0, %v2681_v32  ;;  %vm2692_vm4 = vc.u32 %v2684_v42, %v2688_v3  ;;  %v11436_v48 = vand.u32 2147483647, %v7962_v28  ;;  %v3042_v46 = vshll.u32 %v8309_v62, 30 }
 0x322   : > { %vm2571_vm7 = vc.u32 %v2546_v45, %v2565_v49  ;;  %v2694_v53 = vadd.s32 %v2688_v3, %v2684_v42  ;;  %v6004_v15 = vadd.s32 4294967294, %v2892_v1  ;;  %v2910_v57 = vsub.s32 4, %v8285_v63 }
 0x323   : > { %vm8318_vm6 = vcmp.le.f32.partialorder %v11436_v48, 0.7853982  ;;  %v2572_v43 = vadd.s32 1, %v2568_v18  ;;  %v8325_v52 = vmul.u32 %v2705_v50, %v8082_v17  ;;  %v2709_v34 = vmul.u32 %v2705_v50, %v2681_v32 }
 0x324   : > { %v2880_v26 = vadd.s32 %v8237_v20, %v8233_v30  ;;  %v3043_v2 = vsub.s32 %v3039_v12, %v3042_v46  ;;  %vm6005_vm8 = vcmp.lt.s32.totalorder %v6004_v15, 0  ;;  %v2690_v11 = vshll.u32 %v8312_v35, 16 }
 0x325   : > { %v2573_v16 = vsel %vm2571_vm7, %v2572_v43, %v2568_v18  ;;  %v2693_v29 = vsel %vm2692_vm4, 1, %v11317_v5  ;;  %v2895_v37 = vsel %vm6005_vm8, 0, %v6004_v15  ;;  %v3035_v38 = vadd.s32 %v8262_v22, %v8258_v6 }
 0x326   : > { %vm3044_vm5 = vcmp.lt.s32.totalorder %v3043_v2, 0  ;;  %v3045_v54 = vsub.s32 0, %v3043_v2  ;;  %v2896_v10 = vsub.s32 32, %v2895_v37  ;;  %v2900_v60 = vsub.s32 4294967266, %v2895_v37 }
 0x327   : > { %v2911_v58 = vsel %vm2788_vm14, %v2910_v57, %v8285_v63  ;;  %vm2696_vm13 = vc.u32 %v2694_v53, %v2690_v11  ;;  %v11439_v20 = vmul.u32 %v7977_v36, %v8022_v55  ;;  %v2695_v24 = vadd.s32 %v2693_v29, %v2687_v13 }
 0x328   : > { %v3046_v30 = vsel %vm3044_vm5, %v3045_v54, %v3043_v2  ;;  %v2710_v41 = vshll.u32 %v8325_v52, 16  ;;  %v2897_v40 = vshll.u32 %v8295_v8, %v2895_v37  ;;  %v2898_v6 = vshrl.u32 %v2880_v26, %v2896_v10 }
 0x329   : > { %v2574_v4 = vadd.s32 %v2573_v16, %v11439_v20  ;;  %v2901_v22 = vadd.s32 127, %v2900_v60  ;;  %v3047_v12 = vclz %v3046_v30  ;;  %vm2943_vm9 = vcmp.lt.s32.totalorder %v8011_v39, 0 }
 0x32a   : > { %v2697_v33 = vsel %vm2696_vm13, 1, %v11317_v5  ;;  %v2706_v63 = vmul.u32 %v2704_v14, %v8082_v17  ;;  %v8344_v3 = vmul.u32 %v2704_v14, %v2681_v32  ;;  %v2899_v27 = vor.u32 %v2898_v6, %v2897_v40  ;;  %v11445_v6 = vld [vmem:[#allocation47_spill] sm:$0xff] }
 0x32b   : > { %v2575_v21 = vadd.s32 536870912, %v2574_v4  ;;  %v2902_v36 = vshll.u32 %v2901_v22, 23  ;;  %v2913_v55 = vsel %vm8318_vm6, 0, %v2911_v58  ;;  %v6007_v59 = vadd.s32 4294967294, %v3047_v12 }
 0x32c   : > { %v3065_v8 = vsub.s32 4, %v8309_v62  ;;  %v8349_v61 = vadd.s32 %v2565_v49, %v2546_v45  ;;  %vm2714_vm10 = vc.u32 %v2706_v63, %v2710_v41  ;;  %v11440_v56 = vand.u32 2147483647, %v8011_v39 }
 0x32d   : > { %v8351_v51 = vshrl.u32 %v2575_v21, 30  ;;  %v2903_v50 = vor.u32 4788187, %v2902_v36  ;;  %vm6008_vm12 = vcmp.lt.s32.totalorder %v6007_v59, 0  ;;  %v2699_v32 = vadd.s32 %v2697_v33, %v2695_v24 }
 0x32e   : > { %vm8355_vm15 = vcmp.le.f32.partialorder %v11440_v56, 0.7853982  ;;  %v2715_v47 = vsel %vm2714_vm10, 1, %v11317_v5  ;;  %v3050_v42 = vsel %vm6008_vm12, 0, %v6007_v59  ;;  %v2712_v45 = vshll.u32 %v8344_v3, 16 }
 0x32f   : > { %v2577_v44 = vshll.u32 %v8351_v51, 30  ;;  %v2716_v49 = vadd.s32 %v2710_v41, %v2706_v63  ;;  %v2904_v14 = vand.u32 2147483647, %v2903_v50  ;;  %v2906_v1 = vcvt.s32.f32 %v2899_v27 }
 0x330   : > { %v3051_v18 = vsub.s32 32, %v3050_v42  ;;  %v3055_v0 = vsub.s32 4294967266, %v3050_v42  ;;  %v2689_v48 = vshrl.u32 %v8283_v19, 16  ;;  %v2717_v46 = vadd.s32 %v2715_v47, %v2709_v34 }
 0x331   : > { %v8362_v13 = vsub.s32 %v2574_v4, %v2577_v44  ;;  %vm2718_vm2 = vc.u32 %v2716_v49, %v2712_v45  ;;  %v2907_v53 = vmul.f32 %v2906_v1, %v2904_v14  ;;  %v3052_v15 = vshll.u32 %v3043_v2, %v3050_v42 }
 0x332   : > { %v3053_v57 = vshrl.u32 %v3035_v38, %v3051_v18  ;;  %v3056_v43 = vadd.s32 127, %v3055_v0  ;;  %v2700_v16 = vadd.s32 %v2699_v32, %v2689_v48  ;;  %v2719_v11 = vsel %vm2718_vm2, 1, %v11317_v5  ;;  %v11452_v48 = vld [vmem:[#allocation17_spill] sm:$0xff] }
 0x333   : > { %vm2579_vm4 = vcmp.lt.s32.totalorder %v8362_v13, 0  ;;  %v2580_v26 = vsub.s32 0, %v8362_v13  ;;  %vm2478_vm7 = vcmp.lt.s32.totalorder %v7748_v23, 0  ;;  %v2908_v29 = vxor.u32 2147483648, %v2907_v53 }
 0x334   : > { %v3054_v37 = vor.u32 %v3053_v57, %v3052_v15  ;;  %v3057_v54 = vshll.u32 %v3056_v43, 23  ;;  %v3066_v19 = vsel %vm2943_vm9, %v3065_v8, %v8309_v62  ;;  %v2930_v34 = vadd.s32 3, %v2913_v55 }
 0x335   : > { %v2581_v2 = vsel %vm2579_vm4, %v2580_v26, %v8362_v13  ;;  %v2691_v38 = vshrl.u32 %v8312_v35, 16  ;;  %v2721_v10 = vadd.s32 %v2719_v11, %v2717_v46  ;;  %v2909_v60 = vsel %vm2788_vm14, %v2908_v29, %v2907_v53  ;;  %v11443_v35 = vld [vmem:[#allocation43_spill] sm:$0xff] }
 0x336   : > { %v3058_v58 = vor.u32 4788187, %v3057_v54  ;;  %v2582_v30 = vclz %v2581_v2  ;;  %v2711_v20 = vshrl.u32 %v8325_v52, 16  ;;  %v8380_v4 = vsel %vm8318_vm6, %v7962_v28, %v2909_v60 }
 0x337   : > { %v3061_v24 = vcvt.s32.f32 %v3054_v37  ;;  %v3068_v62 = vsel %vm8355_vm15, 0, %v3066_v19  ;;  %v8384_v41 = vadd.s32 %v2700_v16, %v2691_v38  ;;  %v11444_v40 = vshll.u32 %v11443_v35, 16 }
 0x338   : > { %v2914_v52 = vmul.f32 %v8380_v4, %v8380_v4  ;;  %v3059_v12 = vand.u32 2147483647, %v3058_v58  ;;  %v11448_v9 = vand.u32 2147483647, %v7748_v23  ;;  %v5998_v33 = vadd.s32 4294967294, %v2582_v30 }
 0x339   : > { %vm8389_vm8 = vc.u32 %v11445_v6, %v11444_v40  ;;  %v2722_v63 = vadd.s32 %v2721_v10, %v2711_v20  ;;  %v8401_v27 = vand.u32 3, %v2930_v34  ;;  %v2600_v36 = vsub.s32 4, %v8351_v51 }
 0x33a   : > { %vm8397_vm14 = vcmp.le.f32.partialorder %v11448_v9, 0.7853982  ;;  %v2713_v55 = vshrl.u32 %v8344_v3, 16  ;;  %v8405_v59 = vadd.s32 %v2716_v49, %v2712_v45  ;;  %v2915_v8 = vmul.f32 -0.001358992, %v2914_v52  ;;  %v11451_v49 = vld [vmem:[#allocation37_spill] sm:$0xff] }
 0x33b   : > { %v2922_v50 = vmul.f32 -0.00019511016, %v2914_v52  ;;  %v3062_v56 = vmul.f32 %v3061_v24, %v3059_v12  ;;  %vm5999_vm6 = vcmp.lt.s32.totalorder %v5998_v33, 0  ;;  %v3085_v32 = vadd.s32 3, %v3068_v62  ;;  %v11454_v9 = vld [vmem:[#allocation55_spill] sm:$0xff] }
 0x33c   : > { %v2585_v47 = vsel %vm5999_vm6, 0, %v5998_v33  ;;  %v2723_v42 = vadd.s32 %v2722_v63, %v2713_v55  ;;  %vm2726_vm5 = vc.u32 %v8384_v41, %v8405_v59  ;;  %v2916_v44 = vadd.f32 0.041655596, %v2915_v8 }
 0x33d   : > { %v2923_v14 = vadd.f32 0.008332121, %v2922_v50  ;;  %v3063_v1 = vxor.u32 2147483648, %v3062_v56  ;;  %v2586_v18 = vsub.s32 32, %v2585_v47  ;;  %v2590_v0 = vsub.s32 4294967266, %v2585_v47 }
 0x33e   : > { %v2601_v3 = vsel %vm2478_vm7, %v2600_v36, %v8351_v51  ;;  %v2727_v45 = vadd.s32 1, %v2723_v42  ;;  %v11453_v46 = vand.u32 65535, %v11452_v48  ;;  %v2917_v15 = vmul.f32 %v2916_v44, %v2914_v52 }
 0x33f   : > { %v2924_v57 = vmul.f32 %v2923_v14, %v2914_v52  ;;  %v3064_v43 = vsel %vm2943_vm9, %v3063_v1, %v3062_v56  ;;  %v2588_v26 = vshrl.u32 %v8349_v61, %v2586_v18  ;;  %v2587_v51 = vshll.u32 %v8362_v13, %v2585_v47 }
 0x340   : > { %v8415_v53 = vmul.u32 %v11453_v46, %v11451_v49  ;;  %v8423_v16 = vsel %vm8355_vm15, %v8011_v39, %v3064_v43  ;;  %v2591_v11 = vadd.s32 127, %v2590_v0  ;;  %v2728_v29 = vsel %vm2726_vm5, %v2727_v45, %v2723_v42 }
 0x341   : > { %v2918_v37 = vadd.f32 -0.4999988, %v2917_v15  ;;  %v2925_v54 = vadd.f32 -0.16666654, %v2924_v57  ;;  %v3069_v19 = vmul.f32 %v8423_v16, %v8423_v16  ;;  %v8431_v34 = vand.u32 3, %v3085_v32 }
 0x342   : > { %v2589_v61 = vor.u32 %v2588_v26, %v2587_v51  ;;  %v2592_v2 = vshll.u32 %v2591_v11, 23  ;;  %v2603_v17 = vsel %vm8397_vm14, 0, %v2601_v3  ;;  %v2729_v13 = vadd.s32 %v2728_v29, %v2724_v25 }
 0x343   : > { %v2919_v38 = vmul.f32 %v2918_v37, %v2914_v52  ;;  %v2926_v10 = vmul.f32 %v2925_v54, %v2914_v52  ;;  %vm2932_vm13 = vcmp.lt.s32.totalorder %v8401_v27, 2  ;;  %v3070_v60 = vmul.f32 -0.001358992, %v3069_v19 }
 0x344   : > { %v3077_v58 = vmul.f32 -0.00019511016, %v3069_v19  ;;  %vm2929_vm9 = vweird.f32 %v7962_v28  ;;  %v2593_v30 = vor.u32 4788187, %v2592_v2  ;;  %v2730_v20 = vadd.s32 536870912, %v2729_v13 }
 0x345   : > { %v2225_v24 = vshll.u32 %v8415_v53, 16  ;;  %v2228_v62 = vsel %vm8389_vm8, 1, %v11317_v5  ;;  %v2920_v40 = vadd.f32 1.0, %v2919_v38  ;;  %v2927_v6 = vadd.f32 1.0, %v2926_v10 }
 0x346   : > { %v3071_v31 = vadd.f32 0.041655596, %v3070_v60  ;;  %v3078_v7 = vadd.f32 0.008332121, %v3077_v58  ;;  %v2594_v25 = vand.u32 2147483647, %v2593_v30  ;;  %v2596_v52 = vcvt.s32.f32 %v2589_v61 }
 0x347   : > { %v8444_v12 = vshrl.u32 %v2730_v20, 30  ;;  %vm8447_vm10 = vc.u32 %v11454_v9, %v2225_v24  ;;  %v2928_v63 = vmul.f32 %v2927_v6, %v8380_v4  ;;  %v2937_v36 = vxor.u32 2147483648, %v2920_v40  ;;  %v11457_v4 = vld [vmem:[#allocation49_spill] sm:$0xff]  ;;  %v11459_v30 = vld [vmem:[#allocation35_spill] sm:$0xff]  ;;  %v11461_v6 = vld [vmem:[#allocation36_spill] sm:$0xff] }
 0x348   : > { %v3072_v55 = vmul.f32 %v3071_v31, %v3069_v19  ;;  %v3079_v8 = vmul.f32 %v3078_v7, %v3069_v19  ;;  %vm2933_vm15 = vcmp.eq.s32.totalorder %v8401_v27, 0  ;;  %vm2936_vm12 = vcmp.eq.s32.totalorder %v8401_v27, 2  ;;  %v6139_v27 = vld [vmem:[%s6406_s15 + $0x30] sm:$0xff] }
 0x349   : > { %v2597_v22 = vmul.f32 %v2596_v52, %v2594_v25  ;;  %v2732_v50 = vshll.u32 %v8444_v12, 30  ;;  %v2934_v56 = vxor.u32 2147483648, %v2928_v63  ;;  %v2620_v42 = vadd.s32 3, %v2603_v17  ;;  %v11463_v25 = vld [vmem:[#allocation60_spill] sm:$0xff]  ;;  %v11465_v52 = vld [vmem:[#allocation61_spill] sm:$0xff] }
 0x34a   : > { %v3073_v32 = vadd.f32 -0.4999988, %v3072_v55  ;;  %v3080_v47 = vadd.f32 -0.16666654, %v3079_v8  ;;  %vm3088_vm2 = vcmp.eq.s32.totalorder %v8431_v34, 0  ;;  %v2230_v1 = vadd.s32 %v2228_v62, %v11457_v4 }
 0x34b   : > { %v2598_v44 = vxor.u32 2147483648, %v2597_v22  ;;  %v8456_v14 = vsub.s32 %v2729_v13, %v2732_v50  ;;  %v2232_v18 = vsel %vm8447_vm10, 1, %v11317_v5  ;;  %v2935_v0 = vsel %vm2933_vm15, %v2920_v40, %v2934_v56 }
 0x34c   : > { %v2938_v3 = vsel %vm2936_vm12, %v2937_v36, %v2928_v63  ;;  %v3074_v45 = vmul.f32 %v3073_v32, %v3069_v19  ;;  %v3081_v48 = vmul.f32 %v3080_v47, %v3069_v19  ;;  %vm3087_vm4 = vcmp.lt.s32.totalorder %v8431_v34, 2  ;;  %v6140_v47 = vld [vmem:[%s6406_s15 + $0x38] sm:$0xff] }
 0x34d   : > { %v2939_v46 = vsel %vm2932_vm13, %v2935_v0, %v2938_v3  ;;  %vm3084_vm8 = vweird.f32 %v8011_v39  ;;  %v2599_v15 = vsel %vm2478_vm7, %v2598_v44, %v2597_v22  ;;  %vm2734_vm6 = vcmp.lt.s32.totalorder %v8456_v14, 0 }
 0x34e   : > { %v2735_v57 = vsub.s32 0, %v8456_v14  ;;  %v2940_v43 = vsel %vm2929_vm9, nan, %v2939_v46  ;;  %v3075_v26 = vadd.f32 1.0, %v3074_v45  ;;  %v3082_v51 = vadd.f32 1.0, %v3081_v48  ;;  %v11470_v46 = vld [vmem:[#allocation53_spill] sm:$0xff] }
 0x34f   : > { %v8475_v11 = vsel %vm8397_vm14, %v7748_v23, %v2599_v15  ;;  %v8478_v29 = vadd.f32 %v6139_v27, %v2940_v43  ;;  %v2234_v19 = vadd.s32 %v2232_v18, %v2230_v1  ;;  %vm3091_vm7 = vcmp.eq.s32.totalorder %v8431_v34, 2 }
 0x350   : > { %v2604_v37 = vmul.f32 %v8475_v11, %v8475_v11  ;;  %v2736_v54 = vsel %vm2734_vm6, %v2735_v57, %v8456_v14  ;;  %v3083_v61 = vmul.f32 %v3082_v51, %v8423_v16  ;;  %v3092_v28 = vxor.u32 2147483648, %v3075_v26  ;;  %v11471_v57 = vld [vmem:[#allocation46_spill] sm:$0xff] }
 0x351   : > { %11458 = vst [vmem:[#allocation43_spill] sm:$0xff] %v8478_v29  ;;  %v2737_v2 = vclz %v2736_v54  ;;  %3164 = vmatpush.msrb.mxu0 %v8478_v29  ;;  %v8486_v13 = vand.u32 3, %v2620_v42  ;;  %v2224_v38 = vshrl.u32 %v11443_v35, 16  ;;  %v2725_v60 = vadd.s32 %v8405_v59, %v8384_v41  ;;  %v11500_v54 = vld [vmem:[#allocation39_spill] sm:$0xff] }
 0x352   : > { %v2605_v21 = vmul.f32 -0.001358992, %v2604_v37  ;;  %v2612_v17 = vmul.f32 -0.00019511016, %v2604_v37  ;;  %v3089_v10 = vxor.u32 2147483648, %v3083_v61  ;;  %v11460_v16 = vand.u32 65535, %v11459_v30 }
 0x353   : > { %v6001_v58 = vadd.s32 4294967294, %v2737_v2  ;;  %v2235_v40 = vadd.s32 %v2234_v19, %v2224_v38  ;;  %v11464_v35 = vshll.u32 %v11463_v25, 16  ;;  %v3093_v59 = vsel %vm3091_vm7, %v3092_v28, %v3083_v61  ;;  %v11475_v30 = vld [vmem:[#allocation56_spill] sm:$0xff] }
 0x354   : > { %v8494_v20 = vmul.u32 %v11460_v16, %v11451_v49  ;;  %v2606_v24 = vadd.f32 0.041655596, %v2605_v21  ;;  %v2613_v62 = vadd.f32 0.008332121, %v2612_v17  ;;  %v11462_v31 = vmov %v11460_v16  ;;  %v11468_v49 = vld [vmem:[#allocation45_spill] sm:$0xff]  ;;  %v11476_v16 = vld [vmem:[#allocation54_spill] sm:$0xff] }
 0x355   : > { %v2241_v7 = vmul.u32 %v11462_v31, %v11461_v6  ;;  %vm8502_vm14 = vc.u32 %v11465_v52, %v11464_v35  ;;  %v3090_v41 = vsel %vm3088_vm2, %v3075_v26, %v3089_v10  ;;  %vm6002_vm5 = vcmp.lt.s32.totalorder %v6001_v58, 0 }
 0x356   : > { %v2245_v33 = vshll.u32 %v11468_v49, 16  ;;  %v3094_v63 = vsel %vm3087_vm4, %v3090_v41, %v3093_v59  ;;  %v2607_v36 = vmul.f32 %v2606_v24, %v2604_v37  ;;  %v2614_v55 = vmul.f32 %v2613_v62, %v2604_v37  ;;  %v11478_v41 = vld [vmem:[#allocation62_spill] sm:$0xff] }
 0x357   : > { %v2740_v8 = vsel %vm6002_vm5, 0, %v6001_v58  ;;  %v3095_v22 = vsel %vm3084_vm8, nan, %v3094_v63  ;;  %v2247_v32 = vshll.u32 %v8494_v20, 16  ;;  %vm2623_vm13 = vcmp.eq.s32.totalorder %v8486_v13, 0 }
 0x358   : > { %v2741_v50 = vsub.s32 32, %v2740_v8  ;;  %v2745_v56 = vsub.s32 4294967266, %v2740_v8  ;;  %v8517_v42 = vadd.f32 %v6140_v47, %v3095_v22  ;;  %v2608_v44 = vadd.f32 -0.4999988, %v2607_v36  ;;  %v11481_v36 = vld [vmem:[#allocation63_spill] sm:$0xff] }
 0x359   : > { %v2615_v4 = vadd.f32 -0.16666654, %v2614_v55  ;;  %v2742_v1 = vshll.u32 %v8456_v14, %v2740_v8  ;;  %vm2249_vm9 = vc.u32 %v2241_v7, %v2245_v33  ;;  %v2251_v0 = vadd.s32 %v2245_v33, %v2241_v7 }
 0x35a   : > { %11469 = vst [vmem:[#allocation47_spill] sm:$0xff] %v8517_v42  ;;  %v2743_v34 = vshrl.u32 %v2725_v60, %v2741_v50  ;;  %v2746_v18 = vadd.s32 127, %v2745_v56  ;;  %3193 = vmatpush.msrb.mxu1 %v8517_v42  ;;  %v2609_v39 = vmul.f32 %v2608_v44, %v2604_v37  ;;  %vm2622_vm10 = vcmp.lt.s32.totalorder %v8486_v13, 2  ;;  %v11482_v50 = vld [vmem:[#allocation65_spill] sm:$0xff]  ;;  %v11483_v44 = vld [vmem:[#allocation50_spill] sm:$0xff] }
 0x35b   : > { %v2616_v3 = vmul.f32 %v2615_v4, %v2604_v37  ;;  %v2226_v45 = vshrl.u32 %v8415_v53, 16  ;;  %v2250_v48 = vsel %vm2249_vm9, 1, %v11317_v5  ;;  %vm2633_vm15 = vcmp.lt.s32.totalorder %v11470_v46, 0 }
 0x35c   : > { %vm2619_vm12 = vweird.f32 %v7748_v23  ;;  %v2744_v14 = vor.u32 %v2743_v34, %v2742_v1  ;;  %v2747_v15 = vshll.u32 %v2746_v18, 23  ;;  %v2252_v43 = vadd.s32 %v2250_v48, %v11471_v57  ;;  %v6141_v34 = vld [vmem:[%s6406_s15 + $0x20] sm:$0xff] }
 0x35d   : > { %vm2253_vm2 = vc.u32 %v2251_v0, %v2247_v32  ;;  %v2610_v26 = vadd.f32 1.0, %v2609_v39  ;;  %v2617_v51 = vadd.f32 1.0, %v2616_v3  ;;  %v8528_v27 = vadd.s32 %v2235_v40, %v2226_v45  ;;  %v11486_v39 = vld [vmem:[#allocation16_spill] sm:$0xff] }
 0x35e   : > { %v2254_v37 = vsel %vm2253_vm2, 1, %v11317_v5  ;;  %vm2626_vm4 = vcmp.eq.s32.totalorder %v8486_v13, 2  ;;  %v11472_v53 = vand.u32 2147483647, %v11470_v46  ;;  %v2748_v19 = vor.u32 4788187, %v2747_v15 }
 0x35f   : > { %v2246_v61 = vshrl.u32 %v11468_v49, 16  ;;  %v2256_v28 = vadd.s32 %v2254_v37, %v2252_v43  ;;  %v2618_v2 = vmul.f32 %v2617_v51, %v8475_v11  ;;  %v2627_v21 = vxor.u32 2147483648, %v2610_v26  ;;  %v11479_v49 = vld [vmem:[#allocation58_spill] sm:$0xff]  ;;  %v11487_v3 = vld [vmem:[#allocation40_spill] sm:$0xff]  ;;  %v11491_v43 = vld [vmem:[#allocation27_spill] sm:$0xff] }
 0x360   : > { %vm8534_vm8 = vcmp.le.f32.partialorder %v11472_v53, 0.7853982  ;;  %v2248_v17 = vshrl.u32 %v8494_v20, 16  ;;  %v8541_v38 = vadd.s32 %v2251_v0, %v2247_v32  ;;  %v2749_v10 = vand.u32 2147483647, %v2748_v19  ;;  %v11489_v15 = vld [vmem:[#allocation26_spill] sm:$0xff] }
 0x361   : > { %v2751_v60 = vcvt.s32.f32 %v2744_v14  ;;  %v2257_v58 = vadd.s32 %v2256_v28, %v2246_v61  ;;  %v11477_v24 = vand.u32 65535, %v11476_v16  ;;  %v2624_v40 = vxor.u32 2147483648, %v2618_v2  ;;  %v11494_v61 = vld [vmem:[#allocation52_spill] sm:$0xff]  ;;  %v11495_v28 = vld [vmem:[#allocation57_spill] sm:$0xff] }
 0x362   : > { %v2755_v6 = vsub.s32 4, %v8444_v12  ;;  %vm2261_vm6 = vc.u32 %v8528_v27, %v8541_v38  ;;  %v2383_v11 = vsel %vm8502_vm14, 1, %v11317_v5  ;;  %v2628_v20 = vsel %vm2626_vm4, %v2627_v21, %v2618_v2 }
 0x363   : > { %v2376_v62 = vmul.u32 %v11477_v24, %v11475_v30  ;;  %v2752_v31 = vmul.f32 %v2751_v60, %v2749_v10  ;;  %v2258_v7 = vadd.s32 %v2257_v58, %v2248_v17  ;;  %v2625_v52 = vsel %vm2623_vm13, %v2610_v26, %v2624_v40  ;;  %v11497_v10 = vld [vmem:[#allocation64_spill] sm:$0xff]  ;;  %v11498_v24 = vld [vmem:[#allocation59_spill] sm:$0xff] }
 0x364   : > { %v2385_v59 = vadd.s32 %v2383_v11, %v11478_v41  ;;  %v11480_v33 = vand.u32 65535, %v11479_v49  ;;  %v2400_v55 = vshll.u32 %v11481_v36, 16  ;;  %v2629_v9 = vsel %vm2622_vm10, %v2625_v52, %v2628_v20  ;;  %v11499_v40 = vld [vmem:[#allocation51_spill] sm:$0xff] }
 0x365   : > { %v2380_v35 = vshll.u32 %v2376_v62, 16  ;;  %v2753_v8 = vxor.u32 2147483648, %v2752_v31  ;;  %v2262_v22 = vadd.s32 1, %v2258_v7  ;;  %v2630_v56 = vsel %vm2619_vm12, nan, %v2629_v9 }
 0x366   : > { %v2398_v63 = vmul.u32 %v11480_v33, %v11475_v30  ;;  %v2756_v32 = vsel %vm2633_vm15, %v2755_v6, %v8444_v12  ;;  %v11484_v4 = vmov %v11480_v33  ;;  %v8574_v13 = vadd.f32 %v6141_v34, %v2630_v56 }
 0x367   : > { %vm2386_vm7 = vc.u32 %v11482_v50, %v2380_v35  ;;  %v2396_v1 = vmul.u32 %v11484_v4, %v11483_v44  ;;  %v2754_v18 = vsel %vm2633_vm15, %v2753_v8, %v2752_v31  ;;  %v2263_v23 = vsel %vm2261_vm6, %v2262_v22, %v2258_v7  ;;  %v11503_v44 = vld [vmem:[#allocation19_spill] sm:$0xff] }
 0x368   : > { %v2387_v47 = vsel %vm2386_vm7, 1, %v11317_v5  ;;  %11485 = vst [vmem:[#allocation37_spill] sm:$0xff] %v8574_v13  ;;  %v2757_v12 = vsel %vm8534_vm8, %v11470_v46, %v2754_v18  ;;  %v11488_v45 = vmul.u32 %v11486_v39, %v11487_v3  ;;  %v2379_v14 = vshrl.u32 %v11463_v25, 16  ;;  %3165 = vmatpush.msrb.mxu0 %v8574_v13  ;;  %v11504_v4 = vld [vmem:[#allocation31_spill] sm:$0xff]  ;;  %v11506_v18 = vld [vmem:[#allocation42_spill] sm:$0xff] }
 0x369   : > { %v2389_v0 = vadd.s32 %v2387_v47, %v2385_v59  ;;  %vm2404_vm14 = vc.u32 %v2396_v1, %v2400_v55  ;;  %v11490_v57 = vshll.u32 %v11489_v15, 16  ;;  %v2759_v51 = vmul.f32 %v2757_v12, %v2757_v12  ;;  %v11501_v59 = vld [vmem:[#allocation18_spill] sm:$0xff] }
 0x36a   : > { %v2264_v48 = vadd.s32 %v2263_v23, %v11488_v45  ;;  %v2402_v37 = vshll.u32 %v2398_v63, 16  ;;  %v2405_v53 = vsel %vm2404_vm14, 1, %v11317_v5  ;;  %v2406_v19 = vadd.s32 %v2400_v55, %v2396_v1 }
 0x36b   : > { %vm8591_vm5 = vc.u32 %v11491_v43, %v11490_v57  ;;  %v2357_v25 = vsel %vm2353_vm11, %v11495_v28, %v11494_v61  ;;  %v2390_v17 = vadd.s32 %v2389_v0, %v2379_v14  ;;  %v2407_v60 = vadd.s32 %v2405_v53, %v11497_v10  ;;  %v11507_v14 = vld [vmem:[#allocation44_spill] sm:$0xff] }
 0x36c   : > { %v2265_v21 = vadd.s32 536870912, %v2264_v48  ;;  %v2758_v58 = vsel %vm8534_vm8, 0, %v2756_v32  ;;  %v2760_v30 = vmul.f32 -0.001358992, %v2759_v51  ;;  %v2767_v16 = vmul.f32 -0.00019511016, %v2759_v51 }
 0x36d   : > { %vm2408_vm13 = vc.u32 %v2406_v19, %v2402_v37  ;;  %v2359_v6 = vsel %vm2355_vm3, %v11499_v40, %v11498_v24  ;;  %v2381_v20 = vshrl.u32 %v2376_v62, 16  ;;  %v2401_v52 = vshrl.u32 %v11481_v36, 16  ;;  %v11508_v10 = vld [vmem:[#allocation28_spill] sm:$0xff]  ;;  %v11509_v24 = vld [vmem:[#allocation25_spill] sm:$0xff] }
 0x36e   : > { %v8608_v11 = vshrl.u32 %v2265_v21, 30  ;;  %v2409_v31 = vsel %vm2408_vm13, 1, %v11317_v5  ;;  %v2761_v7 = vadd.f32 0.041655596, %v2760_v30  ;;  %v2768_v35 = vadd.f32 0.008332121, %v2767_v16 }
 0x36f   : > { %v2411_v41 = vadd.s32 %v2409_v31, %v2407_v60  ;;  %v11502_v49 = vshrl.u32 %v11501_v59, 16  ;;  %v2775_v55 = vadd.s32 3, %v2758_v58  ;;  %v8618_v8 = vadd.s32 %v2390_v17, %v2381_v20  ;;  %v11510_v31 = vld [vmem:[#allocation29_spill] sm:$0xff] }
 0x370   : > { %v2267_v9 = vshll.u32 %v8608_v11, 30  ;;  %v2762_v22 = vmul.f32 %v2761_v7, %v2759_v51  ;;  %v2769_v50 = vmul.f32 %v2768_v35, %v2759_v51  ;;  %v2403_v62 = vshrl.u32 %v2398_v63, 16 }
 0x371   : > { %v8615_v33 = vmul.u32 %v11502_v49, %v11500_v54  ;;  %v2412_v56 = vadd.s32 %v2411_v41, %v2401_v52  ;;  %v2360_v32 = vsel %vm2354_vm1, %v2357_v25, %v2359_v6  ;;  %v8622_v36 = vadd.s32 %v2406_v19, %v2402_v37  ;;  %v11512_v41 = vld [vmem:[#allocation22_spill] sm:$0xff] }
 0x372   : > { %v2268_v47 = vsub.s32 %v2264_v48, %v2267_v9  ;;  %v11505_v1 = vand.u32 65535, %v11504_v4  ;;  %v2068_v23 = vshll.u32 %v11506_v18, 16  ;;  %v2763_v0 = vadd.f32 -0.4999988, %v2762_v22 }
 0x373   : > { %v2770_v39 = vadd.f32 -0.16666654, %v2769_v50  ;;  %v2413_v3 = vadd.s32 %v2412_v56, %v2403_v62  ;;  %v2776_v45 = vand.u32 3, %v2775_v55  ;;  %vm2416_vm3 = vc.u32 %v8618_v8, %v8622_v36 }
 0x374   : > { %v8627_v34 = vmul.u32 %v11505_v1, %v11503_v44  ;;  %vm2269_vm11 = vcmp.lt.s32.totalorder %v2268_v47, 0  ;;  %v2270_v63 = vsub.s32 0, %v2268_v47  ;;  %v2414_v48 = vmul.u32 %v11507_v14, %v2360_v32 }
 0x375   : > { %v2764_v57 = vmul.f32 %v2763_v0, %v2759_v51  ;;  %v2771_v43 = vmul.f32 %v2770_v39, %v2759_v51  ;;  %v2417_v37 = vadd.s32 1, %v2413_v3  ;;  %vm2774_vm1 = vweird.f32 %v11470_v46 }
 0x376   : > { %v2271_v53 = vsel %vm2269_vm11, %v2270_v63, %v2268_v47  ;;  %v1915_v19 = vshll.u32 %v8627_v34, 16  ;;  %v1918_v61 = vsel %vm8591_vm5, 1, %v11317_v5  ;;  %vm2777_vm9 = vcmp.lt.s32.totalorder %v2776_v45, 2 }
 0x377   : > { %v2765_v28 = vadd.f32 1.0, %v2764_v57  ;;  %v2772_v2 = vadd.f32 1.0, %v2771_v43  ;;  %v2272_v25 = vclz %v2271_v53  ;;  %v2418_v21 = vsel %vm2416_vm3, %v2417_v37, %v2413_v3 }
 0x378   : > { %vm2778_vm10 = vcmp.eq.s32.totalorder %v2776_v45, 0  ;;  %v2419_v17 = vadd.s32 %v2418_v21, %v2414_v48  ;;  %vm1921_vm15 = vc.u32 %v11508_v10, %v1915_v19  ;;  %vm2781_vm12 = vcmp.eq.s32.totalorder %v2776_v45, 2  ;;  %v11517_v19 = vld [vmem:[#allocation13_spill] sm:$0xff]  ;;  %v11522_v21 = vld [vmem:[#allocation34_spill] sm:$0xff] }
 0x379   : > { %v2773_v51 = vmul.f32 %v2772_v2, %v2757_v12  ;;  %v2782_v60 = vxor.u32 2147483648, %v2765_v28  ;;  %v5992_v58 = vadd.s32 4294967294, %v2272_v25  ;;  %v2260_v30 = vadd.s32 %v8541_v38, %v8528_v27  ;;  %v11511_v12 = vld [vmem:[#allocation30_spill] sm:$0xff] }
 0x37a   : > { %v2420_v16 = vadd.s32 536870912, %v2419_v17  ;;  %v1914_v26 = vshrl.u32 %v11489_v15, 16  ;;  %v1920_v40 = vadd.s32 %v1918_v61, %v11509_v24  ;;  %v1922_v20 = vsel %vm1921_vm15, 1, %v11317_v5  ;;  %v11515_v15 = vld [vmem:[#allocation33_spill] sm:$0xff]  ;;  %v11521_v25 = vld [vmem:[#allocation38_spill] sm:$0xff] }
 0x37b   : > { %v2779_v6 = vxor.u32 2147483648, %v2773_v51  ;;  %vm5993_vm2 = vcmp.lt.s32.totalorder %v5992_v58, 0  ;;  %v1935_v7 = vshll.u32 %v11510_v31, 16  ;;  %v11513_v49 = vand.u32 65535, %v11512_v41 }
 0x37c   : > { %v2275_v35 = vsel %vm5993_vm2, 0, %v5992_v58  ;;  %v8645_v52 = vshrl.u32 %v2420_v16, 30  ;;  %vm2168_vm4 = vcmp.lt.s32.totalorder %v11515_v15, 0  ;;  %v2783_v22 = vsel %vm2781_vm12, %v2782_v60, %v2773_v51 }
 0x37d   : > { %v1931_v55 = vmul.u32 %v11513_v49, %v11511_v12  ;;  %v11514_v27 = vmov %v11513_v49  ;;  %v2780_v9 = vsel %vm2778_vm10, %v2765_v28, %v2779_v6  ;;  %v2276_v50 = vsub.s32 32, %v2275_v35  ;;  %v11518_v28 = vld [vmem:[#allocation41_spill] sm:$0xff] }
 0x37e   : > { %v1933_v38 = vmul.u32 %v11514_v27, %v11503_v44  ;;  %v2280_v62 = vsub.s32 4294967266, %v2275_v35  ;;  %v2784_v56 = vsel %vm2777_vm9, %v2780_v9, %v2783_v22  ;;  %v2277_v32 = vshll.u32 %v2268_v47, %v2275_v35  ;;  %v6142_v44 = vld [vmem:[%s6406_s15 + $0x28] sm:$0xff] }
 0x37f   : > { %v2422_v4 = vshll.u32 %v8645_v52, 30  ;;  %v1924_v1 = vadd.s32 %v1922_v20, %v1920_v40  ;;  %v2785_v0 = vsel %vm2774_vm1, nan, %v2784_v56  ;;  %v2278_v39 = vshrl.u32 %v2260_v30, %v2276_v50 }
 0x380   : > { %v2281_v3 = vadd.s32 127, %v2280_v62  ;;  %vm1939_vm8 = vc.u32 %v1931_v55, %v1935_v7  ;;  %v8661_v63 = vadd.f32 %v6142_v44, %v2785_v0  ;;  %v2290_v14 = vsub.s32 4, %v8608_v11 }
 0x381   : > { %v2423_v48 = vsub.s32 %v2419_v17, %v2422_v4  ;;  %v1940_v57 = vsel %vm1939_vm8, 1, %v11317_v5  ;;  %v2279_v45 = vor.u32 %v2278_v39, %v2277_v32  ;;  %v1937_v47 = vshll.u32 %v1933_v38, 16 }
 0x382   : > { %11516 = vst [vmem:[#allocation17_spill] sm:$0xff] %v8661_v63  ;;  %v2282_v43 = vshll.u32 %v2281_v3, 23  ;;  %v1941_v37 = vadd.s32 %v1935_v7, %v1931_v55  ;;  %3194 = vmatpush.msrb.mxu1 %v8661_v63  ;;  %v1925_v53 = vadd.s32 %v1924_v1, %v1914_v26  ;;  %v1942_v61 = vadd.s32 %v1940_v57, %v11517_v19 }
 0x383   : > { %vm2424_vm6 = vcmp.lt.s32.totalorder %v2423_v48, 0  ;;  %v2425_v46 = vsub.s32 0, %v2423_v48  ;;  %vm8670_vm7 = vc.u32 %v11518_v28, %v2068_v23  ;;  %v11523_v17 = vshrl.u32 %v11522_v21, 16 }
 0x384   : > { %v2283_v51 = vor.u32 4788187, %v2282_v43  ;;  %vm1943_vm14 = vc.u32 %v1941_v37, %v1937_v47  ;;  %v1916_v58 = vshrl.u32 %v8627_v34, 16  ;;  %v1936_v30 = vshrl.u32 %v11510_v31, 16 }
 0x385   : > { %v8677_v10 = vmul.u32 %v11523_v17, %v11521_v25  ;;  %v2426_v60 = vsel %vm2424_vm6, %v2425_v46, %v2423_v48  ;;  %v1944_v16 = vsel %vm1943_vm14, 1, %v11317_v5  ;;  %v2286_v24 = vcvt.s32.f32 %v2279_v45 }
 0x386   : > { %v2284_v26 = vand.u32 2147483647, %v2283_v51  ;;  %v2427_v40 = vclz %v2426_v60  ;;  %v1946_v6 = vadd.s32 %v1944_v16, %v1942_v61  ;;  %v2074_v20 = vadd.s32 %v2068_v23, %v11518_v28  ;;  %v11532_v60 = vld [vmem:[#allocation15_spill] sm:$0xff] }
 0x387   : > { %v11524_v7 = vand.u32 2147483647, %v11515_v15  ;;  %v2291_v34 = vsel %vm2168_vm4, %v2290_v14, %v8608_v11  ;;  %v8694_v31 = vadd.s32 %v1925_v53, %v1916_v58  ;;  %v1938_v49 = vshrl.u32 %v1933_v38, 16  ;;  %v11533_v58 = vld [vmem:[#allocation23_spill] sm:$0xff] }
 0x388   : > { %v2287_v12 = vmul.f32 %v2286_v24, %v2284_v26  ;;  %v5995_v41 = vadd.s32 4294967294, %v2427_v40  ;;  %v1947_v55 = vadd.s32 %v1946_v6, %v1936_v30  ;;  %v2415_v27 = vadd.s32 %v8622_v36, %v8618_v8 }
 0x389   : > { %vm8687_vm5 = vcmp.le.f32.partialorder %v11524_v7, 0.7853982  ;;  %v8698_v23 = vadd.s32 %v1941_v37, %v1937_v47  ;;  %v11527_v9 = vand.u32 65535, %v11501_v59  ;;  %v2073_v11 = vsel %vm8670_vm7, 1, %v11317_v5 }
 0x38a   : > { %v2288_v50 = vxor.u32 2147483648, %v2287_v12  ;;  %v2293_v62 = vsel %vm8687_vm5, 0, %v2291_v34  ;;  %vm5996_vm13 = vcmp.lt.s32.totalorder %v5995_v41, 0  ;;  %v1948_v38 = vadd.s32 %v1947_v55, %v1938_v49 }
 0x38b   : > { %v8703_v22 = vmul.u32 %v11527_v9, %v11500_v54  ;;  %v2430_v56 = vsel %vm5996_vm13, 0, %v5995_v41  ;;  %vm1951_vm11 = vc.u32 %v8694_v31, %v8698_v23  ;;  %v2075_v59 = vadd.s32 %v2073_v11, %v8615_v33 }
 0x38c   : > { %v2289_v36 = vsel %vm2168_vm4, %v2288_v50, %v2287_v12  ;;  %v2431_v32 = vsub.s32 32, %v2430_v56  ;;  %v2435_v4 = vsub.s32 4294967266, %v2430_v56  ;;  %v11528_v1 = vand.u32 65535, %v11522_v21 }
 0x38d   : > { %v2070_v8 = vshll.u32 %v8703_v22, 16  ;;  %v2292_v39 = vsel %vm8687_vm5, %v11515_v15, %v2289_v36  ;;  %v1952_v3 = vadd.s32 1, %v1948_v38  ;;  %v2090_v44 = vshll.u32 %v8677_v10, 16 }
 0x38e   : > { %v8719_v0 = vmul.u32 %v11528_v1, %v11500_v54  ;;  %v2294_v14 = vmul.f32 %v2292_v39, %v2292_v39  ;;  %v2432_v33 = vshll.u32 %v2423_v48, %v2430_v56  ;;  %v2433_v57 = vshrl.u32 %v2415_v27, %v2431_v32 }
 0x38f   : > { %vm2076_vm3 = vc.u32 %v2074_v20, %v2070_v8  ;;  %v2436_v45 = vadd.s32 127, %v2435_v4  ;;  %v11529_v43 = vmov %v11523_v17  ;;  %v1953_v37 = vsel %vm1951_vm11, %v1952_v3, %v1948_v38  ;;  %v11531_v17 = vld [vmem:[#allocation24_spill] sm:$0xff] }
 0x390   : > { %v2089_v47 = vmul.u32 %v11529_v43, %v11500_v54  ;;  %v2077_v46 = vsel %vm2076_vm3, 1, %v11317_v5  ;;  %v11530_v53 = vmov %v11528_v1  ;;  %v2295_v61 = vmul.f32 -0.001358992, %v2294_v14 }
 0x391   : > { %v2086_v19 = vmul.u32 %v11530_v53, %v11521_v25  ;;  %v2302_v28 = vmul.f32 -0.00019511016, %v2294_v14  ;;  %v2434_v2 = vor.u32 %v2433_v57, %v2432_v33  ;;  %v2437_v48 = vshll.u32 %v2436_v45, 23 }
 0x392   : > { %vm2323_vm1 = vcmp.lt.s32.totalorder %v11531_v17, 0  ;;  %v2310_v51 = vadd.s32 3, %v2293_v62  ;;  %v11534_v54 = vmul.u32 %v11532_v60, %v11533_v58  ;;  %v2092_v16 = vshll.u32 %v8719_v0, 16 }
 0x393   : > { %vm2094_vm9 = vc.u32 %v2086_v19, %v2090_v44  ;;  %v2296_v26 = vadd.f32 0.041655596, %v2295_v61  ;;  %v2303_v24 = vadd.f32 0.008332121, %v2302_v28  ;;  %v2438_v40 = vor.u32 4788187, %v2437_v48 }
 0x394   : > { %v1954_v30 = vadd.s32 %v1953_v37, %v11534_v54  ;;  %v2079_v6 = vadd.s32 %v2077_v46, %v2075_v59  ;;  %v2441_v21 = vcvt.s32.f32 %v2434_v2  ;;  %v2095_v20 = vsel %vm2094_vm9, 1, %v11317_v5 }
 0x395   : > { %v2096_v7 = vadd.s32 %v2090_v44, %v2086_v19  ;;  %v2297_v35 = vmul.f32 %v2296_v26, %v2294_v14  ;;  %v2304_v34 = vmul.f32 %v2303_v24, %v2294_v14  ;;  %v2439_v12 = vand.u32 2147483647, %v2438_v40 }
 0x396   : > { %v1955_v25 = vadd.s32 536870912, %v1954_v30  ;;  %v2097_v41 = vadd.s32 %v2095_v20, %v2089_v47  ;;  %v11535_v49 = vand.u32 2147483647, %v11531_v17  ;;  %v2069_v9 = vshrl.u32 %v11506_v18, 16 }
 0x397   : > { %vm2098_vm15 = vc.u32 %v2096_v7, %v2092_v16  ;;  %v2298_v11 = vadd.f32 -0.4999988, %v2297_v35  ;;  %v2305_v50 = vadd.f32 -0.16666654, %v2304_v34  ;;  %v2442_v62 = vmul.f32 %v2441_v21, %v2439_v12  ;;  %v11539_v34 = vld [vmem:[#allocation14_spill] sm:$0xff]  ;;  %v11540_v12 = vld [vmem:[#allocation20_spill] sm:$0xff] }
 0x398   : > { %vm8743_vm10 = vcmp.le.f32.partialorder %v11535_v49, 0.7853982  ;;  %v8747_v27 = vshrl.u32 %v1955_v25, 30  ;;  %v2099_v38 = vsel %vm2098_vm15, 1, %v11317_v5  ;;  %v2080_v8 = vadd.s32 %v2079_v6, %v2069_v9 }
 0x399   : > { %v2091_v59 = vshrl.u32 %v8677_v10, 16  ;;  %v2101_v36 = vadd.s32 %v2099_v38, %v2097_v41  ;;  %v2299_v32 = vmul.f32 %v2298_v11, %v2294_v14  ;;  %v2306_v4 = vmul.f32 %v2305_v50, %v2294_v14 }
 0x39a   : > { %v1957_v56 = vshll.u32 %v8747_v27, 30  ;;  %v2311_v1 = vand.u32 3, %v2310_v51  ;;  %v2443_v3 = vxor.u32 2147483648, %v2442_v62  ;;  %v2445_v44 = vsub.s32 4, %v8645_v52 }
 0x39b   : > { %v2071_v18 = vshrl.u32 %v8703_v22, 16  ;;  %v2102_v57 = vadd.s32 %v2101_v36, %v2091_v59  ;;  %v2300_v45 = vadd.f32 1.0, %v2299_v32  ;;  %v2307_v43 = vadd.f32 1.0, %v2306_v4 }
 0x39c   : > { %v1958_v33 = vsub.s32 %v1954_v30, %v1957_v56  ;;  %v2444_v47 = vsel %vm2323_vm1, %v2443_v3, %v2442_v62  ;;  %v2093_v37 = vshrl.u32 %v8719_v0, 16  ;;  %vm2312_vm2 = vcmp.lt.s32.totalorder %v2311_v1, 2 }
 0x39d   : > { %v2447_v10 = vsel %vm8743_vm10, %v11531_v17, %v2444_v47  ;;  %v8761_v46 = vadd.s32 %v2080_v8, %v2071_v18  ;;  %v2308_v53 = vmul.f32 %v2307_v43, %v2292_v39  ;;  %v2317_v19 = vxor.u32 2147483648, %v2300_v45 }
 0x39e   : > { %vm1959_vm12 = vcmp.lt.s32.totalorder %v1958_v33, 0  ;;  %v1960_v14 = vsub.s32 0, %v1958_v33  ;;  %v2449_v61 = vmul.f32 %v2447_v10, %v2447_v10  ;;  %v2103_v22 = vadd.s32 %v2102_v57, %v2093_v37 }
 0x39f   : > { %vm2316_vm4 = vcmp.eq.s32.totalorder %v2311_v1, 2  ;;  %v8763_v2 = vadd.s32 %v2096_v7, %v2092_v16  ;;  %v2314_v48 = vxor.u32 2147483648, %v2308_v53  ;;  %v2446_v0 = vsel %vm2323_vm1, %v2445_v44, %v8645_v52  ;;  %v6143_v7 = vld [vmem:[%s6406_s15 + $0x10] sm:$0xff] }
 0x3a0   : > { %v1961_v28 = vsel %vm1959_vm12, %v1960_v14, %v1958_v33  ;;  %v2450_v51 = vmul.f32 -0.001358992, %v2449_v61  ;;  %v2457_v60 = vmul.f32 -0.00019511016, %v2449_v61  ;;  %vm2313_vm8 = vcmp.eq.s32.totalorder %v2311_v1, 0 }
 0x3a1   : > { %v2318_v58 = vsel %vm2316_vm4, %v2317_v19, %v2308_v53  ;;  %v1962_v54 = vclz %v1961_v28  ;;  %vm2106_vm6 = vc.u32 %v8761_v46, %v8763_v2  ;;  %v2315_v39 = vsel %vm2313_vm8, %v2300_v45, %v2314_v48 }
 0x3a2   : > { %v2451_v30 = vadd.f32 0.041655596, %v2450_v51  ;;  %v2458_v26 = vadd.f32 0.008332121, %v2457_v60  ;;  %v2107_v24 = vadd.s32 1, %v2103_v22  ;;  %vm2309_vm7 = vweird.f32 %v11515_v15  ;;  %v6144_v60 = vld [vmem:[%s6406_s15 + $0x18] sm:$0xff] }
 0x3a3   : > { %v2319_v16 = vsel %vm2312_vm2, %v2315_v39, %v2318_v58  ;;  %v2448_v52 = vsel %vm8743_vm10, 0, %v2446_v0  ;;  %v5986_v40 = vadd.s32 4294967294, %v1962_v54  ;;  %v11541_v41 = vmul.u32 %v11539_v34, %v11540_v12  ;;  %v11543_v39 = vld [vmem:[#allocation32_spill] sm:$0xff] }
 0x3a4   : > { %v2320_v6 = vsel %vm2309_vm7, nan, %v2319_v16  ;;  %v2452_v21 = vmul.f32 %v2451_v30, %v2449_v61  ;;  %v2459_v25 = vmul.f32 %v2458_v26, %v2449_v61  ;;  %v2108_v20 = vsel %vm2106_vm6, %v2107_v24, %v2103_v22 }
 0x3a5   : > { %v8775_v35 = vadd.f32 %v6143_v7, %v2320_v6  ;;  %vm5987_vm14 = vcmp.lt.s32.totalorder %v5986_v40, 0  ;;  %v2109_v49 = vadd.s32 %v2108_v20, %v11541_v41  ;;  %v2465_v11 = vadd.s32 3, %v2448_v52 }
 0x3a6   : > { %v2453_v9 = vadd.f32 -0.4999988, %v2452_v21  ;;  %v2460_v15 = vadd.f32 -0.16666654, %v2459_v25  ;;  %v1965_v50 = vsel %vm5987_vm14, 0, %v5986_v40  ;;  %v1950_v55 = vadd.s32 %v8698_v23, %v8694_v31 }
 0x3a7   : > { %11538 = vst [vmem:[#allocation55_spill] sm:$0xff] %v8775_v35  ;;  %3166 = vmatpush.msrb.mxu0 %v8775_v35  ;;  %v1966_v62 = vsub.s32 32, %v1965_v50  ;;  %v1970_v38 = vsub.s32 4294967266, %v1965_v50  ;;  %v2110_v56 = vadd.s32 536870912, %v2109_v49  ;;  %v1967_v36 = vshll.u32 %v1958_v33, %v1965_v50 }
 0x3a8   : > { %v2454_v8 = vmul.f32 %v2453_v9, %v2449_v61  ;;  %v2461_v59 = vmul.f32 %v2460_v15, %v2449_v61  ;;  %v2466_v18 = vand.u32 3, %v2465_v11  ;;  %vm2464_vm1 = vweird.f32 %v11531_v17 }
 0x3a9   : > { %v1968_v32 = vshrl.u32 %v1950_v55, %v1966_v62  ;;  %v1971_v4 = vadd.s32 127, %v1970_v38  ;;  %v8783_v1 = vshrl.u32 %v2110_v56, 30  ;;  %vm1858_vm9 = vcmp.lt.s32.totalorder %v11543_v39, 0 }
 0x3aa   : > { %v2455_v3 = vadd.f32 1.0, %v2454_v8  ;;  %v2462_v44 = vadd.f32 1.0, %v2461_v59  ;;  %vm2468_vm5 = vcmp.eq.s32.totalorder %v2466_v18, 0  ;;  %vm2471_vm13 = vcmp.eq.s32.totalorder %v2466_v18, 2 }
 0x3ab   : > { %v1969_v57 = vor.u32 %v1968_v32, %v1967_v36  ;;  %v1972_v45 = vshll.u32 %v1971_v4, 23  ;;  %v2112_v43 = vshll.u32 %v8783_v1, 30  ;;  %vm2467_vm3 = vcmp.lt.s32.totalorder %v2466_v18, 2 }
 0x3ac   : > { %v2463_v47 = vmul.f32 %v2462_v44, %v2447_v10  ;;  %v2472_v37 = vxor.u32 2147483648, %v2455_v3  ;;  %v11544_v26 = vand.u32 2147483647, %v11543_v39  ;;  %v1980_v16 = vsub.s32 4, %v8747_v27 }
 0x3ad   : > { %v1973_v31 = vor.u32 4788187, %v1972_v45  ;;  %v2113_v23 = vsub.s32 %v2109_v49, %v2112_v43  ;;  %v1976_v53 = vcvt.s32.f32 %v1969_v57  ;;  %v2105_v21 = vadd.s32 %v8763_v2, %v8761_v46  ;;  %v11547_v43 = vld [vmem:[#allocation21_spill] sm:$0xff] }
 0x3ae   : > { %v2469_v14 = vxor.u32 2147483648, %v2463_v47  ;;  %v2473_v22 = vsel %vm2471_vm13, %v2472_v37, %v2463_v47  ;;  %vm8794_vm10 = vcmp.le.f32.partialorder %v11544_v26, 0.7853982  ;;  %v1981_v12 = vsel %vm1858_vm9, %v1980_v16, %v8747_v27 }
 0x3af   : > { %v1974_v33 = vand.u32 2147483647, %v1973_v31  ;;  %vm2114_vm11 = vcmp.lt.s32.totalorder %v2113_v23, 0  ;;  %v2115_v19 = vsub.s32 0, %v2113_v23  ;;  %v1983_v62 = vsel %vm8794_vm10, 0, %v1981_v12 }
 0x3b0   : > { %v2470_v61 = vsel %vm2468_vm5, %v2455_v3, %v2469_v14  ;;  %v2000_v59 = vadd.s32 3, %v1983_v62  ;;  %vm2013_vm12 = vcmp.lt.s32.totalorder %v11547_v43, 0  ;;  %v11548_v31 = vand.u32 2147483647, %v11547_v43  ;;  %v3106_v62 = vld [vmem:[%s11100_s5 + $0x10] sm:$0xff] }
 0x3b1   : > { %v2474_v28 = vsel %vm2467_vm3, %v2470_v61, %v2473_v22  ;;  %v1977_v48 = vmul.f32 %v1976_v53, %v1974_v33  ;;  %v2116_v0 = vsel %vm2114_vm11, %v2115_v19, %v2113_v23  ;;  %v2135_v53 = vsub.s32 4, %v8783_v1 }
 0x3b2   : > { %v2475_v10 = vsel %vm2464_vm1, nan, %v2474_v28  ;;  %v2117_v51 = vclz %v2116_v0  ;;  %v2001_v57 = vand.u32 3, %v2000_v59  ;;  %vm8810_vm2 = vcmp.le.f32.partialorder %v11548_v31, 0.7853982 }
 0x3b3   : > { %v8788_v58 = vadd.f32 %v6144_v60, %v2475_v10  ;;  %v1978_v54 = vxor.u32 2147483648, %v1977_v48  ;;  %vm1999_vm7 = vweird.f32 %v11543_v39  ;;  %v2136_v60 = vsel %vm2013_vm12, %v2135_v53, %v8783_v1 }
 0x3b4   : > { %v5989_v30 = vadd.s32 4294967294, %v2117_v51  ;;  %vm2003_vm4 = vcmp.eq.s32.totalorder %v2001_v57, 0  ;;  %vm2006_vm8 = vcmp.eq.s32.totalorder %v2001_v57, 2  ;;  %vm2002_vm6 = vcmp.lt.s32.totalorder %v2001_v57, 2 }
 0x3b5   : > { %11542 = vst [vmem:[#allocation49_spill] sm:$0xff] %v8788_v58  ;;  %3195 = vmatpush.msrb.mxu1 %v8788_v58  ;;  %v1979_v17 = vsel %vm1858_vm9, %v1978_v54, %v1977_v48  ;;  %v6145_v54 = vld [vmem:[%s6406_s15] sm:$0xff]  ;;  %vm2154_vm11 = vweird.f32 %v11547_v43 }
 0x3b6   : > { %v1982_v52 = vsel %vm8794_vm10, %v11543_v39, %v1979_v17  ;;  %vm5990_vm15 = vcmp.lt.s32.totalorder %v5989_v30, 0  ;;  %v3104_v17 = vld [vmem:[%s11100_s5] sm:$0xff]  ;;  %v2138_v39 = vsel %vm8810_vm2, 0, %v2136_v60 }
 0x3b7   : > { %v1984_v40 = vmul.f32 %v1982_v52, %v1982_v52  ;;  %v2120_v6 = vsel %vm5990_vm15, 0, %v5989_v30 }
 0x3b8   : > { %v2121_v25 = vsub.s32 32, %v2120_v6  ;;  %v2125_v20 = vsub.s32 4294967266, %v2120_v6  ;;  %v2122_v41 = vshll.u32 %v2113_v23, %v2120_v6  ;;  %v2155_v6 = vadd.s32 3, %v2138_v39 }
 0x3b9   : > { %v1985_v7 = vmul.f32 -0.001358992, %v1984_v40  ;;  %v1992_v34 = vmul.f32 -0.00019511016, %v1984_v40 }
 0x3ba   : > { %v2123_v49 = vshrl.u32 %v2105_v21, %v2121_v25  ;;  %v2126_v9 = vadd.s32 127, %v2125_v20  ;;  %v2156_v12 = vand.u32 3, %v2155_v6 }
 0x3bb   : > { %v1986_v15 = vadd.f32 0.041655596, %v1985_v7  ;;  %v1993_v11 = vadd.f32 0.008332121, %v1992_v34  ;;  %v3105_v34 = vld [vmem:[%s11100_s5 + $0x8] sm:$0xff] }
 0x3bc   : > { %v2124_v50 = vor.u32 %v2123_v49, %v2122_v41  ;;  %v2127_v55 = vshll.u32 %v2126_v9, 23  ;;  %vm2158_vm14 = vcmp.eq.s32.totalorder %v2156_v12, 0  ;;  %vm2161_vm5 = vcmp.eq.s32.totalorder %v2156_v12, 2 }
 0x3bd   : > { %v1987_v38 = vmul.f32 %v1986_v15, %v1984_v40  ;;  %v1994_v56 = vmul.f32 %v1993_v11, %v1984_v40  ;;  %vm2157_vm13 = vcmp.lt.s32.totalorder %v2156_v12, 2  ;;  %v11562_v12 = vmov 920167782  }
 0x3be   : > { %v2128_v8 = vor.u32 4788187, %v2127_v55  ;;  %v2131_v32 = vcvt.s32.f32 %v2124_v50 }
 0x3bf   : > { %v1988_v46 = vadd.f32 -0.4999988, %v1987_v38  ;;  %v1995_v2 = vadd.f32 -0.16666654, %v1994_v56  ;;  %v6146_v38 = vld [vmem:[%s6406_s15 + $0x8] sm:$0xff]  ;;  %s5861_s15 = scalar_lea.hbm %s11106_s11, %s6076_s27 }
 0x3c0   : > { %v2129_v36 = vand.u32 2147483647, %v2128_v8  ;;  %v3107_v8 = vld [vmem:[%s11100_s5 + $0x18] sm:$0xff]  ;;  %s5865_s28 = sshll.u32 %s5861_s15, 4  ;;  %s5866_s28 = int_to_ptr.hbm [resolvable:$true] %s5865_s28 }
 0x3c1   : > { %v1989_v4 = vmul.f32 %v1988_v46, %v1984_v40  ;;  %v1996_v27 = vmul.f32 %v1995_v2, %v1984_v40  ;;  %v8855_v46 = vpop.permute.xlu2 %3137  ;;  %s6191_s17 = sshra.s32 %s5866_s28, 4  ;;  %s6192_s17 = int_to_ptr.hbm [resolvable:$true] %s6191_s17 }
 0x3c2   : > { %v2132_v3 = vmul.f32 %v2131_v32, %v2129_v36  ;;  %s6193_s13 = scalar_lea.hbm %s6192_s17, 2  ;;  %p6198_p3 = scmp.lt.s32.totalorder %s6192_s17, %s11106_s11 }
 0x3c3   : > { %v1990_v44 = vadd.f32 1.0, %v1989_v4  ;;  %v1997_v18 = vadd.f32 1.0, %v1996_v27  ;;  %v3128_v4 = vpop.permute.xlu1 %3127  ;;  %p6194_p6 = scmp.ne.s32.totalorder %s6192_s17, %s6193_s13  ;;  %p6199_p4 = scmp.lt.s32.totalorder %s6197_s21, %s6193_s13 }
 0x3c4   : > { %v2133_v45 = vxor.u32 2147483648, %v2132_v3 }
 0x3c5   : > { %v1998_v47 = vmul.f32 %v1997_v18, %v1982_v52  ;;  %v2007_v37 = vxor.u32 2147483648, %v1990_v44  ;;  %p6195_p13 = pnand %p6194_p6, %p6368_p11  ;;  %p6200_p5 = por %p6199_p4, %p6198_p3 }
 0x3c6   : > { %v2134_v14 = vsel %vm2013_vm12, %v2133_v45, %v2132_v3 }
 0x3c7   : > { %v2004_v33 = vxor.u32 2147483648, %v1998_v47  ;;  %v2137_v19 = vsel %vm8810_vm2, %v11547_v43, %v2134_v14  ;;  %v2008_v28 = vsel %vm2006_vm8, %v2007_v37, %v1998_v47  ;;  %v3133_v43 = vpop.permute.xlu0 %3132  ;;  %p6196_p0 = pneg %p6195_p13 }
 0x3c8   : > { %v2139_v61 = vmul.f32 %v2137_v19, %v2137_v19 }
 0x3c9   : > { %v2005_v22 = vsel %vm2003_vm4, %v1990_v44, %v2004_v33  ;;  %v3123_v2 = vpop.permute.xlu2 %3122  ;;  %p6201_p7 = pnand %p6200_p5, %p6196_p0 }
 0x3ca   : > { %v2009_v48 = vsel %vm2002_vm6, %v2005_v22, %v2008_v28  ;;  %v2140_v0 = vmul.f32 -0.001358992, %v2139_v61  ;;  %v2147_v10 = vmul.f32 -0.00019511016, %v2139_v61 }
 0x3cb   : > { %v2010_v51 = vsel %vm1999_vm7, nan, %v2009_v48 }
 0x3cc   : > { %v8825_v30 = vadd.f32 %v6145_v54, %v2010_v51  ;;  %v2141_v26 = vadd.f32 0.041655596, %v2140_v0  ;;  %v2148_v24 = vadd.f32 0.008332121, %v2147_v10 }
 0x3ce   : > { %11551 = vst [vmem:[#allocation35_spill] sm:$0xff] %v8825_v30  ;;  %3167 = vmatpush.msrb.mxu0 %v8825_v30  ;;  %v2142_v16 = vmul.f32 %v2141_v26, %v2139_v61  ;;  %v2149_v52 = vmul.f32 %v2148_v24, %v2139_v61 }
 0x3cf   : > { %6009 = vmatmul.msk.f32.vlgmr.msrb.gmra.mxu0 %vm11281_vm0, %v3104_v17 }
 0x3d0   : > { %v2143_v40 = vadd.f32 -0.4999988, %v2142_v16  ;;  %v2150_v1 = vadd.f32 -0.16666654, %v2149_v52 }
 0x3d2   : > { %v2144_v21 = vmul.f32 %v2143_v40, %v2139_v61  ;;  %v2151_v25 = vmul.f32 %v2150_v1, %v2139_v61 }
 0x3d4   : > { %v2145_v20 = vadd.f32 1.0, %v2144_v21  ;;  %v2152_v7 = vadd.f32 1.0, %v2151_v25 }
 0x3d6   : > { %v2153_v41 = vmul.f32 %v2152_v7, %v2137_v19  ;;  %v2162_v49 = vxor.u32 2147483648, %v2145_v20 }
 0x3d7   : > { %6010 = vmatmul.msk.f32.gmra.mxu0 %vm11281_vm0, %v3105_v34 }
 0x3d8   : > { %v2159_v9 = vxor.u32 2147483648, %v2153_v41  ;;  %v2163_v11 = vsel %vm2161_vm5, %v2162_v49, %v2153_v41 }
 0x3da   : > { %v2160_v15 = vsel %vm2158_vm14, %v2145_v20, %v2159_v9 }
 0x3db   : > { %v2164_v50 = vsel %vm2157_vm13, %v2160_v15, %v2163_v11  ;;  %v11563_v11 = vmov 2102212464  }
 0x3dc   : > { %v2165_v55 = vsel %vm2154_vm11, nan, %v2164_v50 }
 0x3dd   : > { %v8843_v56 = vadd.f32 %v6146_v38, %v2165_v55  ;;  %v11564_v38 = vmov 1326507024  }
 0x3df   : > { %11552 = vst [vmem:[#allocation36_spill] sm:$0xff] %v8843_v56  ;;  %3196 = vmatpush.msrb.mxu1 %v8843_v56  ;;  %6011 = vmatmul.msk.f32.gmra.mxu0 %vm11281_vm0, %v3106_v62 }
 0x3e0   : > { %6013 = vmatmul.msk.f32.vlgmr.msrb.gmra.mxu1 %vm11281_vm0, %v3104_v17 }
 0x3e7   : > { %6012 = vmatmul.msk.f32.gmra.mxu0 %vm11281_vm0, %v3107_v8 }
 0x3e8   : > { %6014 = vmatmul.msk.f32.gmra.mxu1 %vm11281_vm0, %v3105_v34 }
 0x3f0   : > { %6015 = vmatmul.msk.f32.gmra.mxu1 %vm11281_vm0, %v3106_v62 }
 0x3f8   : > { %6016 = vmatmul.msk.f32.gmra.mxu1 %vm11281_vm0, %v3107_v8 }
 0x44c   : > { %v3169_v59 = vpop.f32.mrf.mxu0 }
 0x44d   : > { %v8857_v36 = vadd.f32 %v3169_v59, %v3123_v2 }
 0x44f   : > { %11553 = vst [vmem:[#allocation60_spill] sm:$0xff] %v8857_v36  ;;  %v3213_v32 = vand.u32 2139095040, %v8857_v36 }
 0x451   : > { %v3214_v3 = vshrl.u32 %v3213_v32, 23 }
 0x453   : > { %v6017_v57 = vadd.s32 4294967169, %v3214_v3 }
 0x454   : > { %v3172_v27 = vpop.f32.mrf.mxu0 }
 0x455   : > { %v8860_v44 = vadd.f32 %v3172_v27, %v3128_v4  ;;  %v3220_v31 = vadd.s32 1, %v6017_v57 }
 0x457   : > { %11554 = vst [vmem:[#allocation61_spill] sm:$0xff] %v8860_v44  ;;  %v3523_v18 = vand.u32 2139095040, %v8860_v44  ;;  %vm3221_vm3 = vcmp.gt.s32.totalorder %v3220_v31, 0 }
 0x458   : > { %v3222_v22 = vsel %vm3221_vm3, %v3220_v31, 0 }
 0x459   : > { %v3524_v45 = vshrl.u32 %v3523_v18, 23  ;;  %v8874_v60 = vand.u32 31, %v3222_v22  ;;  %v8897_v32 = vshrl.u32 %v3222_v22, 5 }
 0x45b   : > { %v6023_v47 = vadd.s32 4294967169, %v3524_v45  ;;  %11558 = vst [vmem:[#allocation56_spill] sm:$0xff] %v8874_v60  ;;  %v8881_v40 = vsub.s32 32, %v8874_v60  ;;  %v3236_v50 = vshll.u32 %v11563_v11, %v8874_v60  ;;  %vm3245_vm12 = vcmp.lt.s32.totalorder %v8897_v32, 4 }
 0x45c   : > { %v3175_v37 = vpop.f32.mrf.mxu0  ;;  %11565 = vst [vmem:[#allocation63_spill] sm:$0xff] %v8897_v32 }
 0x45d   : > { %v3198_v23 = vpop.f32.mrf.mxu1  ;;  %v8863_v14 = vadd.f32 %v3175_v37, %v3133_v43  ;;  %v3530_v53 = vadd.s32 1, %v6023_v47  ;;  %11560 = vst [vmem:[#allocation62_spill] sm:$0xff] %v8881_v40  ;;  %v3237_v41 = vshrl.u32 %v11562_v12, %v8881_v40  ;;  %v8903_v27 = vshrl.u32 %v11564_v38, %v8881_v40 }
 0x45e   : > { %v8866_v19 = vadd.f32 %v3198_v23, %v3123_v2  ;;  %v8911_v47 = vshll.u32 %v11562_v12, %v8874_v60 }
 0x45f   : > { %11555 = vst [vmem:[#allocation45_spill] sm:$0xff] %v8863_v14  ;;  %v3833_v33 = vand.u32 2139095040, %v8863_v14  ;;  %vm3531_vm1 = vcmp.gt.s32.totalorder %v3530_v53, 0 }
 0x460   : > { %11556 = vst [vmem:[#allocation53_spill] sm:$0xff] %v8866_v19  ;;  %v3368_v48 = vand.u32 2139095040, %v8866_v19  ;;  %v3532_v54 = vsel %vm3531_vm1, %v3530_v53, 0 }
 0x461   : > { %v3834_v61 = vshrl.u32 %v3833_v33, 23  ;;  %v8878_v52 = vand.u32 31, %v3532_v54  ;;  %11567 = vst [vmem:[#allocation50_spill] sm:$0xff] %v8903_v27  ;;  %v8913_v37 = vshrl.u32 %v3532_v54, 5 }
 0x462   : > { %v3369_v39 = vshrl.u32 %v3368_v48, 23  ;;  %11568 = vst [vmem:[#allocation16_spill] sm:$0xff] %v8911_v47 }
 0x463   : > { %v6029_v26 = vadd.s32 4294967169, %v3834_v61  ;;  %11559 = vst [vmem:[#allocation54_spill] sm:$0xff] %v8878_v52  ;;  %v8884_v7 = vsub.s32 32, %v8878_v52  ;;  %v3546_v3 = vshll.u32 %v11563_v11, %v8878_v52  ;;  %v3549_v18 = vshll.u32 %v11562_v12, %v8878_v52 }
 0x464   : > { %v3178_v28 = vpop.f32.mrf.mxu0  ;;  %v6020_v25 = vadd.s32 4294967169, %v3369_v39  ;;  %11569 = vst [vmem:[#allocation40_spill] sm:$0xff] %v8913_v37  ;;  %vm3555_vm4 = vcmp.lt.s32.totalorder %v8913_v37, 4 }
 0x465   : > { %v3201_v0 = vpop.f32.mrf.mxu1  ;;  %v8870_v10 = vadd.f32 %v3178_v28, %v8855_v46  ;;  %v3840_v1 = vadd.s32 1, %v6029_v26  ;;  %11561 = vst [vmem:[#allocation58_spill] sm:$0xff] %v8884_v7  ;;  %v3547_v62 = vshrl.u32 %v11562_v12, %v8884_v7  ;;  %v3550_v8 = vshrl.u32 %v11564_v38, %v8884_v7 }
 0x466   : > { %v8872_v51 = vadd.f32 %v3201_v0, %v3128_v4  ;;  %v3375_v55 = vadd.s32 1, %v6020_v25  ;;  %v8899_v4 = vor.u32 %v3237_v41, %v3236_v50 }
 0x467   : > { %v4143_v24 = vand.u32 2139095040, %v8870_v10  ;;  %vm3841_vm9 = vcmp.gt.s32.totalorder %v3840_v1, 0  ;;  %v8917_v33 = vor.u32 %v3547_v62, %v3546_v3  ;;  %v3551_v53 = vor.u32 %v3550_v8, %v3549_v18 }
 0x468   : > { %11557 = vst [vmem:[#allocation46_spill] sm:$0xff] %v8872_v51  ;;  %v3678_v17 = vand.u32 2139095040, %v8872_v51  ;;  %v3842_v2 = vsel %vm3841_vm9, %v3840_v1, 0  ;;  %vm3376_vm15 = vcmp.gt.s32.totalorder %v3375_v55, 0  ;;  %v8928_v48 = vsel %vm3245_vm12, %v8899_v4, 920167782 }
 0x469   : > { %v4144_v16 = vshrl.u32 %v4143_v24, 23  ;;  %11566 = vst [vmem:[#allocation65_spill] sm:$0xff] %v8899_v4  ;;  %v8915_v31 = vand.u32 31, %v3842_v2  ;;  %v8932_v26 = vsel %vm3376_vm15, %v3375_v55, 0  ;;  %v8946_v39 = vsel %vm3555_vm4, %v3551_v53, 1326507024 }
 0x46a   : > { %v3679_v21 = vshrl.u32 %v3678_v17, 23  ;;  %11570 = vst [vmem:[#allocation26_spill] sm:$0xff] %v8917_v33  ;;  %v11226_v17 = vand.u32 2147483647, %v8870_v10  ;;  %v11576_v18 = vmov 2475754826  }
 0x46b   : > { %v6035_v6 = vadd.s32 4294967169, %v4144_v16  ;;  %11571 = vst [vmem:[#allocation27_spill] sm:$0xff] %v8928_v48  ;;  %v8936_v24 = vsub.s32 32, %v8915_v31  ;;  %v3856_v25 = vshll.u32 %v11563_v11, %v8915_v31  ;;  %v3859_v50 = vshll.u32 %v11562_v12, %v8915_v31 }
 0x46c   : > { %v6026_v9 = vadd.s32 4294967169, %v3679_v21  ;;  %11572 = vst [vmem:[#allocation52_spill] sm:$0xff] %v8932_v26  ;;  %v8952_v21 = vshrl.u32 %v3842_v2, 5  ;;  %v4147_v62 = vand.u32 8388607, %v11226_v17 }
 0x46d   : > { %v3204_v20 = vpop.f32.mrf.mxu1  ;;  %v4150_v49 = vadd.s32 1, %v6035_v6  ;;  %11574 = vst [vmem:[#allocation48_spill] sm:$0xff] %v8946_v39 }
 0x46e   : > { %v8886_v34 = vadd.f32 %v3204_v20, %v3133_v43  ;;  %v3685_v57 = vadd.s32 1, %v6026_v9  ;;  %vm3865_vm11 = vcmp.lt.s32.totalorder %v8952_v21, 4 }
 0x46f   : > { %vm4151_vm10 = vcmp.gt.s32.totalorder %v4150_v49, 0 }
 0x470   : > { %v3988_v15 = vand.u32 2139095040, %v8886_v34  ;;  %v4152_v43 = vsel %vm4151_vm10, %v4150_v49, 0  ;;  %vm3686_vm2 = vcmp.gt.s32.totalorder %v3685_v57, 0 }
 0x471   : > { %v4154_v61 = vand.u32 31, %v4152_v43  ;;  %v3687_v6 = vsel %vm3686_vm2, %v3685_v57, 0  ;;  %v8957_v41 = vshrl.u32 %v4152_v43, 5  ;;  %v3860_v43 = vshrl.u32 %v11564_v38, %v8936_v24 }
 0x472   : > { %v3989_v59 = vshrl.u32 %v3988_v15, 23  ;;  %v3857_v15 = vshrl.u32 %v11562_v12, %v8936_v24 }
 0x473   : > { %v8930_v54 = vsub.s32 32, %v4154_v61  ;;  %v4166_v49 = vshll.u32 %v11563_v11, %v4154_v61  ;;  %v4169_v9 = vshll.u32 %v11562_v12, %v4154_v61  ;;  %vm4175_vm6 = vcmp.lt.s32.totalorder %v8957_v41, 4 }
 0x474   : > { %v6032_v45 = vadd.s32 4294967169, %v3989_v59  ;;  %v11575_v59 = vmov 683565275   ;;  %v4160_v22 = vshll.u32 %v11576_v18, %v4154_v61  ;;  %v8983_v58 = vor.u32 %v3857_v15, %v3856_v25 }
 0x475   : > { %v3207_v23 = vpop.f32.mrf.mxu1  ;;  %v4167_v16 = vshrl.u32 %v11562_v12, %v8930_v54  ;;  %v4170_v1 = vshrl.u32 %v11564_v38, %v8930_v54  ;;  %v4157_v3 = vshll.u32 %v11575_v59, %v4154_v61  ;;  %v4158_v57 = vshrl.u32 %v11576_v18, %v8930_v54 }
 0x476   : > { %v8923_v28 = vadd.f32 %v3207_v23, %v8855_v46  ;;  %v3995_v0 = vadd.s32 1, %v6032_v45  ;;  %v8942_v46 = vsel %vm3555_vm4, %v8917_v33, 920167782  ;;  %v8970_v45 = vand.u32 31, %v3687_v6 }
 0x477   : > { %11573 = vst [vmem:[#allocation57_spill] sm:$0xff] %v8942_v46  ;;  %v4168_v8 = vor.u32 %v4167_v16, %v4166_v49  ;;  %v4171_v2 = vor.u32 %v4170_v1, %v4169_v9  ;;  %v11578_v16 = vmov 2131351028   ;;  %v4148_v9 = vor.u32 8388608, %v4147_v62 }
 0x478   : > { %v4298_v20 = vand.u32 2139095040, %v8923_v28  ;;  %vm3996_vm8 = vcmp.gt.s32.totalorder %v3995_v0, 0  ;;  %11577 = vst [vmem:[#allocation64_spill] sm:$0xff] %v8970_v45  ;;  %v4161_v1 = vshrl.u32 %v11578_v16, %v8930_v54  ;;  %v4163_v17 = vshll.u32 %v11578_v16, %v4154_v61 }
 0x479   : > { %v8974_v23 = vsel %vm3996_vm8, %v3995_v0, 0  ;;  %v4164_v56 = vshrl.u32 %v11563_v11, %v8930_v54  ;;  %v4181_v0 = vsel %vm4175_vm6, %v4168_v8, 920167782  ;;  %v3861_v30 = vor.u32 %v3860_v43, %v3859_v50 }
 0x47a   : > { %v4299_v55 = vshrl.u32 %v4298_v20, 23  ;;  %v4159_v20 = vor.u32 %v4158_v57, %v4157_v3  ;;  %v4162_v3 = vor.u32 %v4161_v1, %v4160_v22  ;;  %v8990_v57 = vsub.s32 32, %v8970_v45 }
 0x47b   : > { %vm4172_vm7 = vcmp.lt.s32.totalorder %v8957_v41, 1  ;;  %v8994_v61 = vand.u32 31, %v8974_v23  ;;  %vm4174_vm5 = vcmp.lt.s32.totalorder %v8957_v41, 3  ;;  %vm4173_vm13 = vcmp.lt.s32.totalorder %v8957_v41, 2 }
 0x47c   : > { %v6038_v53 = vadd.s32 4294967169, %v4299_v55  ;;  %v4185_v55 = vsel %vm4175_vm6, %v4171_v2, 1326507024  ;;  %11579 = vst [vmem:[#allocation59_spill] sm:$0xff] %v8990_v57  ;;  %v4180_v25 = vsel %vm4172_vm7, %v4159_v20, %v4162_v3  ;;  %v3702_v2 = vshrl.u32 %v11562_v12, %v8990_v57 }
 0x47d   : > { %v4186_v15 = vsel %vm4174_vm5, %v4168_v8, %v4185_v55  ;;  %v9018_v43 = vsel %vm3865_vm11, %v8983_v58, 920167782  ;;  %v3701_v1 = vshll.u32 %v11563_v11, %v8970_v45 }
 0x47e   : > { %v4305_v49 = vadd.s32 1, %v6038_v53  ;;  %v4165_v53 = vor.u32 %v4164_v56, %v4163_v17  ;;  %v9004_v56 = vshll.u32 %v4148_v9, 8  ;;  %v9006_v17 = vshrl.u32 %v3687_v6, 5 }
 0x47f   : > { %v9022_v6 = vsel %vm3865_vm11, %v3861_v30, 1326507024  ;;  %v9027_v9 = vsub.s32 32, %v8994_v61  ;;  %v9041_v13 = vor.u32 %v3702_v2, %v3701_v1 }
 0x480   : > { %vm4306_vm14 = vcmp.gt.s32.totalorder %v4305_v49, 0  ;;  %v4182_v22 = vsel %vm4174_vm5, %v4165_v53, %v4181_v0  ;;  %11580 = vst [vmem:[#allocation51_spill] sm:$0xff] %v9006_v17  ;;  %v4184_v62 = vsel %vm4172_vm7, %v4162_v3, %v4165_v53  ;;  %v4190_v35 = vshrl.u32 %v9004_v56, 16 }
 0x481   : > { %v4183_v50 = vsel %vm4173_vm13, %v4180_v25, %v4182_v22  ;;  %v4307_v8 = vsel %vm4306_vm14, %v4305_v49, 0  ;;  %v4187_v0 = vsel %vm4173_vm13, %v4184_v62, %v4186_v15  ;;  %v9033_v25 = vshll.u32 %v11562_v12, %v8970_v45  ;;  %11581 = vst [vmem:[#allocation39_spill] sm:$0xff] %v9041_v13 }
 0x482   : > { %v4213_v55 = vand.u32 65535, %v4183_v50  ;;  %v4189_v22 = vand.u32 65535, %v9004_v56  ;;  %v4191_v63 = vand.u32 65535, %v4187_v0  ;;  %v4192_v30 = vshrl.u32 %v4187_v0, 16 }
 0x483   : > { %v9036_v42 = vand.u32 31, %v4307_v8  ;;  %v4177_v49 = vsel %vm4175_vm6, %v4165_v53, 2102212464  ;;  %v4214_v29 = vshrl.u32 %v4183_v50, 16  ;;  %v9045_v15 = vshrl.u32 %v11564_v38, %v8990_v57 }
 0x484   : > { %v4156_v62 = vshrl.u32 %v11575_v59, %v8930_v54  ;;  %v4194_v19 = vmul.u32 %v4192_v30, %v4189_v22  ;;  %v4012_v0 = vshrl.u32 %v11562_v12, %v9027_v9  ;;  %v4195_v48 = vmul.u32 %v4191_v63, %v4190_v35 }
 0x485   : > { %v4216_v4 = vmul.u32 %v4214_v29, %v4189_v22  ;;  %v4217_v60 = vmul.u32 %v4213_v55, %v4190_v35  ;;  %v4178_v50 = vsel %vm4174_vm5, %v4162_v3, %v4177_v49  ;;  %v4193_v2 = vmul.u32 %v4191_v63, %v4189_v22 }
 0x486   : > { %v4176_v53 = vsel %vm4172_vm7, %v4156_v62, %v4159_v20  ;;  %v4197_v1 = vshll.u32 %v4194_v19, 16  ;;  %v9056_v40 = vsub.s32 32, %v9036_v42  ;;  %v4196_v36 = vmul.u32 %v4192_v30, %v4190_v35 }
 0x487   : > { %v4215_v54 = vmul.u32 %v4213_v55, %v4189_v22  ;;  %v4219_v32 = vshll.u32 %v4216_v4, 16  ;;  %v4199_v47 = vshll.u32 %v4195_v48, 16  ;;  %v4218_v57 = vmul.u32 %v4214_v29, %v4190_v35 }
 0x488   : > { %vm4201_vm3 = vc.u32 %v4193_v2, %v4197_v1  ;;  %v4203_v27 = vadd.s32 %v4197_v1, %v4193_v2  ;;  %v4221_v51 = vshll.u32 %v4217_v60, 16  ;;  %v11254_v3 = vand.u32 2147483647, %v8923_v28 }
 0x489   : > { %v4202_v45 = vsel %vm4201_vm3, 1, %v11317_v5  ;;  %vm4223_vm1 = vc.u32 %v4215_v54, %v4219_v32  ;;  %v4225_v20 = vadd.s32 %v4219_v32, %v4215_v54  ;;  %v4322_v30 = vshrl.u32 %v11562_v12, %v9056_v40 }
 0x48a   : > { %v4204_v62 = vadd.s32 %v4202_v45, %v4196_v36  ;;  %vm4205_vm9 = vc.u32 %v4203_v27, %v4199_v47  ;;  %v4224_v63 = vsel %vm4223_vm1, 1, %v11317_v5  ;;  %v4325_v29 = vshrl.u32 %v11564_v38, %v9056_v40 }
 0x48b   : > { %v4206_v55 = vsel %vm4205_vm9, 1, %v11317_v5  ;;  %v4226_v22 = vadd.s32 %v4224_v63, %v4218_v57  ;;  %vm4227_vm10 = vc.u32 %v4225_v20, %v4221_v51  ;;  %v4198_v35 = vshrl.u32 %v4194_v19, 16 }
 0x48c   : > { %v4208_v49 = vadd.s32 %v4206_v55, %v4204_v62  ;;  %v4228_v32 = vsel %vm4227_vm10, 1, %v11317_v5  ;;  %v4321_v36 = vshll.u32 %v11563_v11, %v9036_v42  ;;  %v4220_v27 = vshrl.u32 %v4216_v4, 16 }
 0x48d   : > { %v4230_v47 = vadd.s32 %v4228_v32, %v4226_v22  ;;  %v4302_v45 = vand.u32 8388607, %v11254_v3  ;;  %v4324_v2 = vshll.u32 %v11562_v12, %v9036_v42  ;;  %v4200_v57 = vshrl.u32 %v4195_v48, 16 }
 0x48e   : > { %v4209_v1 = vadd.s32 %v4208_v49, %v4198_v35  ;;  %v11255_v54 = vand.u32 2147483647, %v8863_v14  ;;  %v9074_v63 = vshrl.u32 %v4307_v8, 5  ;;  %v4179_v19 = vsel %vm4173_vm13, %v4176_v53, %v4178_v50 }
 0x48f   : > { %v4222_v62 = vshrl.u32 %v4217_v60, 16  ;;  %v4231_v55 = vadd.s32 %v4230_v47, %v4220_v27  ;;  %v4323_v46 = vor.u32 %v4322_v30, %v4321_v36  ;;  %v4326_v4 = vor.u32 %v4325_v29, %v4324_v2 }
 0x490   : > { %v4210_v22 = vadd.s32 %v4209_v1, %v4200_v57  ;;  %v4229_v32 = vadd.s32 %v4225_v20, %v4221_v51  ;;  %v9079_v3 = vshrl.u32 %v8974_v23, 5  ;;  %v4011_v48 = vshll.u32 %v11563_v11, %v8994_v61 }
 0x491   : > { %v4232_v35 = vadd.s32 %v4231_v55, %v4222_v62  ;;  %v4303_v49 = vor.u32 8388608, %v4302_v45  ;;  %v9085_v8 = vshll.u32 %v11562_v12, %v8994_v61  ;;  %v9089_v60 = vshrl.u32 %v11564_v38, %v9027_v9 }
 0x492   : > { %vm4235_vm15 = vc.u32 %v4210_v22, %v4229_v32  ;;  %v3837_v51 = vand.u32 8388607, %v11255_v54  ;;  %v9093_v41 = vor.u32 %v4012_v0, %v4011_v48  ;;  %vm4330_vm2 = vcmp.lt.s32.totalorder %v9074_v63, 4 }
 0x493   : > { %v4233_v23 = vmul.u32 %v9004_v56, %v4179_v19  ;;  %v4236_v53 = vadd.s32 1, %v4232_v35  ;;  %v4336_v50 = vsel %vm4330_vm2, %v4323_v46, 920167782  ;;  %v4340_v20 = vsel %vm4330_vm2, %v4326_v4, 1326507024 }
 0x494   : > { %v3847_v30 = vshll.u32 %v11575_v59, %v8915_v31  ;;  %v3848_v29 = vshrl.u32 %v11576_v18, %v8936_v24  ;;  %v9105_v0 = vshll.u32 %v4303_v49, 8  ;;  %v3850_v27 = vshll.u32 %v11576_v18, %v8915_v31 }
 0x495   : > { %v4237_v36 = vsel %vm4235_vm15, %v4236_v53, %v4232_v35  ;;  %v3851_v56 = vshrl.u32 %v11578_v16, %v8936_v24  ;;  %v4312_v45 = vshll.u32 %v11575_v59, %v9036_v42  ;;  %v4315_v2 = vshll.u32 %v11576_v18, %v9036_v42 }
 0x496   : > { %v4238_v47 = vadd.s32 %v4237_v36, %v4233_v23  ;;  %v3838_v57 = vor.u32 8388608, %v3837_v51  ;;  %v4313_v1 = vshrl.u32 %v11576_v18, %v9056_v40  ;;  %v4316_v19 = vshrl.u32 %v11578_v16, %v9056_v40 }
 0x497   : > { %v4318_v62 = vshll.u32 %v11578_v16, %v9036_v42  ;;  %v4319_v55 = vshrl.u32 %v11563_v11, %v9056_v40  ;;  %v9123_v4 = vadd.s32 %v4229_v32, %v4210_v22  ;;  %v9125_v35 = vor.u32 %v3848_v29, %v3847_v30 }
 0x498   : > { %v4239_v48 = vadd.s32 536870912, %v4238_v47  ;;  %v3853_v49 = vshll.u32 %v11578_v16, %v8915_v31  ;;  %v4314_v51 = vor.u32 %v4313_v1, %v4312_v45  ;;  %v9129_v23 = vor.u32 %v4316_v19, %v4315_v2 }
 0x499   : > { %v4320_v53 = vor.u32 %v4319_v55, %v4318_v62  ;;  %v3854_v36 = vshrl.u32 %v11563_v11, %v8936_v24  ;;  %vm4327_vm8 = vcmp.lt.s32.totalorder %v9074_v63, 1  ;;  %v4344_v42 = vand.u32 65535, %v9105_v0 }
 0x49a   : > { %v9133_v54 = vshrl.u32 %v4239_v48, 30  ;;  %v9137_v22 = vor.u32 %v3851_v56, %v3850_v27  ;;  %vm4329_vm6 = vcmp.lt.s32.totalorder %v9074_v63, 3  ;;  %v4335_v31 = vsel %vm4327_vm8, %v4314_v51, %v9129_v23 }
 0x49b   : > { %v4339_v32 = vsel %vm4327_vm8, %v9129_v23, %v4320_v53  ;;  %v4345_v30 = vshrl.u32 %v9105_v0, 16  ;;  %vm4328_vm7 = vcmp.lt.s32.totalorder %v9074_v63, 2  ;;  %v4337_v27 = vsel %vm4329_vm6, %v4320_v53, %v4336_v50 }
 0x49c   : > { %v4241_v29 = vshll.u32 %v9133_v54, 30  ;;  %vm3862_vm14 = vcmp.lt.s32.totalorder %v8952_v21, 1  ;;  %v4338_v56 = vsel %vm4328_vm7, %v4335_v31, %v4337_v27  ;;  %v4341_v45 = vsel %vm4329_vm6, %v4323_v46, %v4340_v20 }
 0x49d   : > { %v9156_v2 = vor.u32 %v3854_v36, %v3853_v49  ;;  %vm3864_vm5 = vcmp.lt.s32.totalorder %v8952_v21, 3  ;;  %v4342_v19 = vsel %vm4328_vm7, %v4339_v32, %v4341_v45  ;;  %v4368_v62 = vand.u32 65535, %v4338_v56 }
 0x49e   : > { %v9159_v1 = vsub.s32 %v4238_v47, %v4241_v29  ;;  %v9163_v55 = vshll.u32 %v3838_v57, 8  ;;  %v4311_v50 = vshrl.u32 %v11575_v59, %v9056_v40  ;;  %v4346_v48 = vand.u32 65535, %v4342_v19 }
 0x49f   : > { %v4347_v31 = vshrl.u32 %v4342_v19, 16  ;;  %v4369_v27 = vshrl.u32 %v4338_v56, 16  ;;  %vm4142_vm13 = vcmp.lt.s32.totalorder %v8870_v10, 0  ;;  %v3870_v20 = vsel %vm3862_vm14, %v9125_v35, %v9137_v22 }
 0x4a0   : > { %vm4243_vm3 = vcmp.lt.s32.totalorder %v9159_v1, 0  ;;  %v4244_v46 = vsub.s32 0, %v9159_v1  ;;  %v3876_v47 = vsel %vm3864_vm5, %v8983_v58, %v9022_v6  ;;  %v4350_v57 = vmul.u32 %v4346_v48, %v4345_v30 }
 0x4a1   : > { %v4349_v40 = vmul.u32 %v4347_v31, %v4344_v42  ;;  %v3872_v49 = vsel %vm3864_vm5, %v9156_v2, %v9018_v43  ;;  %v3874_v36 = vsel %vm3862_vm14, %v9137_v22, %v9156_v2  ;;  %v4331_v29 = vsel %vm4327_vm8, %v4311_v50, %v4314_v51 }
 0x4a2   : > { %v4245_v32 = vsel %vm4243_vm3, %v4244_v46, %v9159_v1  ;;  %v4371_v56 = vmul.u32 %v4369_v27, %v4344_v42  ;;  %v4372_v45 = vmul.u32 %v4368_v62, %v4345_v30  ;;  %v4332_v6 = vsel %vm4330_vm2, %v4320_v53, 2102212464 }
 0x4a3   : > { %v4246_v58 = vclz %v4245_v32  ;;  %v4348_v19 = vmul.u32 %v4346_v48, %v4344_v42  ;;  %v4352_v38 = vshll.u32 %v4349_v40, 16  ;;  %v4264_v43 = vsub.s32 4, %v9133_v54 }
 0x4a4   : > { %v4351_v12 = vmul.u32 %v4347_v31, %v4345_v30  ;;  %v4370_v26 = vmul.u32 %v4368_v62, %v4344_v42  ;;  %v4374_v13 = vshll.u32 %v4371_v56, 16  ;;  %vm3863_vm1 = vcmp.lt.s32.totalorder %v8952_v21, 2 }
 0x4a5   : > { %v6036_v33 = vadd.s32 4294967294, %v4246_v58  ;;  %v4354_v46 = vshll.u32 %v4350_v57, 16  ;;  %vm4356_vm9 = vc.u32 %v4348_v19, %v4352_v38  ;;  %v4358_v39 = vadd.s32 %v4352_v38, %v4348_v19 }
 0x4a6   : > { %v4357_v51 = vsel %vm4356_vm9, 1, %v11317_v5  ;;  %v4376_v50 = vshll.u32 %v4372_v45, 16  ;;  %vm4378_vm10 = vc.u32 %v4370_v26, %v4374_v13  ;;  %v4380_v32 = vadd.s32 %v4374_v13, %v4370_v26 }
 0x4a7   : > { %vm6037_vm15 = vcmp.lt.s32.totalorder %v6036_v33, 0  ;;  %v4359_v53 = vadd.s32 %v4357_v51, %v4351_v12  ;;  %vm4360_vm2 = vc.u32 %v4358_v39, %v4354_v46  ;;  %v4373_v48 = vmul.u32 %v4369_v27, %v4345_v30 }
 0x4a8   : > { %v4249_v37 = vsel %vm6037_vm15, 0, %v6036_v33  ;;  %v4361_v31 = vsel %vm4360_vm2, 1, %v11317_v5  ;;  %v4379_v42 = vsel %vm4378_vm10, 1, %v11317_v5  ;;  %vm4382_vm8 = vc.u32 %v4380_v32, %v4376_v50 }
 0x4a9   : > { %v11582_v62 = vand.u32 2147483647, %v8870_v10  ;;  %v4250_v38 = vsub.s32 32, %v4249_v37  ;;  %v4254_v19 = vsub.s32 4294967266, %v4249_v37  ;;  %v9205_v13 = vsel %vm4142_vm13, %v4264_v43, %v9133_v54 }
 0x4aa   : > { %v4333_v12 = vsel %vm4329_vm6, %v9129_v23, %v4332_v6  ;;  %v4353_v33 = vshrl.u32 %v4349_v40, 16  ;;  %v4363_v26 = vadd.s32 %v4361_v31, %v4359_v53  ;;  %v4381_v39 = vadd.s32 %v4379_v42, %v4373_v48 }
 0x4ab   : > { %vm9198_vm3 = vcmp.le.f32.partialorder %v11582_v62, 0.7853982  ;;  %v4383_v30 = vsel %vm4382_vm8, 1, %v11317_v5  ;;  %v4251_v27 = vshll.u32 %v9159_v1, %v4249_v37  ;;  %v4252_v46 = vshrl.u32 %v9123_v4, %v4250_v38 }
 0x4ac   : > { %v4255_v51 = vadd.s32 127, %v4254_v19  ;;  %v4355_v62 = vshrl.u32 %v4350_v57, 16  ;;  %v4364_v7 = vadd.s32 %v4363_v26, %v4353_v33  ;;  %v4375_v52 = vshrl.u32 %v4371_v56, 16 }
 0x4ad   : > { %v4377_v17 = vshrl.u32 %v4372_v45, 16  ;;  %v4385_v54 = vadd.s32 %v4383_v30, %v4381_v39  ;;  %v4253_v43 = vor.u32 %v4252_v46, %v4251_v27  ;;  %v9213_v14 = vadd.s32 %v4380_v32, %v4376_v50 }
 0x4ae   : > { %v4256_v44 = vshll.u32 %v4255_v51, 23  ;;  %v3877_v23 = vsel %vm3863_vm1, %v3874_v36, %v3876_v47  ;;  %v9217_v40 = vadd.s32 %v4364_v7, %v4355_v62  ;;  %v3873_v37 = vsel %vm3863_vm1, %v3870_v20, %v3872_v49 }
 0x4af   : > { %v4386_v6 = vadd.s32 %v4385_v54, %v4375_v52  ;;  %v3881_v4 = vand.u32 65535, %v3877_v23  ;;  %v3879_v57 = vand.u32 65535, %v9163_v55  ;;  %v3880_v56 = vshrl.u32 %v9163_v55, 16 }
 0x4b0   : > { %v4257_v1 = vor.u32 4788187, %v4256_v44  ;;  %v3882_v45 = vshrl.u32 %v3877_v23, 16  ;;  %v4016_v50 = vor.u32 %v9089_v60, %v9085_v8  ;;  %v4260_v32 = vcvt.s32.f32 %v4253_v43 }
 0x4b1   : > { %v4334_v47 = vsel %vm4328_vm7, %v4331_v29, %v4333_v12  ;;  %v4387_v7 = vadd.s32 %v4386_v6, %v4377_v17  ;;  %vm4390_vm6 = vc.u32 %v9217_v40, %v9213_v14  ;;  %v9229_v20 = vmul.u32 %v3881_v4, %v3880_v56 }
 0x4b2   : > { %v4258_v36 = vand.u32 2147483647, %v4257_v1  ;;  %v3884_v52 = vmul.u32 %v3882_v45, %v3879_v57  ;;  %v4267_v44 = vsel %vm9198_vm3, 0, %v9205_v13  ;;  %v3903_v53 = vand.u32 65535, %v3873_v37 }
 0x4b3   : > { %v4391_v49 = vadd.s32 1, %v4387_v7  ;;  %v3904_v48 = vshrl.u32 %v3873_v37, 16  ;;  %vm4020_vm9 = vcmp.lt.s32.totalorder %v9079_v3, 4  ;;  %v4388_v63 = vmul.u32 %v9105_v0, %v4334_v47 }
 0x4b4   : > { %v4261_v8 = vmul.f32 %v4260_v32, %v4258_v36  ;;  %v3883_v17 = vmul.u32 %v3881_v4, %v3879_v57  ;;  %v3887_v60 = vshll.u32 %v3884_v52, 16  ;;  %v3886_v31 = vmul.u32 %v3882_v45, %v3880_v56 }
 0x4b5   : > { %v4392_v29 = vsel %vm4390_vm6, %v4391_v49, %v4387_v7  ;;  %v3889_v42 = vshll.u32 %v9229_v20, 16  ;;  %v3906_v38 = vmul.u32 %v3904_v48, %v3879_v57  ;;  %v3905_v26 = vmul.u32 %v3903_v53, %v3879_v57 }
 0x4b6   : > { %v4262_v19 = vxor.u32 2147483648, %v4261_v8  ;;  %v4393_v12 = vadd.s32 %v4392_v29, %v4388_v63  ;;  %vm3891_vm7 = vc.u32 %v3883_v17, %v3887_v60  ;;  %v3893_v33 = vadd.s32 %v3887_v60, %v3883_v17 }
 0x4b7   : > { %v3892_v13 = vsel %vm3891_vm7, 1, %v11317_v5  ;;  %v9238_v39 = vmul.u32 %v3903_v53, %v3880_v56  ;;  %v3909_v30 = vshll.u32 %v3906_v38, 16  ;;  %v3867_v62 = vsel %vm3865_vm11, %v9156_v2, 2102212464 }
 0x4b8   : > { %v4263_v0 = vsel %vm4142_vm13, %v4262_v19, %v4261_v8  ;;  %v4394_v27 = vadd.s32 536870912, %v4393_v12  ;;  %v3894_v46 = vadd.s32 %v3892_v13, %v3886_v31  ;;  %vm3895_vm10 = vc.u32 %v3893_v33, %v3889_v42 }
 0x4b9   : > { %v9245_v51 = vsel %vm9198_vm3, %v8870_v10, %v4263_v0  ;;  %v3896_v54 = vsel %vm3895_vm10, 1, %v11317_v5  ;;  %vm3913_vm15 = vc.u32 %v3905_v26, %v3909_v30  ;;  %v4284_v23 = vadd.s32 3, %v4267_v44 }
 0x4ba   : > { %v4268_v43 = vmul.f32 %v9245_v51, %v9245_v51  ;;  %v9253_v6 = vshrl.u32 %v4394_v27, 30  ;;  %v3914_v37 = vsel %vm3913_vm15, 1, %v11317_v5  ;;  %v3898_v4 = vadd.s32 %v3896_v54, %v3894_v46 }
 0x4bb   : > { %v3908_v1 = vmul.u32 %v3904_v48, %v3880_v56  ;;  %v3911_v58 = vshll.u32 %v9238_v39, 16  ;;  %v3915_v57 = vadd.s32 %v3909_v30, %v3905_v26  ;;  %v3846_v47 = vshrl.u32 %v11575_v59, %v8936_v24 }
 0x4bc   : > { %v4269_v45 = vmul.f32 -0.001358992, %v4268_v43  ;;  %v4276_v32 = vmul.f32 -0.00019511016, %v4268_v43  ;;  %v4396_v2 = vshll.u32 %v9253_v6, 30  ;;  %v3888_v36 = vshrl.u32 %v3884_v52, 16 }
 0x4bd   : > { %v9262_v7 = vsel %vm4020_vm9, %v4016_v50, 1326507024  ;;  %v3916_v44 = vadd.s32 %v3914_v37, %v3908_v1  ;;  %vm3917_vm11 = vc.u32 %v3915_v57, %v3911_v58  ;;  %v3866_v48 = vsel %vm3862_vm14, %v3846_v47, %v9125_v35 }
 0x4be   : > { %v4270_v49 = vadd.f32 0.041655596, %v4269_v45  ;;  %v4277_v53 = vadd.f32 0.008332121, %v4276_v32  ;;  %v9264_v56 = vsub.s32 %v4393_v12, %v4396_v2  ;;  %v4285_v8 = vand.u32 3, %v4284_v23 }
 0x4bf   : > { %v3868_v24 = vsel %vm3864_vm5, %v9137_v22, %v3867_v62  ;;  %v3899_v63 = vadd.s32 %v3898_v4, %v3888_v36  ;;  %v3918_v50 = vsel %vm3917_vm11, 1, %v11317_v5  ;;  %vm4297_vm2 = vcmp.lt.s32.totalorder %v8923_v28, 0 }
 0x4c0   : > { %v4271_v17 = vmul.f32 %v4270_v49, %v4268_v43  ;;  %v4278_v52 = vmul.f32 %v4277_v53, %v4268_v43  ;;  %vm4398_vm13 = vcmp.lt.s32.totalorder %v9264_v56, 0  ;;  %v4399_v60 = vsub.s32 0, %v9264_v56 }
 0x4c1   : > { %v3890_v29 = vshrl.u32 %v9229_v20, 16  ;;  %v3910_v31 = vshrl.u32 %v3906_v38, 16  ;;  %v3920_v35 = vadd.s32 %v3918_v50, %v3916_v44  ;;  %v3869_v22 = vsel %vm3863_vm1, %v3866_v48, %v3868_v24 }
 0x4c2   : > { %v4272_v42 = vadd.f32 -0.4999988, %v4271_v17  ;;  %v4279_v19 = vadd.f32 -0.16666654, %v4278_v52  ;;  %v4400_v12 = vsel %vm4398_vm13, %v4399_v60, %v9264_v56  ;;  %vm4287_vm14 = vcmp.eq.s32.totalorder %v4285_v8, 0 }
 0x4c3   : > { %v4401_v33 = vclz %v4400_v12  ;;  %v9280_v13 = vadd.s32 %v3899_v63, %v3890_v29  ;;  %v3921_v26 = vadd.s32 %v3920_v35, %v3910_v31  ;;  %vm4286_vm5 = vcmp.lt.s32.totalorder %v4285_v8, 2 }
 0x4c4   : > { %v4273_v30 = vmul.f32 %v4272_v42, %v4268_v43  ;;  %v4280_v0 = vmul.f32 %v4279_v19, %v4268_v43  ;;  %vm4290_vm8 = vcmp.eq.s32.totalorder %v4285_v8, 2  ;;  %v3912_v20 = vshrl.u32 %v9238_v39, 16 }
 0x4c5   : > { %vm4283_vm3 = vweird.f32 %v8870_v10  ;;  %v6039_v38 = vadd.s32 4294967294, %v4401_v33  ;;  %v4419_v27 = vsub.s32 4, %v9253_v6  ;;  %v9285_v46 = vadd.s32 %v3915_v57, %v3911_v58 }
 0x4c6   : > { %v3985_v21 = vand.u32 2147483647, %v8886_v34  ;;  %v4274_v62 = vadd.f32 1.0, %v4273_v30  ;;  %v4281_v54 = vadd.f32 1.0, %v4280_v0  ;;  %v4389_v23 = vadd.s32 %v9213_v14, %v9217_v40 }
 0x4c7   : > { %v3922_v37 = vadd.s32 %v3921_v26, %v3912_v20  ;;  %v11585_v43 = vand.u32 2147483647, %v8923_v28  ;;  %vm6040_vm6 = vcmp.lt.s32.totalorder %v6039_v38, 0  ;;  %v3923_v39 = vmul.u32 %v9163_v55, %v3869_v22 }
 0x4c8   : > { %vm3925_vm7 = vc.u32 %v9280_v13, %v9285_v46  ;;  %v4006_v1 = vshrl.u32 %v11578_v16, %v9027_v9  ;;  %v4282_v58 = vmul.f32 %v4281_v54, %v9245_v51  ;;  %v4291_v57 = vxor.u32 2147483648, %v4274_v62 }
 0x4c9   : > { %vm9292_vm1 = vcmp.le.f32.partialorder %v11585_v43, 0.7853982  ;;  %v4404_v14 = vsel %vm6040_vm6, 0, %v6039_v38  ;;  %v3926_v40 = vadd.s32 1, %v3922_v37  ;;  %v4420_v2 = vsel %vm4297_vm2, %v4419_v27, %v9253_v6 }
 0x4ca   : > { %v4405_v45 = vsub.s32 32, %v4404_v14  ;;  %v4409_v32 = vsub.s32 4294967266, %v4404_v14  ;;  %v3992_v55 = vand.u32 8388607, %v3985_v21  ;;  %v4288_v47 = vxor.u32 2147483648, %v4282_v58 }
 0x4cb   : > { %v4406_v36 = vshll.u32 %v9264_v56, %v4404_v14  ;;  %v3927_v44 = vsel %vm3925_vm7, %v3926_v40, %v3922_v37  ;;  %v4005_v49 = vshll.u32 %v11576_v18, %v8994_v61  ;;  %v4292_v51 = vsel %vm4290_vm8, %v4291_v57, %v4282_v58  ;;  %v11588_v40 = vld [vmem:[#allocation45_spill] sm:$0xff] }
 0x4cc   : > { %v4407_v53 = vshrl.u32 %v4389_v23, %v4405_v45  ;;  %v4410_v48 = vadd.s32 127, %v4409_v32  ;;  %v3928_v24 = vadd.s32 %v3927_v44, %v3923_v39  ;;  %v4289_v63 = vsel %vm4287_vm14, %v4274_v62, %v4288_v47 }
 0x4cd   : > { %v9312_v50 = vor.u32 %v4006_v1, %v4005_v49  ;;  %v4008_v6 = vshll.u32 %v11578_v16, %v8994_v61  ;;  %v4009_v17 = vshrl.u32 %v11563_v11, %v9027_v9  ;;  %v4293_v56 = vsel %vm4286_vm5, %v4289_v63, %v4292_v51 }
 0x4ce   : > { %v4408_v52 = vor.u32 %v4407_v53, %v4406_v36  ;;  %v4411_v60 = vshll.u32 %v4410_v48, 23  ;;  %v3929_v29 = vadd.s32 536870912, %v3928_v24  ;;  %v4294_v31 = vsel %vm4283_vm3, nan, %v4293_v56 }
 0x4cf   : > { %v3993_v35 = vor.u32 8388608, %v3992_v55  ;;  %v4003_v42 = vshrl.u32 %v11576_v18, %v9027_v9  ;;  %v9323_v19 = vor.u32 %v4009_v17, %v4008_v6  ;;  %4494 = vmatpush.msrb.mxu2 %v4294_v31  ;;  %vm4017_vm10 = vcmp.lt.s32.totalorder %v9079_v3, 1 }
 0x4d0   : > { %v4412_v12 = vor.u32 4788187, %v4411_v60  ;;  %v9325_v22 = vshrl.u32 %v3929_v29, 30  ;;  %vm4019_vm15 = vcmp.lt.s32.totalorder %v9079_v3, 3  ;;  %v4422_v8 = vsel %vm9292_vm1, 0, %v4420_v2 }
 0x4d1   : > { %v4002_v10 = vshll.u32 %v11575_v59, %v8994_v61  ;;  %v4029_v33 = vsel %vm4017_vm10, %v9312_v50, %v9323_v19  ;;  %v4031_v26 = vsel %vm4019_vm15, %v9093_v41, %v9262_v7  ;;  %v4415_v0 = vcvt.s32.f32 %v4408_v52 }
 0x4d2   : > { %v4413_v30 = vand.u32 2147483647, %v4412_v12  ;;  %v3931_v20 = vshll.u32 %v9325_v22, 30  ;;  %vm4018_vm11 = vcmp.lt.s32.totalorder %v9079_v3, 2  ;;  %v4026_v61 = vsel %vm4020_vm9, %v9093_v41, 920167782 }
 0x4d3   : > { %v4004_v38 = vor.u32 %v4003_v42, %v4002_v10  ;;  %v4032_v27 = vsel %vm4018_vm11, %v4029_v33, %v4031_v26  ;;  %v9348_v62 = vshll.u32 %v3993_v35, 8  ;;  %v4439_v23 = vadd.s32 3, %v4422_v8 }
 0x4d4   : > { %v4416_v54 = vmul.f32 %v4415_v0, %v4413_v30  ;;  %v3932_v37 = vsub.s32 %v3928_v24, %v3931_v20  ;;  %v4036_v7 = vand.u32 65535, %v4032_v27  ;;  %v3706_v43 = vor.u32 %v9045_v15, %v9033_v25 }
 0x4d5   : > { %v4034_v39 = vand.u32 65535, %v9348_v62  ;;  %v9354_v1 = vshrl.u32 %v9348_v62, 16  ;;  %v4037_v58 = vshrl.u32 %v4032_v27, 16  ;;  %v3924_v57 = vadd.s32 %v9285_v46, %v9280_v13 }
 0x4d6   : > { %v4417_v41 = vxor.u32 2147483648, %v4416_v54  ;;  %vm3933_vm13 = vcmp.lt.s32.totalorder %v3932_v37, 0  ;;  %v3934_v14 = vsub.s32 0, %v3932_v37  ;;  %vm3832_vm14 = vcmp.lt.s32.totalorder %v11588_v40, 0 }
 0x4d7   : > { %v4025_v45 = vsel %vm4017_vm10, %v4004_v38, %v9312_v50  ;;  %v4027_v32 = vsel %vm4019_vm15, %v9323_v19, %v4026_v61  ;;  %v9365_v2 = vmul.u32 %v4037_v58, %v4034_v39  ;;  %v9368_v55 = vmul.u32 %v4036_v7, %v9354_v1 }
 0x4d8   : > { %v4418_v13 = vsel %vm4297_vm2, %v4417_v41, %v4416_v54  ;;  %v9372_v46 = vand.u32 3, %v4439_v23  ;;  %v3935_v47 = vsel %vm3933_vm13, %v3934_v14, %v3932_v37  ;;  %v4001_v36 = vshrl.u32 %v11575_v59, %v9027_v9 }
 0x4d9   : > { %v9379_v44 = vsel %vm9292_vm1, %v8923_v28, %v4418_v13  ;;  %v3936_v49 = vclz %v3935_v47  ;;  %v4038_v51 = vmul.u32 %v4036_v7, %v4034_v39  ;;  %v4042_v53 = vshll.u32 %v9365_v2, 16 }
 0x4da   : > { %v4423_v48 = vmul.f32 %v9379_v44, %v9379_v44  ;;  %v11589_v24 = vand.u32 2147483647, %v11588_v40  ;;  %v3954_v9 = vsub.s32 4, %v9325_v22  ;;  %v9393_v4 = vsel %vm4017_vm10, %v4001_v36, %v4004_v38 }
 0x4db   : > { %v4028_v6 = vsel %vm4018_vm11, %v4025_v45, %v4027_v32  ;;  %v6030_v17 = vadd.s32 4294967294, %v3936_v49  ;;  %v4041_v56 = vmul.u32 %v4037_v58, %v9354_v1  ;;  %v4044_v52 = vshll.u32 %v9368_v55, 16 }
 0x4dc   : > { %vm9386_vm2 = vcmp.le.f32.partialorder %v11589_v24, 0.7853982  ;;  %vm4046_vm5 = vc.u32 %v4038_v51, %v4042_v53  ;;  %v4424_v60 = vmul.f32 -0.001358992, %v4423_v48  ;;  %v4431_v29 = vmul.f32 -0.00019511016, %v4423_v48 }
 0x4dd   : > { %v4047_v31 = vsel %vm4046_vm5, 1, %v11317_v5  ;;  %v4048_v35 = vadd.s32 %v4042_v53, %v4038_v51  ;;  %vm6031_vm8 = vcmp.lt.s32.totalorder %v6030_v17, 0  ;;  %v4058_v12 = vand.u32 65535, %v4028_v6 }
 0x4de   : > { %v4049_v42 = vadd.s32 %v4047_v31, %v4041_v56  ;;  %v4059_v8 = vshrl.u32 %v4028_v6, 16  ;;  %v4425_v10 = vadd.f32 0.041655596, %v4424_v60  ;;  %v4432_v33 = vadd.f32 0.008332121, %v4431_v29 }
 0x4df   : > { %v3939_v26 = vsel %vm6031_vm8, 0, %v6030_v17  ;;  %vm4050_vm3 = vc.u32 %v4048_v35, %v4044_v52  ;;  %v4022_v20 = vsel %vm4020_vm9, %v9323_v19, 2102212464  ;;  %v3955_v54 = vsel %vm3832_vm14, %v3954_v9, %v9325_v22 }
 0x4e0   : > { %v3940_v30 = vsub.s32 32, %v3939_v26  ;;  %v3944_v0 = vsub.s32 4294967266, %v3939_v26  ;;  %v4051_v61 = vsel %vm4050_vm3, 1, %v11317_v5  ;;  %v4426_v38 = vmul.f32 %v4425_v10, %v4423_v48 }
 0x4e1   : > { %v4433_v27 = vmul.f32 %v4432_v33, %v4423_v48  ;;  %v4061_v23 = vmul.u32 %v4059_v8, %v4034_v39  ;;  %v3941_v7 = vshll.u32 %v3932_v37, %v3939_v26  ;;  %v4062_v14 = vmul.u32 %v4058_v12, %v9354_v1 }
 0x4e2   : > { %v3942_v58 = vshrl.u32 %v3924_v57, %v3940_v30  ;;  %v3945_v41 = vadd.s32 127, %v3944_v0  ;;  %v4427_v45 = vadd.f32 -0.4999988, %v4426_v38  ;;  %v4053_v13 = vadd.s32 %v4051_v61, %v4049_v42  ;;  %v11592_v0 = vld [vmem:[#allocation61_spill] sm:$0xff] }
 0x4e3   : > { %v4434_v32 = vadd.f32 -0.16666654, %v4433_v27  ;;  %v4064_v47 = vshll.u32 %v4061_v23, 16  ;;  %vm4442_vm9 = vcmp.eq.s32.totalorder %v9372_v46, 0  ;;  %v3957_v49 = vsel %vm9386_vm2, 0, %v3955_v54  ;;  %v11593_v27 = vld [vmem:[#allocation51_spill] sm:$0xff] }
 0x4e4   : > { %v3943_v19 = vor.u32 %v3942_v58, %v3941_v7  ;;  %v3946_v36 = vshll.u32 %v3945_v41, 23  ;;  %v4060_v51 = vmul.u32 %v4058_v12, %v4034_v39  ;;  %v4428_v53 = vmul.f32 %v4427_v45, %v4423_v48 }
 0x4e5   : > { %v4435_v22 = vmul.f32 %v4434_v32, %v4423_v48  ;;  %vm4441_vm1 = vcmp.lt.s32.totalorder %v9372_v46, 2  ;;  %v4043_v37 = vshrl.u32 %v9365_v2, 16  ;;  %v4063_v57 = vmul.u32 %v4059_v8, %v9354_v1 }
 0x4e6   : > { %vm4438_vm6 = vweird.f32 %v8923_v28  ;;  %v3947_v24 = vor.u32 4788187, %v3946_v36  ;;  %v4066_v9 = vshll.u32 %v4062_v14, 16  ;;  %vm4068_vm7 = vc.u32 %v4060_v51, %v4064_v47  ;;  %v11595_v28 = vld [vmem:[#allocation58_spill] sm:$0xff] }
 0x4e7   : > { %v4070_v6 = vadd.s32 %v4064_v47, %v4060_v51  ;;  %v4429_v17 = vadd.f32 1.0, %v4428_v53  ;;  %v4436_v56 = vadd.f32 1.0, %v4435_v22  ;;  %v4054_v52 = vadd.s32 %v4053_v13, %v4043_v37 }
 0x4e8   : > { %v4069_v60 = vsel %vm4068_vm7, 1, %v11317_v5  ;;  %v3948_v39 = vand.u32 2147483647, %v3947_v24  ;;  %v3950_v29 = vcvt.s32.f32 %v3943_v19  ;;  %v4045_v1 = vshrl.u32 %v9368_v55, 16 }
 0x4e9   : > { %v4071_v48 = vadd.s32 %v4069_v60, %v4063_v57  ;;  %vm4072_vm10 = vc.u32 %v4070_v6, %v4066_v9  ;;  %v4437_v31 = vmul.f32 %v4436_v56, %v9379_v44  ;;  %v4446_v2 = vxor.u32 2147483648, %v4429_v17  ;;  %v11598_v60 = vld [vmem:[#allocation26_spill] sm:$0xff] }
 0x4ea   : > { %v4073_v35 = vsel %vm4072_vm10, 1, %v11317_v5  ;;  %v3951_v42 = vmul.f32 %v3950_v29, %v3948_v39  ;;  %v4023_v12 = vsel %vm4019_vm15, %v9312_v50, %v4022_v20  ;;  %v4065_v8 = vshrl.u32 %v4061_v23, 16 }
 0x4eb   : > { %v4075_v10 = vadd.s32 %v4073_v35, %v4071_v48  ;;  %v4443_v33 = vxor.u32 2147483648, %v4437_v31  ;;  %v3974_v26 = vadd.s32 3, %v3957_v49  ;;  %v9422_v30 = vadd.s32 %v4054_v52, %v4045_v1  ;;  %v11597_v52 = vld [vmem:[#allocation48_spill] sm:$0xff]  ;;  %v11599_v1 = vld [vmem:[#allocation39_spill] sm:$0xff] }
 0x4ec   : > { %v3520_v61 = vand.u32 2147483647, %v11592_v0  ;;  %vm4445_vm13 = vcmp.eq.s32.totalorder %v9372_v46, 2  ;;  %v3952_v44 = vxor.u32 2147483648, %v3951_v42  ;;  %v4067_v38 = vshrl.u32 %v4062_v14, 16 }
 0x4ed   : > { %v4076_v55 = vadd.s32 %v4075_v10, %v4065_v8  ;;  %vm3710_vm5 = vcmp.lt.s32.totalorder %v11593_v27, 4  ;;  %v4444_v54 = vsel %vm4442_vm9, %v4429_v17, %v4443_v33  ;;  %v4447_v7 = vsel %vm4445_vm13, %v4446_v2, %v4437_v31  ;;  %v11596_v17 = vld [vmem:[#allocation40_spill] sm:$0xff] }
 0x4ee   : > { %v9429_v50 = vadd.s32 %v4070_v6, %v4066_v9  ;;  %v3527_v20 = vand.u32 8388607, %v3520_v61  ;;  %v4448_v23 = vsel %vm4441_vm1, %v4444_v54, %v4447_v7  ;;  %v3953_v58 = vsel %vm3832_vm14, %v3952_v44, %v3951_v42  ;;  %v11600_v44 = vld [vmem:[#allocation52_spill] sm:$0xff] }
 0x4ef   : > { %v4024_v41 = vsel %vm4018_vm11, %v9393_v4, %v4023_v12  ;;  %v4077_v14 = vadd.s32 %v4076_v55, %v4067_v38  ;;  %v4449_v45 = vsel %vm4438_vm6, nan, %v4448_v23  ;;  %v9445_v32 = vsel %vm9386_vm2, %v11588_v40, %v3953_v58  ;;  %v11594_v4 = vld [vmem:[#allocation54_spill] sm:$0xff] }
 0x4f0   : > { %v9447_v13 = vand.u32 3, %v3974_v26  ;;  %vm4080_vm15 = vc.u32 %v9422_v30, %v9429_v50  ;;  %4523 = vmatpush.msrb.mxu3 %v4449_v45  ;;  %v3958_v46 = vmul.f32 %v9445_v32, %v9445_v32  ;;  %v3540_v47 = vshll.u32 %v11576_v18, %v11594_v4 }
 0x4f1   : > { %v4081_v3 = vadd.s32 1, %v4077_v14  ;;  %v3541_v19 = vshrl.u32 %v11578_v16, %v11595_v28  ;;  %v4078_v63 = vmul.u32 %v9348_v62, %v4024_v41  ;;  %v3528_v36 = vor.u32 8388608, %v3527_v20 }
 0x4f2   : > { %v3543_v49 = vshll.u32 %v11578_v16, %v11594_v4  ;;  %v3544_v51 = vshrl.u32 %v11563_v11, %v11595_v28  ;;  %v3959_v53 = vmul.f32 -0.001358992, %v3958_v46  ;;  %v3966_v22 = vmul.f32 -0.00019511016, %v3958_v46 }
 0x4f3   : > { %v4082_v37 = vsel %vm4080_vm15, %v4081_v3, %v4077_v14  ;;  %v9462_v57 = vor.u32 %v3541_v19, %v3540_v47  ;;  %v3538_v9 = vshrl.u32 %v11576_v18, %v11595_v28  ;;  %vm3554_vm11 = vcmp.lt.s32.totalorder %v11596_v17, 3  ;;  %v11601_v3 = vld [vmem:[#allocation57_spill] sm:$0xff] }
 0x4f4   : > { %v4083_v24 = vadd.s32 %v4082_v37, %v4078_v63  ;;  %v3545_v6 = vor.u32 %v3544_v51, %v3543_v49  ;;  %v3960_v62 = vadd.f32 0.041655596, %v3959_v53  ;;  %v3967_v56 = vadd.f32 0.008332121, %v3966_v22 }
 0x4f5   : > { %vm3552_vm14 = vcmp.lt.s32.totalorder %v11596_v17, 1  ;;  %v3566_v39 = vsel %vm3554_vm11, %v11598_v60, %v11597_v52  ;;  %v3537_v48 = vshll.u32 %v11575_v59, %v11594_v4  ;;  %v9477_v2 = vshll.u32 %v3528_v36, 8 }
 0x4f6   : > { %v4084_v29 = vadd.s32 536870912, %v4083_v24  ;;  %v3564_v31 = vsel %vm3552_vm14, %v9462_v57, %v3545_v6  ;;  %v9482_v35 = vsel %vm3710_vm5, %v11599_v1, 920167782  ;;  %v3961_v42 = vmul.f32 %v3960_v62, %v3958_v46 }
 0x4f7   : > { %v3968_v12 = vmul.f32 %v3967_v56, %v3958_v46  ;;  %vm3553_vm2 = vcmp.lt.s32.totalorder %v11596_v17, 2  ;;  %v9490_v8 = vsel %vm3710_vm5, %v3706_v43, 1326507024  ;;  %v3539_v33 = vor.u32 %v3538_v9, %v3537_v48 }
 0x4f8   : > { %v4085_v10 = vshrl.u32 %v4084_v29, 30  ;;  %v3567_v26 = vsel %vm3553_vm2, %v3564_v31, %v3566_v39  ;;  %v9495_v38 = vand.u32 31, %v11600_v44  ;;  %v3962_v55 = vadd.f32 -0.4999988, %v3961_v42 }
 0x4f9   : > { %v3969_v54 = vadd.f32 -0.16666654, %v3968_v12  ;;  %v3571_v7 = vand.u32 65535, %v3567_v26  ;;  %vm3977_vm8 = vcmp.eq.s32.totalorder %v9447_v13, 0  ;;  %vm3980_vm3 = vcmp.eq.s32.totalorder %v9447_v13, 2 }
 0x4fa   : > { %v4086_v25 = vshll.u32 %v4085_v10, 30  ;;  %v3569_v15 = vand.u32 65535, %v9477_v2  ;;  %v3572_v43 = vshrl.u32 %v3567_v26, 16  ;;  %v3963_v20 = vmul.f32 %v3962_v55, %v3958_v46 }
 0x4fb   : > { %v3970_v23 = vmul.f32 %v3969_v54, %v3958_v46  ;;  %vm3976_vm9 = vcmp.lt.s32.totalorder %v9447_v13, 2  ;;  %vm3987_vm1 = vcmp.lt.s32.totalorder %v8886_v34, 0  ;;  %v3536_v58 = vshrl.u32 %v11575_v59, %v11595_v28 }
 0x4fc   : > { %v3570_v41 = vshrl.u32 %v9477_v2, 16  ;;  %vm3973_vm6 = vweird.f32 %v11588_v40  ;;  %v4087_v14 = vsub.s32 %v4083_v24, %v4086_v25  ;;  %v3560_v45 = vsel %vm3552_vm14, %v3539_v33, %v9462_v57 }
 0x4fd   : > { %v3562_v46 = vsel %vm3554_vm11, %v3545_v6, %v11601_v3  ;;  %v3574_v4 = vmul.u32 %v3572_v43, %v3569_v15  ;;  %v3964_v47 = vadd.f32 1.0, %v3963_v20  ;;  %v3971_v19 = vadd.f32 1.0, %v3970_v23 }
 0x4fe   : > { %v3557_v63 = vsel %vm3555_vm4, %v3545_v6, 2102212464  ;;  %v9514_v28 = vmul.u32 %v3571_v7, %v3570_v41  ;;  %vm4088_vm7 = vcmp.lt.s32.totalorder %v4087_v14, 0  ;;  %v4089_v36 = vsub.s32 0, %v4087_v14 }
 0x4ff   : > { %v3573_v49 = vmul.u32 %v3571_v7, %v3569_v15  ;;  %v3577_v51 = vshll.u32 %v3574_v4, 16  ;;  %v3972_v53 = vmul.f32 %v3971_v19, %v9445_v32  ;;  %v3981_v22 = vxor.u32 2147483648, %v3964_v47 }
 0x500   : > { %v4109_v37 = vsub.s32 4, %v4085_v10  ;;  %v3563_v24 = vsel %vm3553_vm2, %v3560_v45, %v3562_v46  ;;  %v4090_v9 = vsel %vm4088_vm7, %v4089_v36, %v4087_v14  ;;  %v3576_v62 = vmul.u32 %v3572_v43, %v3570_v41 }
 0x501   : > { %vm3581_vm10 = vc.u32 %v3573_v49, %v3577_v51  ;;  %v3583_v56 = vadd.s32 %v3577_v51, %v3573_v49  ;;  %v3978_v52 = vxor.u32 2147483648, %v3972_v53  ;;  %v4091_v60 = vclz %v4090_v9 }
 0x502   : > { %v3579_v6 = vshll.u32 %v9514_v28, 16  ;;  %v3582_v39 = vsel %vm3581_vm10, 1, %v11317_v5  ;;  %v3982_v29 = vsel %vm3980_vm3, %v3981_v22, %v3972_v53  ;;  %v3556_v32 = vsel %vm3552_vm14, %v3536_v58, %v3539_v33 }
 0x503   : > { %v3584_v48 = vadd.s32 %v3582_v39, %v3576_v62  ;;  %v3593_v31 = vand.u32 65535, %v3563_v24  ;;  %v3979_v42 = vsel %vm3977_vm8, %v3964_v47, %v3978_v52  ;;  %v6033_v12 = vadd.s32 4294967294, %v4091_v60 }
 0x504   : > { %vm3585_vm4 = vc.u32 %v3583_v56, %v3579_v6  ;;  %v3594_v26 = vshrl.u32 %v3563_v24, 16  ;;  %v3983_v55 = vsel %vm3976_vm9, %v3979_v42, %v3982_v29  ;;  %v9531_v54 = vsel %vm3987_vm1, %v4109_v37, %v4085_v10  ;;  %v11605_v29 = vld [vmem:[#allocation64_spill] sm:$0xff] }
 0x505   : > { %v3558_v7 = vsel %vm3554_vm11, %v9462_v57, %v3557_v63  ;;  %v3586_v33 = vsel %vm3585_vm4, 1, %v11317_v5  ;;  %v3984_v25 = vsel %vm3973_vm6, nan, %v3983_v55  ;;  %vm6034_vm13 = vcmp.lt.s32.totalorder %v6033_v12, 0 }
 0x506   : > { %v3588_v43 = vadd.s32 %v3586_v33, %v3584_v48  ;;  %v3596_v20 = vmul.u32 %v3594_v26, %v3569_v15  ;;  %4495 = vmatpush.msrb.mxu2 %v3984_v25  ;;  %vm9541_vm15 = vcmp.le.f32.partialorder %v3985_v21, 0.7853982  ;;  %v4079_v10 = vadd.s32 %v9429_v50, %v9422_v30  ;;  %v11604_v30 = vld [vmem:[#allocation46_spill] sm:$0xff]  ;;  %v11606_v48 = vld [vmem:[#allocation59_spill] sm:$0xff] }
 0x507   : > { %v4094_v23 = vsel %vm6034_vm13, 0, %v6033_v12  ;;  %v3597_v57 = vmul.u32 %v3593_v31, %v3570_v41  ;;  %v9549_v40 = vsel %vm3553_vm2, %v3556_v32, %v3558_v7  ;;  %v3578_v3 = vshrl.u32 %v3574_v4, 16 }
 0x508   : > { %v4095_v58 = vsub.s32 32, %v4094_v23  ;;  %v4099_v45 = vsub.s32 4294967266, %v4094_v23  ;;  %v4096_v46 = vshll.u32 %v4087_v14, %v4094_v23  ;;  %v4112_v21 = vsel %vm9541_vm15, 0, %v9531_v54 }
 0x509   : > { %v3595_v47 = vmul.u32 %v3593_v31, %v3569_v15  ;;  %v3599_v19 = vshll.u32 %v3596_v20, 16  ;;  %v3589_v49 = vadd.s32 %v3588_v43, %v3578_v3  ;;  %v3675_v50 = vand.u32 2147483647, %v11604_v30 }
 0x50a   : > { %v4097_v63 = vshrl.u32 %v4079_v10, %v4095_v58  ;;  %v4100_v36 = vadd.s32 127, %v4099_v45  ;;  %v3598_v51 = vmul.u32 %v3594_v26, %v3570_v41  ;;  %v3601_v53 = vshll.u32 %v3597_v57, 16 }
 0x50b   : > { %vm3603_vm11 = vc.u32 %v3595_v47, %v3599_v19  ;;  %v3605_v22 = vadd.s32 %v3599_v19, %v3595_v47  ;;  %v3580_v4 = vshrl.u32 %v9514_v28, 16  ;;  %v3602_v24 = vshrl.u32 %v3597_v57, 16 }
 0x50c   : > { %v4098_v17 = vor.u32 %v4097_v63, %v4096_v46  ;;  %v4101_v37 = vshll.u32 %v4100_v36, 23  ;;  %v3604_v14 = vsel %vm3603_vm11, 1, %v11317_v5  ;;  %v3682_v15 = vand.u32 8388607, %v3675_v50  ;;  %v11608_v36 = vld [vmem:[#allocation16_spill] sm:$0xff] }
 0x50d   : > { %v3606_v9 = vadd.s32 %v3604_v14, %v3598_v51  ;;  %vm3607_vm14 = vc.u32 %v3605_v22, %v3601_v53  ;;  %v9559_v56 = vadd.s32 %v3589_v49, %v3580_v4  ;;  %v3600_v52 = vshrl.u32 %v3596_v20, 16  ;;  %v11610_v51 = vld [vmem:[#allocation63_spill] sm:$0xff] }
 0x50e   : > { %v4102_v62 = vor.u32 4788187, %v4101_v37  ;;  %v3608_v41 = vsel %vm3607_vm14, 1, %v11317_v5  ;;  %v4105_v60 = vcvt.s32.f32 %v4098_v17  ;;  %v9562_v6 = vadd.s32 %v3605_v22, %v3601_v53 }
 0x50f   : > { %v3610_v39 = vadd.s32 %v3608_v41, %v3606_v9  ;;  %v3692_v28 = vshll.u32 %v11575_v59, %v11605_v29  ;;  %v3693_v31 = vshrl.u32 %v11576_v18, %v11606_v48  ;;  %v3695_v42 = vshll.u32 %v11576_v18, %v11605_v29 }
 0x510   : > { %v4103_v32 = vand.u32 2147483647, %v4102_v62  ;;  %v3696_v12 = vshrl.u32 %v11578_v16, %v11606_v48  ;;  %v3683_v55 = vor.u32 8388608, %v3682_v15  ;;  %v3698_v54 = vshll.u32 %v11578_v16, %v11605_v29 }
 0x511   : > { %v3611_v26 = vadd.s32 %v3610_v39, %v3600_v52  ;;  %v3699_v7 = vshrl.u32 %v11563_v11, %v11606_v48  ;;  %vm3615_vm2 = vc.u32 %v9559_v56, %v9562_v6  ;;  %v9578_v25 = vor.u32 %v3693_v31, %v3692_v28 }
 0x512   : > { %v4106_v33 = vmul.f32 %v4105_v60, %v4103_v32  ;;  %v9580_v43 = vor.u32 %v3696_v12, %v3695_v42  ;;  %vm3707_vm8 = vcmp.lt.s32.totalorder %v11593_v27, 1  ;;  %vm3709_vm3 = vcmp.lt.s32.totalorder %v11593_v27, 3 }
 0x513   : > { %v3612_v20 = vadd.s32 %v3611_v26, %v3602_v24  ;;  %v9582_v10 = vor.u32 %v3699_v7, %v3698_v54  ;;  %vm3708_vm9 = vcmp.lt.s32.totalorder %v11593_v27, 2  ;;  %v3721_v58 = vsel %vm3709_vm3, %v11599_v1, %v9490_v8  ;;  %v11607_v8 = vld [vmem:[#allocation50_spill] sm:$0xff] }
 0x514   : > { %v4107_v23 = vxor.u32 2147483648, %v4106_v33  ;;  %v3715_v57 = vsel %vm3707_vm8, %v9578_v25, %v9580_v43  ;;  %v9603_v47 = vshll.u32 %v3683_v55, 8  ;;  %v3613_v63 = vmul.u32 %v9477_v2, %v9549_v40 }
 0x515   : > { %v3616_v45 = vadd.s32 1, %v3612_v20  ;;  %v3717_v3 = vsel %vm3709_vm3, %v9582_v10, %v9482_v35  ;;  %v3719_v46 = vsel %vm3707_vm8, %v9580_v43, %v9582_v10  ;;  %v11609_v49 = vor.u32 %v11607_v8, %v11608_v36 }
 0x516   : > { %v4108_v19 = vsel %vm3987_vm1, %v4107_v23, %v4106_v33  ;;  %v9611_v1 = vsel %vm3708_vm9, %v3715_v57, %v3717_v3  ;;  %v3722_v35 = vsel %vm3708_vm9, %v3719_v46, %v3721_v58  ;;  %v9623_v22 = vsub.s32 32, %v9495_v38 }
 0x517   : > { %v9620_v53 = vsel %vm3245_vm12, %v11609_v49, 1326507024  ;;  %v4111_v2 = vsel %vm9541_vm15, %v8886_v34, %v4108_v19  ;;  %v3617_v40 = vsel %vm3615_vm2, %v3616_v45, %v3612_v20  ;;  %v4129_v37 = vadd.s32 3, %v4112_v21 }
 0x518   : > { %v4113_v17 = vmul.f32 %v4111_v2, %v4111_v2  ;;  %v3618_v4 = vadd.s32 %v3617_v40, %v3613_v63  ;;  %v3726_v14 = vand.u32 65535, %v3722_v35  ;;  %v3724_v24 = vand.u32 65535, %v9603_v47 }
 0x519   : > { %v3725_v9 = vshrl.u32 %v9603_v47, 16  ;;  %v3727_v15 = vshrl.u32 %v3722_v35, 16  ;;  %v3749_v62 = vshrl.u32 %v9611_v1, 16  ;;  %v9636_v13 = vshll.u32 %v11563_v11, %v9495_v38 }
 0x51a   : > { %v4114_v52 = vmul.f32 -0.001358992, %v4113_v17  ;;  %v4121_v41 = vmul.f32 -0.00019511016, %v4113_v17  ;;  %v3619_v60 = vadd.s32 536870912, %v3618_v4  ;;  %v9650_v26 = vand.u32 3, %v4129_v37 }
 0x51b   : > { %v11611_v39 = vmov 920167782   ;;  %v3729_v21 = vmul.u32 %v3727_v15, %v3724_v24  ;;  %v9642_v28 = vmul.u32 %v3726_v14, %v3725_v9  ;;  %v3728_v55 = vmul.u32 %v3726_v14, %v3724_v24 }
 0x51c   : > { %v9640_v29 = vshll.u32 %v11611_v39, %v9495_v38  ;;  %v9646_v32 = vshrl.u32 %v11611_v39, %v9623_v22  ;;  %v4115_v31 = vadd.f32 0.041655596, %v4114_v52  ;;  %v4122_v42 = vadd.f32 0.008332121, %v4121_v41 }
 0x51d   : > { %v9648_v12 = vshrl.u32 %v3619_v60, 30  ;;  %v3732_v54 = vshll.u32 %v3729_v21, 16  ;;  %v9652_v7 = vmul.u32 %v3749_v62, %v3724_v24  ;;  %v11612_v33 = vmov 1326507024  }
 0x51e   : > { %v9656_v20 = vshrl.u32 %v11612_v33, %v9623_v22  ;;  %v4116_v23 = vmul.f32 %v4115_v31, %v4113_v17  ;;  %v4123_v57 = vmul.f32 %v4122_v42, %v4113_v17  ;;  %v3734_v45 = vshll.u32 %v9642_v28, 16 }
 0x51f   : > { %v3621_v58 = vshll.u32 %v9648_v12, 30  ;;  %vm3736_vm1 = vc.u32 %v3728_v55, %v3732_v54  ;;  %v3738_v3 = vadd.s32 %v3732_v54, %v3728_v55  ;;  %v3748_v46 = vand.u32 65535, %v9611_v1 }
 0x520   : > { %v4117_v19 = vadd.f32 -0.4999988, %v4116_v23  ;;  %v4124_v63 = vadd.f32 -0.16666654, %v4123_v57  ;;  %v3691_v8 = vshrl.u32 %v11575_v59, %v11606_v48  ;;  %vm4132_vm6 = vcmp.eq.s32.totalorder %v9650_v26, 0 }
 0x521   : > { %v9661_v35 = vsub.s32 %v3618_v4, %v3621_v58  ;;  %vm4135_vm7 = vcmp.eq.s32.totalorder %v9650_v26, 2  ;;  %v3731_v36 = vmul.u32 %v3727_v15, %v3725_v9  ;;  %v3737_v49 = vsel %vm3736_vm1, 1, %v11317_v5 }
 0x522   : > { %vm3740_vm10 = vc.u32 %v3738_v3, %v3734_v45  ;;  %v3754_v40 = vshll.u32 %v9652_v7, 16  ;;  %v4118_v37 = vmul.f32 %v4117_v19, %v4113_v17  ;;  %v4125_v14 = vmul.f32 %v4124_v63, %v4113_v17 }
 0x523   : > { %vm4131_vm4 = vcmp.lt.s32.totalorder %v9650_v26, 2  ;;  %vm3623_vm13 = vcmp.lt.s32.totalorder %v9661_v35, 0  ;;  %v3624_v1 = vsub.s32 0, %v9661_v35  ;;  %vm4128_vm15 = vweird.f32 %v8886_v34 }
 0x524   : > { %v3614_v48 = vadd.s32 %v9562_v6, %v9559_v56  ;;  %v3739_v4 = vadd.s32 %v3737_v49, %v3731_v36  ;;  %v3741_v15 = vsel %vm3740_vm10, 1, %v11317_v5  ;;  %v3752_v52 = vmul.u32 %v3748_v46, %v3725_v9 }
 0x525   : > { %v4119_v41 = vadd.f32 1.0, %v4118_v37  ;;  %v4126_v60 = vadd.f32 1.0, %v4125_v14  ;;  %v3625_v31 = vsel %vm3623_vm13, %v3624_v1, %v9661_v35  ;;  %v3750_v17 = vmul.u32 %v3748_v46, %v3724_v24 }
 0x526   : > { %vm3522_vm11 = vcmp.lt.s32.totalorder %v11592_v0, 0  ;;  %v3626_v42 = vclz %v3625_v31  ;;  %v3711_v55 = vsel %vm3707_vm8, %v3691_v8, %v9578_v25  ;;  %v3733_v54 = vshrl.u32 %v3729_v21, 16 }
 0x527   : > { %v3743_v23 = vadd.s32 %v3741_v15, %v3739_v4  ;;  %v4127_v57 = vmul.f32 %v4126_v60, %v4111_v2  ;;  %v4136_v56 = vxor.u32 2147483648, %v4119_v41  ;;  %vm3758_vm14 = vc.u32 %v3750_v17, %v3754_v40  ;;  %v11615_v60 = vld [vmem:[#allocation60_spill] sm:$0xff] }
 0x528   : > { %v3760_v6 = vadd.s32 %v3754_v40, %v3750_v17  ;;  %v6024_v58 = vadd.s32 4294967294, %v3626_v42  ;;  %v3712_v45 = vsel %vm3710_vm5, %v9582_v10, 2102212464  ;;  %v3753_v3 = vmul.u32 %v3749_v62, %v3725_v9 }
 0x529   : > { %v3756_v24 = vshll.u32 %v3752_v52, 16  ;;  %v4133_v46 = vxor.u32 2147483648, %v4127_v57  ;;  %v3735_v19 = vshrl.u32 %v9642_v28, 16  ;;  %v3744_v63 = vadd.s32 %v3743_v23, %v3733_v54 }
 0x52a   : > { %v3759_v36 = vsel %vm3758_vm14, 1, %v11317_v5  ;;  %vm6025_vm2 = vcmp.lt.s32.totalorder %v6024_v58, 0  ;;  %v3644_v25 = vsub.s32 4, %v9648_v12  ;;  %v4137_v8 = vsel %vm4135_vm7, %v4136_v56, %v4127_v57  ;;  %v11616_v57 = vld [vmem:[#allocation62_spill] sm:$0xff] }
 0x52b   : > { %v3761_v2 = vadd.s32 %v3759_v36, %v3753_v3  ;;  %vm3762_vm8 = vc.u32 %v3760_v6, %v3756_v24  ;;  %v4134_v21 = vsel %vm4132_vm6, %v4119_v41, %v4133_v46  ;;  %vm9693_vm5 = vcmp.le.f32.partialorder %v3520_v61, 0.7853982 }
 0x52c   : > { %v3629_v9 = vsel %vm6025_vm2, 0, %v6024_v58  ;;  %v3763_v62 = vsel %vm3762_vm8, 1, %v11317_v5  ;;  %v4138_v28 = vsel %vm4131_vm4, %v4134_v21, %v4137_v8  ;;  %v3713_v37 = vsel %vm3709_vm3, %v9580_v43, %v3712_v45  ;;  %v11617_v58 = vld [vmem:[#allocation56_spill] sm:$0xff] }
 0x52d   : > { %v3630_v49 = vsub.s32 32, %v3629_v9  ;;  %v3634_v40 = vsub.s32 4294967266, %v3629_v9  ;;  %v4139_v14 = vsel %vm4128_vm15, nan, %v4138_v28  ;;  %v9705_v1 = vadd.s32 %v3744_v63, %v3735_v19  ;;  %v11618_v28 = vld [vmem:[#allocation65_spill] sm:$0xff] }
 0x52e   : > { %v3755_v61 = vshrl.u32 %v9652_v7, 16  ;;  %v3765_v4 = vadd.s32 %v3763_v62, %v3761_v2  ;;  %4524 = vmatpush.msrb.mxu3 %v4139_v14  ;;  %v3631_v15 = vshll.u32 %v9661_v35, %v3629_v9  ;;  %v3210_v31 = vand.u32 2147483647, %v11615_v60 }
 0x52f   : > { %v3632_v41 = vshrl.u32 %v3614_v48, %v3630_v49  ;;  %v3635_v26 = vadd.s32 127, %v3634_v40  ;;  %v3645_v17 = vsel %vm3522_vm11, %v3644_v25, %v9648_v12  ;;  %v3714_v34 = vsel %vm3708_vm9, %v3711_v55, %v3713_v37 }
 0x530   : > { %v3757_v43 = vshrl.u32 %v3752_v52, 16  ;;  %v3766_v42 = vadd.s32 %v3765_v4, %v3755_v61  ;;  %v9715_v7 = vadd.s32 %v3760_v6, %v3756_v24  ;;  %v3217_v35 = vand.u32 8388607, %v3210_v31 }
 0x531   : > { %v3633_v54 = vor.u32 %v3632_v41, %v3631_v15  ;;  %v3636_v23 = vshll.u32 %v3635_v26, 23  ;;  %v3228_v56 = vshrl.u32 %v11576_v18, %v11616_v57  ;;  %v3230_v45 = vshll.u32 %v11576_v18, %v11617_v58 }
 0x532   : > { %v3767_v48 = vadd.s32 %v3766_v42, %v3757_v43  ;;  %v3231_v27 = vshrl.u32 %v11578_v16, %v11616_v57  ;;  %vm3770_vm3 = vc.u32 %v9705_v1, %v9715_v7  ;;  %v3218_v52 = vor.u32 8388608, %v3217_v35 }
 0x533   : > { %v3637_v12 = vor.u32 4788187, %v3636_v23  ;;  %v3227_v55 = vshll.u32 %v11575_v59, %v11617_v58  ;;  %v3233_v24 = vshll.u32 %v11578_v16, %v11617_v58  ;;  %v3234_v46 = vshrl.u32 %v11563_v11, %v11616_v57 }
 0x534   : > { %v3771_v6 = vadd.s32 1, %v3767_v48  ;;  %v9729_v3 = vor.u32 %v3231_v27, %v3230_v45  ;;  %v3640_v63 = vcvt.s32.f32 %v3633_v54  ;;  %v3647_v36 = vsel %vm9693_vm5, 0, %v3645_v17 }
 0x535   : > { %v3638_v19 = vand.u32 2147483647, %v3637_v12  ;;  %v3768_v25 = vmul.u32 %v9603_v47, %v3714_v34  ;;  %v9738_v21 = vor.u32 %v3228_v56, %v3227_v55  ;;  %v3235_v8 = vor.u32 %v3234_v46, %v3233_v24 }
 0x536   : > { %v3772_v2 = vsel %vm3770_vm3, %v3771_v6, %v3767_v48  ;;  %vm3244_vm9 = vcmp.lt.s32.totalorder %v11610_v51, 3  ;;  %vm3242_vm1 = vcmp.lt.s32.totalorder %v11610_v51, 1  ;;  %v9747_v40 = vshrl.u32 %v11600_v44, 5 }
 0x537   : > { %v3641_v9 = vmul.f32 %v3640_v63, %v3638_v19  ;;  %v3773_v62 = vadd.s32 %v3772_v2, %v3768_v25  ;;  %v3256_v49 = vsel %vm3244_vm9, %v11618_v28, %v9620_v53  ;;  %v9751_v47 = vor.u32 %v9646_v32, %v9636_v13  ;;  %v11619_v13 = vld [vmem:[#allocation27_spill] sm:$0xff] }
 0x538   : > { %v3254_v37 = vsel %vm3242_vm1, %v9729_v3, %v3235_v8  ;;  %v9756_v14 = vshll.u32 %v3218_v52, 8  ;;  %v3396_v61 = vor.u32 %v9656_v20, %v9640_v29  ;;  %vm3243_vm6 = vcmp.lt.s32.totalorder %v11610_v51, 2 }
 0x539   : > { %v3642_v4 = vxor.u32 2147483648, %v3641_v9  ;;  %v3774_v15 = vadd.s32 536870912, %v3773_v62  ;;  %v3664_v53 = vadd.s32 3, %v3647_v36  ;;  %v3250_v44 = vsel %vm3242_vm1, %v9738_v21, %v9729_v3 }
 0x53a   : > { %v3252_v32 = vsel %vm3244_vm9, %v3235_v8, %v11619_v13  ;;  %v3257_v41 = vsel %vm3243_vm6, %v3254_v37, %v3256_v49  ;;  %vm3400_vm7 = vcmp.lt.s32.totalorder %v9747_v40, 4  ;;  %v3259_v43 = vand.u32 65535, %v9756_v14 }
 0x53b   : > { %v3643_v29 = vsel %vm3522_vm11, %v3642_v4, %v3641_v9  ;;  %v9772_v20 = vshrl.u32 %v3774_v15, 30  ;;  %v3261_v26 = vand.u32 65535, %v3257_v41  ;;  %v3262_v17 = vshrl.u32 %v3257_v41, 16 }
 0x53c   : > { %v3646_v34 = vsel %vm9693_vm5, %v11592_v0, %v3643_v29  ;;  %v3260_v42 = vshrl.u32 %v9756_v14, 16  ;;  %v9783_v54 = vsel %vm3400_vm7, %v9751_v47, 920167782  ;;  %v3253_v48 = vsel %vm3243_vm6, %v3250_v44, %v3252_v32 }
 0x53d   : > { %v3648_v23 = vmul.f32 %v3646_v34, %v3646_v34  ;;  %v3776_v35 = vshll.u32 %v9772_v20, 30  ;;  %v9790_v56 = vsel %vm3400_vm7, %v3396_v61, 1326507024  ;;  %v9792_v10 = vand.u32 3, %v3664_v53 }
 0x53e   : > { %v3264_v58 = vmul.u32 %v3262_v17, %v3259_v43  ;;  %v9794_v45 = vmul.u32 %v3261_v26, %v3260_v42  ;;  %v3226_v55 = vshrl.u32 %v11575_v59, %v11616_v57  ;;  %v3263_v6 = vmul.u32 %v3261_v26, %v3259_v43 }
 0x53f   : > { %v3649_v27 = vmul.f32 -0.001358992, %v3648_v23  ;;  %v3656_v12 = vmul.f32 -0.00019511016, %v3648_v23  ;;  %v3777_v52 = vsub.s32 %v3773_v62, %v3776_v35  ;;  %v3283_v46 = vand.u32 65535, %v3253_v48 }
 0x540   : > { %v3267_v24 = vshll.u32 %v3264_v58, 16  ;;  %v3284_v19 = vshrl.u32 %v3253_v48, 16  ;;  %v3266_v2 = vmul.u32 %v3262_v17, %v3260_v42  ;;  %v3269_v9 = vshll.u32 %v9794_v45, 16 }
 0x541   : > { %v3650_v63 = vadd.f32 0.041655596, %v3649_v27  ;;  %v3657_v36 = vadd.f32 0.008332121, %v3656_v12  ;;  %vm3778_vm10 = vcmp.lt.s32.totalorder %v3777_v52, 0  ;;  %v3779_v25 = vsub.s32 0, %v3777_v52 }
 0x542   : > { %vm3271_vm4 = vc.u32 %v3263_v6, %v3267_v24  ;;  %v3273_v28 = vadd.s32 %v3267_v24, %v3263_v6  ;;  %v3247_v57 = vsel %vm3245_vm12, %v3235_v8, 2102212464  ;;  %v3286_v32 = vmul.u32 %v3284_v19, %v3259_v43 }
 0x543   : > { %v3651_v49 = vmul.f32 %v3650_v63, %v3648_v23  ;;  %v3658_v37 = vmul.f32 %v3657_v36, %v3648_v23  ;;  %v3780_v61 = vsel %vm3778_vm10, %v3779_v25, %v3777_v52  ;;  %v3272_v62 = vsel %vm3271_vm4, 1, %v11317_v5 }
 0x544   : > { %v3781_v4 = vclz %v3780_v61  ;;  %v3274_v15 = vadd.s32 %v3272_v62, %v3266_v2  ;;  %vm3275_vm13 = vc.u32 %v3273_v28, %v3269_v9  ;;  %vm3667_vm15 = vcmp.eq.s32.totalorder %v9792_v10, 0 }
 0x545   : > { %v3652_v53 = vadd.f32 -0.4999988, %v3651_v49  ;;  %v3659_v44 = vadd.f32 -0.16666654, %v3658_v37  ;;  %v3276_v13 = vsel %vm3275_vm13, 1, %v11317_v5  ;;  %vm3670_vm11 = vcmp.eq.s32.totalorder %v9792_v10, 2 }
 0x546   : > { %v3769_v41 = vadd.s32 %v9715_v7, %v9705_v1  ;;  %v6027_v29 = vadd.s32 4294967294, %v3781_v4  ;;  %v3246_v26 = vsel %vm3242_vm1, %v3226_v55, %v9738_v21  ;;  %vm3666_vm12 = vcmp.lt.s32.totalorder %v9792_v10, 2  ;;  %v11620_v4 = vld [vmem:[#allocation53_spill] sm:$0xff] }
 0x547   : > { %v3653_v8 = vmul.f32 %v3652_v53, %v3648_v23  ;;  %v3660_v17 = vmul.f32 %v3659_v44, %v3648_v23  ;;  %v3278_v35 = vadd.s32 %v3276_v13, %v3274_v15  ;;  %v3287_v48 = vmul.u32 %v3283_v46, %v3260_v42 }
 0x548   : > { %vm3663_vm14 = vweird.f32 %v11592_v0  ;;  %vm6028_vm2 = vcmp.lt.s32.totalorder %v6027_v29, 0  ;;  %v3248_v27 = vsel %vm3244_vm9, %v9729_v3, %v3247_v57  ;;  %v3268_v12 = vshrl.u32 %v3264_v58, 16 }
 0x549   : > { %v3289_v1 = vshll.u32 %v3286_v32, 16  ;;  %v3654_v7 = vadd.f32 1.0, %v3653_v8  ;;  %v3661_v6 = vadd.f32 1.0, %v3660_v17  ;;  %v3784_v24 = vsel %vm6028_vm2, 0, %v6027_v29 }
 0x54a   : > { %v3285_v63 = vmul.u32 %v3283_v46, %v3259_v43  ;;  %v3785_v21 = vsub.s32 32, %v3784_v24  ;;  %v3789_v55 = vsub.s32 4294967266, %v3784_v24  ;;  %v3279_v23 = vadd.s32 %v3278_v35, %v3268_v12 }
 0x54b   : > { %v3288_v36 = vmul.u32 %v3284_v19, %v3260_v42  ;;  %v3662_v25 = vmul.f32 %v3661_v6, %v3646_v34  ;;  %v3671_v2 = vxor.u32 2147483648, %v3654_v7  ;;  %v3786_v9 = vshll.u32 %v3777_v52, %v3784_v24 }
 0x54c   : > { %v3291_v28 = vshll.u32 %v3287_v48, 16  ;;  %v3787_v49 = vshrl.u32 %v3769_v41, %v3785_v21  ;;  %v3790_v37 = vadd.s32 127, %v3789_v55  ;;  %vm3293_vm8 = vc.u32 %v3285_v63, %v3289_v1 }
 0x54d   : > { %v3295_v61 = vadd.s32 %v3289_v1, %v3285_v63  ;;  %v3668_v62 = vxor.u32 2147483648, %v3662_v25  ;;  %v3270_v3 = vshrl.u32 %v9794_v45, 16  ;;  %v3294_v58 = vsel %vm3293_vm8, 1, %v11317_v5 }
 0x54e   : > { %v3365_v57 = vand.u32 2147483647, %v11620_v4  ;;  %v3788_v43 = vor.u32 %v3787_v49, %v3786_v9  ;;  %v3791_v46 = vshll.u32 %v3790_v37, 23  ;;  %v3296_v15 = vadd.s32 %v3294_v58, %v3288_v36 }
 0x54f   : > { %vm3297_vm5 = vc.u32 %v3295_v61, %v3291_v28  ;;  %v3669_v34 = vsel %vm3667_vm15, %v3654_v7, %v3668_v62  ;;  %v3672_v42 = vsel %vm3670_vm11, %v3671_v2, %v3662_v25  ;;  %v3290_v52 = vshrl.u32 %v3286_v32, 16 }
 0x550   : > { %v3298_v19 = vsel %vm3297_vm5, 1, %v11317_v5  ;;  %v3673_v45 = vsel %vm3666_vm12, %v3669_v34, %v3672_v42  ;;  %v3792_v53 = vor.u32 4788187, %v3791_v46  ;;  %v9825_v44 = vadd.s32 %v3279_v23, %v3270_v3 }
 0x551   : > { %v3300_v13 = vadd.s32 %v3298_v19, %v3296_v15  ;;  %v3674_v41 = vsel %vm3663_vm14, nan, %v3673_v45  ;;  %vm3677_vm3 = vcmp.lt.s32.totalorder %v11604_v30, 0  ;;  %v3292_v29 = vshrl.u32 %v3287_v48, 16 }
 0x552   : > { %v9830_v8 = vadd.s32 %v3295_v61, %v3291_v28  ;;  %4496 = vmatpush.msrb.mxu2 %v3674_v41  ;;  %v3793_v17 = vand.u32 2147483647, %v3792_v53  ;;  %v3795_v32 = vcvt.s32.f32 %v3788_v43  ;;  %v3372_v10 = vand.u32 8388607, %v3365_v57 }
 0x553   : > { %v3301_v35 = vadd.s32 %v3300_v13, %v3290_v52  ;;  %v3799_v12 = vsub.s32 4, %v9772_v20  ;;  %v3249_v1 = vsel %vm3243_vm6, %v3246_v26, %v3248_v27  ;;  %v3383_v0 = vshrl.u32 %v11576_v18, %v9623_v22 }
 0x554   : > { %v3386_v48 = vshrl.u32 %v11578_v16, %v9623_v22  ;;  %v3796_v7 = vmul.f32 %v3795_v32, %v3793_v17  ;;  %vm3305_vm9 = vc.u32 %v9825_v44, %v9830_v8  ;;  %v3385_v24 = vshll.u32 %v11576_v18, %v9495_v38 }
 0x555   : > { %v3302_v6 = vadd.s32 %v3301_v35, %v3292_v29  ;;  %v3373_v63 = vor.u32 8388608, %v3372_v10  ;;  %v3382_v21 = vshll.u32 %v11575_v59, %v9495_v38  ;;  %v3388_v51 = vshll.u32 %v11578_v16, %v9495_v38 }
 0x556   : > { %v3389_v26 = vshrl.u32 %v11563_v11, %v9623_v22  ;;  %v3797_v27 = vxor.u32 2147483648, %v3796_v7  ;;  %v3303_v55 = vmul.u32 %v9756_v14, %v3249_v1  ;;  %v9852_v36 = vor.u32 %v3386_v48, %v3385_v24 }
 0x557   : > { %v3306_v23 = vadd.s32 1, %v3302_v6  ;;  %v3800_v25 = vsel %vm3677_vm3, %v3799_v12, %v9772_v20  ;;  %v9857_v2 = vor.u32 %v3383_v0, %v3382_v21  ;;  %vm3399_vm1 = vcmp.lt.s32.totalorder %v9747_v40, 3 }
 0x558   : > { %v9859_v9 = vor.u32 %v3389_v26, %v3388_v51  ;;  %vm9864_vm6 = vcmp.le.f32.partialorder %v3675_v50, 0.7853982  ;;  %v3798_v14 = vsel %vm3677_vm3, %v3797_v27, %v3796_v7  ;;  %v3411_v20 = vsel %vm3399_vm1, %v9751_v47, %v9790_v56 }
 0x559   : > { %v3307_v28 = vsel %vm3305_vm9, %v3306_v23, %v3302_v6  ;;  %v3801_v49 = vsel %vm9864_vm6, %v11604_v30, %v3798_v14  ;;  %vm3397_vm10 = vcmp.lt.s32.totalorder %v9747_v40, 1  ;;  %v9881_v37 = vshll.u32 %v3373_v63, 8 }
 0x55a   : > { %v3308_v50 = vadd.s32 %v3307_v28, %v3303_v55  ;;  %v3802_v61 = vsel %vm9864_vm6, 0, %v3800_v25  ;;  %v3803_v62 = vmul.f32 %v3801_v49, %v3801_v49  ;;  %vm3398_vm4 = vcmp.lt.s32.totalorder %v9747_v40, 2 }
 0x55b   : > { %v3409_v47 = vsel %vm3397_vm10, %v9852_v36, %v9859_v9  ;;  %v3405_v3 = vsel %vm3397_vm10, %v9857_v2, %v9852_v36  ;;  %v3407_v58 = vsel %vm3399_vm1, %v9859_v9, %v9783_v54  ;;  %v3414_v52 = vand.u32 65535, %v9881_v37 }
 0x55c   : > { %v3309_v56 = vadd.s32 536870912, %v3308_v50  ;;  %v3412_v43 = vsel %vm3398_vm4, %v3409_v47, %v3411_v20  ;;  %v3804_v46 = vmul.f32 -0.001358992, %v3803_v62  ;;  %v3811_v15 = vmul.f32 -0.00019511016, %v3803_v62 }
 0x55d   : > { %v3416_v34 = vand.u32 65535, %v3412_v43  ;;  %v3415_v19 = vshrl.u32 %v9881_v37, 16  ;;  %v3417_v45 = vshrl.u32 %v3412_v43, 16  ;;  %v3819_v41 = vadd.s32 3, %v3802_v61 }
 0x55e   : > { %v9900_v42 = vshrl.u32 %v3309_v56, 30  ;;  %v3805_v53 = vadd.f32 0.041655596, %v3804_v46  ;;  %v3812_v13 = vadd.f32 0.008332121, %v3811_v15  ;;  %v3408_v29 = vsel %vm3398_vm4, %v3405_v3, %v3407_v58 }
 0x55f   : > { %v3419_v17 = vmul.u32 %v3417_v45, %v3414_v52  ;;  %v9907_v32 = vmul.u32 %v3416_v34, %v3415_v19  ;;  %v3418_v1 = vmul.u32 %v3416_v34, %v3414_v52  ;;  %v3439_v48 = vshrl.u32 %v3408_v29, 16 }
 0x560   : > { %v3311_v54 = vshll.u32 %v9900_v42, 30  ;;  %v3806_v35 = vmul.f32 %v3805_v53, %v3803_v62  ;;  %v3813_v10 = vmul.f32 %v3812_v13, %v3803_v62  ;;  %v3820_v24 = vand.u32 3, %v3819_v41 }
 0x561   : > { %v3422_v0 = vshll.u32 %v3419_v17, 16  ;;  %v3421_v63 = vmul.u32 %v3417_v45, %v3415_v19  ;;  %v3424_v51 = vshll.u32 %v9907_v32, 16  ;;  %vm3818_vm11 = vweird.f32 %v11604_v30 }
 0x562   : > { %v3312_v12 = vsub.s32 %v3308_v50, %v3311_v54  ;;  %v3807_v7 = vadd.f32 -0.4999988, %v3806_v35  ;;  %v3814_v6 = vadd.f32 -0.16666654, %v3813_v10  ;;  %v3438_v14 = vand.u32 65535, %v3408_v29 }
 0x563   : > { %vm3426_vm15 = vc.u32 %v3418_v1, %v3422_v0  ;;  %v3428_v23 = vadd.s32 %v3422_v0, %v3418_v1  ;;  %v3441_v28 = vmul.u32 %v3439_v48, %v3414_v52  ;;  %vm3821_vm14 = vcmp.lt.s32.totalorder %v3820_v24, 2 }
 0x564   : > { %vm3313_vm13 = vcmp.lt.s32.totalorder %v3312_v12, 0  ;;  %v3314_v21 = vsub.s32 0, %v3312_v12  ;;  %v3808_v26 = vmul.f32 %v3807_v7, %v3803_v62  ;;  %v3815_v27 = vmul.f32 %v3814_v6, %v3803_v62 }
 0x565   : > { %v3427_v55 = vsel %vm3426_vm15, 1, %v11317_v5  ;;  %vm3430_vm12 = vc.u32 %v3428_v23, %v3424_v51  ;;  %vm3822_vm2 = vcmp.eq.s32.totalorder %v3820_v24, 0  ;;  %vm3825_vm8 = vcmp.eq.s32.totalorder %v3820_v24, 2 }
 0x566   : > { %v3315_v25 = vsel %vm3313_vm13, %v3314_v21, %v3312_v12  ;;  %v3429_v38 = vadd.s32 %v3427_v55, %v3421_v63  ;;  %v3809_v20 = vadd.f32 1.0, %v3808_v26  ;;  %v3816_v50 = vadd.f32 1.0, %v3815_v27 }
 0x567   : > { %v3316_v61 = vclz %v3315_v25  ;;  %v3431_v47 = vsel %vm3430_vm12, 1, %v11317_v5  ;;  %v3423_v43 = vshrl.u32 %v3419_v17, 16  ;;  %v3440_v46 = vmul.u32 %v3438_v14, %v3414_v52 }
 0x568   : > { %v3817_v56 = vmul.f32 %v3816_v50, %v3801_v49  ;;  %v3826_v62 = vxor.u32 2147483648, %v3809_v20  ;;  %v3433_v58 = vadd.s32 %v3431_v47, %v3429_v38  ;;  %v3442_v15 = vmul.u32 %v3438_v14, %v3415_v19 }
 0x569   : > { %v6018_v3 = vadd.s32 4294967294, %v3316_v61  ;;  %v3444_v34 = vshll.u32 %v3441_v28, 16  ;;  %v3304_v53 = vadd.s32 %v9830_v8, %v9825_v44  ;;  %v3443_v13 = vmul.u32 %v3439_v48, %v3415_v19 }
 0x56a   : > { %v3823_v45 = vxor.u32 2147483648, %v3817_v56  ;;  %v3827_v41 = vsel %vm3825_vm8, %v3826_v62, %v3817_v56  ;;  %v3434_v54 = vadd.s32 %v3433_v58, %v3423_v43  ;;  %v3446_v1 = vshll.u32 %v3442_v15, 16 }
 0x56b   : > { %vm6019_vm5 = vcmp.lt.s32.totalorder %v6018_v3, 0  ;;  %vm3448_vm3 = vc.u32 %v3440_v46, %v3444_v34  ;;  %v3450_v7 = vadd.s32 %v3444_v34, %v3440_v46  ;;  %v3381_v6 = vshrl.u32 %v11575_v59, %v9623_v22 }
 0x56c   : > { %v3319_v29 = vsel %vm6019_vm5, 0, %v6018_v3  ;;  %v3824_v35 = vsel %vm3822_vm2, %v3809_v20, %v3823_v45  ;;  %v3449_v0 = vsel %vm3448_vm3, 1, %v11317_v5  ;;  %v3402_v63 = vsel %vm3400_vm7, %v9859_v9, 2102212464 }
 0x56d   : > { %v3320_v49 = vsub.s32 32, %v3319_v29  ;;  %v3324_v10 = vsub.s32 4294967266, %v3319_v29  ;;  %v3828_v17 = vsel %vm3821_vm14, %v3824_v35, %v3827_v41  ;;  %v3321_v52 = vshll.u32 %v3312_v12, %v3319_v29 }
 0x56e   : > { %v3829_v44 = vsel %vm3818_vm11, nan, %v3828_v17  ;;  %v3451_v48 = vadd.s32 %v3449_v0, %v3443_v13  ;;  %vm3452_vm9 = vc.u32 %v3450_v7, %v3446_v1  ;;  %v3425_v21 = vshrl.u32 %v9907_v32, 16 }
 0x56f   : > { %v3322_v8 = vshrl.u32 %v3304_v53, %v3320_v49  ;;  %v3325_v19 = vadd.s32 127, %v3324_v10  ;;  %4525 = vmatpush.msrb.mxu3 %v3829_v44  ;;  %v3453_v51 = vsel %vm3452_vm9, 1, %v11317_v5  ;;  %v3445_v30 = vshrl.u32 %v3441_v28, 16 }
 0x570   : > { %v3455_v26 = vadd.s32 %v3453_v51, %v3451_v48  ;;  %v3401_v55 = vsel %vm3397_vm10, %v3381_v6, %v9857_v2  ;;  %v3403_v22 = vsel %vm3399_vm1, %v9852_v36, %v3402_v63  ;;  %v3435_v23 = vadd.s32 %v3434_v54, %v3425_v21 }
 0x571   : > { %v3323_v24 = vor.u32 %v3322_v8, %v3321_v52  ;;  %v3326_v12 = vshll.u32 %v3325_v19, 23  ;;  %v3447_v9 = vshrl.u32 %v3442_v15, 16  ;;  %v3454_v20 = vadd.s32 %v3450_v7, %v3446_v1 }
 0x572   : > { %v3456_v25 = vadd.s32 %v3455_v26, %v3445_v30  ;;  %v3404_v32 = vsel %vm3398_vm4, %v3401_v55, %v3403_v22  ;;  %vm3212_vm6 = vcmp.lt.s32.totalorder %v11615_v60, 0  ;;  %v3334_v36 = vsub.s32 4, %v9900_v42 }
 0x573   : > { %v3327_v27 = vor.u32 4788187, %v3326_v12  ;;  %v3330_v14 = vcvt.s32.f32 %v3323_v24  ;;  %vm3460_vm7 = vc.u32 %v3435_v23, %v3454_v20  ;;  %v3458_v2 = vmul.u32 %v9881_v37, %v3404_v32 }
 0x574   : > { %v3457_v28 = vadd.s32 %v3456_v25, %v3447_v9  ;;  %vm9940_vm1 = vcmp.le.f32.partialorder %v3210_v31, 0.7853982  ;;  %v3335_v37 = vsel %vm3212_vm6, %v3334_v36, %v9900_v42  ;;  %v3459_v21 = vadd.s32 %v3454_v20, %v3435_v23 }
 0x575   : > { %v3328_v38 = vand.u32 2147483647, %v3327_v27  ;;  %v3337_v53 = vsel %vm9940_vm1, 0, %v3335_v37  ;;  %vm3353_vm11 = vweird.f32 %v11615_v60  ;;  %vm3367_vm14 = vcmp.lt.s32.totalorder %v11620_v4, 0 }
 0x576   : > { %v3461_v61 = vadd.s32 1, %v3457_v28  ;;  %v3354_v49 = vadd.s32 3, %v3337_v53  ;;  %vm9961_vm2 = vcmp.le.f32.partialorder %v3365_v57, 0.7853982  ;;  %vm3508_vm9 = vweird.f32 %v11620_v4 }
 0x577   : > { %v3331_v50 = vmul.f32 %v3330_v14, %v3328_v38 }
 0x578   : > { %v3462_v56 = vsel %vm3460_vm7, %v3461_v61, %v3457_v28  ;;  %v3355_v19 = vand.u32 3, %v3354_v49  ;;  %v3112_v28 = vld [vmem:[%s11102_s7] sm:$0xff]  ;;  %v3113_v61 = vld [vmem:[%s11102_s7 + $0x8] sm:$0xff] }
 0x579   : > { %v3332_v47 = vxor.u32 2147483648, %v3331_v50  ;;  %v3463_v3 = vadd.s32 %v3462_v56, %v3458_v2 }
 0x57a   : > { %vm3357_vm13 = vcmp.eq.s32.totalorder %v3355_v19, 0  ;;  %vm3360_vm15 = vcmp.eq.s32.totalorder %v3355_v19, 2  ;;  %vm3356_vm12 = vcmp.lt.s32.totalorder %v3355_v19, 2 }
 0x57b   : > { %v3333_v40 = vsel %vm3212_vm6, %v3332_v47, %v3331_v50  ;;  %v3464_v46 = vadd.s32 536870912, %v3463_v3 }
 0x57c   : > { %v3336_v58 = vsel %vm9940_vm1, %v11615_v60, %v3333_v40 }
 0x57d   : > { %v3338_v43 = vmul.f32 %v3336_v58, %v3336_v58  ;;  %v3465_v45 = vshrl.u32 %v3464_v46, 30  ;;  %v3114_v46 = vld [vmem:[%s11102_s7 + $0x10] sm:$0xff] }
 0x57f   : > { %v3339_v15 = vmul.f32 -0.001358992, %v3338_v43  ;;  %v3346_v34 = vmul.f32 -0.00019511016, %v3338_v43  ;;  %v3466_v41 = vshll.u32 %v3465_v45, 30  ;;  %v3489_v56 = vsub.s32 4, %v3465_v45 }
 0x581   : > { %v3340_v31 = vadd.f32 0.041655596, %v3339_v15  ;;  %v3347_v13 = vadd.f32 0.008332121, %v3346_v34  ;;  %v3467_v35 = vsub.s32 %v3463_v3, %v3466_v41 }
 0x583   : > { %v3341_v29 = vmul.f32 %v3340_v31, %v3338_v43  ;;  %v3348_v54 = vmul.f32 %v3347_v13, %v3338_v43  ;;  %vm3468_vm10 = vcmp.lt.s32.totalorder %v3467_v35, 0  ;;  %v3469_v17 = vsub.s32 0, %v3467_v35 }
 0x585   : > { %v3342_v10 = vadd.f32 -0.4999988, %v3341_v29  ;;  %v3349_v1 = vadd.f32 -0.16666654, %v3348_v54  ;;  %v3470_v42 = vsel %vm3468_vm10, %v3469_v17, %v3467_v35 }
 0x586   : > { %v3471_v7 = vclz %v3470_v42 }
 0x587   : > { %v3343_v52 = vmul.f32 %v3342_v10, %v3338_v43  ;;  %v3350_v0 = vmul.f32 %v3349_v1, %v3338_v43  ;;  %v3490_v43 = vsel %vm3367_vm14, %v3489_v56, %v3465_v45  ;;  %v3115_v45 = vld [vmem:[%s11102_s7 + $0x18] sm:$0xff] }
 0x588   : > { %v6021_v48 = vadd.s32 4294967294, %v3471_v7  ;;  %v3492_v15 = vsel %vm9961_vm2, 0, %v3490_v43 }
 0x589   : > { %v3344_v44 = vadd.f32 1.0, %v3343_v52  ;;  %v3351_v8 = vadd.f32 1.0, %v3350_v0  ;;  %v3509_v41 = vadd.s32 3, %v3492_v15 }
 0x58a   : > { %vm6022_vm4 = vcmp.lt.s32.totalorder %v6021_v48, 0 }
 0x58b   : > { %v3352_v6 = vmul.f32 %v3351_v8, %v3336_v58  ;;  %v3361_v63 = vxor.u32 2147483648, %v3344_v44  ;;  %v3474_v12 = vsel %vm6022_vm4, 0, %v6021_v48  ;;  %v3510_v10 = vand.u32 3, %v3509_v41  ;;  %v9984_v8 = vpop.permute.xlu0 %4467 }
 0x58c   : > { %v3475_v51 = vsub.s32 32, %v3474_v12  ;;  %v3479_v30 = vsub.s32 4294967266, %v3474_v12  ;;  %v3476_v22 = vshll.u32 %v3467_v35, %v3474_v12 }
 0x58d   : > { %v3358_v24 = vxor.u32 2147483648, %v3352_v6  ;;  %v3362_v27 = vsel %vm3360_vm15, %v3361_v63, %v3352_v6  ;;  %vm3512_vm8 = vcmp.eq.s32.totalorder %v3510_v10, 0  ;;  %vm3515_vm5 = vcmp.eq.s32.totalorder %v3510_v10, 2 }
 0x58e   : > { %v3477_v9 = vshrl.u32 %v3459_v21, %v3475_v51  ;;  %v3480_v25 = vadd.s32 127, %v3479_v30  ;;  %vm3511_vm3 = vcmp.lt.s32.totalorder %v3510_v10, 2 }
 0x58f   : > { %v3359_v26 = vsel %vm3357_vm13, %v3344_v44, %v3358_v24 }
 0x590   : > { %v3363_v55 = vsel %vm3356_vm12, %v3359_v26, %v3362_v27  ;;  %v3478_v14 = vor.u32 %v3477_v9, %v3476_v22  ;;  %v3481_v32 = vshll.u32 %v3480_v25, 23 }
 0x591   : > { %v3364_v38 = vsel %vm3353_vm11, nan, %v3363_v55 }
 0x592   : > { %4497 = vmatpush.msrb.mxu2 %v3364_v38  ;;  %v3482_v23 = vor.u32 4788187, %v3481_v32  ;;  %v3485_v60 = vcvt.s32.f32 %v3478_v14 }
 0x593   : > { %6041 = vmatmul.msk.f32.vlgmr.msrb.gmra.mxu2 %vm11281_vm0, %v3112_v28  ;;  %v9986_v19 = vpop.permute.xlu0 %4452 }
 0x594   : > { %v3483_v20 = vand.u32 2147483647, %v3482_v23 }
 0x596   : > { %v3486_v50 = vmul.f32 %v3485_v60, %v3483_v20 }
 0x598   : > { %v3487_v47 = vxor.u32 2147483648, %v3486_v50 }
 0x59a   : > { %v3488_v36 = vsel %vm3367_vm14, %v3487_v47, %v3486_v50 }
 0x59b   : > { %6042 = vmatmul.msk.f32.gmra.mxu2 %vm11281_vm0, %v3113_v61  ;;  %v3491_v62 = vsel %vm9961_vm2, %v11620_v4, %v3488_v36 }
 0x59c   : > { %v3493_v40 = vmul.f32 %v3491_v62, %v3491_v62 }
 0x59e   : > { %v3494_v3 = vmul.f32 -0.001358992, %v3493_v40  ;;  %v3501_v58 = vmul.f32 -0.00019511016, %v3493_v40 }
 0x5a0   : > { %v3495_v57 = vadd.f32 0.041655596, %v3494_v3  ;;  %v3502_v37 = vadd.f32 0.008332121, %v3501_v58 }
 0x5a2   : > { %v3496_v34 = vmul.f32 %v3495_v57, %v3493_v40  ;;  %v3503_v53 = vmul.f32 %v3502_v37, %v3493_v40 }
 0x5a3   : > { %6043 = vmatmul.msk.f32.gmra.mxu2 %vm11281_vm0, %v3114_v46 }
 0x5a4   : > { %v3497_v31 = vadd.f32 -0.4999988, %v3496_v34  ;;  %v3504_v13 = vadd.f32 -0.16666654, %v3503_v53 }
 0x5a6   : > { %v3498_v29 = vmul.f32 %v3497_v31, %v3493_v40  ;;  %v3505_v54 = vmul.f32 %v3504_v13, %v3493_v40 }
 0x5a8   : > { %v3499_v35 = vadd.f32 1.0, %v3498_v29  ;;  %v3506_v49 = vadd.f32 1.0, %v3505_v54 }
 0x5aa   : > { %v3507_v1 = vmul.f32 %v3506_v49, %v3491_v62  ;;  %v3516_v17 = vxor.u32 2147483648, %v3499_v35 }
 0x5ab   : > { %6044 = vmatmul.msk.f32.gmra.mxu2 %vm11281_vm0, %v3115_v45 }
 0x5ac   : > { %v3513_v52 = vxor.u32 2147483648, %v3507_v1  ;;  %v3517_v42 = vsel %vm3515_vm5, %v3516_v17, %v3507_v1 }
 0x5ae   : > { %v3514_v0 = vsel %vm3512_vm8, %v3499_v35, %v3513_v52 }
 0x5af   : > { %v3518_v7 = vsel %vm3511_vm3, %v3514_v0, %v3517_v42 }
 0x5b0   : > { %v3519_v44 = vsel %vm3508_vm9, nan, %v3518_v7 }
 0x5b1   : > { %4526 = vmatpush.msrb.mxu3 %v3519_v44 }
 0x5b2   : > { %6045 = vmatmul.msk.f32.vlgmr.msrb.gmra.mxu3 %vm11281_vm0, %v3112_v28 }
 0x5ba   : > { %6046 = vmatmul.msk.f32.gmra.mxu3 %vm11281_vm0, %v3113_v61 }
 0x5c2   : > { %6047 = vmatmul.msk.f32.gmra.mxu3 %vm11281_vm0, %v3114_v46 }
 0x5ca   : > { %6048 = vmatmul.msk.f32.gmra.mxu3 %vm11281_vm0, %v3115_v45 }
 0x616   : > { %v4499_v48 = vpop.f32.mrf.mxu2 }
 0x617   : > { %v9989_v6 = vadd.f32 %v4499_v48, %v9986_v19 }
 0x619   : > { %v4543_v4 = vand.u32 2139095040, %v9989_v6  ;;  %v4540_v12 = vand.u32 2147483647, %v9989_v6 }
 0x61b   : > { %v4544_v63 = vshrl.u32 %v4543_v4, 23  ;;  %v4547_v51 = vand.u32 8388607, %v4540_v12 }
 0x61d   : > { %v6049_v24 = vadd.s32 4294967169, %v4544_v63  ;;  %v4548_v55 = vor.u32 8388608, %v4547_v51 }
 0x61f   : > { %v4550_v21 = vadd.s32 1, %v6049_v24  ;;  %v10019_v62 = vshll.u32 %v4548_v55, 8 }
 0x621   : > { %vm4551_vm7 = vcmp.gt.s32.totalorder %v4550_v21, 0  ;;  %v4589_v34 = vand.u32 65535, %v10019_v62  ;;  %v4590_v53 = vshrl.u32 %v10019_v62, 16 }
 0x622   : > { %v4552_v30 = vsel %vm4551_vm7, %v4550_v21, 0 }
 0x623   : > { %v4554_v26 = vand.u32 31, %v4552_v30  ;;  %v9997_v22 = vshrl.u32 %v4552_v30, 5 }
 0x625   : > { %v9995_v27 = vsub.s32 32, %v4554_v26  ;;  %v4557_v9 = vshll.u32 %v11575_v59, %v4554_v26  ;;  %v4560_v25 = vshll.u32 %v11576_v18, %v4554_v26  ;;  %v4563_v32 = vshll.u32 %v11578_v16, %v4554_v26 }
 0x626   : > { %v4566_v23 = vshll.u32 %v11563_v11, %v4554_v26  ;;  %v4569_v60 = vshll.u32 %v11611_v39, %v4554_v26  ;;  %vm4572_vm6 = vcmp.lt.s32.totalorder %v9997_v22, 1  ;;  %vm4575_vm1 = vcmp.lt.s32.totalorder %v9997_v22, 4 }
 0x627   : > { %v4558_v38 = vshrl.u32 %v11576_v18, %v9995_v27  ;;  %v4561_v14 = vshrl.u32 %v11578_v16, %v9995_v27  ;;  %v4564_v28 = vshrl.u32 %v11563_v11, %v9995_v27  ;;  %v4567_v20 = vshrl.u32 %v11611_v39, %v9995_v27 }
 0x628   : > { %v4570_v50 = vshrl.u32 %v11612_v33, %v9995_v27  ;;  %vm4574_vm10 = vcmp.lt.s32.totalorder %v9997_v22, 3  ;;  %vm4573_vm4 = vcmp.lt.s32.totalorder %v9997_v22, 2 }
 0x629   : > { %v10014_v61 = vor.u32 %v4558_v38, %v4557_v9  ;;  %v10016_v47 = vor.u32 %v4561_v14, %v4560_v25  ;;  %v4565_v2 = vor.u32 %v4564_v28, %v4563_v32  ;;  %v4568_v36 = vor.u32 %v4567_v20, %v4566_v23 }
 0x62a   : > { %v4571_v56 = vor.u32 %v4570_v50, %v4569_v60 }
 0x62b   : > { %v4580_v40 = vsel %vm4572_vm6, %v10014_v61, %v10016_v47  ;;  %v4584_v3 = vsel %vm4572_vm6, %v10016_v47, %v4565_v2  ;;  %v4581_v58 = vsel %vm4575_vm1, %v4568_v36, 920167782  ;;  %v4577_v50 = vsel %vm4575_vm1, %v4565_v2, 2102212464 }
 0x62c   : > { %v4585_v43 = vsel %vm4575_vm1, %v4571_v56, 1326507024  ;;  %v4582_v46 = vsel %vm4574_vm10, %v4565_v2, %v4581_v58  ;;  %v4556_v56 = vshrl.u32 %v11575_v59, %v9995_v27 }
 0x62d   : > { %v4586_v57 = vsel %vm4574_vm10, %v4568_v36, %v4585_v43  ;;  %v4583_v37 = vsel %vm4573_vm4, %v4580_v40, %v4582_v46 }
 0x62e   : > { %v4587_v15 = vsel %vm4573_vm4, %v4584_v3, %v4586_v57  ;;  %v4613_v41 = vand.u32 65535, %v4583_v37  ;;  %v4614_v29 = vshrl.u32 %v4583_v37, 16  ;;  %v4576_v58 = vsel %vm4572_vm6, %v4556_v56, %v10014_v61 }
 0x62f   : > { %v4591_v31 = vand.u32 65535, %v4587_v15  ;;  %v4592_v13 = vshrl.u32 %v4587_v15, 16 }
 0x630   : > { %v4616_v35 = vmul.u32 %v4614_v29, %v4589_v34  ;;  %v4617_v49 = vmul.u32 %v4613_v41, %v4590_v53  ;;  %v4615_v52 = vmul.u32 %v4613_v41, %v4589_v34  ;;  %v4618_v44 = vmul.u32 %v4614_v29, %v4590_v53 }
 0x631   : > { %v4594_v54 = vmul.u32 %v4592_v13, %v4589_v34  ;;  %v4595_v45 = vmul.u32 %v4591_v31, %v4590_v53  ;;  %v4593_v10 = vmul.u32 %v4591_v31, %v4589_v34  ;;  %v4596_v17 = vmul.u32 %v4592_v13, %v4590_v53 }
 0x632   : > { %v4619_v0 = vshll.u32 %v4616_v35, 16  ;;  %v4621_v4 = vshll.u32 %v4617_v49, 16  ;;  %v4620_v25 = vshrl.u32 %v4616_v35, 16  ;;  %v4622_v32 = vshrl.u32 %v4617_v49, 16 }
 0x633   : > { %v4597_v1 = vshll.u32 %v4594_v54, 16  ;;  %v4599_v42 = vshll.u32 %v4595_v45, 16  ;;  %v4598_v26 = vshrl.u32 %v4594_v54, 16  ;;  %v4600_v20 = vshrl.u32 %v4595_v45, 16 }
 0x634   : > { %vm4623_vm15 = vc.u32 %v4615_v52, %v4619_v0  ;;  %v4625_v63 = vadd.s32 %v4619_v0, %v4615_v52 }
 0x635   : > { %vm4601_vm13 = vc.u32 %v4593_v10, %v4597_v1  ;;  %v4603_v7 = vadd.s32 %v4597_v1, %v4593_v10  ;;  %v4624_v21 = vsel %vm4623_vm15, 1, %v11317_v5  ;;  %v4528_v23 = vpop.f32.mrf.mxu3 }
 0x636   : > { %v4602_v48 = vsel %vm4601_vm13, 1, %v11317_v5  ;;  %v4626_v30 = vadd.s32 %v4624_v21, %v4618_v44  ;;  %vm4627_vm12 = vc.u32 %v4625_v63, %v4621_v4  ;;  %v10050_v60 = vadd.f32 %v4528_v23, %v9986_v19 }
 0x637   : > { %v4604_v24 = vadd.s32 %v4602_v48, %v4596_v17  ;;  %vm4605_vm11 = vc.u32 %v4603_v7, %v4599_v42  ;;  %v4628_v9 = vsel %vm4627_vm12, 1, %v11317_v5  ;;  %v4578_v19 = vsel %vm4574_vm10, %v10016_v47, %v4577_v50  ;;  %v4502_v7 = vpop.f32.mrf.mxu2 }
 0x638   : > { %v4606_v51 = vsel %vm4605_vm11, 1, %v11317_v5  ;;  %v4630_v38 = vadd.s32 %v4628_v9, %v4626_v30  ;;  %v4698_v3 = vand.u32 2139095040, %v10050_v60  ;;  %v10065_v43 = vadd.s32 %v4625_v63, %v4621_v4  ;;  %v4458_v63 = vpop.permute.xlu2 %4457 }
 0x639   : > { %v4608_v55 = vadd.s32 %v4606_v51, %v4604_v24  ;;  %v4579_v27 = vsel %vm4573_vm4, %v4576_v58, %v4578_v19  ;;  %v11273_v57 = vand.u32 2147483647, %v10050_v60 }
 0x63a   : > { %v4631_v28 = vadd.s32 %v4630_v38, %v4620_v25  ;;  %v4699_v2 = vshrl.u32 %v4698_v3, 23  ;;  %v4633_v61 = vmul.u32 %v10019_v62, %v4579_v27 }
 0x63b   : > { %v4609_v14 = vadd.s32 %v4608_v55, %v4598_v26  ;;  %v4702_v47 = vand.u32 8388607, %v11273_v57  ;;  %v10095_v55 = vadd.f32 %v4502_v7, %v4458_v63 }
 0x63c   : > { %v4632_v36 = vadd.s32 %v4631_v28, %v4622_v32  ;;  %v6052_v37 = vadd.s32 4294967169, %v4699_v2 }
 0x63d   : > { %v10056_v40 = vadd.s32 %v4609_v14, %v4600_v20  ;;  %v4703_v41 = vor.u32 8388608, %v4702_v47  ;;  %v4853_v56 = vand.u32 2139095040, %v10095_v55  ;;  %v4531_v2 = vpop.f32.mrf.mxu3  ;;  %v11278_v47 = vand.u32 2147483647, %v10095_v55 }
 0x63e   : > { %v4636_v46 = vadd.s32 1, %v4632_v36  ;;  %v4705_v34 = vadd.s32 1, %v6052_v37 }
 0x63f   : > { %vm4635_vm14 = vc.u32 %v10056_v40, %v10065_v43  ;;  %v10088_v51 = vshll.u32 %v4703_v41, 8 }
 0x640   : > { %v4637_v15 = vsel %vm4635_vm14, %v4636_v46, %v4632_v36  ;;  %vm4706_vm2 = vcmp.gt.s32.totalorder %v4705_v34, 0 }
 0x641   : > { %v4638_v53 = vadd.s32 %v4637_v15, %v4633_v61  ;;  %v4707_v31 = vsel %vm4706_vm2, %v4705_v34, 0  ;;  %v4744_v50 = vand.u32 65535, %v10088_v51  ;;  %v4745_v3 = vshrl.u32 %v10088_v51, 16 }
 0x642   : > { %v4709_v13 = vand.u32 31, %v4707_v31  ;;  %v10075_v45 = vshrl.u32 %v4707_v31, 5  ;;  %v4854_v31 = vshrl.u32 %v4853_v56, 23 }
 0x643   : > { %v4639_v54 = vadd.s32 536870912, %v4638_v53 }
 0x644   : > { %v4710_v29 = vsub.s32 32, %v4709_v13  ;;  %v4712_v22 = vshll.u32 %v11575_v59, %v4709_v13  ;;  %v4715_v35 = vshll.u32 %v11576_v18, %v4709_v13  ;;  %v4718_v10 = vshll.u32 %v11578_v16, %v4709_v13 }
 0x645   : > { %v4721_v17 = vshll.u32 %v11563_v11, %v4709_v13  ;;  %v4724_v0 = vshll.u32 %v11611_v39, %v4709_v13  ;;  %vm4727_vm8 = vcmp.lt.s32.totalorder %v10075_v45, 1  ;;  %v10090_v30 = vshrl.u32 %v4639_v54, 30 }
 0x646   : > { %v4713_v49 = vshrl.u32 %v11576_v18, %v4710_v29  ;;  %v4716_v62 = vshrl.u32 %v11578_v16, %v4710_v29  ;;  %v4719_v1 = vshrl.u32 %v11563_v11, %v4710_v29  ;;  %v4722_v52 = vshrl.u32 %v11611_v39, %v4710_v29 }
 0x647   : > { %v4725_v42 = vshrl.u32 %v11612_v33, %v4710_v29  ;;  %vm4730_vm5 = vcmp.lt.s32.totalorder %v10075_v45, 4  ;;  %vm4729_vm3 = vcmp.lt.s32.totalorder %v10075_v45, 3  ;;  %vm4728_vm9 = vcmp.lt.s32.totalorder %v10075_v45, 2 }
 0x648   : > { %v4714_v44 = vor.u32 %v4713_v49, %v4712_v22  ;;  %v4717_v48 = vor.u32 %v4716_v62, %v4715_v35  ;;  %v4720_v4 = vor.u32 %v4719_v1, %v4718_v10  ;;  %v4723_v24 = vor.u32 %v4722_v52, %v4721_v17 }
 0x649   : > { %v4726_v21 = vor.u32 %v4725_v42, %v4724_v0  ;;  %v4641_v20 = vshll.u32 %v10090_v30, 30  ;;  %v4711_v27 = vshrl.u32 %v11575_v59, %v4710_v29  ;;  %v10121_v13 = vadd.f32 %v4531_v2, %v4458_v63 }
 0x64a   : > { %v4735_v26 = vsel %vm4727_vm8, %v4714_v44, %v4717_v48  ;;  %v4736_v9 = vsel %vm4730_vm5, %v4723_v24, 920167782  ;;  %v4739_v25 = vsel %vm4727_vm8, %v4717_v48, %v4720_v4  ;;  %v4732_v49 = vsel %vm4730_vm5, %v4720_v4, 2102212464 }
 0x64b   : > { %v4740_v38 = vsel %vm4730_vm5, %v4726_v21, 1326507024  ;;  %v4737_v14 = vsel %vm4729_vm3, %v4720_v4, %v4736_v9  ;;  %v10118_v61 = vsub.s32 %v4638_v53, %v4641_v20  ;;  %v4731_v41 = vsel %vm4727_vm8, %v4711_v27, %v4714_v44 }
 0x64c   : > { %v4741_v32 = vsel %vm4729_vm3, %v4723_v24, %v4740_v38  ;;  %v4738_v28 = vsel %vm4728_vm9, %v4735_v26, %v4737_v14  ;;  %v6055_v63 = vadd.s32 4294967169, %v4854_v31  ;;  %v4733_v4 = vsel %vm4729_vm3, %v4717_v48, %v4732_v49 }
 0x64d   : > { %v4742_v23 = vsel %vm4728_vm9, %v4739_v25, %v4741_v32  ;;  %v4768_v19 = vand.u32 65535, %v4738_v28  ;;  %v4769_v46 = vshrl.u32 %v4738_v28, 16  ;;  %v4644_v14 = vsub.s32 0, %v10118_v61 }
 0x64e   : > { %v4746_v36 = vand.u32 65535, %v4742_v23  ;;  %v4747_v58 = vshrl.u32 %v4742_v23, 16  ;;  %v4860_v38 = vadd.s32 1, %v6055_v63  ;;  %v4857_v23 = vand.u32 8388607, %v11278_v47 }
 0x64f   : > { %v4771_v34 = vmul.u32 %v4769_v46, %v4744_v50  ;;  %v4772_v35 = vmul.u32 %v4768_v19, %v4745_v3  ;;  %v4770_v62 = vmul.u32 %v4768_v19, %v4744_v50  ;;  %v4773_v17 = vmul.u32 %v4769_v46, %v4745_v3 }
 0x650   : > { %v4749_v37 = vmul.u32 %v4747_v58, %v4744_v50  ;;  %v4750_v15 = vmul.u32 %v4746_v36, %v4745_v3  ;;  %v4748_v54 = vmul.u32 %v4746_v36, %v4744_v50  ;;  %v4751_v29 = vmul.u32 %v4747_v58, %v4745_v3 }
 0x651   : > { %v4774_v10 = vshll.u32 %v4771_v34, 16  ;;  %v4776_v0 = vshll.u32 %v4772_v35, 16  ;;  %v4775_v32 = vshrl.u32 %v4771_v34, 16  ;;  %vm4643_vm4 = vcmp.lt.s32.totalorder %v10118_v61, 0 }
 0x652   : > { %v4752_v22 = vshll.u32 %v4749_v37, 16  ;;  %v4754_v1 = vshll.u32 %v4750_v15, 16  ;;  %v4753_v26 = vshrl.u32 %v4749_v37, 16  ;;  %v4755_v20 = vshrl.u32 %v4750_v15, 16 }
 0x653   : > { %vm4778_vm6 = vc.u32 %v4770_v62, %v4774_v10  ;;  %v4780_v42 = vadd.s32 %v4774_v10, %v4770_v62  ;;  %vm4861_vm13 = vcmp.gt.s32.totalorder %v4860_v38, 0  ;;  %v4734_v50 = vsel %vm4728_vm9, %v4731_v41, %v4733_v4 }
 0x654   : > { %vm4756_vm7 = vc.u32 %v4748_v54, %v4752_v22  ;;  %v4758_v53 = vadd.s32 %v4752_v22, %v4748_v54  ;;  %v4779_v44 = vsel %vm4778_vm6, 1, %v11317_v5  ;;  %v4777_v36 = vshrl.u32 %v4772_v35, 16 }
 0x655   : > { %v4757_v52 = vsel %vm4756_vm7, 1, %v11317_v5  ;;  %v4781_v21 = vadd.s32 %v4779_v44, %v4773_v17  ;;  %vm4782_vm10 = vc.u32 %v4780_v42, %v4776_v0  ;;  %v4862_v3 = vsel %vm4861_vm13, %v4860_v38, 0 }
 0x656   : > { %v4759_v7 = vadd.s32 %v4757_v52, %v4751_v29  ;;  %vm4760_vm1 = vc.u32 %v4758_v53, %v4754_v1  ;;  %v4783_v25 = vsel %vm4782_vm10, 1, %v11317_v5  ;;  %v10141_v19 = vadd.s32 %v4780_v42, %v4776_v0 }
 0x657   : > { %v4761_v24 = vsel %vm4760_vm1, 1, %v11317_v5  ;;  %v4785_v28 = vadd.s32 %v4783_v25, %v4781_v21  ;;  %v4864_v46 = vand.u32 31, %v4862_v3  ;;  %v4645_v2 = vsel %vm4643_vm4, %v4644_v14, %v10118_v61 }
 0x658   : > { %v4763_v9 = vadd.s32 %v4761_v24, %v4759_v7  ;;  %v4858_v37 = vor.u32 8388608, %v4857_v23  ;;  %v5008_v34 = vand.u32 2139095040, %v10121_v13  ;;  %v4788_v15 = vmul.u32 %v10088_v51, %v4734_v50 }
 0x659   : > { %v4786_v56 = vadd.s32 %v4785_v28, %v4775_v32  ;;  %v10148_v45 = vshrl.u32 %v4862_v3, 5  ;;  %v4865_v31 = vsub.s32 32, %v4864_v46  ;;  %v4867_v54 = vshll.u32 %v11575_v59, %v4864_v46 }
 0x65a   : > { %v4764_v48 = vadd.s32 %v4763_v9, %v4753_v26  ;;  %v4870_v22 = vshll.u32 %v11576_v18, %v4864_v46  ;;  %v4873_v35 = vshll.u32 %v11578_v16, %v4864_v46  ;;  %v4876_v51 = vshll.u32 %v11563_v11, %v4864_v46 }
 0x65b   : > { %v4787_v27 = vadd.s32 %v4786_v56, %v4777_v36  ;;  %v4868_v49 = vshrl.u32 %v11576_v18, %v4865_v31  ;;  %v4871_v29 = vshrl.u32 %v11578_v16, %v4865_v31  ;;  %v4874_v62 = vshrl.u32 %v11563_v11, %v4865_v31 }
 0x65c   : > { %v10139_v58 = vadd.s32 %v4764_v48, %v4755_v20  ;;  %v4877_v1 = vshrl.u32 %v11611_v39, %v4865_v31  ;;  %v4879_v53 = vshll.u32 %v11611_v39, %v4864_v46  ;;  %v4880_v17 = vshrl.u32 %v11612_v33, %v4865_v31 }
 0x65d   : > { %v4791_v41 = vadd.s32 1, %v4787_v27  ;;  %v4869_v0 = vor.u32 %v4868_v49, %v4867_v54  ;;  %v4872_v42 = vor.u32 %v4871_v29, %v4870_v22  ;;  %v4875_v7 = vor.u32 %v4874_v62, %v4873_v35 }
 0x65e   : > { %vm4790_vm15 = vc.u32 %v10139_v58, %v10141_v19  ;;  %v4646_v44 = vclz %v4645_v2  ;;  %v4878_v63 = vor.u32 %v4877_v1, %v4876_v51  ;;  %v4881_v4 = vor.u32 %v4880_v17, %v4879_v53 }
 0x65f   : > { %v4792_v10 = vsel %vm4790_vm15, %v4791_v41, %v4787_v27  ;;  %v10160_v24 = vshll.u32 %v4858_v37, 8  ;;  %vm4882_vm11 = vcmp.lt.s32.totalorder %v10148_v45, 1  ;;  %vm4885_vm12 = vcmp.lt.s32.totalorder %v10148_v45, 4 }
 0x660   : > { %v4793_v52 = vadd.s32 %v4792_v10, %v4788_v15  ;;  %v5009_v26 = vshrl.u32 %v5008_v34, 23  ;;  %vm4884_vm14 = vcmp.lt.s32.totalorder %v10148_v45, 3  ;;  %v4890_v9 = vsel %vm4882_vm11, %v4869_v0, %v4872_v42 }
 0x661   : > { %v4891_v25 = vsel %vm4885_vm12, %v4878_v63, 920167782  ;;  %v4894_v38 = vsel %vm4882_vm11, %v4872_v42, %v4875_v7  ;;  %vm4883_vm2 = vcmp.lt.s32.totalorder %v10148_v45, 2  ;;  %v4895_v32 = vsel %vm4885_vm12, %v4881_v4, 1326507024 }
 0x662   : > { %v4794_v21 = vadd.s32 536870912, %v4793_v52  ;;  %v4892_v14 = vsel %vm4884_vm14, %v4875_v7, %v4891_v25  ;;  %v6050_v28 = vadd.s32 4294967294, %v4646_v44  ;;  %v4896_v20 = vsel %vm4884_vm14, %v4878_v63, %v4895_v32 }
 0x663   : > { %v4893_v23 = vsel %vm4883_vm2, %v4890_v9, %v4892_v14  ;;  %v4899_v48 = vand.u32 65535, %v10160_v24  ;;  %v4897_v50 = vsel %vm4883_vm2, %v4894_v38, %v4896_v20  ;;  %v6058_v3 = vadd.s32 4294967169, %v5009_v26 }
 0x664   : > { %v4923_v36 = vand.u32 65535, %v4893_v23  ;;  %v4924_v56 = vshrl.u32 %v4893_v23, 16  ;;  %v10183_v46 = vshrl.u32 %v4794_v21, 30  ;;  %v4900_v2 = vshrl.u32 %v10160_v24, 16 }
 0x665   : > { %v4901_v27 = vand.u32 65535, %v4897_v50  ;;  %v4902_v37 = vshrl.u32 %v4897_v50, 16  ;;  %v4866_v34 = vshrl.u32 %v11575_v59, %v4865_v31  ;;  %v11272_v35 = vand.u32 2147483647, %v10121_v13 }
 0x666   : > { %11627 = vst [vmem:[#allocation18_spill] sm:$0xff] %v10183_v46  ;;  %v4926_v15 = vmul.u32 %v4924_v56, %v4899_v48  ;;  %v4927_v22 = vmul.u32 %v4923_v36, %v4900_v2  ;;  %vm6051_vm8 = vcmp.lt.s32.totalorder %v6050_v28, 0  ;;  %v5015_v62 = vadd.s32 1, %v6058_v3 }
 0x667   : > { %v4904_v41 = vmul.u32 %v4902_v37, %v4899_v48  ;;  %v4905_v54 = vmul.u32 %v4901_v27, %v4900_v2  ;;  %v4886_v49 = vsel %vm4882_vm11, %v4866_v34, %v4869_v0  ;;  %v4796_v51 = vshll.u32 %v10183_v46, 30 }
 0x668   : > { %v4929_v29 = vshll.u32 %v4926_v15, 16  ;;  %v4903_v10 = vmul.u32 %v4901_v27, %v4899_v48  ;;  %v4925_v53 = vmul.u32 %v4923_v36, %v4899_v48  ;;  %v4887_v31 = vsel %vm4885_vm12, %v4875_v7, 2102212464 }
 0x669   : > { %v4907_v1 = vshll.u32 %v4904_v41, 16  ;;  %v4906_v17 = vmul.u32 %v4902_v37, %v4900_v2  ;;  %v4909_v44 = vshll.u32 %v4905_v54, 16  ;;  %v4928_v63 = vmul.u32 %v4924_v56, %v4900_v2 }
 0x66a   : > { %v4931_v21 = vshll.u32 %v4927_v22, 16  ;;  %vm4933_vm3 = vc.u32 %v4925_v53, %v4929_v29  ;;  %v4935_v9 = vadd.s32 %v4929_v29, %v4925_v53  ;;  %vm5016_vm9 = vcmp.gt.s32.totalorder %v5015_v62, 0 }
 0x66b   : > { %vm4911_vm5 = vc.u32 %v4903_v10, %v4907_v1  ;;  %v4913_v4 = vadd.s32 %v4907_v1, %v4903_v10  ;;  %v4934_v0 = vsel %vm4933_vm3, 1, %v11317_v5  ;;  %v10195_v25 = vsub.s32 %v4793_v52, %v4796_v51 }
 0x66c   : > { %v4912_v26 = vsel %vm4911_vm5, 1, %v11317_v5  ;;  %v4936_v14 = vadd.s32 %v4934_v0, %v4928_v63  ;;  %v4888_v7 = vsel %vm4884_vm14, %v4872_v42, %v4887_v31  ;;  %vm4937_vm6 = vc.u32 %v4935_v9, %v4931_v21 }
 0x66d   : > { %v4914_v38 = vadd.s32 %v4912_v26, %v4906_v17  ;;  %vm4915_vm7 = vc.u32 %v4913_v4, %v4909_v44  ;;  %v5017_v23 = vsel %vm5016_vm9, %v5015_v62, 0  ;;  %v10201_v20 = vsel %vm6051_vm8, 0, %v6050_v28 }
 0x66e   : > { %v4916_v32 = vsel %vm4915_vm7, 1, %v11317_v5  ;;  %v4908_v48 = vshrl.u32 %v4904_v41, 16  ;;  %v4938_v36 = vsel %vm4937_vm6, 1, %v11317_v5  ;;  %v4930_v56 = vshrl.u32 %v4926_v15, 16 }
 0x66f   : > { %v4918_v50 = vadd.s32 %v4916_v32, %v4914_v38  ;;  %v4940_v52 = vadd.s32 %v4938_v36, %v4936_v14  ;;  %v5012_v3 = vand.u32 8388607, %v11272_v35  ;;  %v5019_v2 = vand.u32 31, %v5017_v23 }
 0x670   : > { %v4799_v27 = vsub.s32 0, %v10195_v25  ;;  %v4889_v42 = vsel %vm4883_vm2, %v4886_v49, %v4888_v7  ;;  %v4910_v37 = vshrl.u32 %v4905_v54, 16  ;;  %vm4798_vm1 = vcmp.lt.s32.totalorder %v10195_v25, 0 }
 0x671   : > { %v4919_v34 = vadd.s32 %v4918_v50, %v4908_v48  ;;  %v4932_v28 = vshrl.u32 %v4927_v22, 16  ;;  %v4941_v41 = vadd.s32 %v4940_v52, %v4930_v56  ;;  %v10210_v29 = vsub.s32 32, %v5019_v2 }
 0x672   : > { %v4650_v15 = vsub.s32 32, %v10201_v20  ;;  %v4654_v62 = vsub.s32 4294967266, %v10201_v20  ;;  %v10216_v10 = vadd.s32 %v4935_v9, %v4931_v21  ;;  %v5013_v53 = vor.u32 8388608, %v5012_v3 }
 0x673   : > { %v10214_v51 = vadd.s32 %v4919_v34, %v4910_v37  ;;  %v4942_v1 = vadd.s32 %v4941_v41, %v4932_v28  ;;  %v5023_v45 = vshrl.u32 %v11576_v18, %v10210_v29  ;;  %v5026_v54 = vshrl.u32 %v11578_v16, %v10210_v29 }
 0x674   : > { %v4800_v22 = vsel %vm4798_vm1, %v4799_v27, %v10195_v25  ;;  %v4943_v49 = vmul.u32 %v10160_v24, %v4889_v42  ;;  %v5022_v31 = vshll.u32 %v11575_v59, %v5019_v2  ;;  %v10227_v44 = vshrl.u32 %v5017_v23, 5 }
 0x675   : > { %vm4945_vm10 = vc.u32 %v10214_v51, %v10216_v10  ;;  %v4946_v17 = vadd.s32 1, %v4942_v1  ;;  %v5025_v63 = vshll.u32 %v11576_v18, %v5019_v2  ;;  %v5029_v4 = vshrl.u32 %v11563_v11, %v10210_v29 }
 0x676   : > { %v10232_v21 = vor.u32 %v5023_v45, %v5022_v31  ;;  %v5028_v26 = vshll.u32 %v11578_v16, %v5019_v2  ;;  %v5031_v0 = vshll.u32 %v11563_v11, %v5019_v2  ;;  %v5032_v24 = vshrl.u32 %v11611_v39, %v10210_v29 }
 0x677   : > { %v4947_v9 = vsel %vm4945_vm10, %v4946_v17, %v4942_v1  ;;  %v10238_v38 = vor.u32 %v5026_v54, %v5025_v63  ;;  %v5034_v14 = vshll.u32 %v11611_v39, %v5019_v2  ;;  %v5035_v7 = vshrl.u32 %v11612_v33, %v10210_v29 }
 0x678   : > { %v4634_v32 = vadd.s32 %v10065_v43, %v10056_v40  ;;  %v4948_v23 = vadd.s32 %v4947_v9, %v4943_v49  ;;  %v5030_v48 = vor.u32 %v5029_v4, %v5028_v26  ;;  %v5033_v50 = vor.u32 %v5032_v24, %v5031_v0 }
 0x679   : > { %v4655_v36 = vadd.s32 127, %v4654_v62  ;;  %v4801_v56 = vclz %v4800_v22  ;;  %v5036_v52 = vor.u32 %v5035_v7, %v5034_v14  ;;  %vm5037_vm4 = vcmp.lt.s32.totalorder %v10227_v44, 1 }
 0x67a   : > { %v4652_v3 = vshrl.u32 %v4634_v32, %v4650_v15  ;;  %v4949_v27 = vadd.s32 536870912, %v4948_v23  ;;  %vm5040_vm13 = vcmp.lt.s32.totalorder %v10227_v44, 4  ;;  %vm5039_vm15 = vcmp.lt.s32.totalorder %v10227_v44, 3 }
 0x67b   : > { %v5045_v2 = vsel %vm5037_vm4, %v10232_v21, %v10238_v38  ;;  %v5046_v40 = vsel %vm5040_vm13, %v5033_v50, 920167782  ;;  %v10254_v43 = vshll.u32 %v5013_v53, 8  ;;  %vm5038_vm11 = vcmp.lt.s32.totalorder %v10227_v44, 2 }
 0x67c   : > { %v10256_v42 = vshrl.u32 %v4949_v27, 30  ;;  %v5047_v37 = vsel %vm5039_vm15, %v5030_v48, %v5046_v40  ;;  %v5049_v34 = vsel %vm5037_vm4, %v10238_v38, %v5030_v48  ;;  %v4656_v28 = vshll.u32 %v4655_v36, 23 }
 0x67d   : > { %v6053_v41 = vadd.s32 4294967294, %v4801_v56  ;;  %v5048_v15 = vsel %vm5038_vm11, %v5045_v2, %v5047_v37  ;;  %v5050_v62 = vsel %vm5040_vm13, %v5036_v52, 1326507024  ;;  %v4651_v1 = vshll.u32 %v10118_v61, %v10201_v20  ;;  %v4505_v2 = vpop.f32.mrf.mxu2 }
 0x67e   : > { %v4951_v53 = vshll.u32 %v10256_v42, 30  ;;  %v5051_v45 = vsel %vm5039_vm15, %v5033_v50, %v5050_v62  ;;  %v5078_v54 = vand.u32 65535, %v5048_v15  ;;  %v5054_v49 = vand.u32 65535, %v10254_v43 }
 0x67f   : > { %v5052_v22 = vsel %vm5038_vm11, %v5049_v34, %v5051_v45  ;;  %v5055_v31 = vshrl.u32 %v10254_v43, 16  ;;  %v5079_v17 = vshrl.u32 %v5048_v15, 16  ;;  %v4653_v63 = vor.u32 %v4652_v3, %v4651_v1  ;;  %v4463_v15 = vpop.permute.xlu1 %4462 }
 0x680   : > { %v10277_v4 = vsub.s32 %v4948_v23, %v4951_v53  ;;  %v5056_v26 = vand.u32 65535, %v5052_v22  ;;  %v5057_v0 = vshrl.u32 %v5052_v22, 16  ;;  %v4657_v61 = vor.u32 4788187, %v4656_v28 }
 0x681   : > { %vm6054_vm12 = vcmp.lt.s32.totalorder %v6053_v41, 0  ;;  %v5081_v20 = vmul.u32 %v5079_v17, %v5054_v49  ;;  %v5082_v24 = vmul.u32 %v5078_v54, %v5055_v31  ;;  %v5021_v14 = vshrl.u32 %v11575_v59, %v10210_v29 }
 0x682   : > { %vm4953_vm14 = vcmp.lt.s32.totalorder %v10277_v4, 0  ;;  %v4954_v9 = vsub.s32 0, %v10277_v4  ;;  %v5059_v7 = vmul.u32 %v5057_v0, %v5054_v49  ;;  %v5042_v32 = vsel %vm5040_vm13, %v5030_v48, 2102212464 }
 0x683   : > { %v5060_v50 = vmul.u32 %v5056_v26, %v5055_v31  ;;  %v5080_v23 = vmul.u32 %v5078_v54, %v5054_v49  ;;  %v5084_v36 = vshll.u32 %v5081_v20, 16  ;;  %v5058_v52 = vmul.u32 %v5056_v26, %v5054_v49 }
 0x684   : > { %v4955_v56 = vsel %vm4953_vm14, %v4954_v9, %v10277_v4  ;;  %v5062_v3 = vshll.u32 %v5059_v7, 16  ;;  %v5083_v27 = vmul.u32 %v5079_v17, %v5055_v31  ;;  %v5061_v37 = vmul.u32 %v5057_v0, %v5055_v31 }
 0x685   : > { %v4956_v40 = vclz %v4955_v56  ;;  %v5064_v34 = vshll.u32 %v5060_v50, 16  ;;  %v5086_v28 = vshll.u32 %v5082_v24, 16  ;;  %vm5088_vm8 = vc.u32 %v5080_v23, %v5084_v36 }
 0x686   : > { %vm5066_vm2 = vc.u32 %v5058_v52, %v5062_v3  ;;  %v5068_v29 = vadd.s32 %v5062_v3, %v5058_v52  ;;  %v5090_v62 = vadd.s32 %v5084_v36, %v5080_v23  ;;  %v5041_v48 = vsel %vm5037_vm4, %v5021_v14, %v10232_v21 }
 0x687   : > { %v5067_v1 = vsel %vm5066_vm2, 1, %v11317_v5  ;;  %v5089_v53 = vsel %vm5088_vm8, 1, %v11317_v5  ;;  %v10291_v45 = vadd.f32 %v4505_v2, %v4463_v15  ;;  %v6056_v49 = vadd.s32 4294967294, %v4956_v40 }
 0x688   : > { %v5069_v54 = vadd.s32 %v5067_v1, %v5061_v37  ;;  %vm5070_vm5 = vc.u32 %v5068_v29, %v5064_v34  ;;  %v5091_v22 = vadd.s32 %v5089_v53, %v5083_v27  ;;  %vm5092_vm3 = vc.u32 %v5090_v62, %v5086_v28 }
 0x689   : > { %v5043_v31 = vsel %vm5039_vm15, %v10238_v38, %v5042_v32  ;;  %v5071_v17 = vsel %vm5070_vm5, 1, %v11317_v5  ;;  %v5093_v26 = vsel %vm5092_vm3, 1, %v11317_v5  ;;  %v5063_v21 = vshrl.u32 %v5059_v7, 16 }
 0x68a   : > { %v5073_v0 = vadd.s32 %v5071_v17, %v5069_v54  ;;  %v5085_v9 = vshrl.u32 %v5081_v20, 16  ;;  %v5095_v14 = vadd.s32 %v5093_v26, %v5091_v22  ;;  %v4658_v23 = vand.u32 2147483647, %v4657_v61  ;;  %v4534_v61 = vpop.f32.mrf.mxu3 }
 0x68b   : > { %v4804_v36 = vsel %vm6054_vm12, 0, %v6053_v41  ;;  %v5065_v56 = vshrl.u32 %v5060_v50, 16  ;;  %v5087_v3 = vshrl.u32 %v5082_v24, 16  ;;  %v5163_v2 = vand.u32 2139095040, %v10291_v45 }
 0x68c   : > { %v5074_v52 = vadd.s32 %v5073_v0, %v5063_v21  ;;  %v5096_v27 = vadd.s32 %v5095_v14, %v5085_v9  ;;  %v4660_v40 = vcvt.s32.f32 %v4653_v63  ;;  %vm6057_vm9 = vcmp.lt.s32.totalorder %v6056_v49, 0 }
 0x68d   : > { %v5044_v38 = vsel %vm5038_vm11, %v5041_v48, %v5043_v31  ;;  %v10304_v7 = vadd.s32 %v5090_v62, %v5086_v28  ;;  %v5164_v37 = vshrl.u32 %v5163_v2, 23  ;;  %v4805_v41 = vsub.s32 32, %v4804_v36 }
 0x68e   : > { %v10302_v32 = vadd.s32 %v5074_v52, %v5065_v56  ;;  %v5097_v20 = vadd.s32 %v5096_v27, %v5087_v3  ;;  %v4661_v34 = vmul.f32 %v4660_v40, %v4658_v23  ;;  %v4809_v50 = vsub.s32 4294967266, %v4804_v36 }
 0x68f   : > { %v4789_v24 = vadd.s32 %v10141_v19, %v10139_v58  ;;  %v6061_v29 = vadd.s32 4294967169, %v5164_v37  ;;  %v10310_v44 = vsel %vm6057_vm9, 0, %v6056_v49  ;;  %v5098_v48 = vmul.u32 %v10254_v43, %v5044_v38 }
 0x690   : > { %vm5100_vm7 = vc.u32 %v10302_v32, %v10304_v7  ;;  %v5101_v63 = vadd.s32 1, %v5097_v20  ;;  %v11276_v28 = vand.u32 2147483647, %v10291_v45  ;;  %v10314_v62 = vadd.f32 %v4534_v61, %v4463_v15 }
 0x691   : > { %v5170_v53 = vadd.s32 1, %v6061_v29  ;;  %v4662_v54 = vxor.u32 2147483648, %v4661_v34  ;;  %v4807_v22 = vshrl.u32 %v4789_v24, %v4805_v41  ;;  %v4810_v31 = vadd.s32 127, %v4809_v50 }
 0x692   : > { %v5102_v1 = vsel %vm5100_vm7, %v5101_v63, %v5097_v20  ;;  %v4806_v58 = vshll.u32 %v10195_v25, %v4804_v36  ;;  %v4964_v19 = vsub.s32 4294967266, %v10310_v44  ;;  %v5167_v49 = vand.u32 8388607, %v11276_v28 }
 0x693   : > { %v5103_v17 = vadd.s32 %v5102_v1, %v5098_v48  ;;  %vm5171_vm6 = vcmp.gt.s32.totalorder %v5170_v53, 0  ;;  %v5318_v21 = vand.u32 2139095040, %v10314_v62  ;;  %vm4542_vm1 = vcmp.lt.s32.totalorder %v9989_v6, 0 }
 0x694   : > { %v5172_v43 = vsel %vm5171_vm6, %v5170_v53, 0  ;;  %v10324_v0 = vsel %vm4542_vm1, %v4662_v54, %v4661_v34  ;;  %v10326_v9 = vor.u32 %v4807_v22, %v4806_v58  ;;  %v4811_v25 = vshll.u32 %v4810_v31, 23 }
 0x695   : > { %v5104_v26 = vadd.s32 536870912, %v5103_v17  ;;  %v5174_v15 = vand.u32 31, %v5172_v43  ;;  %v4944_v23 = vadd.s32 %v10216_v10, %v10214_v51  ;;  %v4960_v36 = vsub.s32 32, %v10310_v44 }
 0x696   : > { %v4965_v56 = vadd.s32 127, %v4964_v19  ;;  %v5168_v27 = vor.u32 8388608, %v5167_v49  ;;  %v10334_v2 = vshrl.u32 %v5172_v43, 5  ;;  %v5319_v40 = vshrl.u32 %v5318_v21, 23 }
 0x697   : > { %v10328_v14 = vshrl.u32 %v5104_v26, 30  ;;  %v5175_v52 = vsub.s32 32, %v5174_v15  ;;  %v5177_v38 = vshll.u32 %v11575_v59, %v5174_v15  ;;  %v5180_v37 = vshll.u32 %v11576_v18, %v5174_v15 }
 0x698   : > { %v5183_v51 = vshll.u32 %v11578_v16, %v5174_v15  ;;  %v5186_v34 = vshll.u32 %v11563_v11, %v5174_v15  ;;  %v5189_v63 = vshll.u32 %v11611_v39, %v5174_v15  ;;  %v10348_v48 = vor.u32 4788187, %v4811_v25 }
 0x699   : > { %v5106_v3 = vshll.u32 %v10328_v14, 30  ;;  %v5178_v20 = vshrl.u32 %v11576_v18, %v5175_v52  ;;  %v5181_v61 = vshrl.u32 %v11578_v16, %v5175_v52  ;;  %v5184_v10 = vshrl.u32 %v11563_v11, %v5175_v52 }
 0x69a   : > { %v5187_v41 = vshrl.u32 %v11611_v39, %v5175_v52  ;;  %v5190_v29 = vshrl.u32 %v11612_v33, %v5175_v52  ;;  %v4815_v22 = vcvt.s32.f32 %v10326_v9  ;;  %v4962_v31 = vshrl.u32 %v4944_v23, %v4960_v36 }
 0x69b   : > { %v5179_v50 = vor.u32 %v5178_v20, %v5177_v38  ;;  %v10344_v24 = vor.u32 %v5181_v61, %v5180_v37  ;;  %v10350_v1 = vsub.s32 %v5103_v17, %v5106_v3  ;;  %v5185_v53 = vor.u32 %v5184_v10, %v5183_v51 }
 0x69c   : > { %v5188_v54 = vor.u32 %v5187_v41, %v5186_v34  ;;  %v5191_v58 = vor.u32 %v5190_v29, %v5189_v63  ;;  %vm5192_vm10 = vcmp.lt.s32.totalorder %v10334_v2, 1  ;;  %v4966_v19 = vshll.u32 %v4965_v56, 23 }
 0x69d   : > { %vm5195_vm4 = vcmp.lt.s32.totalorder %v10334_v2, 4  ;;  %v5200_v26 = vsel %vm5192_vm10, %v5179_v50, %v10344_v24  ;;  %v10358_v49 = vshll.u32 %v5168_v27, 8  ;;  %vm5194_vm13 = vcmp.lt.s32.totalorder %v10334_v2, 3 }
 0x69e   : > { %v5201_v17 = vsel %vm5195_vm4, %v5188_v54, 920167782  ;;  %v5204_v43 = vsel %vm5192_vm10, %v10344_v24, %v5185_v53  ;;  %v6064_v21 = vadd.s32 4294967169, %v5319_v40  ;;  %v5109_v15 = vsub.s32 0, %v10350_v1 }
 0x69f   : > { %vm5193_vm15 = vcmp.lt.s32.totalorder %v10334_v2, 2  ;;  %v5202_v25 = vsel %vm5194_vm13, %v5185_v53, %v5201_v17  ;;  %v5205_v23 = vsel %vm5195_vm4, %v5191_v58, 1326507024  ;;  %vm5108_vm11 = vcmp.lt.s32.totalorder %v10350_v1, 0 }
 0x6a0   : > { %v5203_v36 = vsel %vm5193_vm15, %v5200_v26, %v5202_v25  ;;  %v5206_v56 = vsel %vm5194_vm13, %v5188_v54, %v5205_v23  ;;  %v11274_v3 = vand.u32 2147483647, %v10314_v62  ;;  %v5209_v40 = vand.u32 65535, %v10358_v49 }
 0x6a1   : > { %v5207_v27 = vsel %vm5193_vm15, %v5204_v43, %v5206_v56  ;;  %v5233_v38 = vand.u32 65535, %v5203_v36  ;;  %v5234_v20 = vshrl.u32 %v5203_v36, 16  ;;  %v4961_v37 = vshll.u32 %v10277_v4, %v10310_v44 }
 0x6a2   : > { %v5210_v61 = vshrl.u32 %v10358_v49, 16  ;;  %v5211_v51 = vand.u32 65535, %v5207_v27  ;;  %v5212_v10 = vshrl.u32 %v5207_v27, 16  ;;  %v4813_v34 = vand.u32 2147483647, %v10348_v48 }
 0x6a3   : > { %v5110_v41 = vsel %vm5108_vm11, %v5109_v15, %v10350_v1  ;;  %v5236_v63 = vmul.u32 %v5234_v20, %v5209_v40  ;;  %v5325_v29 = vadd.s32 1, %v6064_v21  ;;  %v10386_v54 = vor.u32 %v4962_v31, %v4961_v37 }
 0x6a4   : > { %v10390_v58 = vadd.s32 %v10304_v7, %v10302_v32  ;;  %v5176_v26 = vshrl.u32 %v11575_v59, %v5175_v52  ;;  %v5237_v17 = vmul.u32 %v5233_v38, %v5210_v61  ;;  %v10393_v4 = vor.u32 4788187, %v4966_v19 }
 0x6a5   : > { %v5214_v44 = vmul.u32 %v5212_v10, %v5209_v40  ;;  %v5215_v43 = vmul.u32 %v5211_v51, %v5210_v61  ;;  %v10397_v25 = vand.u32 8388607, %v11274_v3  ;;  %v5111_v15 = vclz %v5110_v41 }
 0x6a6   : > { %v5196_v31 = vsel %vm5192_vm10, %v5176_v26, %v5179_v50  ;;  %v5197_v21 = vsel %vm5195_vm4, %v5185_v53, 2102212464  ;;  %v5239_v32 = vshll.u32 %v5236_v63, 16  ;;  %v5213_v7 = vmul.u32 %v5211_v51, %v5209_v40 }
 0x6a7   : > { %v5217_v23 = vshll.u32 %v5214_v44, 16  ;;  %v5235_v52 = vmul.u32 %v5233_v38, %v5209_v40  ;;  %vm5326_vm12 = vcmp.gt.s32.totalorder %v5325_v29, 0  ;;  %v5216_v19 = vmul.u32 %v5212_v10, %v5210_v61 }
 0x6a8   : > { %v5219_v36 = vshll.u32 %v5215_v43, 16  ;;  %v5238_v56 = vmul.u32 %v5234_v20, %v5210_v61  ;;  %v5241_v27 = vshll.u32 %v5237_v17, 16  ;;  %v5198_v50 = vsel %vm5194_vm13, %v10344_v24, %v5197_v21 }
 0x6a9   : > { %vm5221_vm14 = vc.u32 %v5213_v7, %v5217_v23  ;;  %v5223_v37 = vadd.s32 %v5217_v23, %v5213_v7  ;;  %vm5243_vm2 = vc.u32 %v5235_v52, %v5239_v32  ;;  %v5245_v35 = vadd.s32 %v5239_v32, %v5235_v52 }
 0x6aa   : > { %v5222_v41 = vsel %vm5221_vm14, 1, %v11317_v5  ;;  %v5244_v53 = vsel %vm5243_vm2, 1, %v11317_v5  ;;  %v5327_v51 = vsel %vm5326_vm12, %v5325_v29, 0  ;;  %v6059_v38 = vadd.s32 4294967294, %v5111_v15 }
 0x6ab   : > { %v5224_v26 = vadd.s32 %v5222_v41, %v5216_v19  ;;  %vm5225_vm8 = vc.u32 %v5223_v37, %v5219_v36  ;;  %v5246_v40 = vadd.s32 %v5244_v53, %v5238_v56  ;;  %vm5247_vm5 = vc.u32 %v5245_v35, %v5241_v27 }
 0x6ac   : > { %v5226_v20 = vsel %vm5225_vm8, 1, %v11317_v5  ;;  %v5240_v61 = vshrl.u32 %v5236_v63, 16  ;;  %v5248_v10 = vsel %vm5247_vm5, 1, %v11317_v5  ;;  %v5218_v32 = vshrl.u32 %v5214_v44, 16 }
 0x6ad   : > { %v5228_v7 = vadd.s32 %v5226_v20, %v5224_v26  ;;  %v5250_v23 = vadd.s32 %v5248_v10, %v5246_v40  ;;  %v5329_v52 = vand.u32 31, %v5327_v51  ;;  %v4970_v24 = vcvt.s32.f32 %v10386_v54 }
 0x6ae   : > { %v5199_v21 = vsel %vm5193_vm15, %v5196_v31, %v5198_v50  ;;  %v5220_v29 = vshrl.u32 %v5215_v43, 16  ;;  %v5323_v19 = vor.u32 8388608, %v10397_v25  ;;  %v5242_v56 = vshrl.u32 %v5237_v17, 16 }
 0x6af   : > { %v5229_v36 = vadd.s32 %v5228_v7, %v5218_v32  ;;  %v5251_v15 = vadd.s32 %v5250_v23, %v5240_v61  ;;  %v10414_v37 = vsub.s32 32, %v5329_v52  ;;  %vm6060_vm3 = vcmp.lt.s32.totalorder %v6059_v38, 0 }
 0x6b0   : > { %v10416_v63 = vadd.s32 %v5245_v35, %v5241_v27  ;;  %v10418_v44 = vshrl.u32 %v5327_v51, 5  ;;  %v5332_v41 = vshll.u32 %v11575_v59, %v5329_v52  ;;  %v5335_v43 = vshll.u32 %v11576_v18, %v5329_v52 }
 0x6b1   : > { %v10421_v53 = vadd.s32 %v5229_v36, %v5220_v29  ;;  %v5252_v54 = vadd.s32 %v5251_v15, %v5242_v56  ;;  %v5333_v2 = vshrl.u32 %v11576_v18, %v10414_v37  ;;  %v5336_v17 = vshrl.u32 %v11578_v16, %v10414_v37 }
 0x6b2   : > { %v5338_v25 = vshll.u32 %v11578_v16, %v5329_v52  ;;  %v5339_v35 = vshrl.u32 %v11563_v11, %v10414_v37  ;;  %v5342_v31 = vshrl.u32 %v11611_v39, %v10414_v37  ;;  %v5253_v27 = vmul.u32 %v10358_v49, %v5199_v21 }
 0x6b3   : > { %vm5255_vm9 = vc.u32 %v10421_v53, %v10416_v63  ;;  %v5256_v50 = vadd.s32 1, %v5252_v54  ;;  %v5341_v51 = vshll.u32 %v11563_v11, %v5329_v52  ;;  %v10438_v26 = vsel %vm6060_vm3, 0, %v6059_v38 }
 0x6b4   : > { %v10440_v40 = vor.u32 %v5333_v2, %v5332_v41  ;;  %v10442_v20 = vor.u32 %v5336_v17, %v5335_v43  ;;  %v10444_v61 = vor.u32 %v5339_v35, %v5338_v25  ;;  %v5344_v7 = vshll.u32 %v11611_v39, %v5329_v52 }
 0x6b5   : > { %v5257_v10 = vsel %vm5255_vm9, %v5256_v50, %v5252_v54  ;;  %v5343_v32 = vor.u32 %v5342_v31, %v5341_v51  ;;  %v5345_v49 = vshrl.u32 %v11612_v33, %v10414_v37  ;;  %v4968_v23 = vand.u32 2147483647, %v10393_v4 }
 0x6b6   : > { %v5258_v21 = vadd.s32 %v5257_v10, %v5253_v27  ;;  %vm5347_vm7 = vcmp.lt.s32.totalorder %v10418_v44, 1  ;;  %v10451_v38 = vshll.u32 %v5323_v19, 8  ;;  %v5115_v29 = vsub.s32 32, %v10438_v26 }
 0x6b7   : > { %v5346_v36 = vor.u32 %v5345_v49, %v5344_v7  ;;  %vm5350_vm6 = vcmp.lt.s32.totalorder %v10418_v44, 4  ;;  %v5355_v52 = vsel %vm5347_vm7, %v10440_v40, %v10442_v20  ;;  %vm5349_vm10 = vcmp.lt.s32.totalorder %v10418_v44, 3 }
 0x6b8   : > { %v5259_v56 = vadd.s32 536870912, %v5258_v21  ;;  %v5356_v4 = vsel %vm5350_vm6, %v5343_v32, 920167782  ;;  %v5359_v19 = vsel %vm5347_vm7, %v10442_v20, %v10444_v61  ;;  %v5119_v15 = vsub.s32 4294967266, %v10438_v26 }
 0x6b9   : > { %vm5348_vm4 = vcmp.lt.s32.totalorder %v10418_v44, 2  ;;  %v5357_v41 = vsel %vm5349_vm10, %v10444_v61, %v5356_v4  ;;  %v5360_v54 = vsel %vm5350_vm6, %v5346_v36, 1326507024  ;;  %v5364_v25 = vand.u32 65535, %v10451_v38 }
 0x6ba   : > { %v10473_v2 = vshrl.u32 %v5259_v56, 30  ;;  %v5358_v43 = vsel %vm5348_vm4, %v5355_v52, %v5357_v41  ;;  %v5361_v17 = vsel %vm5349_vm10, %v5343_v32, %v5360_v54  ;;  %v5365_v31 = vshrl.u32 %v10451_v38, 16  ;;  %v4508_v32 = vpop.f32.mrf.mxu2 }
 0x6bb   : > { %v5362_v35 = vsel %vm5348_vm4, %v5359_v19, %v5361_v17  ;;  %v5388_v27 = vand.u32 65535, %v5358_v43  ;;  %v5389_v50 = vshrl.u32 %v5358_v43, 16  ;;  %v10487_v51 = vmul.f32 %v4815_v22, %v4813_v34 }
 0x6bc   : > { %v5261_v10 = vshll.u32 %v10473_v2, 30  ;;  %v5366_v7 = vand.u32 65535, %v5362_v35  ;;  %v5367_v49 = vshrl.u32 %v5362_v35, 16  ;;  %v10490_v36 = vmul.f32 %v4970_v24, %v4968_v23 }
 0x6bd   : > { %v10493_v52 = vshrl.u32 %v10390_v58, %v5115_v29  ;;  %v5391_v56 = vmul.u32 %v5389_v50, %v5364_v25  ;;  %v5392_v4 = vmul.u32 %v5388_v27, %v5365_v31  ;;  %v5120_v19 = vadd.s32 127, %v5119_v15 }
 0x6be   : > { %v10495_v41 = vsub.s32 %v5258_v21, %v5261_v10  ;;  %v5369_v48 = vmul.u32 %v5367_v49, %v5364_v25  ;;  %v5370_v54 = vmul.u32 %v5366_v7, %v5365_v31  ;;  %v5390_v9 = vmul.u32 %v5388_v27, %v5364_v25 }
 0x6bf   : > { %v5393_v22 = vmul.u32 %v5389_v50, %v5365_v31  ;;  %v5394_v34 = vshll.u32 %v5391_v56, 16  ;;  %v10498_v43 = vadd.f32 %v4508_v32, %v9984_v8  ;;  %v5368_v23 = vmul.u32 %v5366_v7, %v5364_v25 }
 0x6c0   : > { %vm5263_vm13 = vcmp.lt.s32.totalorder %v10495_v41, 0  ;;  %v5264_v24 = vsub.s32 0, %v10495_v41  ;;  %v5372_v58 = vshll.u32 %v5369_v48, 16  ;;  %v5371_v29 = vmul.u32 %v5367_v49, %v5365_v31 }
 0x6c1   : > { %v5374_v17 = vshll.u32 %v5370_v54, 16  ;;  %v5396_v35 = vshll.u32 %v5392_v4, 16  ;;  %vm5398_vm15 = vc.u32 %v5390_v9, %v5394_v34  ;;  %v5400_v32 = vadd.s32 %v5394_v34, %v5390_v9 }
 0x6c2   : > { %v5265_v21 = vsel %vm5263_vm13, %v5264_v24, %v10495_v41  ;;  %vm5376_vm11 = vc.u32 %v5368_v23, %v5372_v58  ;;  %v5378_v15 = vadd.s32 %v5372_v58, %v5368_v23  ;;  %v5399_v27 = vsel %vm5398_vm15, 1, %v11317_v5 }
 0x6c3   : > { %v5266_v50 = vclz %v5265_v21  ;;  %v5377_v10 = vsel %vm5376_vm11, 1, %v11317_v5  ;;  %v5401_v57 = vadd.s32 %v5399_v27, %v5393_v22  ;;  %v5121_v3 = vshll.u32 %v5120_v19, 23 }
 0x6c4   : > { %v5331_v25 = vshrl.u32 %v11575_v59, %v10414_v37  ;;  %v5379_v7 = vadd.s32 %v5377_v10, %v5371_v29  ;;  %vm5380_vm12 = vc.u32 %v5378_v15, %v5374_v17  ;;  %vm10509_vm14 = vcmp.le.f32.partialorder %v4540_v12, 0.7853982 }
 0x6c5   : > { %v6062_v49 = vadd.s32 4294967294, %v5266_v50  ;;  %v5352_v24 = vsel %vm5350_vm6, %v10444_v61, 2102212464  ;;  %v5381_v9 = vsel %vm5380_vm12, 1, %v11317_v5  ;;  %vm5402_vm2 = vc.u32 %v5400_v32, %v5396_v35 }
 0x6c6   : > { %vm11282_vm8 = vcmp.lt.s32.totalorder %v10050_v60, 0  ;;  %v5373_v19 = vshrl.u32 %v5369_v48, 16  ;;  %v5383_v37 = vadd.s32 %v5381_v9, %v5379_v7  ;;  %v5403_v22 = vsel %vm5402_vm2, 1, %v11317_v5 }
 0x6c7   : > { %v5473_v34 = vand.u32 2139095040, %v10498_v43  ;;  %vm4852_vm5 = vcmp.lt.s32.totalorder %v10095_v55, 0  ;;  %vm6063_vm3 = vcmp.lt.s32.totalorder %v6062_v49, 0  ;;  %v5351_v12 = vsel %vm5347_vm7, %v5331_v25, %v10440_v40 }
 0x6c8   : > { %v5395_v23 = vshrl.u32 %v5391_v56, 16  ;;  %v5405_v61 = vadd.s32 %v5403_v22, %v5401_v57  ;;  %v5353_v58 = vsel %vm5349_vm10, %v10442_v20, %v5352_v24  ;;  %v5375_v29 = vshrl.u32 %v5370_v54, 16  ;;  %v4537_v56 = vpop.f32.mrf.mxu3 }
 0x6c9   : > { %v5384_v48 = vadd.s32 %v5383_v37, %v5373_v19  ;;  %v5474_v17 = vshrl.u32 %v5473_v34, 23  ;;  %v5116_v21 = vshll.u32 %v10350_v1, %v10438_v26  ;;  %v5397_v15 = vshrl.u32 %v5392_v4, 16 }
 0x6ca   : > { %v5406_v27 = vadd.s32 %v5405_v61, %v5395_v23  ;;  %v11275_v50 = vand.u32 2147483647, %v10498_v43  ;;  %v5269_v10 = vsel %vm6063_vm3, 0, %v6062_v49  ;;  %v5404_v9 = vadd.s32 %v5400_v32, %v5396_v35 }
 0x6cb   : > { %v5385_v7 = vadd.s32 %v5384_v48, %v5375_v29  ;;  %v6067_v40 = vadd.s32 4294967169, %v5474_v17  ;;  %v4817_v57 = vxor.u32 2147483648, %v10487_v51  ;;  %v4972_v25 = vxor.u32 2147483648, %v10490_v36 }
 0x6cc   : > { %v5354_v20 = vsel %vm5348_vm4, %v5351_v12, %v5353_v58  ;;  %v5407_v54 = vadd.s32 %v5406_v27, %v5397_v15  ;;  %v10535_v24 = vor.u32 %v10493_v52, %v5116_v21  ;;  %v10537_v1 = vor.u32 4788187, %v5121_v3 }
 0x6cd   : > { %vm5410_vm9 = vc.u32 %v5385_v7, %v5404_v9  ;;  %v5480_v26 = vadd.s32 1, %v6067_v40  ;;  %v5270_v4 = vsub.s32 32, %v5269_v10  ;;  %v5477_v35 = vand.u32 8388607, %v11275_v50 }
 0x6ce   : > { %v5411_v49 = vadd.s32 1, %v5407_v54  ;;  %v10542_v32 = vadd.f32 %v4537_v56, %v9984_v8  ;;  %v10548_v44 = vsel %vm10509_vm14, %v9989_v6, %v10324_v0  ;;  %v5274_v52 = vsub.s32 4294967266, %v5269_v10 }
 0x6cf   : > { %v5408_v3 = vmul.u32 %v10451_v38, %v5354_v20  ;;  %vm5481_vm7 = vcmp.gt.s32.totalorder %v5480_v26, 0  ;;  %v10554_v19 = vsel %vm11282_vm8, %v4817_v57, %v10487_v51  ;;  %v5254_v37 = vadd.s32 %v10416_v63, %v10421_v53 }
 0x6d0   : > { %v5412_v8 = vsel %vm5410_vm9, %v5411_v49, %v5407_v54  ;;  %v5482_v22 = vsel %vm5481_vm7, %v5480_v26, 0  ;;  %v10561_v34 = vsel %vm4852_vm5, %v4972_v25, %v10490_v36  ;;  %v5478_v58 = vor.u32 8388608, %v5477_v35 }
 0x6d1   : > { %v5413_v12 = vadd.s32 %v5412_v8, %v5408_v3  ;;  %v5484_v38 = vand.u32 31, %v5482_v22  ;;  %v5272_v61 = vshrl.u32 %v5254_v37, %v5270_v4  ;;  %v11277_v51 = vand.u32 2147483647, %v10542_v32 }
 0x6d2   : > { %v5275_v29 = vadd.s32 127, %v5274_v52  ;;  %v5628_v53 = vand.u32 2139095040, %v10542_v32  ;;  %v10567_v17 = vshrl.u32 %v5482_v22, 5  ;;  %v5271_v4 = vshll.u32 %v10495_v41, %v5269_v10 }
 0x6d3   : > { %v5414_v48 = vadd.s32 536870912, %v5413_v12  ;;  %v5485_v63 = vsub.s32 32, %v5484_v38  ;;  %v5487_v36 = vshll.u32 %v11575_v59, %v5484_v38  ;;  %v5490_v21 = vshll.u32 %v11576_v18, %v5484_v38 }
 0x6d4   : > { %v5493_v15 = vshll.u32 %v11578_v16, %v5484_v38  ;;  %v5496_v57 = vshll.u32 %v11563_v11, %v5484_v38  ;;  %v5499_v54 = vshll.u32 %v11611_v39, %v5484_v38  ;;  %v10583_v3 = vadd.s32 %v5404_v9, %v5385_v7 }
 0x6d5   : > { %v10572_v27 = vshrl.u32 %v5414_v48, 30  ;;  %v5488_v40 = vshrl.u32 %v11576_v18, %v5485_v63  ;;  %v5491_v56 = vshrl.u32 %v11578_v16, %v5485_v63  ;;  %v5494_v25 = vshrl.u32 %v11563_v11, %v5485_v63 }
 0x6d6   : > { %v5497_v20 = vshrl.u32 %v11611_v39, %v5485_v63  ;;  %v5500_v26 = vshrl.u32 %v11612_v33, %v5485_v63  ;;  %v10585_v48 = vor.u32 %v5272_v61, %v5271_v4  ;;  %vm5502_vm6 = vcmp.lt.s32.totalorder %v10567_v17, 1 }
 0x6d7   : > { %v5416_v49 = vshll.u32 %v10572_v27, 30  ;;  %v5489_v35 = vor.u32 %v5488_v40, %v5487_v36  ;;  %v5492_v52 = vor.u32 %v5491_v56, %v5490_v21  ;;  %v5495_v37 = vor.u32 %v5494_v25, %v5493_v15 }
 0x6d8   : > { %v5498_v8 = vor.u32 %v5497_v20, %v5496_v57  ;;  %v5501_v22 = vor.u32 %v5500_v26, %v5499_v54  ;;  %v10590_v38 = vshll.u32 %v5478_v58, 8  ;;  %v5276_v28 = vshll.u32 %v5275_v29, 23 }
 0x6d9   : > { %v10587_v50 = vsub.s32 %v5413_v12, %v5416_v49  ;;  %vm5505_vm10 = vcmp.lt.s32.totalorder %v10567_v17, 4  ;;  %v5510_v41 = vsel %vm5502_vm6, %v5489_v35, %v5492_v52  ;;  %v5629_v10 = vshrl.u32 %v5628_v53, 23 }
 0x6da   : > { %vm5504_vm13 = vcmp.lt.s32.totalorder %v10567_v17, 3  ;;  %v5511_v9 = vsel %vm5505_vm10, %v5498_v8, 920167782  ;;  %vm5503_vm15 = vcmp.lt.s32.totalorder %v10567_v17, 2  ;;  %v5514_v61 = vsel %vm5502_vm6, %v5492_v52, %v5495_v37 }
 0x6db   : > { %vm5418_vm4 = vcmp.lt.s32.totalorder %v10587_v50, 0  ;;  %v5419_v7 = vsub.s32 0, %v10587_v50  ;;  %v5512_v12 = vsel %vm5504_vm13, %v5495_v37, %v5511_v9  ;;  %v5515_v58 = vsel %vm5505_vm10, %v5501_v22, 1326507024 }
 0x6dc   : > { %v5513_v53 = vsel %vm5503_vm15, %v5510_v41, %v5512_v12  ;;  %v5516_v36 = vsel %vm5504_vm13, %v5498_v8, %v5515_v58  ;;  %v5519_v21 = vand.u32 65535, %v10590_v38  ;;  %v5520_v25 = vshrl.u32 %v10590_v38, 16 }
 0x6dd   : > { %v5420_v29 = vsel %vm5418_vm4, %v5419_v7, %v10587_v50  ;;  %v5517_v40 = vsel %vm5503_vm15, %v5514_v61, %v5516_v36  ;;  %v5543_v56 = vand.u32 65535, %v5513_v53  ;;  %v5544_v57 = vshrl.u32 %v5513_v53, 16 }
 0x6de   : > { %v5421_v15 = vclz %v5420_v29  ;;  %v5521_v20 = vand.u32 65535, %v5517_v40  ;;  %v5522_v54 = vshrl.u32 %v5517_v40, 16  ;;  %v10618_v26 = vand.u32 8388607, %v11277_v51 }
 0x6df   : > { %v10620_v4 = vor.u32 4788187, %v5276_v28  ;;  %v5546_v8 = vmul.u32 %v5544_v57, %v5519_v21  ;;  %v6070_v22 = vadd.s32 4294967169, %v5629_v10  ;;  %v5486_v41 = vshrl.u32 %v11575_v59, %v5485_v63 }
 0x6e0   : > { %v6065_v49 = vadd.s32 4294967294, %v5421_v15  ;;  %v5507_v7 = vsel %vm5505_vm10, %v5495_v37, 2102212464  ;;  %v5524_v9 = vmul.u32 %v5522_v54, %v5519_v21  ;;  %v5525_v12 = vmul.u32 %v5521_v20, %v5520_v25 }
 0x6e1   : > { %v5547_v58 = vmul.u32 %v5543_v56, %v5520_v25  ;;  %v5549_v29 = vshll.u32 %v5546_v8, 16  ;;  %v5506_v28 = vsel %vm5502_vm6, %v5486_v41, %v5489_v35  ;;  %v5523_v36 = vmul.u32 %v5521_v20, %v5519_v21 }
 0x6e2   : > { %vm6066_vm11 = vcmp.lt.s32.totalorder %v6065_v49, 0  ;;  %v5527_v15 = vshll.u32 %v5524_v9, 16  ;;  %v5508_v63 = vsel %vm5504_vm13, %v5492_v52, %v5507_v7  ;;  %v5526_v10 = vmul.u32 %v5522_v54, %v5520_v25 }
 0x6e3   : > { %v10626_v53 = vsel %vm6066_vm11, 0, %v6065_v49  ;;  %v5545_v40 = vmul.u32 %v5543_v56, %v5519_v21  ;;  %v5635_v37 = vadd.s32 1, %v6070_v22  ;;  %v5529_v51 = vshll.u32 %v5525_v12, 16 }
 0x6e4   : > { %vm5531_vm12 = vc.u32 %v5523_v36, %v5527_v15  ;;  %v5533_v0 = vadd.s32 %v5527_v15, %v5523_v36  ;;  %v5548_v61 = vmul.u32 %v5544_v57, %v5520_v25  ;;  %v5429_v23 = vsub.s32 4294967266, %v10626_v53 }
 0x6e5   : > { %v5532_v49 = vsel %vm5531_vm12, 1, %v11317_v5  ;;  %v5551_v47 = vshll.u32 %v5547_v58, 16  ;;  %vm5553_vm2 = vc.u32 %v5545_v40, %v5549_v29  ;;  %v5555_v20 = vadd.s32 %v5549_v29, %v5545_v40 }
 0x6e6   : > { %v5534_v46 = vadd.s32 %v5532_v49, %v5526_v10  ;;  %vm5535_vm3 = vc.u32 %v5533_v0, %v5529_v51  ;;  %v5554_v35 = vsel %vm5553_vm2, 1, %v11317_v5  ;;  %v5509_v52 = vsel %vm5503_vm15, %v5506_v28, %v5508_v63 }
 0x6e7   : > { %v5528_v21 = vshrl.u32 %v5524_v9, 16  ;;  %v5536_v56 = vsel %vm5535_vm3, 1, %v11317_v5  ;;  %v5556_v54 = vadd.s32 %v5554_v35, %v5548_v61  ;;  %v5425_v57 = vsub.s32 32, %v10626_v53 }
 0x6e8   : > { %v5538_v25 = vadd.s32 %v5536_v56, %v5534_v46  ;;  %vm5557_vm9 = vc.u32 %v5555_v20, %v5551_v47  ;;  %vm5636_vm7 = vcmp.gt.s32.totalorder %v5635_v37, 0  ;;  %v5430_v22 = vadd.s32 127, %v5429_v23 }
 0x6e9   : > { %v5550_v41 = vshrl.u32 %v5546_v8, 16  ;;  %v5558_v7 = vsel %vm5557_vm9, 1, %v11317_v5  ;;  %v5637_v0 = vsel %vm5636_vm7, %v5635_v37, 0  ;;  %v5530_v51 = vshrl.u32 %v5525_v12, 16 }
 0x6ea   : > { %v5539_v36 = vadd.s32 %v5538_v25, %v5528_v21  ;;  %v5560_v29 = vadd.s32 %v5558_v7, %v5556_v54  ;;  %v5639_v15 = vand.u32 31, %v5637_v0  ;;  %v5278_v17 = vand.u32 2147483647, %v10620_v4 }
 0x6eb   : > { %v5552_v9 = vshrl.u32 %v5547_v58, 16  ;;  %v5563_v28 = vmul.u32 %v10590_v38, %v5509_v52  ;;  %v5633_v61 = vor.u32 8388608, %v10618_v26  ;;  %v5427_v46 = vshrl.u32 %v10583_v3, %v5425_v57 }
 0x6ec   : > { %v5540_v63 = vadd.s32 %v5539_v36, %v5530_v51  ;;  %v5561_v10 = vadd.s32 %v5560_v29, %v5550_v41  ;;  %v5640_v23 = vsub.s32 32, %v5639_v15  ;;  %v5431_v8 = vshll.u32 %v5430_v22, 23 }
 0x6ed   : > { %v5559_v40 = vadd.s32 %v5555_v20, %v5551_v47  ;;  %v10644_v49 = vshrl.u32 %v5637_v0, 5  ;;  %v5642_v12 = vshll.u32 %v11575_v59, %v5639_v15  ;;  %v5645_v35 = vshll.u32 %v11576_v18, %v5639_v15 }
 0x6ee   : > { %v5562_v37 = vadd.s32 %v5561_v10, %v5552_v9  ;;  %v5648_v4 = vshll.u32 %v11578_v16, %v5639_v15  ;;  %v5651_v38 = vshll.u32 %v11563_v11, %v5639_v15  ;;  %v5643_v26 = vshrl.u32 %v11576_v18, %v5640_v23 }
 0x6ef   : > { %vm5565_vm6 = vc.u32 %v5540_v63, %v5559_v40  ;;  %v5646_v3 = vshrl.u32 %v11578_v16, %v5640_v23  ;;  %v5649_v58 = vshrl.u32 %v11563_v11, %v5640_v23  ;;  %v11630_v47 = vand.u32 2147483647, %v10095_v55 }
 0x6f0   : > { %v5566_v52 = vadd.s32 1, %v5562_v37  ;;  %v5652_v21 = vshrl.u32 %v11611_v39, %v5640_v23  ;;  %v5654_v56 = vshll.u32 %v11611_v39, %v5639_v15  ;;  %v5655_v54 = vshrl.u32 %v11612_v33, %v5640_v23 }
 0x6f1   : > { %vm10655_vm10 = vcmp.le.f32.partialorder %v11630_v47, 0.7853982  ;;  %v5426_v18 = vshll.u32 %v10587_v50, %v10626_v53  ;;  %v10664_v57 = vor.u32 %v5643_v26, %v5642_v12  ;;  %v10666_v16 = vor.u32 %v5646_v3, %v5645_v35 }
 0x6f2   : > { %v10668_v11 = vor.u32 %v5649_v58, %v5648_v4  ;;  %v5432_v25 = vor.u32 4788187, %v5431_v8  ;;  %v5567_v22 = vsel %vm5565_vm6, %v5566_v52, %v5562_v37  ;;  %v5653_v41 = vor.u32 %v5652_v21, %v5651_v38 }
 0x6f3   : > { %v5656_v7 = vor.u32 %v5655_v54, %v5654_v56  ;;  %v11633_v0 = vand.u32 2147483647, %v10537_v1  ;;  %v11634_v51 = vcvt.s32.f32 %v10535_v24  ;;  %v5428_v33 = vor.u32 %v5427_v46, %v5426_v18 }
 0x6f4   : > { %v5568_v36 = vadd.s32 %v5567_v22, %v5563_v28  ;;  %vm5657_vm4 = vcmp.lt.s32.totalorder %v10644_v49, 1  ;;  %v11635_v50 = vcvt.s32.f32 %v10585_v48  ;;  %vm5660_vm13 = vcmp.lt.s32.totalorder %v10644_v49, 4 }
 0x6f5   : > { %v10674_v39 = vmul.f32 %v11634_v51, %v11633_v0  ;;  %v5665_v29 = vsel %vm5657_vm4, %v10664_v57, %v10666_v16  ;;  %v10686_v1 = vshll.u32 %v5633_v61, 8  ;;  %vm5659_vm15 = vcmp.lt.s32.totalorder %v10644_v49, 3 }
 0x6f6   : > { %v10679_v53 = vmul.f32 %v11635_v50, %v5278_v17  ;;  %v5569_v24 = vadd.s32 536870912, %v5568_v36  ;;  %v5666_v15 = vsel %vm5660_vm13, %v5653_v41, 920167782  ;;  %v5669_v48 = vsel %vm5657_vm4, %v10666_v16, %v10668_v11 }
 0x6f7   : > { %v5433_v17 = vand.u32 2147483647, %v5432_v25  ;;  %vm5658_vm11 = vcmp.lt.s32.totalorder %v10644_v49, 2  ;;  %v5667_v9 = vsel %vm5659_vm15, %v10668_v11, %v5666_v15  ;;  %v5670_v28 = vsel %vm5660_vm13, %v5656_v7, 1326507024 }
 0x6f8   : > { %v5435_v61 = vcvt.s32.f32 %v5428_v33  ;;  %v10701_v46 = vshrl.u32 %v5569_v24, 30  ;;  %v5668_v10 = vsel %vm5658_vm11, %v5665_v29, %v5667_v9  ;;  %v5671_v8 = vsel %vm5659_vm15, %v5653_v41, %v5670_v28 }
 0x6f9   : > { %v5672_v12 = vsel %vm5658_vm11, %v5669_v48, %v5671_v8  ;;  %v5674_v37 = vand.u32 65535, %v10686_v1  ;;  %v5698_v35 = vand.u32 65535, %v5668_v10  ;;  %v5699_v4 = vshrl.u32 %v5668_v10, 16 }
 0x6fa   : > { %v10714_v38 = vsel %vm10655_vm10, %v10095_v55, %v10561_v34  ;;  %v5571_v26 = vshll.u32 %v10701_v46, 30  ;;  %v5676_v3 = vand.u32 65535, %v5672_v12  ;;  %v5677_v58 = vshrl.u32 %v5672_v12, 16 }
 0x6fb   : > { %v5127_v47 = vxor.u32 2147483648, %v10674_v39  ;;  %v10718_v52 = vmul.f32 %v5435_v61, %v5433_v17  ;;  %v5675_v21 = vshrl.u32 %v10686_v1, 16  ;;  %v5701_v56 = vmul.u32 %v5699_v4, %v5674_v37 }
 0x6fc   : > { %v5282_v54 = vxor.u32 2147483648, %v10679_v53  ;;  %v5564_v18 = vadd.s32 %v5559_v40, %v5540_v63  ;;  %v10722_v25 = vsub.s32 %v5568_v36, %v5571_v26  ;;  %v5679_v22 = vmul.u32 %v5677_v58, %v5674_v37 }
 0x6fd   : > { %v5641_v34 = vshrl.u32 %v11575_v59, %v5640_v23  ;;  %v5680_v41 = vmul.u32 %v5676_v3, %v5675_v21  ;;  %v5702_v7 = vmul.u32 %v5698_v35, %v5675_v21  ;;  %v5704_v0 = vshll.u32 %v5701_v56, 16 }
 0x6fe   : > { %vm5573_vm12 = vcmp.lt.s32.totalorder %v10722_v25, 0  ;;  %v5574_v51 = vsub.s32 0, %v10722_v25  ;;  %v5678_v33 = vmul.u32 %v5676_v3, %v5674_v37  ;;  %v5682_v50 = vshll.u32 %v5679_v22, 16 }
 0x6ff   : > { %v5437_v29 = vxor.u32 2147483648, %v10718_v52  ;;  %v5681_v24 = vmul.u32 %v5677_v58, %v5675_v21  ;;  %v5700_v15 = vmul.u32 %v5698_v35, %v5674_v37  ;;  %v5703_v48 = vmul.u32 %v5699_v4, %v5675_v21 }
 0x700   : > { %v5575_v63 = vsel %vm5573_vm12, %v5574_v51, %v10722_v25  ;;  %v5684_v40 = vshll.u32 %v5680_v41, 16  ;;  %vm5686_vm2 = vc.u32 %v5678_v33, %v5682_v50  ;;  %v5688_v36 = vadd.s32 %v5682_v50, %v5678_v33 }
 0x701   : > { %vm5162_vm3 = vcmp.lt.s32.totalorder %v10291_v45, 0  ;;  %vm5472_vm9 = vcmp.lt.s32.totalorder %v10498_v43, 0  ;;  %v5576_v59 = vclz %v5575_v63  ;;  %v5687_v23 = vsel %vm5686_vm2, 1, %v11317_v5 }
 0x702   : > { %v5706_v17 = vshll.u32 %v5702_v7, 16  ;;  %vm5708_vm7 = vc.u32 %v5700_v15, %v5704_v0  ;;  %v5689_v9 = vadd.s32 %v5687_v23, %v5681_v24  ;;  %vm5690_vm6 = vc.u32 %v5688_v36, %v5684_v40 }
 0x703   : > { %v5709_v28 = vsel %vm5708_vm7, 1, %v11317_v5  ;;  %v5710_v61 = vadd.s32 %v5704_v0, %v5700_v15  ;;  %vm5007_vm0 = vcmp.lt.s32.totalorder %v10121_v13, 0  ;;  %vm5317_vm12 = vcmp.lt.s32.totalorder %v10314_v62, 0 }
 0x704   : > { %v6068_v10 = vadd.s32 4294967294, %v5576_v59  ;;  %v5661_v8 = vsel %vm5657_vm4, %v5641_v34, %v10664_v57  ;;  %v5691_v12 = vsel %vm5690_vm6, 1, %v11317_v5  ;;  %v5711_v37 = vadd.s32 %v5709_v28, %v5703_v48 }
 0x705   : > { %v5662_v35 = vsel %vm5660_vm13, %v10668_v11, 2102212464  ;;  %v5683_v4 = vshrl.u32 %v5679_v22, 16  ;;  %v5693_v26 = vadd.s32 %v5691_v12, %v5689_v9  ;;  %vm5712_vm2 = vc.u32 %v5710_v61, %v5706_v17 }
 0x706   : > { %v11636_v3 = vand.u32 2147483647, %v10291_v45  ;;  %vm6069_vm8 = vcmp.lt.s32.totalorder %v6068_v10, 0  ;;  %v5594_v21 = vsub.s32 4, %v10701_v46  ;;  %v5685_v57 = vshrl.u32 %v5680_v41, 16 }
 0x707   : > { %v5713_v34 = vsel %vm5712_vm2, 1, %v11317_v5  ;;  %v11639_v0 = vand.u32 2147483647, %v10314_v62  ;;  %v5579_v11 = vsel %vm6069_vm8, 0, %v6068_v10  ;;  %v5694_v22 = vadd.s32 %v5693_v26, %v5683_v4 }
 0x708   : > { %vm10744_vm7 = vcmp.le.f32.partialorder %v11636_v3, 0.7853982  ;;  %v5705_v33 = vshrl.u32 %v5701_v56, 16  ;;  %v5715_v50 = vadd.s32 %v5713_v34, %v5711_v37  ;;  %v11642_v24 = vand.u32 2147483647, %v10050_v60 }
 0x709   : > { %vm10752_vm4 = vcmp.le.f32.partialorder %v11639_v0, 0.7853982  ;;  %v11645_v41 = vand.u32 2147483647, %v10121_v13  ;;  %v5580_v48 = vsub.s32 32, %v5579_v11  ;;  %v5584_v63 = vsub.s32 4294967266, %v5579_v11 }
 0x70a   : > { %vm10758_vm13 = vcmp.le.f32.partialorder %v11642_v24, 0.7853982  ;;  %v5663_v40 = vsel %vm5659_vm15, %v10666_v16, %v5662_v35  ;;  %v5284_v56 = vsub.s32 4, %v10473_v2  ;;  %v10772_v36 = vadd.s32 %v5694_v22, %v5685_v57 }
 0x70b   : > { %vm10764_vm6 = vcmp.le.f32.partialorder %v11645_v41, 0.7853982  ;;  %v5707_v59 = vshrl.u32 %v5702_v7, 16  ;;  %v5716_v23 = vadd.s32 %v5715_v50, %v5705_v33  ;;  %v5439_v9 = vsub.s32 4, %v10572_v27 }
 0x70c   : > { %v5581_v28 = vshll.u32 %v10722_v25, %v5579_v11  ;;  %v5582_v10 = vshrl.u32 %v5564_v18, %v5580_v48  ;;  %v5585_v12 = vadd.s32 127, %v5584_v63  ;;  %v5714_v37 = vadd.s32 %v5710_v61, %v5706_v17 }
 0x70d   : > { %v5283_v4 = vsel %vm5162_vm3, %v5282_v54, %v10679_v53  ;;  %v5595_v16 = vsel %vm5472_vm9, %v5594_v21, %v10701_v46  ;;  %v5664_v7 = vsel %vm5658_vm11, %v5661_v8, %v5663_v40  ;;  %v5717_v35 = vadd.s32 %v5716_v23, %v5707_v59 }
 0x70e   : > { %v5583_v26 = vor.u32 %v5582_v10, %v5581_v28  ;;  %v5586_v3 = vshll.u32 %v5585_v12, 23  ;;  %vm5720_vm8 = vc.u32 %v10772_v36, %v5714_v37  ;;  %v5285_v18 = vsel %vm5162_vm3, %v5284_v56, %v10473_v2 }
 0x70f   : > { %v5128_v53 = vsel %vm5007_vm0, %v5127_v47, %v10674_v39  ;;  %v11648_v46 = vand.u32 2147483647, %v10498_v43  ;;  %v5721_v54 = vadd.s32 1, %v5717_v35  ;;  %v5440_v25 = vsel %vm5317_vm12, %v5439_v9, %v10572_v27 }
 0x710   : > { %v5438_v2 = vsel %vm5317_vm12, %v5437_v29, %v10718_v52  ;;  %v5587_v17 = vor.u32 4788187, %v5586_v3  ;;  %v5718_v47 = vmul.u32 %v10686_v1, %v5664_v7  ;;  %v10814_v61 = vmul.f32 %v10714_v38, %v10714_v38 }
 0x711   : > { %vm10797_vm15 = vcmp.le.f32.partialorder %v11648_v46, 0.7853982  ;;  %v10819_v27 = vsel %vm10744_vm7, %v10291_v45, %v5283_v4  ;;  %v5722_v8 = vsel %vm5720_vm8, %v5721_v54, %v5717_v35  ;;  %v5287_v21 = vsel %vm10744_vm7, 0, %v5285_v18 }
 0x712   : > { %v5597_v39 = vsel %vm10797_vm15, 0, %v5595_v16  ;;  %v5588_v52 = vand.u32 2147483647, %v5587_v17  ;;  %v5590_v29 = vcvt.s32.f32 %v5583_v26  ;;  %v5723_v57 = vadd.s32 %v5722_v8, %v5718_v47 }
 0x713   : > { %v5442_v34 = vsel %vm10752_vm4, 0, %v5440_v25  ;;  %v10829_v1 = vsel %vm10758_vm13, %v10050_v60, %v10554_v19  ;;  %v10834_v0 = vsel %vm10764_vm6, %v10121_v13, %v5128_v53  ;;  %v10839_v58 = vsel %vm10752_vm4, %v10314_v62, %v5438_v2 }
 0x714   : > { %v5614_v11 = vadd.s32 3, %v5597_v39  ;;  %v5591_v22 = vmul.f32 %v5590_v29, %v5588_v52  ;;  %v5724_v33 = vadd.s32 536870912, %v5723_v57  ;;  %v5304_v50 = vadd.s32 3, %v5287_v21 }
 0x715   : > { %v4974_v24 = vsub.s32 4, %v10256_v42  ;;  %v10844_v19 = vmul.f32 %v10548_v44, %v10548_v44  ;;  %v5288_v41 = vmul.f32 %v10819_v27, %v10819_v27  ;;  %v5459_v48 = vadd.s32 3, %v5442_v34 }
 0x716   : > { %v4979_v63 = vmul.f32 -0.001358992, %v10814_v61  ;;  %v10851_v51 = vmul.f32 %v10829_v1, %v10829_v1  ;;  %v10855_v40 = vmul.f32 %v10834_v0, %v10834_v0  ;;  %v5592_v56 = vxor.u32 2147483648, %v5591_v22 }
 0x717   : > { %v5725_v59 = vshrl.u32 %v5724_v33, 30  ;;  %v10859_v23 = vmul.f32 %v10839_v58, %v10839_v58  ;;  %vm5627_vm11 = vcmp.lt.s32.totalorder %v10542_v32, 0  ;;  %v10862_v9 = vand.u32 3, %v5614_v11 }
 0x718   : > { %v4980_v28 = vadd.f32 0.041655596, %v4979_v63  ;;  %v4986_v10 = vmul.f32 -0.00019511016, %v10814_v61  ;;  %v5593_v12 = vsel %vm5472_vm9, %v5592_v56, %v5591_v22  ;;  %v10867_v16 = vand.u32 3, %v5304_v50 }
 0x719   : > { %v5726_v4 = vshll.u32 %v5725_v59, 30  ;;  %v10872_v7 = vsel %vm4852_vm5, %v4974_v24, %v10256_v42  ;;  %v10877_v35 = vsel %vm10797_vm15, %v10498_v43, %v5593_v12  ;;  %v5289_v26 = vmul.f32 -0.001358992, %v5288_v41 }
 0x71a   : > { %v5296_v3 = vmul.f32 -0.00019511016, %v5288_v41  ;;  %v10879_v18 = vand.u32 3, %v5459_v48  ;;  %v10883_v53 = vmul.f32 %v10877_v35, %v10877_v35  ;;  %v4981_v54 = vmul.f32 %v4980_v28, %v10814_v61 }
 0x71b   : > { %v10885_v46 = vsub.s32 %v5723_v57, %v5726_v4  ;;  %v4664_v42 = vsub.s32 4, %v10090_v30  ;;  %v5719_v25 = vadd.s32 %v5714_v37, %v10772_v36  ;;  %v5290_v2 = vadd.f32 0.041655596, %v5289_v26 }
 0x71c   : > { %v5297_v49 = vadd.f32 0.008332121, %v5296_v3  ;;  %v4987_v17 = vadd.f32 0.008332121, %v4986_v10  ;;  %v5606_v39 = vmul.f32 -0.00019511016, %v10883_v53  ;;  %vm5303_vm4 = vweird.f32 %v10291_v45 }
 0x71d   : > { %v11651_v47 = vand.u32 2147483647, %v10542_v32  ;;  %vm5728_vm3 = vcmp.lt.s32.totalorder %v10885_v46, 0  ;;  %v5729_v21 = vsub.s32 0, %v10885_v46  ;;  %v5749_v52 = vsub.s32 4, %v5725_v59 }
 0x71e   : > { %v5291_v29 = vmul.f32 %v5290_v2, %v5288_v41  ;;  %v5298_v57 = vmul.f32 %v5297_v49, %v5288_v41  ;;  %v5444_v36 = vmul.f32 -0.001358992, %v10859_v23  ;;  %v4977_v37 = vsel %vm10655_vm10, 0, %v10872_v7 }
 0x71f   : > { %vm10893_vm5 = vcmp.le.f32.partialorder %v11651_v47, 0.7853982  ;;  %v5607_v34 = vadd.f32 0.008332121, %v5606_v39  ;;  %v5730_v11 = vsel %vm5728_vm3, %v5729_v21, %v10885_v46  ;;  %v5451_v22 = vmul.f32 -0.00019511016, %v10859_v23 }
 0x720   : > { %v4982_v33 = vadd.f32 -0.4999988, %v4981_v54  ;;  %v5731_v50 = vclz %v5730_v11  ;;  %v5292_v24 = vadd.f32 -0.4999988, %v5291_v29  ;;  %v5299_v48 = vadd.f32 -0.16666654, %v5298_v57 }
 0x721   : > { %v5445_v63 = vadd.f32 0.041655596, %v5444_v36  ;;  %v5608_v56 = vmul.f32 %v5607_v34, %v10883_v53  ;;  %v10908_v28 = vsel %vm5627_vm11, %v5749_v52, %v5725_v59  ;;  %v4988_v10 = vmul.f32 %v4987_v17, %v10814_v61 }
 0x722   : > { %v10914_v12 = vsel %vm4542_vm1, %v4664_v42, %v10090_v30  ;;  %v6071_v4 = vadd.s32 4294967294, %v5731_v50  ;;  %v5599_v26 = vmul.f32 -0.001358992, %v10883_v53  ;;  %v5293_v3 = vmul.f32 %v5292_v24, %v5288_v41 }
 0x723   : > { %v5300_v54 = vmul.f32 %v5299_v48, %v5288_v41  ;;  %v5609_v2 = vadd.f32 -0.16666654, %v5608_v56  ;;  %vm5310_vm9 = vcmp.eq.s32.totalorder %v10867_v16, 2  ;;  %v5446_v49 = vmul.f32 %v5445_v63, %v10859_v23 }
 0x724   : > { %v5452_v39 = vadd.f32 0.008332121, %v5451_v22  ;;  %v4983_v59 = vmul.f32 %v4982_v33, %v10814_v61  ;;  %vm6072_vm12 = vcmp.lt.s32.totalorder %v6071_v4, 0  ;;  %v5600_v17 = vadd.f32 0.041655596, %v5599_v26 }
 0x725   : > { %v5294_v47 = vadd.f32 1.0, %v5293_v3  ;;  %v5301_v21 = vadd.f32 1.0, %v5300_v54  ;;  %vm5307_vm1 = vcmp.eq.s32.totalorder %v10867_v16, 0  ;;  %v5610_v30 = vmul.f32 %v5609_v2, %v10883_v53 }
 0x726   : > { %v5734_v42 = vsel %vm6072_vm12, 0, %v6071_v4  ;;  %vm5617_vm2 = vcmp.eq.s32.totalorder %v10862_v9, 0  ;;  %vm5306_vm7 = vcmp.lt.s32.totalorder %v10867_v16, 2  ;;  %v5447_v41 = vadd.f32 -0.4999988, %v5446_v49 }
 0x727   : > { %v5453_v52 = vmul.f32 %v5452_v39, %v10859_v23  ;;  %v5735_v29 = vsub.s32 32, %v5734_v42  ;;  %v5739_v57 = vsub.s32 4294967266, %v5734_v42  ;;  %v5752_v36 = vsel %vm10893_vm5, 0, %v10908_v28 }
 0x728   : > { %v5601_v34 = vmul.f32 %v5600_v17, %v10883_v53  ;;  %v5611_v11 = vadd.f32 1.0, %v5610_v30  ;;  %vm5620_vm8 = vcmp.eq.s32.totalorder %v10862_v9, 2  ;;  %v5302_v22 = vmul.f32 %v5301_v21, %v10819_v27 }
 0x729   : > { %v5448_v33 = vmul.f32 %v5447_v41, %v10859_v23  ;;  %v5454_v50 = vadd.f32 -0.16666654, %v5453_v52  ;;  %v5736_v24 = vshll.u32 %v10885_v46, %v5734_v42  ;;  %v5737_v48 = vshrl.u32 %v5719_v25, %v5735_v29 }
 0x72a   : > { %v5740_v63 = vadd.s32 127, %v5739_v57  ;;  %v5602_v56 = vadd.f32 -0.4999988, %v5601_v34  ;;  %vm5616_vm15 = vcmp.lt.s32.totalorder %v10862_v9, 2  ;;  %v5612_v28 = vmul.f32 %v5611_v11, %v10877_v35 }
 0x72b   : > { %vm5613_vm3 = vweird.f32 %v10498_v43  ;;  %v5311_v4 = vxor.u32 2147483648, %v5294_v47  ;;  %v5455_v26 = vmul.f32 %v5454_v50, %v10859_v23  ;;  %v4984_v3 = vadd.f32 1.0, %v4983_v59 }
 0x72c   : > { %v5738_v54 = vor.u32 %v5737_v48, %v5736_v24  ;;  %v5741_v27 = vshll.u32 %v5740_v63, 23  ;;  %v5603_v2 = vmul.f32 %v5602_v56, %v10883_v53  ;;  %v4989_v49 = vadd.f32 -0.16666654, %v4988_v10  ;;  %v11654_v24 = vld [vmem:[#allocation37_spill] sm:$0xff]  ;;  %v11655_v56 = vld [vmem:[#allocation43_spill] sm:$0xff] }
 0x72d   : > { %v5618_v39 = vxor.u32 2147483648, %v5612_v28  ;;  %v5308_v46 = vxor.u32 2147483648, %v5302_v22  ;;  %v10939_v25 = vadd.f32 1.0, %v5448_v33  ;;  %v5456_v17 = vadd.f32 1.0, %v5455_v26 }
 0x72e   : > { %v5742_v21 = vor.u32 4788187, %v5741_v27  ;;  %v5745_v30 = vcvt.s32.f32 %v5738_v54  ;;  %v5604_v42 = vadd.f32 1.0, %v5603_v2  ;;  %v5312_v35 = vsel %vm5310_vm9, %v5311_v4, %v5302_v22 }
 0x72f   : > { %v5309_v23 = vsel %vm5307_vm1, %v5294_v47, %v5308_v46  ;;  %v5457_v59 = vmul.f32 %v5456_v17, %v10839_v58  ;;  %v4990_v41 = vmul.f32 %v4989_v49, %v10814_v61  ;;  %v4994_v53 = vadd.s32 3, %v4977_v37 }
 0x730   : > { %v5743_v10 = vand.u32 2147483647, %v5742_v21  ;;  %v5619_v52 = vsel %vm5617_vm2, %v5604_v42, %v5618_v39  ;;  %v5621_v29 = vxor.u32 2147483648, %v5604_v42  ;;  %v5313_v57 = vsel %vm5306_vm7, %v5309_v23, %v5312_v35  ;;  %v11656_v21 = vld [vmem:[#allocation55_spill] sm:$0xff] }
 0x731   : > { %vm4993_vm9 = vweird.f32 %v10095_v55  ;;  %v5314_v58 = vsel %vm5303_vm4, nan, %v5313_v57  ;;  %vm5462_vm12 = vcmp.eq.s32.totalorder %v10879_v18, 0  ;;  %v5463_v61 = vxor.u32 2147483648, %v5457_v59 }
 0x732   : > { %v4991_v20 = vadd.f32 1.0, %v4990_v41  ;;  %v5746_v47 = vmul.f32 %v5745_v30, %v5743_v10  ;;  %v5622_v7 = vsel %vm5620_vm8, %v5621_v29, %v5612_v28  ;;  %v4995_v37 = vand.u32 3, %v4994_v53 }
 0x733   : > { %v4667_v34 = vsel %vm10509_vm14, 0, %v10914_v12  ;;  %v5769_v16 = vadd.s32 3, %v5752_v36  ;;  %v5623_v11 = vsel %vm5616_vm15, %v5619_v52, %v5622_v7  ;;  %v5001_v22 = vxor.u32 2147483648, %v4984_v3 }
 0x734   : > { %v4992_v45 = vmul.f32 %v4991_v20, %v10714_v38  ;;  %v5747_v33 = vxor.u32 2147483648, %v5746_v47  ;;  %v5624_v50 = vsel %vm5613_vm3, nan, %v5623_v11  ;;  %v5784_v48 = vadd.f32 %v5314_v58, %v11654_v24 }
 0x735   : > { %vm5465_vm10 = vcmp.eq.s32.totalorder %v10879_v18, 2  ;;  %v5466_v63 = vxor.u32 2147483648, %v10939_v25  ;;  %v5786_v31 = vadd.f32 %v5624_v50, %v11655_v56  ;;  %vm5461_vm14 = vcmp.lt.s32.totalorder %v10879_v18, 2 }
 0x736   : > { %v5464_v9 = vsel %vm5462_vm12, %v10939_v25, %v5463_v61  ;;  %vm4996_vm1 = vcmp.lt.s32.totalorder %v4995_v37, 2  ;;  %v4998_v38 = vxor.u32 2147483648, %v4992_v45  ;;  %v5748_v43 = vsel %vm5627_vm11, %v5747_v33, %v5746_v47 }
 0x737   : > { %vm4997_vm2 = vcmp.eq.s32.totalorder %v4995_v37, 0  ;;  %vm5000_vm7 = vcmp.eq.s32.totalorder %v4995_v37, 2  ;;  %v5129_v12 = vsub.s32 4, %v10328_v14  ;;  %v10983_v36 = vsel %vm10893_vm5, %v10542_v32, %v5748_v43  ;;  %5811 = vmatpush.msra.mxu0 %v5786_v31  ;;  %v11657_v31 = vld [vmem:[#allocation18_spill] sm:$0xff] }
 0x738   : > { %v4999_v28 = vsel %vm4997_vm2, %v4984_v3, %v4998_v38  ;;  %v5002_v4 = vsel %vm5000_vm7, %v5001_v22, %v4992_v45  ;;  %v5134_v26 = vmul.f32 -0.001358992, %v10855_v40  ;;  %v5753_v54 = vmul.f32 %v10983_v36, %v10983_v36 }
 0x739   : > { %v5003_v27 = vsel %vm4996_vm1, %v4999_v28, %v5002_v4  ;;  %v5130_v2 = vsel %vm5007_vm0, %v5129_v12, %v10328_v14  ;;  %v5141_v49 = vmul.f32 -0.00019511016, %v10855_v40  ;;  %5812 = vmatpush.msra.mxu0 %v5784_v48  ;;  %v4669_v46 = vmul.f32 -0.001358992, %v10844_v19 }
 0x73a   : > { %v5004_v8 = vsel %vm4993_vm9, nan, %v5003_v27  ;;  %v5132_v3 = vsel %vm10764_vm6, 0, %v5130_v2  ;;  %v5135_v39 = vadd.f32 0.041655596, %v5134_v26  ;;  %v5761_v25 = vmul.f32 -0.00019511016, %v5753_v54 }
 0x73b   : > { %v5754_v17 = vmul.f32 -0.001358992, %v5753_v54  ;;  %v5782_v30 = vadd.f32 %v5004_v8, %v11656_v21  ;;  %v5142_v42 = vadd.f32 0.008332121, %v5141_v49  ;;  %v5149_v14 = vadd.s32 3, %v5132_v3 }
 0x73c   : > { %v5136_v35 = vmul.f32 %v5135_v39, %v10855_v40  ;;  %v4670_v23 = vadd.f32 0.041655596, %v4669_v46  ;;  %v4676_v41 = vmul.f32 -0.00019511016, %v10844_v19  ;;  %v5762_v53 = vadd.f32 0.008332121, %v5761_v25 }
 0x73d   : > { %v5755_v55 = vadd.f32 0.041655596, %v5754_v17  ;;  %v11000_v10 = vand.u32 3, %v5769_v16  ;;  %5813 = vmatpush.msra.mxu0 %v5782_v30  ;;  %v5143_v5 = vmul.f32 %v5142_v42, %v10855_v40  ;;  %v5467_v52 = vsel %vm5465_vm10, %v5466_v63, %v5457_v59 }
 0x73e   : > { %v5137_v29 = vadd.f32 -0.4999988, %v5136_v35  ;;  %v4671_v57 = vmul.f32 %v4670_v23, %v10844_v19  ;;  %v4677_v58 = vadd.f32 0.008332121, %v4676_v41  ;;  %v5763_v61 = vmul.f32 %v5762_v53, %v5753_v54 }
 0x73f   : > { %v5756_v20 = vmul.f32 %v5755_v55, %v5753_v54  ;;  %v5468_v47 = vsel %vm5461_vm14, %v5464_v9, %v5467_v52  ;;  %v5144_v7 = vadd.f32 -0.16666654, %v5143_v5  ;;  %vm5458_vm0 = vweird.f32 %v10314_v62 }
 0x740   : > { %v5138_v37 = vmul.f32 %v5137_v29, %v10855_v40  ;;  %v5150_v16 = vand.u32 3, %v5149_v14  ;;  %v4684_v11 = vadd.s32 3, %v4667_v34  ;;  %v5764_v45 = vadd.f32 -0.16666654, %v5763_v61  ;;  %v11659_v29 = vld [vmem:[#allocation47_spill] sm:$0xff] }
 0x741   : > { %v5757_v22 = vadd.f32 -0.4999988, %v5756_v20  ;;  %v5145_v59 = vmul.f32 %v5144_v7, %v10855_v40  ;;  %v4672_v33 = vadd.f32 -0.4999988, %v4671_v57  ;;  %vm5772_vm6 = vcmp.eq.s32.totalorder %v11000_v10, 0 }
 0x742   : > { %vm5775_vm11 = vcmp.eq.s32.totalorder %v11000_v10, 2  ;;  %v5469_v50 = vsel %vm5458_vm0, nan, %v5468_v47  ;;  %v5139_v24 = vadd.f32 1.0, %v5138_v37  ;;  %v4678_v18 = vmul.f32 %v4677_v58, %v10844_v19 }
 0x743   : > { %v5765_v48 = vmul.f32 %v5764_v45, %v5753_v54  ;;  %v5758_v63 = vmul.f32 %v5757_v22, %v5753_v54  ;;  %vm5771_vm5 = vcmp.lt.s32.totalorder %v11000_v10, 2  ;;  %v5146_v62 = vadd.f32 1.0, %v5145_v59 }
 0x744   : > { %v4673_v34 = vmul.f32 %v4672_v33, %v10844_v19  ;;  %vm5768_vm4 = vweird.f32 %v10542_v32  ;;  %vm5151_vm8 = vcmp.lt.s32.totalorder %v5150_v16, 2  ;;  %v4679_v40 = vadd.f32 -0.16666654, %v4678_v18  ;;  %v11660_v32 = vld [vmem:[#allocation17_spill] sm:$0xff] }
 0x745   : > { %v4685_v56 = vand.u32 3, %v4684_v11  ;;  %v4819_v9 = vsub.s32 4, %v11657_v31  ;;  %v5766_v38 = vadd.f32 1.0, %v5765_v48  ;;  %v5759_v43 = vadd.f32 1.0, %v5758_v63  ;;  %v11661_v11 = vld [vmem:[#allocation35_spill] sm:$0xff]  ;;  %v11662_v33 = vld [vmem:[#allocation49_spill] sm:$0xff] }
 0x746   : > { %v5147_v12 = vmul.f32 %v5146_v62, %v10834_v0  ;;  %v5156_v28 = vxor.u32 2147483648, %v5139_v24  ;;  %vm5148_vm15 = vweird.f32 %v10121_v13  ;;  %v4674_v4 = vadd.f32 1.0, %v4673_v34  ;;  %v5788_v13 = vld [vmem:[%s11104_s9] sm:$0x1] }
 0x747   : > { %v4680_v26 = vmul.f32 %v4679_v40, %v10844_v19  ;;  %v4824_v54 = vmul.f32 -0.001358992, %v10851_v51  ;;  %v4831_v27 = vmul.f32 -0.00019511016, %v10851_v51  ;;  %v5767_v2 = vmul.f32 %v5766_v38, %v10983_v36  ;;  %v11664_v40 = vld [vmem:[#allocation36_spill] sm:$0xff] }
 0x748   : > { %v5776_v49 = vxor.u32 2147483648, %v5759_v43  ;;  %vm5152_vm3 = vcmp.eq.s32.totalorder %v5150_v16, 0  ;;  %v5153_v8 = vxor.u32 2147483648, %v5147_v12  ;;  %vm4683_vm9 = vweird.f32 %v9989_v6 }
 0x749   : > { %vm5155_vm12 = vcmp.eq.s32.totalorder %v5150_v16, 2  ;;  %v4681_v3 = vadd.f32 1.0, %v4680_v26  ;;  %vm11658_vm10 = vcmp.lt.s32.totalorder %v10050_v60, 0  ;;  %v4825_v39 = vadd.f32 0.041655596, %v4824_v54 }
 0x74a   : > { %v4820_v0 = vsel %vm11658_vm10, %v4819_v9, %v11657_v31  ;;  %v5773_v46 = vxor.u32 2147483648, %v5767_v2  ;;  %v5154_v19 = vsel %vm5152_vm3, %v5139_v24, %v5153_v8  ;;  %vm4686_vm14 = vcmp.lt.s32.totalorder %v4685_v56, 2 }
 0x74b   : > { %v4832_v25 = vadd.f32 0.008332121, %v4831_v27  ;;  %v5157_v17 = vsel %vm5155_vm12, %v5156_v28, %v5147_v12  ;;  %v4682_v21 = vmul.f32 %v4681_v3, %v10548_v44  ;;  %v4691_v36 = vxor.u32 2147483648, %v4674_v4 }
 0x74c   : > { %v4826_v30 = vmul.f32 %v4825_v39, %v10851_v51  ;;  %v5774_v42 = vsel %vm5772_vm6, %v5759_v43, %v5773_v46  ;;  %v5777_v35 = vsel %vm5775_vm11, %v5776_v49, %v5767_v2  ;;  %v4822_v14 = vsel %vm10758_vm13, 0, %v4820_v0 }
 0x74d   : > { %v4833_v23 = vmul.f32 %v4832_v25, %v10851_v51  ;;  %v5778_v41 = vsel %vm5771_vm5, %v5774_v42, %v5777_v35  ;;  %v5158_v53 = vsel %vm5151_vm8, %v5154_v19, %v5157_v17  ;;  %vm4687_vm1 = vcmp.eq.s32.totalorder %v4685_v56, 0 }
 0x74e   : > { %v4688_v44 = vxor.u32 2147483648, %v4682_v21  ;;  %v5779_v55 = vsel %vm5768_vm4, nan, %v5778_v41  ;;  %vm4690_vm2 = vcmp.eq.s32.totalorder %v4685_v56, 2  ;;  %v4827_v5 = vadd.f32 -0.4999988, %v4826_v30 }
 0x74f   : > { %v4834_v52 = vadd.f32 -0.16666654, %v4833_v23  ;;  %v5787_v57 = vadd.f32 %v5779_v55, %v11659_v29  ;;  %v4692_v15 = vsel %vm4690_vm2, %v4691_v36, %v4682_v21  ;;  %v4839_v61 = vadd.s32 3, %v4822_v14 }
 0x750   : > { %v4689_v58 = vsel %vm4687_vm1, %v4674_v4, %v4688_v44  ;;  %v5159_v20 = vsel %vm5148_vm15, nan, %v5158_v53  ;;  %v4828_v47 = vmul.f32 %v4827_v5, %v10851_v51  ;;  %v5785_v37 = vadd.f32 %v5469_v50, %v11660_v32 }
 0x751   : > { %v4693_v10 = vsel %vm4686_vm14, %v4689_v58, %v4692_v15  ;;  %v4835_v7 = vmul.f32 %v4834_v52, %v10851_v51  ;;  %5831 = vmatpush.msra.mxu1 %v5787_v57  ;;  %v5783_v24 = vadd.f32 %v5159_v20, %v11662_v33  ;;  %v4840_v18 = vand.u32 3, %v4839_v61 }
 0x752   : > { %v4694_v16 = vsel %vm4683_vm9, nan, %v4693_v10  ;;  %v4829_v22 = vadd.f32 1.0, %v4828_v47  ;;  %vm11663_vm13 = vcmask 261120   ;;  %vm4838_vm11 = vweird.f32 %v10050_v60 }
 0x753   : > { %v5780_v45 = vadd.f32 %v4694_v16, %v11661_v11  ;;  %v4836_v59 = vadd.f32 1.0, %v4835_v7  ;;  %5832 = vmatpush.msra.mxu1 %v5785_v37  ;;  %vm4842_vm7 = vcmp.eq.s32.totalorder %v4840_v18, 0  ;;  %vm4845_vm0 = vcmp.eq.s32.totalorder %v4840_v18, 2  ;;  %vm11665_vm5 = vmmov %vm11663_vm13 }
 0x754   : > { %v4846_v50 = vxor.u32 2147483648, %v4829_v22  ;;  %vm4841_vm6 = vcmp.lt.s32.totalorder %v4840_v18, 2  ;;  %v5845_v9 = vlaneseq  ;;  %vm5842_vm4 = vcmask 1040384  }
 0x755   : > { %5814 = vmatpush.msra.mxu0 %v5780_v45  ;;  %v4837_v51 = vmul.f32 %v4836_v59, %v10829_v1  ;;  %5833 = vmatpush.msra.mxu1 %v5783_v24  ;;  %v5793_v1 = vpop.permute.xlu1 %5792 }
 0x756   : > { %6073 = vmatmul.msk.f32.vlgmr.msra.gmra.mxu0 %vm11663_vm13, %v5788_v13  ;;  %v5795_v31 = vperm.slane %v5793_v1, 0  ;;  %vm5847_vm8 = vcmp.lt.s32.totalorder %v5845_v9, 256 }
 0x757   : > { %v4843_v6 = vxor.u32 2147483648, %v4837_v51  ;;  %v4847_v63 = vsel %vm4845_vm0, %v4846_v50, %v4837_v51 }
 0x759   : > { %v4844_v48 = vsel %vm4842_vm7, %v4829_v22, %v4843_v6 }
 0x75a   : > { %v4848_v62 = vsel %vm4841_vm6, %v4844_v48, %v4847_v63 }
 0x75b   : > { %v4849_v34 = vsel %vm4838_vm11, nan, %v4848_v62 }
 0x75c   : > { %v5781_v56 = vadd.f32 %v4849_v34, %v11664_v40 }
 0x75e   : > { %5834 = vmatpush.msra.mxu1 %v5781_v56 }
 0x75f   : > { %6074 = vmatmul.msk.f32.vlgmr.msra.gmra.mxu1 %vm11665_vm5, %v5788_v13 }
 0x7d3   : > { %v5816_v38 = vpop.f32.mrf.mxu0 }
 0x7d4   : > { %v5817_v12 = vadd.f32 %v5816_v38, %v5795_v31 }
 0x7dc   : > { %v5836_v43 = vpop.f32.mrf.mxu1 }
 0x7dd   : > { %v5837_v60 = vadd.f32 %v5836_v43, %v5795_v31 }
 0x7df   : > { %v5841_v28 = vrot.slane %v5837_v60, 7 }
 0x7e1   : > { %v5843_v4 = vsel %vm5842_vm4, %v5817_v12, %v5841_v28 }
 0x7e2   : > { %5849 = vst.msk [vmem:[%s408_s23] sm:$0x3] %vm5847_vm8, %v5843_v4 }
 0x7e3   : > { %6204 = shalt.err (!%p6201_p7)
}
 0x7e4   : > { %6082 = dma.vmem_to_hbm [thread:$0]  (%p6368_p11), %s5864_s16, 32, %s5866_s28, %s5851_s10  }
 0x7e5 PF: > { %s5877_s27 = sand.u32 1, %s6231_s19   ;;  %p6089_p8 = pnand %p5938_p9, %p6372_p12 }
 0x7e6   : > { %s5878_s29 = scalar_lea.sflag [#allocation5], %s5877_s27 }
 0x7e7   : > { %p6090_p10 = pneg %p6089_p8 }
 0x7e9   : > { %6226 = dma.done.wait (%p6090_p10), %s5878_s29, 32  }
 0x7ea   : > { %6228 = vsyncadd (%p6090_p10), %s5878_s29, 4294967264  ;;  %s11667_s22 = sld [smem:[#allocation10_spill]]  ;;  %s11670_s19 = smov %s6235_s20 }
 0x7eb   : > { %s11668_s25 = sld [smem:[#allocation9_spill]] }
 0x7ec   : > { %s11669_s21 = sld [smem:[#allocation11_spill]] }
 0x7f0   : > { %p26_p1 = scmp.ge.s32.totalorder %s11667_s22, 4  }
 0x7f1   : > { %s11671_s20 = smov %s11668_s25 }
 0x7f2   :  { %28 = sbr.rel (!%p26_p1) target bundleno = 8 (0x8), region = 109 }
 0x7f7   :  { %5884 = vsyncpa [#allocation4], 1 }
 0x7f8   :  { %5886 = vsyncpa [#allocation4 + $0x1], 1 }
 0x7f9   :  { %5887 = vsyncpa [#allocation5], 1 }
 0x7fa   :  { %5889 = vsyncpa [#allocation5 + $0x1], 1 }

</bundles_post_ra>
